<compile_context>
chip_gen: v7x
topology: tpu7x:2x2x1
jax: 0.10.0
libtpu: 0.0.40
codegen_flags: <defaults>
</compile_context>

<pallas_src>
import math
import functools

import jax
import jax.numpy as jnp
from jax.experimental import pallas as pl
from jax.experimental.pallas import tpu as pltpu


def _decoder_layer_kernel(
    x_ref, e_ref, eg_ref, sbias_ref, tbias_ref,
    wqkv_s_ref, bqkv_s_ref,          # self-attn fused in-proj   (D,3D) bf16, (1,3D) f32
    wq_c_ref, bq_c_ref,              # cross-attn Q proj         (2,D,D) bf16, (2,D)
    wkv_c_ref, bkv_c_ref,            # cross-attn fused K/V proj (2,D,2D) bf16, (2,2D)
    wo_ref, bo_ref,                  # out-proj                  (3,D,D) bf16, (3,D)
    wup_ref, bup_ref, wdown_ref, bdown_ref,   # FFNs (bf16 weights, f32 biases)
    nw_ref, nb_ref,                  # 5 Norm layers             (5,D), (5,D)
    out_ref,
    *, heads: int, d_model: int, eps: float,
):
  bt, lq, _ = x_ref.shape
  lk = e_ref.shape[1]
  lg = eg_ref.shape[1]
  d_k = d_model // heads
  scale = 1.0 / math.sqrt(d_k)
  f32 = jnp.float32
  bf16 = jnp.bfloat16

  # Flatten the batch tile: per-token ops become one large (Bt*L, D) slab.
  # (Lq/Lk/Lg are multiples of 8, so these reshapes are free re-tilings.)
  x = x_ref[...].reshape(bt * lq, d_model)
  e = e_ref[...].reshape(bt * lk, d_model)
  eg = eg_ref[...].reshape(bt * lg, d_model)

  src_bias = sbias_ref[...]          # additive mask bias (already * -1e9), f32
  trg_bias = tbias_ref[...]

  def bdot(a_f32, w_bf16):
    # bf16 x bf16 -> f32 accumulation on the MXU.
    return jnp.dot(a_f32.astype(bf16), w_bf16, preferred_element_type=f32)

  def norm(h, idx):
    # Matches PyTorch Norm: torch.std is unbiased (ddof=1), eps added to std.
    w = nw_ref[idx:idx + 1, :]
    b = nb_ref[idx:idx + 1, :]
    mean = jnp.mean(h, axis=-1, keepdims=True)
    diff = h - mean
    var = jnp.sum(diff * diff, axis=-1, keepdims=True) * (1.0 / (d_model - 1))
    inv = pl.reciprocal(jnp.sqrt(var) + eps, approx=False)   # EUP, not VALU divide
    return w * (diff * inv) + b

  def split_heads(t2d, seq_len):
    # (Bt*L, D) -> (heads*Bt, L, d_k) via lane slices + leading-axis stack.
    parts = [t2d[:, h * d_k:(h + 1) * d_k] for h in range(heads)]
    st = jnp.stack(parts, axis=0)                     # (H, Bt*L, dk)
    return st.reshape(heads * bt, seq_len, d_k)

  def attend(q2d, k2d, v2d, lq_, lkv_, bias, slot, o_idx):
    qh = split_heads((q2d * scale).astype(bf16), lq_)   # (H*Bt, Lq, dk)
    kh = split_heads(k2d.astype(bf16), lkv_)             # (H*Bt, Lkv, dk)
    vh = split_heads(v2d.astype(bf16), lkv_)             # (H*Bt, Lkv, dk)

    # One batched bf16 matmul for all heads/batch; scores accumulate in f32.
    scores = jnp.einsum('bqd,bkd->bqk', qh, kh,
                        preferred_element_type=f32)       # (H*Bt, Lq, Lkv)
    if bias is not None:
      scores = scores + bias[None, :, :]                  # additive -1e9 mask

    if slot:
      # slot_attention: softmax over the *query* axis, then row-normalize.
      m = jnp.max(scores, axis=-2, keepdims=True)
      ex = jnp.exp(scores - m)
      sm = ex * pl.reciprocal(jnp.sum(ex, axis=-2, keepdims=True), approx=True)
      sm = sm * pl.reciprocal(jnp.sum(sm, axis=-1, keepdims=True), approx=False)
    else:
      m = jnp.max(scores, axis=-1, keepdims=True)
      ex = jnp.exp(scores - m)
      sm = ex * pl.reciprocal(jnp.sum(ex, axis=-1, keepdims=True), approx=True)

    ctx = jnp.einsum('bqk,bkd->bqd', sm.astype(bf16), vh,
                     preferred_element_type=f32)          # (H*Bt, Lq, dk)
    # Concatenate heads back on the lane dim -> (N, D): the out-projection then
    # is ONE K=D contraction that fills the MXU (no per-head matmul + sum).
    ctx = ctx.reshape(heads, bt * lq_, d_k).astype(bf16)
    ctx_cat = jnp.concatenate([ctx[h] for h in range(heads)], axis=-1)  # (N, D)

    out = jnp.dot(ctx_cat, wo_ref[o_idx], preferred_element_type=f32)
    return out + bo_ref[o_idx:o_idx + 1, :]

  def ffn(h, idx):
    hid = jnp.maximum(bdot(h, wup_ref[idx]) + bup_ref[idx:idx + 1, :], 0.0)
    return bdot(hid, wdown_ref[idx]) + bdown_ref[idx:idx + 1, :]

  # Dropout modules are inference-mode identities.
  # ---- 1. self attention (fused QKV projection) -----------------------------
  qkv = bdot(x, wqkv_s_ref[...]) + bqkv_s_ref[...]
  q = qkv[:, :d_model]
  k = qkv[:, d_model:2 * d_model]
  v = qkv[:, 2 * d_model:]
  x1 = norm(x + attend(q, k, v, lq, lq, None, False, 0), 0)

  # ---- 2. slot cross attention over e_outputs (fused K/V projection) --------
  q = bdot(x1, wq_c_ref[0]) + bq_c_ref[0:1, :]
  kv = bdot(e, wkv_c_ref[0]) + bkv_c_ref[0:1, :]
  x2 = norm(x1 + attend(q, kv[:, :d_model], kv[:, d_model:], lq, lk,
                        src_bias, True, 1), 1)

  # ---- 3. feed-forward 1 -----------------------------------------------------
  x3 = norm(x2 + ffn(x2, 0), 2)

  # ---- 4. slot cross attention over e_outputs_global ------------------------
  q = bdot(x3, wq_c_ref[1]) + bq_c_ref[1:2, :]
  kv = bdot(eg, wkv_c_ref[1]) + bkv_c_ref[1:2, :]
  x4 = norm(x3 + attend(q, kv[:, :d_model], kv[:, d_model:], lq, lg,
                        trg_bias, True, 2), 3)

  # ---- 5. feed-forward 2 -----------------------------------------------------
  x5 = norm(x4 + ffn(x4, 1), 4)

  out_ref[...] = x5.reshape(bt, lq, d_model)


def _tpu_kind():
  try:
    return jax.devices()[0].device_kind.lower()
  except Exception:
    return ""


def _pick_batch_tile(B, Lq, Lk, Lg, D, d_ff, kind):
  """Generation-aware tile: one big tile on single-TC chips, even grid on
  multi-TC chips, capped by a rough f32 activation-footprint budget."""
  is_v7 = ("v7" in kind) or ("7x" in kind)
  multi_tc = is_v7 or ("v4" in kind) or ("v5p" in kind)
  budget = (40 if is_v7 else 80) * 1024 * 1024
  want = B // 2 if (multi_tc and B % 2 == 0) else B

  def fits(bt):
    n = bt * Lq
    # FFN hidden (largest live temp) + several (N, D) slabs + projected enc slabs.
    act = 4 * (n * d_ff + 10 * n * D + 3 * bt * (Lk + Lg) * D)
    return act <= budget

  bt = max(want, 1)
  while bt > 1 and (B % bt != 0 or not fits(bt)):
    bt -= 1
  return max(bt, 1)


def _vmem_limit_bytes(kind):
  if ("v7" in kind) or ("7x" in kind):
    return 48 * 1024 * 1024          # v7x: 64 MiB physical per TC
  if any(t in kind for t in ("v4", "v5", "v6")):
    return 100 * 1024 * 1024         # 128 MiB physical
  return 32 * 1024 * 1024


def decoder_layer_double_slot(x, e, eg, src_mask, trg_mask, params, *, heads,
                              batch_tile=None):
  B, Lq, D = x.shape
  Lk = e.shape[1]
  Lg = eg.shape[1]
  d_ff = params["wup"].shape[-1]

  kind = _tpu_kind()
  if batch_tile is None:
    batch_tile = _pick_batch_tile(B, Lq, Lk, Lg, D, d_ff, kind)
  assert B % batch_tile == 0
  num_tiles = B // batch_tile

  f32 = jnp.float32
  bf16 = jnp.bfloat16

  # Additive mask bias precomputed in the wrapper (1 = masked -> -1e9).
  src_bias = src_mask.astype(f32) * jnp.float32(-1e9)
  trg_bias = trg_mask.astype(f32) * jnp.float32(-1e9)

  # Pre-split / pre-cast weights (bf16); biases / norm params stay f32.
  wqkv, bqkv = params["wqkv"], params["bqkv"]          # (3,D,3D), (3,3D)
  wqkv_self = wqkv[0].astype(bf16)                     # (D, 3D)  fused QKV
  bqkv_self = bqkv[0:1]                                # (1, 3D)
  wq_cross = wqkv[1:, :, :D].astype(bf16)              # (2, D, D)
  bq_cross = bqkv[1:, :D]                              # (2, D)
  wkv_cross = wqkv[1:, :, D:].astype(bf16)             # (2, D, 2D) fused K/V
  bkv_cross = bqkv[1:, D:]                             # (2, 2D)
  wo = params["wo"].astype(bf16)                       # (3, D, D)
  wup = params["wup"].astype(bf16)                     # (2, D, d_ff)
  wdown = params["wdown"].astype(bf16)                 # (2, d_ff, D)

  kernel = functools.partial(
      _decoder_layer_kernel, heads=heads, d_model=D, eps=1e-5)

  def make_call(single_buffer_weights):
    def full_spec(shape):
      rank = len(shape)
      idx_map = lambda i, _r=rank: (0,) * _r
      if single_buffer_weights:
        # Constant index map across the grid -> single-buffer these blocks.
        return pl.BlockSpec(shape, idx_map, pipeline_mode=pl.Buffered(1))
      return pl.BlockSpec(shape, idx_map)

    def batched(L):
      return pl.BlockSpec((batch_tile, L, D), lambda i: (i, 0, 0))

    in_specs = [
        batched(Lq), batched(Lk), batched(Lg),
        full_spec((Lq, Lk)), full_spec((Lq, Lg)),
        full_spec((D, 3 * D)), full_spec((1, 3 * D)),
        full_spec((2, D, D)), full_spec((2, D)),
        full_spec((2, D, 2 * D)), full_spec((2, 2 * D)),
        full_spec((3, D, D)), full_spec((3, D)),
        full_spec((2, D, d_ff)), full_spec((2, d_ff)),
        full_spec((2, d_ff, D)), full_spec((2, D)),
        full_spec((5, D)), full_spec((5, D)),
    ]
    out_spec = pl.BlockSpec((batch_tile, Lq, D), lambda i: (i, 0, 0))

    return pl.pallas_call(
        kernel,
        out_shape=jax.ShapeDtypeStruct((B, Lq, D), f32),
        grid=(num_tiles,),
        in_specs=in_specs,
        out_specs=out_spec,
        compiler_params=pltpu.CompilerParams(
            dimension_semantics=("parallel",),
            vmem_limit_bytes=_vmem_limit_bytes(kind)),
    )

  args = (x, e, eg, src_bias, trg_bias,
          wqkv_self, bqkv_self, wq_cross, bq_cross, wkv_cross, bkv_cross,
          wo, params["bo"], wup, params["bup"], wdown, params["bdown"],
          params["nw"], params["nb"])

  try_single = num_tiles > 1
  try:
    return jax.block_until_ready(make_call(try_single)(*args))
  except Exception:
    if not try_single:
      raise
    # Fallback: installed JAX may not support pipeline_mode=pl.Buffered(1).
    return jax.block_until_ready(make_call(False)(*args))


def _reference_forward(x, e, eg, src_mask, trg_mask, p, heads):
  """Pure-JAX f32 mirror of the PyTorch forward (semantic reference)."""
  D = x.shape[-1]
  dk = D // heads

  def norm(h, i):
    w, b = p["nw"][i], p["nb"][i]
    mean = h.mean(-1, keepdims=True)
    var = ((h - mean) ** 2).sum(-1, keepdims=True) / (D - 1)
    return w * (h - mean) / (jnp.sqrt(var) + 1e-5) + b

  def mha(q_in, kv_in, i, mask, slot):
    wqkv, bqkv, wo, bo = p["wqkv"][i], p["bqkv"][i], p["wo"][i], p["bo"][i]
    q = q_in @ wqkv[:, :D] + bqkv[:D]
    k = kv_in @ wqkv[:, D:2 * D] + bqkv[D:2 * D]
    v = kv_in @ wqkv[:, 2 * D:] + bqkv[2 * D:]
    B, Lq, _ = q.shape
    Lkv = k.shape[1]
    qh = q.reshape(B, Lq, heads, dk).transpose(0, 2, 1, 3)
    kh = k.reshape(B, Lkv, heads, dk).transpose(0, 2, 1, 3)
    vh = v.reshape(B, Lkv, heads, dk).transpose(0, 2, 1, 3)
    s = jnp.einsum("bhqd,bhkd->bhqk", qh, kh) / math.sqrt(dk)
    if mask is not None:
      s = jnp.where(mask[None, None] == 1.0, -1e9, s)
    if slot:
      s = jax.nn.softmax(s, axis=-2)
      s = s / s.sum(-1, keepdims=True)
    else:
      s = jax.nn.softmax(s, axis=-1)
    o = jnp.einsum("bhqk,bhkd->bhqd", s, vh).transpose(0, 2, 1, 3)
    return o.reshape(B, Lq, D) @ wo + bo

  def ffn(h, i):
    hid = jnp.maximum(h @ p["wup"][i] + p["bup"][i], 0.0)
    return hid @ p["wdown"][i] + p["bdown"][i]

  x = norm(x + mha(x, x, 0, None, False), 0)
  x = norm(x + mha(x, e, 1, src_mask, True), 1)
  x = norm(x + ffn(x, 0), 2)
  x = norm(x + mha(x, eg, 2, trg_mask, True), 3)
  x = norm(x + ffn(x, 1), 4)
  return x


def _matched_reference(x, e, eg, src_bias, trg_bias, p, heads):
  """Mirror of the kernel's bf16-operand / f32-accumulate math (exact softmax)."""
  D = x.shape[-1]
  dk = D // heads
  bf, f32 = jnp.bfloat16, jnp.float32

  def mm(a, b):
    return jnp.dot(a.astype(bf), b.astype(bf), preferred_element_type=f32)

  def norm(h, i):
    w, b = p["nw"][i], p["nb"][i]
    mean = h.mean(-1, keepdims=True)
    diff = h - mean
    var = (diff ** 2).sum(-1, keepdims=True) / (D - 1)
    return w * diff / (jnp.sqrt(var) + 1e-5) + b

  def split(t, B, L):
    return t.reshape(B, L, heads, dk).transpose(0, 2, 1, 3)

  def mha(q_in, kv_in, i, bias, slot):
    wqkv, bqkv, wo, bo = p["wqkv"][i], p["bqkv"][i], p["wo"][i], p["bo"][i]
    q = mm(q_in, wqkv[:, :D]) + bqkv[:D]
    k = mm(kv_in, wqkv[:, D:2 * D]) + bqkv[D:2 * D]
    v = mm(kv_in, wqkv[:, 2 * D:]) + bqkv[2 * D:]
    B, Lq, _ = q.shape
    Lkv = k.shape[1]
    qh = split(q * (1.0 / math.sqrt(dk)), B, Lq).astype(bf)
    kh = split(k, B, Lkv).astype(bf)
    vh = split(v, B, Lkv).astype(bf)
    s = jnp.einsum("bhqd,bhkd->bhqk", qh, kh, preferred_element_type=f32)
    if bias is not None:
      s = s + bias[None, None]
    if slot:
      s = jax.nn.softmax(s, axis=-2)
      s = s / s.sum(-1, keepdims=True)
    else:
      s = jax.nn.softmax(s, axis=-1)
    o = jnp.einsum("bhqk,bhkd->bhqd", s.astype(bf), vh,
                   preferred_element_type=f32).transpose(0, 2, 1, 3)
    return mm(o.reshape(B, Lq, D), wo) + bo

  def ffn(h, i):
    hid = jnp.maximum(mm(h, p["wup"][i]) + p["bup"][i], 0.0)
    return mm(hid, p["wdown"][i]) + p["bdown"][i]

  x = norm(x + mha(x, x, 0, None, False), 0)
  x = norm(x + mha(x, e, 1, src_bias, True), 1)
  x = norm(x + ffn(x, 0), 2)
  x = norm(x + mha(x, eg, 2, trg_bias, True), 3)
  x = norm(x + ffn(x, 1), 4)
  return x


def _init_params(key, d_model, d_ff):
  ks = jax.random.split(key, 12)
  f32 = jnp.float32
  a_qkv = math.sqrt(6.0 / (4 * d_model))
  a_lin = math.sqrt(6.0 / (2 * d_model))
  a_up = math.sqrt(6.0 / (d_model + d_ff))
  return {
      "wqkv": jax.random.uniform(ks[0], (3, d_model, 3 * d_model), f32, -a_qkv, a_qkv),
      "bqkv": 0.01 * jax.random.normal(ks[1], (3, 3 * d_model), f32),
      "wo":   jax.random.uniform(ks[2], (3, d_model, d_model), f32, -a_lin, a_lin),
      "bo":   0.01 * jax.random.normal(ks[3], (3, d_model), f32),
      "wup":  jax.random.uniform(ks[4], (2, d_model, d_ff), f32, -a_up, a_up),
      "bup":  0.01 * jax.random.normal(ks[5], (2, d_ff), f32),
      "wdown": jax.random.uniform(ks[6], (2, d_ff, d_model), f32, -a_up, a_up),
      "bdown": 0.01 * jax.random.normal(ks[7], (2, d_model), f32),
      "nw":   1.0 + 0.05 * jax.random.normal(ks[8], (5, d_model), f32),
      "nb":   0.05 * jax.random.normal(ks[9], (5, d_model), f32),
  }


if __name__ == "__main__":
  # Lane-dense demo shapes: d_model = 128 fills the 128-lane vregs; sequence
  # lengths are multiples of 8 so the flattening reshapes are free re-tilings.
  B, Lq, Lk, Lg = 4, 8, 16, 8
  D, HEADS, DFF = 128, 4, 256

  key = jax.random.PRNGKey(0)
  kx, ke, kg, kp = jax.random.split(key, 4)

  x = jax.random.normal(kx, (B, Lq, D), jnp.float32)
  e_outputs = jax.random.normal(ke, (B, Lk, D), jnp.float32)
  e_outputs_global = jax.random.normal(kg, (B, Lg, D), jnp.float32)

  # Binary masks (1 = masked). Deterministic pattern, no fully-masked rows.
  qi = jnp.arange(Lq)[:, None]
  src_mask = ((qi + jnp.arange(Lk)[None, :]) % 4 == 0).astype(jnp.float32)
  trg_mask = ((qi + jnp.arange(Lg)[None, :]) % 3 == 0).astype(jnp.float32)

  params = _init_params(kp, D, DFF)

  out = decoder_layer_double_slot(
      x, e_outputs, e_outputs_global, src_mask, trg_mask, params, heads=HEADS)
  out = jax.block_until_ready(out)

  src_bias = src_mask * jnp.float32(-1e9)
  trg_bias = trg_mask * jnp.float32(-1e9)
  ref_matched = jax.block_until_ready(
      _matched_reference(x, e_outputs, e_outputs_global, src_bias, trg_bias,
                         params, HEADS))
  ref_f32 = jax.block_until_ready(
      _reference_forward(x, e_outputs, e_outputs_global, src_mask, trg_mask,
                         params, HEADS))

  assert out.shape == (B, Lq, D)
  assert bool(jnp.all(jnp.isfinite(out)))
  err_matched = float(jnp.max(jnp.abs(out - ref_matched)))   # structural check
  err_f32 = float(jnp.max(jnp.abs(out - ref_f32)))           # bf16 vs f32 drift
  assert err_matched < 2e-2, err_matched
  assert err_f32 < 1.5e-1, err_f32

  print("KERNEL_OK")
</pallas_src>

<mosaic_0001>
module attributes {stable_mosaic.version = 11 : i64} {
  func.func @_decoder_layer_kernel(%arg0: i32, %arg1: memref<4x8x128xf32, #tpu.memory_space<vmem>>, %arg2: memref<4x16x128xf32, #tpu.memory_space<vmem>>, %arg3: memref<4x8x128xf32, #tpu.memory_space<vmem>>, %arg4: memref<8x16xf32, #tpu.memory_space<vmem>>, %arg5: memref<8x8xf32, #tpu.memory_space<vmem>>, %arg6: memref<128x384xbf16, #tpu.memory_space<vmem>>, %arg7: memref<1x384xf32, #tpu.memory_space<vmem>>, %arg8: memref<2x128x128xbf16, #tpu.memory_space<vmem>>, %arg9: memref<2x128xf32, #tpu.memory_space<vmem>>, %arg10: memref<2x128x256xbf16, #tpu.memory_space<vmem>>, %arg11: memref<2x256xf32, #tpu.memory_space<vmem>>, %arg12: memref<3x128x128xbf16, #tpu.memory_space<vmem>>, %arg13: memref<3x128xf32, #tpu.memory_space<vmem>>, %arg14: memref<2x128x256xbf16, #tpu.memory_space<vmem>>, %arg15: memref<2x256xf32, #tpu.memory_space<vmem>>, %arg16: memref<2x256x128xbf16, #tpu.memory_space<vmem>>, %arg17: memref<2x128xf32, #tpu.memory_space<vmem>>, %arg18: memref<5x128xf32, #tpu.memory_space<vmem>>, %arg19: memref<5x128xf32, #tpu.memory_space<vmem>>, %arg20: memref<4x8x128xf32, #tpu.memory_space<vmem>>) attributes {dimension_semantics = [#tpu.dimension_semantics<parallel>], iteration_bounds = array<i64: 1>, scalar_prefetch = 0 : i64, scratch_operands = 0 : i64, tpu.core_type = #tpu.core_type<tc>, window_params = [{transform_indices = @transform_0, window_bounds = array<i64: 4, 8, 128>}, {transform_indices = @transform_1, window_bounds = array<i64: 4, 16, 128>}, {transform_indices = @transform_2, window_bounds = array<i64: 4, 8, 128>}, {pipeline_mode = #tpu.pipeline_mode<synchronous>, transform_indices = @transform_3, window_bounds = array<i64: 8, 16>}, {pipeline_mode = #tpu.pipeline_mode<synchronous>, transform_indices = @transform_4, window_bounds = array<i64: 8, 8>}, {pipeline_mode = #tpu.pipeline_mode<synchronous>, transform_indices = @transform_5, window_bounds = array<i64: 128, 384>}, {pipeline_mode = #tpu.pipeline_mode<synchronous>, transform_indices = @transform_6, window_bounds = array<i64: 1, 384>}, {pipeline_mode = #tpu.pipeline_mode<synchronous>, transform_indices = @transform_7, window_bounds = array<i64: 2, 128, 128>}, {pipeline_mode = #tpu.pipeline_mode<synchronous>, transform_indices = @transform_8, window_bounds = array<i64: 2, 128>}, {pipeline_mode = #tpu.pipeline_mode<synchronous>, transform_indices = @transform_9, window_bounds = array<i64: 2, 128, 256>}, {pipeline_mode = #tpu.pipeline_mode<synchronous>, transform_indices = @transform_10, window_bounds = array<i64: 2, 256>}, {pipeline_mode = #tpu.pipeline_mode<synchronous>, transform_indices = @transform_11, window_bounds = array<i64: 3, 128, 128>}, {pipeline_mode = #tpu.pipeline_mode<synchronous>, transform_indices = @transform_12, window_bounds = array<i64: 3, 128>}, {pipeline_mode = #tpu.pipeline_mode<synchronous>, transform_indices = @transform_13, window_bounds = array<i64: 2, 128, 256>}, {pipeline_mode = #tpu.pipeline_mode<synchronous>, transform_indices = @transform_14, window_bounds = array<i64: 2, 256>}, {pipeline_mode = #tpu.pipeline_mode<synchronous>, transform_indices = @transform_15, window_bounds = array<i64: 2, 256, 128>}, {pipeline_mode = #tpu.pipeline_mode<synchronous>, transform_indices = @transform_16, window_bounds = array<i64: 2, 128>}, {pipeline_mode = #tpu.pipeline_mode<synchronous>, transform_indices = @transform_17, window_bounds = array<i64: 5, 128>}, {pipeline_mode = #tpu.pipeline_mode<synchronous>, transform_indices = @transform_18, window_bounds = array<i64: 5, 128>}, {transform_indices = @transform_19, window_bounds = array<i64: 4, 8, 128>}]} {
    %c0 = arith.constant 0 : index
    %c0_0 = arith.constant 0 : index
    %c0_1 = arith.constant 0 : index
    %0 = vector.load %arg1[%c0, %c0_0, %c0_1] : memref<4x8x128xf32, #tpu.memory_space<vmem>>, vector<4x8x128xf32>
    %1 = vector.shape_cast %0 : vector<4x8x128xf32> to vector<32x128xf32>
    %c0_2 = arith.constant 0 : index
    %c0_3 = arith.constant 0 : index
    %c0_4 = arith.constant 0 : index
    %2 = vector.load %arg2[%c0_2, %c0_3, %c0_4] : memref<4x16x128xf32, #tpu.memory_space<vmem>>, vector<4x16x128xf32>
    %3 = vector.shape_cast %2 : vector<4x16x128xf32> to vector<64x128xf32>
    %c0_5 = arith.constant 0 : index
    %c0_6 = arith.constant 0 : index
    %c0_7 = arith.constant 0 : index
    %4 = vector.load %arg3[%c0_5, %c0_6, %c0_7] : memref<4x8x128xf32, #tpu.memory_space<vmem>>, vector<4x8x128xf32>
    %5 = vector.shape_cast %4 : vector<4x8x128xf32> to vector<32x128xf32>
    %c0_8 = arith.constant 0 : index
    %c0_9 = arith.constant 0 : index
    %6 = vector.load %arg4[%c0_8, %c0_9] : memref<8x16xf32, #tpu.memory_space<vmem>>, vector<8x16xf32>
    %c0_10 = arith.constant 0 : index
    %c0_11 = arith.constant 0 : index
    %7 = vector.load %arg5[%c0_10, %c0_11] : memref<8x8xf32, #tpu.memory_space<vmem>>, vector<8x8xf32>
    %c0_12 = arith.constant 0 : index
    %c0_13 = arith.constant 0 : index
    %8 = vector.load %arg6[%c0_12, %c0_13] : memref<128x384xbf16, #tpu.memory_space<vmem>>, vector<128x384xbf16>
    %9 = arith.truncf %1 : vector<32x128xf32> to vector<32x128xbf16>
    %cst = arith.constant dense<0.000000e+00> : vector<32x384xf32>
    %10 = tpu.matmul %9, %8, %cst {dimension_numbers = #tpu.dot_dimension_numbers<[1], [0], [0], [1], [0, 0, 1, 1], [], []>} : vector<32x128xbf16>, vector<128x384xbf16>, vector<32x384xf32> -> vector<32x384xf32>
    %c0_14 = arith.constant 0 : index
    %c0_15 = arith.constant 0 : index
    %11 = vector.load %arg7[%c0_14, %c0_15] : memref<1x384xf32, #tpu.memory_space<vmem>>, vector<1x384xf32>
    %12 = vector.broadcast %11 : vector<1x384xf32> to vector<32x384xf32>
    %13 = arith.addf %10, %12 : vector<32x384xf32>
    %14 = vector.extract_strided_slice %13 {offsets = [0, 0], sizes = [32, 128], strides = [1, 1]} : vector<32x384xf32> to vector<32x128xf32>
    %15 = vector.extract_strided_slice %13 {offsets = [0, 128], sizes = [32, 128], strides = [1, 1]} : vector<32x384xf32> to vector<32x128xf32>
    %16 = vector.extract_strided_slice %13 {offsets = [0, 256], sizes = [32, 128], strides = [1, 1]} : vector<32x384xf32> to vector<32x128xf32>
    %cst_16 = arith.constant 0.176776692 : f32
    %17 = vector.broadcast %cst_16 : f32 to vector<32x128xf32>
    %18 = arith.mulf %14, %17 : vector<32x128xf32>
    %19 = arith.truncf %18 : vector<32x128xf32> to vector<32x128xbf16>
    %20 = vector.extract_strided_slice %19 {offsets = [0, 0], sizes = [32, 32], strides = [1, 1]} : vector<32x128xbf16> to vector<32x32xbf16>
    %21 = vector.extract_strided_slice %19 {offsets = [0, 32], sizes = [32, 32], strides = [1, 1]} : vector<32x128xbf16> to vector<32x32xbf16>
    %22 = vector.extract_strided_slice %19 {offsets = [0, 64], sizes = [32, 32], strides = [1, 1]} : vector<32x128xbf16> to vector<32x32xbf16>
    %23 = vector.extract_strided_slice %19 {offsets = [0, 96], sizes = [32, 32], strides = [1, 1]} : vector<32x128xbf16> to vector<32x32xbf16>
    %24 = vector.shape_cast %20 : vector<32x32xbf16> to vector<1x32x32xbf16>
    %25 = vector.shape_cast %21 : vector<32x32xbf16> to vector<1x32x32xbf16>
    %26 = vector.shape_cast %22 : vector<32x32xbf16> to vector<1x32x32xbf16>
    %27 = vector.shape_cast %23 : vector<32x32xbf16> to vector<1x32x32xbf16>
    %28 = tpu.concatenate %24, %25, %26, %27 in 0 : vector<1x32x32xbf16>, vector<1x32x32xbf16>, vector<1x32x32xbf16>, vector<1x32x32xbf16> -> vector<4x32x32xbf16>
    %29 = vector.shape_cast %28 : vector<4x32x32xbf16> to vector<16x8x32xbf16>
    %30 = arith.truncf %15 : vector<32x128xf32> to vector<32x128xbf16>
    %31 = vector.extract_strided_slice %30 {offsets = [0, 0], sizes = [32, 32], strides = [1, 1]} : vector<32x128xbf16> to vector<32x32xbf16>
    %32 = vector.extract_strided_slice %30 {offsets = [0, 32], sizes = [32, 32], strides = [1, 1]} : vector<32x128xbf16> to vector<32x32xbf16>
    %33 = vector.extract_strided_slice %30 {offsets = [0, 64], sizes = [32, 32], strides = [1, 1]} : vector<32x128xbf16> to vector<32x32xbf16>
    %34 = vector.extract_strided_slice %30 {offsets = [0, 96], sizes = [32, 32], strides = [1, 1]} : vector<32x128xbf16> to vector<32x32xbf16>
    %35 = vector.shape_cast %31 : vector<32x32xbf16> to vector<1x32x32xbf16>
    %36 = vector.shape_cast %32 : vector<32x32xbf16> to vector<1x32x32xbf16>
    %37 = vector.shape_cast %33 : vector<32x32xbf16> to vector<1x32x32xbf16>
    %38 = vector.shape_cast %34 : vector<32x32xbf16> to vector<1x32x32xbf16>
    %39 = tpu.concatenate %35, %36, %37, %38 in 0 : vector<1x32x32xbf16>, vector<1x32x32xbf16>, vector<1x32x32xbf16>, vector<1x32x32xbf16> -> vector<4x32x32xbf16>
    %40 = vector.shape_cast %39 : vector<4x32x32xbf16> to vector<16x8x32xbf16>
    %41 = arith.truncf %16 : vector<32x128xf32> to vector<32x128xbf16>
    %42 = vector.extract_strided_slice %41 {offsets = [0, 0], sizes = [32, 32], strides = [1, 1]} : vector<32x128xbf16> to vector<32x32xbf16>
    %43 = vector.extract_strided_slice %41 {offsets = [0, 32], sizes = [32, 32], strides = [1, 1]} : vector<32x128xbf16> to vector<32x32xbf16>
    %44 = vector.extract_strided_slice %41 {offsets = [0, 64], sizes = [32, 32], strides = [1, 1]} : vector<32x128xbf16> to vector<32x32xbf16>
    %45 = vector.extract_strided_slice %41 {offsets = [0, 96], sizes = [32, 32], strides = [1, 1]} : vector<32x128xbf16> to vector<32x32xbf16>
    %46 = vector.shape_cast %42 : vector<32x32xbf16> to vector<1x32x32xbf16>
    %47 = vector.shape_cast %43 : vector<32x32xbf16> to vector<1x32x32xbf16>
    %48 = vector.shape_cast %44 : vector<32x32xbf16> to vector<1x32x32xbf16>
    %49 = vector.shape_cast %45 : vector<32x32xbf16> to vector<1x32x32xbf16>
    %50 = tpu.concatenate %46, %47, %48, %49 in 0 : vector<1x32x32xbf16>, vector<1x32x32xbf16>, vector<1x32x32xbf16>, vector<1x32x32xbf16> -> vector<4x32x32xbf16>
    %51 = vector.shape_cast %50 : vector<4x32x32xbf16> to vector<16x8x32xbf16>
    "tpu.trace_start"() <{level = 10 : i32, message = "bqd,bkd->bqk"}> : () -> ()
    %cst_17 = arith.constant dense<0.000000e+00> : vector<16x8x8xf32>
    %52 = tpu.matmul %29, %40, %cst_17 {dimension_numbers = #tpu.dot_dimension_numbers<[2], [2], [1], [1], [0, 0, 0, 1, 1, 1], [0], [0]>} : vector<16x8x32xbf16>, vector<16x8x32xbf16>, vector<16x8x8xf32> -> vector<16x8x8xf32>
    "tpu.trace_stop"() : () -> ()
    %cst_18 = arith.constant dense<0xFF800000> : vector<16x8xf32>
    %53 = vector.multi_reduction <maximumf>, %52, %cst_18 [2] : vector<16x8x8xf32> to vector<16x8xf32>
    %54 = vector.shape_cast %53 : vector<16x8xf32> to vector<16x8x1xf32>
    %55 = vector.broadcast %54 : vector<16x8x1xf32> to vector<16x8x8xf32>
    %56 = arith.subf %52, %55 : vector<16x8x8xf32>
    %57 = math.exp %56 : vector<16x8x8xf32>
    %cst_19 = arith.constant dense<0.000000e+00> : vector<16x8xf32>
    %58 = vector.multi_reduction <add>, %57, %cst_19 [2] : vector<16x8x8xf32> to vector<16x8xf32>
    %59 = vector.shape_cast %58 : vector<16x8xf32> to vector<16x8x1xf32>
    %60 = tpu.reciprocal %59 {approx = true} : vector<16x8x1xf32> -> vector<16x8x1xf32>
    %61 = vector.broadcast %60 : vector<16x8x1xf32> to vector<16x8x8xf32>
    %62 = arith.mulf %57, %61 : vector<16x8x8xf32>
    %63 = arith.truncf %62 : vector<16x8x8xf32> to vector<16x8x8xbf16>
    "tpu.trace_start"() <{level = 10 : i32, message = "bqk,bkd->bqd"}> : () -> ()
    %cst_20 = arith.constant dense<0.000000e+00> : vector<16x8x32xf32>
    %64 = tpu.matmul %63, %51, %cst_20 {dimension_numbers = #tpu.dot_dimension_numbers<[2], [1], [1], [2], [0, 0, 0, 1, 1, 2], [0], [0]>} : vector<16x8x8xbf16>, vector<16x8x32xbf16>, vector<16x8x32xf32> -> vector<16x8x32xf32>
    "tpu.trace_stop"() : () -> ()
    %65 = vector.shape_cast %64 : vector<16x8x32xf32> to vector<4x32x32xf32>
    %66 = arith.truncf %65 : vector<4x32x32xf32> to vector<4x32x32xbf16>
    %67 = vector.extract_strided_slice %66 {offsets = [0, 0, 0], sizes = [1, 32, 32], strides = [1, 1, 1]} : vector<4x32x32xbf16> to vector<1x32x32xbf16>
    %68 = vector.shape_cast %67 : vector<1x32x32xbf16> to vector<32x32xbf16>
    %69 = vector.extract_strided_slice %66 {offsets = [1, 0, 0], sizes = [1, 32, 32], strides = [1, 1, 1]} : vector<4x32x32xbf16> to vector<1x32x32xbf16>
    %70 = vector.shape_cast %69 : vector<1x32x32xbf16> to vector<32x32xbf16>
    %71 = vector.extract_strided_slice %66 {offsets = [2, 0, 0], sizes = [1, 32, 32], strides = [1, 1, 1]} : vector<4x32x32xbf16> to vector<1x32x32xbf16>
    %72 = vector.shape_cast %71 : vector<1x32x32xbf16> to vector<32x32xbf16>
    %73 = vector.extract_strided_slice %66 {offsets = [3, 0, 0], sizes = [1, 32, 32], strides = [1, 1, 1]} : vector<4x32x32xbf16> to vector<1x32x32xbf16>
    %74 = vector.shape_cast %73 : vector<1x32x32xbf16> to vector<32x32xbf16>
    %75 = tpu.concatenate %68, %70, %72, %74 in 1 : vector<32x32xbf16>, vector<32x32xbf16>, vector<32x32xbf16>, vector<32x32xbf16> -> vector<32x128xbf16>
    %c0_21 = arith.constant 0 : index
    %c0_22 = arith.constant 0 : index
    %c0_23 = arith.constant 0 : index
    %76 = vector.load %arg12[%c0_21, %c0_22, %c0_23] : memref<3x128x128xbf16, #tpu.memory_space<vmem>>, vector<1x128x128xbf16>
    %77 = vector.shape_cast %76 : vector<1x128x128xbf16> to vector<128x128xbf16>
    %cst_24 = arith.constant dense<0.000000e+00> : vector<32x128xf32>
    %78 = tpu.matmul %75, %77, %cst_24 {dimension_numbers = #tpu.dot_dimension_numbers<[1], [0], [0], [1], [0, 0, 1, 1], [], []>} : vector<32x128xbf16>, vector<128x128xbf16>, vector<32x128xf32> -> vector<32x128xf32>
    %c0_25 = arith.constant 0 : index
    %c0_26 = arith.constant 0 : index
    %79 = vector.load %arg13[%c0_25, %c0_26] : memref<3x128xf32, #tpu.memory_space<vmem>>, vector<1x128xf32>
    %80 = vector.broadcast %79 : vector<1x128xf32> to vector<32x128xf32>
    %81 = arith.addf %78, %80 : vector<32x128xf32>
    %82 = arith.addf %1, %81 : vector<32x128xf32>
    %c0_27 = arith.constant 0 : index
    %c0_28 = arith.constant 0 : index
    %83 = vector.load %arg18[%c0_27, %c0_28] : memref<5x128xf32, #tpu.memory_space<vmem>>, vector<1x128xf32>
    %c0_29 = arith.constant 0 : index
    %c0_30 = arith.constant 0 : index
    %84 = vector.load %arg19[%c0_29, %c0_30] : memref<5x128xf32, #tpu.memory_space<vmem>>, vector<1x128xf32>
    %cst_31 = arith.constant dense<0.000000e+00> : vector<32xf32>
    %85 = vector.multi_reduction <add>, %82, %cst_31 [1] : vector<32x128xf32> to vector<32xf32>
    %86 = vector.shape_cast %85 : vector<32xf32> to vector<32x1xf32>
    %cst_32 = arith.constant 1.280000e+02 : f32
    %87 = vector.broadcast %cst_32 : f32 to vector<32x1xf32>
    %88 = arith.divf %86, %87 : vector<32x1xf32>
    %89 = vector.broadcast %88 : vector<32x1xf32> to vector<32x128xf32>
    %90 = arith.subf %82, %89 : vector<32x128xf32>
    %91 = arith.mulf %90, %90 : vector<32x128xf32>
    %cst_33 = arith.constant dense<0.000000e+00> : vector<32xf32>
    %92 = vector.multi_reduction <add>, %91, %cst_33 [1] : vector<32x128xf32> to vector<32xf32>
    %93 = vector.shape_cast %92 : vector<32xf32> to vector<32x1xf32>
    %cst_34 = arith.constant 0.00787401571 : f32
    %94 = vector.broadcast %cst_34 : f32 to vector<32x1xf32>
    %95 = arith.mulf %93, %94 : vector<32x1xf32>
    %96 = math.sqrt %95 : vector<32x1xf32>
    %cst_35 = arith.constant 9.99999974E-6 : f32
    %97 = vector.broadcast %cst_35 : f32 to vector<32x1xf32>
    %98 = arith.addf %96, %97 : vector<32x1xf32>
    %99 = tpu.reciprocal %98 : vector<32x1xf32> -> vector<32x1xf32>
    %100 = vector.broadcast %99 : vector<32x1xf32> to vector<32x128xf32>
    %101 = arith.mulf %90, %100 : vector<32x128xf32>
    %102 = vector.broadcast %83 : vector<1x128xf32> to vector<32x128xf32>
    %103 = arith.mulf %102, %101 : vector<32x128xf32>
    %104 = vector.broadcast %84 : vector<1x128xf32> to vector<32x128xf32>
    %105 = arith.addf %103, %104 : vector<32x128xf32>
    %c0_36 = arith.constant 0 : index
    %c0_37 = arith.constant 0 : index
    %c0_38 = arith.constant 0 : index
    %106 = vector.load %arg8[%c0_36, %c0_37, %c0_38] : memref<2x128x128xbf16, #tpu.memory_space<vmem>>, vector<1x128x128xbf16>
    %107 = vector.shape_cast %106 : vector<1x128x128xbf16> to vector<128x128xbf16>
    %108 = arith.truncf %105 : vector<32x128xf32> to vector<32x128xbf16>
    %cst_39 = arith.constant dense<0.000000e+00> : vector<32x128xf32>
    %109 = tpu.matmul %108, %107, %cst_39 {dimension_numbers = #tpu.dot_dimension_numbers<[1], [0], [0], [1], [0, 0, 1, 1], [], []>} : vector<32x128xbf16>, vector<128x128xbf16>, vector<32x128xf32> -> vector<32x128xf32>
    %c0_40 = arith.constant 0 : index
    %c0_41 = arith.constant 0 : index
    %110 = vector.load %arg9[%c0_40, %c0_41] : memref<2x128xf32, #tpu.memory_space<vmem>>, vector<1x128xf32>
    %111 = vector.broadcast %110 : vector<1x128xf32> to vector<32x128xf32>
    %112 = arith.addf %109, %111 : vector<32x128xf32>
    %c0_42 = arith.constant 0 : index
    %c0_43 = arith.constant 0 : index
    %c0_44 = arith.constant 0 : index
    %113 = vector.load %arg10[%c0_42, %c0_43, %c0_44] : memref<2x128x256xbf16, #tpu.memory_space<vmem>>, vector<1x128x256xbf16>
    %114 = vector.shape_cast %113 : vector<1x128x256xbf16> to vector<128x256xbf16>
    %115 = arith.truncf %3 : vector<64x128xf32> to vector<64x128xbf16>
    %cst_45 = arith.constant dense<0.000000e+00> : vector<64x256xf32>
    %116 = tpu.matmul %115, %114, %cst_45 {dimension_numbers = #tpu.dot_dimension_numbers<[1], [0], [0], [1], [0, 0, 1, 1], [], []>} : vector<64x128xbf16>, vector<128x256xbf16>, vector<64x256xf32> -> vector<64x256xf32>
    %c0_46 = arith.constant 0 : index
    %c0_47 = arith.constant 0 : index
    %117 = vector.load %arg11[%c0_46, %c0_47] : memref<2x256xf32, #tpu.memory_space<vmem>>, vector<1x256xf32>
    %118 = vector.broadcast %117 : vector<1x256xf32> to vector<64x256xf32>
    %119 = arith.addf %116, %118 : vector<64x256xf32>
    %120 = vector.extract_strided_slice %119 {offsets = [0, 0], sizes = [64, 128], strides = [1, 1]} : vector<64x256xf32> to vector<64x128xf32>
    %121 = vector.extract_strided_slice %119 {offsets = [0, 128], sizes = [64, 128], strides = [1, 1]} : vector<64x256xf32> to vector<64x128xf32>
    %cst_48 = arith.constant 0.176776692 : f32
    %122 = vector.broadcast %cst_48 : f32 to vector<32x128xf32>
    %123 = arith.mulf %112, %122 : vector<32x128xf32>
    %124 = arith.truncf %123 : vector<32x128xf32> to vector<32x128xbf16>
    %125 = vector.extract_strided_slice %124 {offsets = [0, 0], sizes = [32, 32], strides = [1, 1]} : vector<32x128xbf16> to vector<32x32xbf16>
    %126 = vector.extract_strided_slice %124 {offsets = [0, 32], sizes = [32, 32], strides = [1, 1]} : vector<32x128xbf16> to vector<32x32xbf16>
    %127 = vector.extract_strided_slice %124 {offsets = [0, 64], sizes = [32, 32], strides = [1, 1]} : vector<32x128xbf16> to vector<32x32xbf16>
    %128 = vector.extract_strided_slice %124 {offsets = [0, 96], sizes = [32, 32], strides = [1, 1]} : vector<32x128xbf16> to vector<32x32xbf16>
    %129 = vector.shape_cast %125 : vector<32x32xbf16> to vector<1x32x32xbf16>
    %130 = vector.shape_cast %126 : vector<32x32xbf16> to vector<1x32x32xbf16>
    %131 = vector.shape_cast %127 : vector<32x32xbf16> to vector<1x32x32xbf16>
    %132 = vector.shape_cast %128 : vector<32x32xbf16> to vector<1x32x32xbf16>
    %133 = tpu.concatenate %129, %130, %131, %132 in 0 : vector<1x32x32xbf16>, vector<1x32x32xbf16>, vector<1x32x32xbf16>, vector<1x32x32xbf16> -> vector<4x32x32xbf16>
    %134 = vector.shape_cast %133 : vector<4x32x32xbf16> to vector<16x8x32xbf16>
    %135 = arith.truncf %120 : vector<64x128xf32> to vector<64x128xbf16>
    %136 = vector.extract_strided_slice %135 {offsets = [0, 0], sizes = [64, 32], strides = [1, 1]} : vector<64x128xbf16> to vector<64x32xbf16>
    %137 = vector.extract_strided_slice %135 {offsets = [0, 32], sizes = [64, 32], strides = [1, 1]} : vector<64x128xbf16> to vector<64x32xbf16>
    %138 = vector.extract_strided_slice %135 {offsets = [0, 64], sizes = [64, 32], strides = [1, 1]} : vector<64x128xbf16> to vector<64x32xbf16>
    %139 = vector.extract_strided_slice %135 {offsets = [0, 96], sizes = [64, 32], strides = [1, 1]} : vector<64x128xbf16> to vector<64x32xbf16>
    %140 = vector.shape_cast %136 : vector<64x32xbf16> to vector<1x64x32xbf16>
    %141 = vector.shape_cast %137 : vector<64x32xbf16> to vector<1x64x32xbf16>
    %142 = vector.shape_cast %138 : vector<64x32xbf16> to vector<1x64x32xbf16>
    %143 = vector.shape_cast %139 : vector<64x32xbf16> to vector<1x64x32xbf16>
    %144 = tpu.concatenate %140, %141, %142, %143 in 0 : vector<1x64x32xbf16>, vector<1x64x32xbf16>, vector<1x64x32xbf16>, vector<1x64x32xbf16> -> vector<4x64x32xbf16>
    %145 = vector.shape_cast %144 : vector<4x64x32xbf16> to vector<16x16x32xbf16>
    %146 = arith.truncf %121 : vector<64x128xf32> to vector<64x128xbf16>
    %147 = vector.extract_strided_slice %146 {offsets = [0, 0], sizes = [64, 32], strides = [1, 1]} : vector<64x128xbf16> to vector<64x32xbf16>
    %148 = vector.extract_strided_slice %146 {offsets = [0, 32], sizes = [64, 32], strides = [1, 1]} : vector<64x128xbf16> to vector<64x32xbf16>
    %149 = vector.extract_strided_slice %146 {offsets = [0, 64], sizes = [64, 32], strides = [1, 1]} : vector<64x128xbf16> to vector<64x32xbf16>
    %150 = vector.extract_strided_slice %146 {offsets = [0, 96], sizes = [64, 32], strides = [1, 1]} : vector<64x128xbf16> to vector<64x32xbf16>
    %151 = vector.shape_cast %147 : vector<64x32xbf16> to vector<1x64x32xbf16>
    %152 = vector.shape_cast %148 : vector<64x32xbf16> to vector<1x64x32xbf16>
    %153 = vector.shape_cast %149 : vector<64x32xbf16> to vector<1x64x32xbf16>
    %154 = vector.shape_cast %150 : vector<64x32xbf16> to vector<1x64x32xbf16>
    %155 = tpu.concatenate %151, %152, %153, %154 in 0 : vector<1x64x32xbf16>, vector<1x64x32xbf16>, vector<1x64x32xbf16>, vector<1x64x32xbf16> -> vector<4x64x32xbf16>
    %156 = vector.shape_cast %155 : vector<4x64x32xbf16> to vector<16x16x32xbf16>
    "tpu.trace_start"() <{level = 10 : i32, message = "bqd,bkd->bqk"}> : () -> ()
    %cst_49 = arith.constant dense<0.000000e+00> : vector<16x8x16xf32>
    %157 = tpu.matmul %134, %145, %cst_49 {dimension_numbers = #tpu.dot_dimension_numbers<[2], [2], [1], [1], [0, 0, 0, 1, 1, 1], [0], [0]>} : vector<16x8x32xbf16>, vector<16x16x32xbf16>, vector<16x8x16xf32> -> vector<16x8x16xf32>
    "tpu.trace_stop"() : () -> ()
    %158 = vector.shape_cast %6 : vector<8x16xf32> to vector<1x8x16xf32>
    %159 = vector.broadcast %158 : vector<1x8x16xf32> to vector<16x8x16xf32>
    %160 = arith.addf %157, %159 : vector<16x8x16xf32>
    %cst_50 = arith.constant dense<0xFF800000> : vector<16x16xf32>
    %161 = vector.multi_reduction <maximumf>, %160, %cst_50 [1] : vector<16x8x16xf32> to vector<16x16xf32>
    %162 = vector.shape_cast %161 : vector<16x16xf32> to vector<16x1x16xf32>
    %163 = vector.broadcast %162 : vector<16x1x16xf32> to vector<16x8x16xf32>
    %164 = arith.subf %160, %163 : vector<16x8x16xf32>
    %165 = math.exp %164 : vector<16x8x16xf32>
    %cst_51 = arith.constant dense<0.000000e+00> : vector<16x16xf32>
    %166 = vector.multi_reduction <add>, %165, %cst_51 [1] : vector<16x8x16xf32> to vector<16x16xf32>
    %167 = vector.shape_cast %166 : vector<16x16xf32> to vector<16x1x16xf32>
    %168 = tpu.reciprocal %167 {approx = true} : vector<16x1x16xf32> -> vector<16x1x16xf32>
    %169 = vector.broadcast %168 : vector<16x1x16xf32> to vector<16x8x16xf32>
    %170 = arith.mulf %165, %169 : vector<16x8x16xf32>
    %cst_52 = arith.constant dense<0.000000e+00> : vector<16x8xf32>
    %171 = vector.multi_reduction <add>, %170, %cst_52 [2] : vector<16x8x16xf32> to vector<16x8xf32>
    %172 = vector.shape_cast %171 : vector<16x8xf32> to vector<16x8x1xf32>
    %173 = tpu.reciprocal %172 : vector<16x8x1xf32> -> vector<16x8x1xf32>
    %174 = vector.broadcast %173 : vector<16x8x1xf32> to vector<16x8x16xf32>
    %175 = arith.mulf %170, %174 : vector<16x8x16xf32>
    %176 = arith.truncf %175 : vector<16x8x16xf32> to vector<16x8x16xbf16>
    "tpu.trace_start"() <{level = 10 : i32, message = "bqk,bkd->bqd"}> : () -> ()
    %cst_53 = arith.constant dense<0.000000e+00> : vector<16x8x32xf32>
    %177 = tpu.matmul %176, %156, %cst_53 {dimension_numbers = #tpu.dot_dimension_numbers<[2], [1], [1], [2], [0, 0, 0, 1, 1, 2], [0], [0]>} : vector<16x8x16xbf16>, vector<16x16x32xbf16>, vector<16x8x32xf32> -> vector<16x8x32xf32>
    "tpu.trace_stop"() : () -> ()
    %178 = vector.shape_cast %177 : vector<16x8x32xf32> to vector<4x32x32xf32>
    %179 = arith.truncf %178 : vector<4x32x32xf32> to vector<4x32x32xbf16>
    %180 = vector.extract_strided_slice %179 {offsets = [0, 0, 0], sizes = [1, 32, 32], strides = [1, 1, 1]} : vector<4x32x32xbf16> to vector<1x32x32xbf16>
    %181 = vector.shape_cast %180 : vector<1x32x32xbf16> to vector<32x32xbf16>
    %182 = vector.extract_strided_slice %179 {offsets = [1, 0, 0], sizes = [1, 32, 32], strides = [1, 1, 1]} : vector<4x32x32xbf16> to vector<1x32x32xbf16>
    %183 = vector.shape_cast %182 : vector<1x32x32xbf16> to vector<32x32xbf16>
    %184 = vector.extract_strided_slice %179 {offsets = [2, 0, 0], sizes = [1, 32, 32], strides = [1, 1, 1]} : vector<4x32x32xbf16> to vector<1x32x32xbf16>
    %185 = vector.shape_cast %184 : vector<1x32x32xbf16> to vector<32x32xbf16>
    %186 = vector.extract_strided_slice %179 {offsets = [3, 0, 0], sizes = [1, 32, 32], strides = [1, 1, 1]} : vector<4x32x32xbf16> to vector<1x32x32xbf16>
    %187 = vector.shape_cast %186 : vector<1x32x32xbf16> to vector<32x32xbf16>
    %188 = tpu.concatenate %181, %183, %185, %187 in 1 : vector<32x32xbf16>, vector<32x32xbf16>, vector<32x32xbf16>, vector<32x32xbf16> -> vector<32x128xbf16>
    %c1 = arith.constant 1 : index
    %c0_54 = arith.constant 0 : index
    %c0_55 = arith.constant 0 : index
    %189 = vector.load %arg12[%c1, %c0_54, %c0_55] : memref<3x128x128xbf16, #tpu.memory_space<vmem>>, vector<1x128x128xbf16>
    %190 = vector.shape_cast %189 : vector<1x128x128xbf16> to vector<128x128xbf16>
    %cst_56 = arith.constant dense<0.000000e+00> : vector<32x128xf32>
    %191 = tpu.matmul %188, %190, %cst_56 {dimension_numbers = #tpu.dot_dimension_numbers<[1], [0], [0], [1], [0, 0, 1, 1], [], []>} : vector<32x128xbf16>, vector<128x128xbf16>, vector<32x128xf32> -> vector<32x128xf32>
    %c1_57 = arith.constant 1 : index
    %c0_58 = arith.constant 0 : index
    %192 = vector.load %arg13[%c1_57, %c0_58] : memref<3x128xf32, #tpu.memory_space<vmem>>, vector<1x128xf32>
    %193 = vector.broadcast %192 : vector<1x128xf32> to vector<32x128xf32>
    %194 = arith.addf %191, %193 : vector<32x128xf32>
    %195 = arith.addf %105, %194 : vector<32x128xf32>
    %c1_59 = arith.constant 1 : index
    %c0_60 = arith.constant 0 : index
    %196 = vector.load %arg18[%c1_59, %c0_60] : memref<5x128xf32, #tpu.memory_space<vmem>>, vector<1x128xf32>
    %c1_61 = arith.constant 1 : index
    %c0_62 = arith.constant 0 : index
    %197 = vector.load %arg19[%c1_61, %c0_62] : memref<5x128xf32, #tpu.memory_space<vmem>>, vector<1x128xf32>
    %cst_63 = arith.constant dense<0.000000e+00> : vector<32xf32>
    %198 = vector.multi_reduction <add>, %195, %cst_63 [1] : vector<32x128xf32> to vector<32xf32>
    %199 = vector.shape_cast %198 : vector<32xf32> to vector<32x1xf32>
    %cst_64 = arith.constant 1.280000e+02 : f32
    %200 = vector.broadcast %cst_64 : f32 to vector<32x1xf32>
    %201 = arith.divf %199, %200 : vector<32x1xf32>
    %202 = vector.broadcast %201 : vector<32x1xf32> to vector<32x128xf32>
    %203 = arith.subf %195, %202 : vector<32x128xf32>
    %204 = arith.mulf %203, %203 : vector<32x128xf32>
    %cst_65 = arith.constant dense<0.000000e+00> : vector<32xf32>
    %205 = vector.multi_reduction <add>, %204, %cst_65 [1] : vector<32x128xf32> to vector<32xf32>
    %206 = vector.shape_cast %205 : vector<32xf32> to vector<32x1xf32>
    %cst_66 = arith.constant 0.00787401571 : f32
    %207 = vector.broadcast %cst_66 : f32 to vector<32x1xf32>
    %208 = arith.mulf %206, %207 : vector<32x1xf32>
    %209 = math.sqrt %208 : vector<32x1xf32>
    %cst_67 = arith.constant 9.99999974E-6 : f32
    %210 = vector.broadcast %cst_67 : f32 to vector<32x1xf32>
    %211 = arith.addf %209, %210 : vector<32x1xf32>
    %212 = tpu.reciprocal %211 : vector<32x1xf32> -> vector<32x1xf32>
    %213 = vector.broadcast %212 : vector<32x1xf32> to vector<32x128xf32>
    %214 = arith.mulf %203, %213 : vector<32x128xf32>
    %215 = vector.broadcast %196 : vector<1x128xf32> to vector<32x128xf32>
    %216 = arith.mulf %215, %214 : vector<32x128xf32>
    %217 = vector.broadcast %197 : vector<1x128xf32> to vector<32x128xf32>
    %218 = arith.addf %216, %217 : vector<32x128xf32>
    %c0_68 = arith.constant 0 : index
    %c0_69 = arith.constant 0 : index
    %c0_70 = arith.constant 0 : index
    %219 = vector.load %arg14[%c0_68, %c0_69, %c0_70] : memref<2x128x256xbf16, #tpu.memory_space<vmem>>, vector<1x128x256xbf16>
    %220 = vector.shape_cast %219 : vector<1x128x256xbf16> to vector<128x256xbf16>
    %221 = arith.truncf %218 : vector<32x128xf32> to vector<32x128xbf16>
    %cst_71 = arith.constant dense<0.000000e+00> : vector<32x256xf32>
    %222 = tpu.matmul %221, %220, %cst_71 {dimension_numbers = #tpu.dot_dimension_numbers<[1], [0], [0], [1], [0, 0, 1, 1], [], []>} : vector<32x128xbf16>, vector<128x256xbf16>, vector<32x256xf32> -> vector<32x256xf32>
    %c0_72 = arith.constant 0 : index
    %c0_73 = arith.constant 0 : index
    %223 = vector.load %arg15[%c0_72, %c0_73] : memref<2x256xf32, #tpu.memory_space<vmem>>, vector<1x256xf32>
    %224 = vector.broadcast %223 : vector<1x256xf32> to vector<32x256xf32>
    %225 = arith.addf %222, %224 : vector<32x256xf32>
    %cst_74 = arith.constant 0.000000e+00 : f32
    %226 = vector.broadcast %cst_74 : f32 to vector<32x256xf32>
    %227 = arith.maximumf %225, %226 : vector<32x256xf32>
    %c0_75 = arith.constant 0 : index
    %c0_76 = arith.constant 0 : index
    %c0_77 = arith.constant 0 : index
    %228 = vector.load %arg16[%c0_75, %c0_76, %c0_77] : memref<2x256x128xbf16, #tpu.memory_space<vmem>>, vector<1x256x128xbf16>
    %229 = vector.shape_cast %228 : vector<1x256x128xbf16> to vector<256x128xbf16>
    %230 = arith.truncf %227 : vector<32x256xf32> to vector<32x256xbf16>
    %cst_78 = arith.constant dense<0.000000e+00> : vector<32x128xf32>
    %231 = tpu.matmul %230, %229, %cst_78 {dimension_numbers = #tpu.dot_dimension_numbers<[1], [0], [0], [1], [0, 0, 1, 1], [], []>} : vector<32x256xbf16>, vector<256x128xbf16>, vector<32x128xf32> -> vector<32x128xf32>
    %c0_79 = arith.constant 0 : index
    %c0_80 = arith.constant 0 : index
    %232 = vector.load %arg17[%c0_79, %c0_80] : memref<2x128xf32, #tpu.memory_space<vmem>>, vector<1x128xf32>
    %233 = vector.broadcast %232 : vector<1x128xf32> to vector<32x128xf32>
    %234 = arith.addf %231, %233 : vector<32x128xf32>
    %235 = arith.addf %218, %234 : vector<32x128xf32>
    %c2 = arith.constant 2 : index
    %c0_81 = arith.constant 0 : index
    %236 = vector.load %arg18[%c2, %c0_81] : memref<5x128xf32, #tpu.memory_space<vmem>>, vector<1x128xf32>
    %c2_82 = arith.constant 2 : index
    %c0_83 = arith.constant 0 : index
    %237 = vector.load %arg19[%c2_82, %c0_83] : memref<5x128xf32, #tpu.memory_space<vmem>>, vector<1x128xf32>
    %cst_84 = arith.constant dense<0.000000e+00> : vector<32xf32>
    %238 = vector.multi_reduction <add>, %235, %cst_84 [1] : vector<32x128xf32> to vector<32xf32>
    %239 = vector.shape_cast %238 : vector<32xf32> to vector<32x1xf32>
    %cst_85 = arith.constant 1.280000e+02 : f32
    %240 = vector.broadcast %cst_85 : f32 to vector<32x1xf32>
    %241 = arith.divf %239, %240 : vector<32x1xf32>
    %242 = vector.broadcast %241 : vector<32x1xf32> to vector<32x128xf32>
    %243 = arith.subf %235, %242 : vector<32x128xf32>
    %244 = arith.mulf %243, %243 : vector<32x128xf32>
    %cst_86 = arith.constant dense<0.000000e+00> : vector<32xf32>
    %245 = vector.multi_reduction <add>, %244, %cst_86 [1] : vector<32x128xf32> to vector<32xf32>
    %246 = vector.shape_cast %245 : vector<32xf32> to vector<32x1xf32>
    %cst_87 = arith.constant 0.00787401571 : f32
    %247 = vector.broadcast %cst_87 : f32 to vector<32x1xf32>
    %248 = arith.mulf %246, %247 : vector<32x1xf32>
    %249 = math.sqrt %248 : vector<32x1xf32>
    %cst_88 = arith.constant 9.99999974E-6 : f32
    %250 = vector.broadcast %cst_88 : f32 to vector<32x1xf32>
    %251 = arith.addf %249, %250 : vector<32x1xf32>
    %252 = tpu.reciprocal %251 : vector<32x1xf32> -> vector<32x1xf32>
    %253 = vector.broadcast %252 : vector<32x1xf32> to vector<32x128xf32>
    %254 = arith.mulf %243, %253 : vector<32x128xf32>
    %255 = vector.broadcast %236 : vector<1x128xf32> to vector<32x128xf32>
    %256 = arith.mulf %255, %254 : vector<32x128xf32>
    %257 = vector.broadcast %237 : vector<1x128xf32> to vector<32x128xf32>
    %258 = arith.addf %256, %257 : vector<32x128xf32>
    %c1_89 = arith.constant 1 : index
    %c0_90 = arith.constant 0 : index
    %c0_91 = arith.constant 0 : index
    %259 = vector.load %arg8[%c1_89, %c0_90, %c0_91] : memref<2x128x128xbf16, #tpu.memory_space<vmem>>, vector<1x128x128xbf16>
    %260 = vector.shape_cast %259 : vector<1x128x128xbf16> to vector<128x128xbf16>
    %261 = arith.truncf %258 : vector<32x128xf32> to vector<32x128xbf16>
    %cst_92 = arith.constant dense<0.000000e+00> : vector<32x128xf32>
    %262 = tpu.matmul %261, %260, %cst_92 {dimension_numbers = #tpu.dot_dimension_numbers<[1], [0], [0], [1], [0, 0, 1, 1], [], []>} : vector<32x128xbf16>, vector<128x128xbf16>, vector<32x128xf32> -> vector<32x128xf32>
    %c1_93 = arith.constant 1 : index
    %c0_94 = arith.constant 0 : index
    %263 = vector.load %arg9[%c1_93, %c0_94] : memref<2x128xf32, #tpu.memory_space<vmem>>, vector<1x128xf32>
    %264 = vector.broadcast %263 : vector<1x128xf32> to vector<32x128xf32>
    %265 = arith.addf %262, %264 : vector<32x128xf32>
    %c1_95 = arith.constant 1 : index
    %c0_96 = arith.constant 0 : index
    %c0_97 = arith.constant 0 : index
    %266 = vector.load %arg10[%c1_95, %c0_96, %c0_97] : memref<2x128x256xbf16, #tpu.memory_space<vmem>>, vector<1x128x256xbf16>
    %267 = vector.shape_cast %266 : vector<1x128x256xbf16> to vector<128x256xbf16>
    %268 = arith.truncf %5 : vector<32x128xf32> to vector<32x128xbf16>
    %cst_98 = arith.constant dense<0.000000e+00> : vector<32x256xf32>
    %269 = tpu.matmul %268, %267, %cst_98 {dimension_numbers = #tpu.dot_dimension_numbers<[1], [0], [0], [1], [0, 0, 1, 1], [], []>} : vector<32x128xbf16>, vector<128x256xbf16>, vector<32x256xf32> -> vector<32x256xf32>
    %c1_99 = arith.constant 1 : index
    %c0_100 = arith.constant 0 : index
    %270 = vector.load %arg11[%c1_99, %c0_100] : memref<2x256xf32, #tpu.memory_space<vmem>>, vector<1x256xf32>
    %271 = vector.broadcast %270 : vector<1x256xf32> to vector<32x256xf32>
    %272 = arith.addf %269, %271 : vector<32x256xf32>
    %273 = vector.extract_strided_slice %272 {offsets = [0, 0], sizes = [32, 128], strides = [1, 1]} : vector<32x256xf32> to vector<32x128xf32>
    %274 = vector.extract_strided_slice %272 {offsets = [0, 128], sizes = [32, 128], strides = [1, 1]} : vector<32x256xf32> to vector<32x128xf32>
    %cst_101 = arith.constant 0.176776692 : f32
    %275 = vector.broadcast %cst_101 : f32 to vector<32x128xf32>
    %276 = arith.mulf %265, %275 : vector<32x128xf32>
    %277 = arith.truncf %276 : vector<32x128xf32> to vector<32x128xbf16>
    %278 = vector.extract_strided_slice %277 {offsets = [0, 0], sizes = [32, 32], strides = [1, 1]} : vector<32x128xbf16> to vector<32x32xbf16>
    %279 = vector.extract_strided_slice %277 {offsets = [0, 32], sizes = [32, 32], strides = [1, 1]} : vector<32x128xbf16> to vector<32x32xbf16>
    %280 = vector.extract_strided_slice %277 {offsets = [0, 64], sizes = [32, 32], strides = [1, 1]} : vector<32x128xbf16> to vector<32x32xbf16>
    %281 = vector.extract_strided_slice %277 {offsets = [0, 96], sizes = [32, 32], strides = [1, 1]} : vector<32x128xbf16> to vector<32x32xbf16>
    %282 = vector.shape_cast %278 : vector<32x32xbf16> to vector<1x32x32xbf16>
    %283 = vector.shape_cast %279 : vector<32x32xbf16> to vector<1x32x32xbf16>
    %284 = vector.shape_cast %280 : vector<32x32xbf16> to vector<1x32x32xbf16>
    %285 = vector.shape_cast %281 : vector<32x32xbf16> to vector<1x32x32xbf16>
    %286 = tpu.concatenate %282, %283, %284, %285 in 0 : vector<1x32x32xbf16>, vector<1x32x32xbf16>, vector<1x32x32xbf16>, vector<1x32x32xbf16> -> vector<4x32x32xbf16>
    %287 = vector.shape_cast %286 : vector<4x32x32xbf16> to vector<16x8x32xbf16>
    %288 = arith.truncf %273 : vector<32x128xf32> to vector<32x128xbf16>
    %289 = vector.extract_strided_slice %288 {offsets = [0, 0], sizes = [32, 32], strides = [1, 1]} : vector<32x128xbf16> to vector<32x32xbf16>
    %290 = vector.extract_strided_slice %288 {offsets = [0, 32], sizes = [32, 32], strides = [1, 1]} : vector<32x128xbf16> to vector<32x32xbf16>
    %291 = vector.extract_strided_slice %288 {offsets = [0, 64], sizes = [32, 32], strides = [1, 1]} : vector<32x128xbf16> to vector<32x32xbf16>
    %292 = vector.extract_strided_slice %288 {offsets = [0, 96], sizes = [32, 32], strides = [1, 1]} : vector<32x128xbf16> to vector<32x32xbf16>
    %293 = vector.shape_cast %289 : vector<32x32xbf16> to vector<1x32x32xbf16>
    %294 = vector.shape_cast %290 : vector<32x32xbf16> to vector<1x32x32xbf16>
    %295 = vector.shape_cast %291 : vector<32x32xbf16> to vector<1x32x32xbf16>
    %296 = vector.shape_cast %292 : vector<32x32xbf16> to vector<1x32x32xbf16>
    %297 = tpu.concatenate %293, %294, %295, %296 in 0 : vector<1x32x32xbf16>, vector<1x32x32xbf16>, vector<1x32x32xbf16>, vector<1x32x32xbf16> -> vector<4x32x32xbf16>
    %298 = vector.shape_cast %297 : vector<4x32x32xbf16> to vector<16x8x32xbf16>
    %299 = arith.truncf %274 : vector<32x128xf32> to vector<32x128xbf16>
    %300 = vector.extract_strided_slice %299 {offsets = [0, 0], sizes = [32, 32], strides = [1, 1]} : vector<32x128xbf16> to vector<32x32xbf16>
    %301 = vector.extract_strided_slice %299 {offsets = [0, 32], sizes = [32, 32], strides = [1, 1]} : vector<32x128xbf16> to vector<32x32xbf16>
    %302 = vector.extract_strided_slice %299 {offsets = [0, 64], sizes = [32, 32], strides = [1, 1]} : vector<32x128xbf16> to vector<32x32xbf16>
    %303 = vector.extract_strided_slice %299 {offsets = [0, 96], sizes = [32, 32], strides = [1, 1]} : vector<32x128xbf16> to vector<32x32xbf16>
    %304 = vector.shape_cast %300 : vector<32x32xbf16> to vector<1x32x32xbf16>
    %305 = vector.shape_cast %301 : vector<32x32xbf16> to vector<1x32x32xbf16>
    %306 = vector.shape_cast %302 : vector<32x32xbf16> to vector<1x32x32xbf16>
    %307 = vector.shape_cast %303 : vector<32x32xbf16> to vector<1x32x32xbf16>
    %308 = tpu.concatenate %304, %305, %306, %307 in 0 : vector<1x32x32xbf16>, vector<1x32x32xbf16>, vector<1x32x32xbf16>, vector<1x32x32xbf16> -> vector<4x32x32xbf16>
    %309 = vector.shape_cast %308 : vector<4x32x32xbf16> to vector<16x8x32xbf16>
    "tpu.trace_start"() <{level = 10 : i32, message = "bqd,bkd->bqk"}> : () -> ()
    %cst_102 = arith.constant dense<0.000000e+00> : vector<16x8x8xf32>
    %310 = tpu.matmul %287, %298, %cst_102 {dimension_numbers = #tpu.dot_dimension_numbers<[2], [2], [1], [1], [0, 0, 0, 1, 1, 1], [0], [0]>} : vector<16x8x32xbf16>, vector<16x8x32xbf16>, vector<16x8x8xf32> -> vector<16x8x8xf32>
    "tpu.trace_stop"() : () -> ()
    %311 = vector.shape_cast %7 : vector<8x8xf32> to vector<1x8x8xf32>
    %312 = vector.broadcast %311 : vector<1x8x8xf32> to vector<16x8x8xf32>
    %313 = arith.addf %310, %312 : vector<16x8x8xf32>
    %cst_103 = arith.constant dense<0xFF800000> : vector<16x8xf32>
    %314 = vector.multi_reduction <maximumf>, %313, %cst_103 [1] : vector<16x8x8xf32> to vector<16x8xf32>
    %315 = vector.shape_cast %314 : vector<16x8xf32> to vector<16x1x8xf32>
    %316 = vector.broadcast %315 : vector<16x1x8xf32> to vector<16x8x8xf32>
    %317 = arith.subf %313, %316 : vector<16x8x8xf32>
    %318 = math.exp %317 : vector<16x8x8xf32>
    %cst_104 = arith.constant dense<0.000000e+00> : vector<16x8xf32>
    %319 = vector.multi_reduction <add>, %318, %cst_104 [1] : vector<16x8x8xf32> to vector<16x8xf32>
    %320 = vector.shape_cast %319 : vector<16x8xf32> to vector<16x1x8xf32>
    %321 = tpu.reciprocal %320 {approx = true} : vector<16x1x8xf32> -> vector<16x1x8xf32>
    %322 = vector.broadcast %321 : vector<16x1x8xf32> to vector<16x8x8xf32>
    %323 = arith.mulf %318, %322 : vector<16x8x8xf32>
    %cst_105 = arith.constant dense<0.000000e+00> : vector<16x8xf32>
    %324 = vector.multi_reduction <add>, %323, %cst_105 [2] : vector<16x8x8xf32> to vector<16x8xf32>
    %325 = vector.shape_cast %324 : vector<16x8xf32> to vector<16x8x1xf32>
    %326 = tpu.reciprocal %325 : vector<16x8x1xf32> -> vector<16x8x1xf32>
    %327 = vector.broadcast %326 : vector<16x8x1xf32> to vector<16x8x8xf32>
    %328 = arith.mulf %323, %327 : vector<16x8x8xf32>
    %329 = arith.truncf %328 : vector<16x8x8xf32> to vector<16x8x8xbf16>
    "tpu.trace_start"() <{level = 10 : i32, message = "bqk,bkd->bqd"}> : () -> ()
    %cst_106 = arith.constant dense<0.000000e+00> : vector<16x8x32xf32>
    %330 = tpu.matmul %329, %309, %cst_106 {dimension_numbers = #tpu.dot_dimension_numbers<[2], [1], [1], [2], [0, 0, 0, 1, 1, 2], [0], [0]>} : vector<16x8x8xbf16>, vector<16x8x32xbf16>, vector<16x8x32xf32> -> vector<16x8x32xf32>
    "tpu.trace_stop"() : () -> ()
    %331 = vector.shape_cast %330 : vector<16x8x32xf32> to vector<4x32x32xf32>
    %332 = arith.truncf %331 : vector<4x32x32xf32> to vector<4x32x32xbf16>
    %333 = vector.extract_strided_slice %332 {offsets = [0, 0, 0], sizes = [1, 32, 32], strides = [1, 1, 1]} : vector<4x32x32xbf16> to vector<1x32x32xbf16>
    %334 = vector.shape_cast %333 : vector<1x32x32xbf16> to vector<32x32xbf16>
    %335 = vector.extract_strided_slice %332 {offsets = [1, 0, 0], sizes = [1, 32, 32], strides = [1, 1, 1]} : vector<4x32x32xbf16> to vector<1x32x32xbf16>
    %336 = vector.shape_cast %335 : vector<1x32x32xbf16> to vector<32x32xbf16>
    %337 = vector.extract_strided_slice %332 {offsets = [2, 0, 0], sizes = [1, 32, 32], strides = [1, 1, 1]} : vector<4x32x32xbf16> to vector<1x32x32xbf16>
    %338 = vector.shape_cast %337 : vector<1x32x32xbf16> to vector<32x32xbf16>
    %339 = vector.extract_strided_slice %332 {offsets = [3, 0, 0], sizes = [1, 32, 32], strides = [1, 1, 1]} : vector<4x32x32xbf16> to vector<1x32x32xbf16>
    %340 = vector.shape_cast %339 : vector<1x32x32xbf16> to vector<32x32xbf16>
    %341 = tpu.concatenate %334, %336, %338, %340 in 1 : vector<32x32xbf16>, vector<32x32xbf16>, vector<32x32xbf16>, vector<32x32xbf16> -> vector<32x128xbf16>
    %c2_107 = arith.constant 2 : index
    %c0_108 = arith.constant 0 : index
    %c0_109 = arith.constant 0 : index
    %342 = vector.load %arg12[%c2_107, %c0_108, %c0_109] : memref<3x128x128xbf16, #tpu.memory_space<vmem>>, vector<1x128x128xbf16>
    %343 = vector.shape_cast %342 : vector<1x128x128xbf16> to vector<128x128xbf16>
    %cst_110 = arith.constant dense<0.000000e+00> : vector<32x128xf32>
    %344 = tpu.matmul %341, %343, %cst_110 {dimension_numbers = #tpu.dot_dimension_numbers<[1], [0], [0], [1], [0, 0, 1, 1], [], []>} : vector<32x128xbf16>, vector<128x128xbf16>, vector<32x128xf32> -> vector<32x128xf32>
    %c2_111 = arith.constant 2 : index
    %c0_112 = arith.constant 0 : index
    %345 = vector.load %arg13[%c2_111, %c0_112] : memref<3x128xf32, #tpu.memory_space<vmem>>, vector<1x128xf32>
    %346 = vector.broadcast %345 : vector<1x128xf32> to vector<32x128xf32>
    %347 = arith.addf %344, %346 : vector<32x128xf32>
    %348 = arith.addf %258, %347 : vector<32x128xf32>
    %c3 = arith.constant 3 : index
    %c0_113 = arith.constant 0 : index
    %349 = vector.load %arg18[%c3, %c0_113] : memref<5x128xf32, #tpu.memory_space<vmem>>, vector<1x128xf32>
    %c3_114 = arith.constant 3 : index
    %c0_115 = arith.constant 0 : index
    %350 = vector.load %arg19[%c3_114, %c0_115] : memref<5x128xf32, #tpu.memory_space<vmem>>, vector<1x128xf32>
    %cst_116 = arith.constant dense<0.000000e+00> : vector<32xf32>
    %351 = vector.multi_reduction <add>, %348, %cst_116 [1] : vector<32x128xf32> to vector<32xf32>
    %352 = vector.shape_cast %351 : vector<32xf32> to vector<32x1xf32>
    %cst_117 = arith.constant 1.280000e+02 : f32
    %353 = vector.broadcast %cst_117 : f32 to vector<32x1xf32>
    %354 = arith.divf %352, %353 : vector<32x1xf32>
    %355 = vector.broadcast %354 : vector<32x1xf32> to vector<32x128xf32>
    %356 = arith.subf %348, %355 : vector<32x128xf32>
    %357 = arith.mulf %356, %356 : vector<32x128xf32>
    %cst_118 = arith.constant dense<0.000000e+00> : vector<32xf32>
    %358 = vector.multi_reduction <add>, %357, %cst_118 [1] : vector<32x128xf32> to vector<32xf32>
    %359 = vector.shape_cast %358 : vector<32xf32> to vector<32x1xf32>
    %cst_119 = arith.constant 0.00787401571 : f32
    %360 = vector.broadcast %cst_119 : f32 to vector<32x1xf32>
    %361 = arith.mulf %359, %360 : vector<32x1xf32>
    %362 = math.sqrt %361 : vector<32x1xf32>
    %cst_120 = arith.constant 9.99999974E-6 : f32
    %363 = vector.broadcast %cst_120 : f32 to vector<32x1xf32>
    %364 = arith.addf %362, %363 : vector<32x1xf32>
    %365 = tpu.reciprocal %364 : vector<32x1xf32> -> vector<32x1xf32>
    %366 = vector.broadcast %365 : vector<32x1xf32> to vector<32x128xf32>
    %367 = arith.mulf %356, %366 : vector<32x128xf32>
    %368 = vector.broadcast %349 : vector<1x128xf32> to vector<32x128xf32>
    %369 = arith.mulf %368, %367 : vector<32x128xf32>
    %370 = vector.broadcast %350 : vector<1x128xf32> to vector<32x128xf32>
    %371 = arith.addf %369, %370 : vector<32x128xf32>
    %c1_121 = arith.constant 1 : index
    %c0_122 = arith.constant 0 : index
    %c0_123 = arith.constant 0 : index
    %372 = vector.load %arg14[%c1_121, %c0_122, %c0_123] : memref<2x128x256xbf16, #tpu.memory_space<vmem>>, vector<1x128x256xbf16>
    %373 = vector.shape_cast %372 : vector<1x128x256xbf16> to vector<128x256xbf16>
    %374 = arith.truncf %371 : vector<32x128xf32> to vector<32x128xbf16>
    %cst_124 = arith.constant dense<0.000000e+00> : vector<32x256xf32>
    %375 = tpu.matmul %374, %373, %cst_124 {dimension_numbers = #tpu.dot_dimension_numbers<[1], [0], [0], [1], [0, 0, 1, 1], [], []>} : vector<32x128xbf16>, vector<128x256xbf16>, vector<32x256xf32> -> vector<32x256xf32>
    %c1_125 = arith.constant 1 : index
    %c0_126 = arith.constant 0 : index
    %376 = vector.load %arg15[%c1_125, %c0_126] : memref<2x256xf32, #tpu.memory_space<vmem>>, vector<1x256xf32>
    %377 = vector.broadcast %376 : vector<1x256xf32> to vector<32x256xf32>
    %378 = arith.addf %375, %377 : vector<32x256xf32>
    %cst_127 = arith.constant 0.000000e+00 : f32
    %379 = vector.broadcast %cst_127 : f32 to vector<32x256xf32>
    %380 = arith.maximumf %378, %379 : vector<32x256xf32>
    %c1_128 = arith.constant 1 : index
    %c0_129 = arith.constant 0 : index
    %c0_130 = arith.constant 0 : index
    %381 = vector.load %arg16[%c1_128, %c0_129, %c0_130] : memref<2x256x128xbf16, #tpu.memory_space<vmem>>, vector<1x256x128xbf16>
    %382 = vector.shape_cast %381 : vector<1x256x128xbf16> to vector<256x128xbf16>
    %383 = arith.truncf %380 : vector<32x256xf32> to vector<32x256xbf16>
    %cst_131 = arith.constant dense<0.000000e+00> : vector<32x128xf32>
    %384 = tpu.matmul %383, %382, %cst_131 {dimension_numbers = #tpu.dot_dimension_numbers<[1], [0], [0], [1], [0, 0, 1, 1], [], []>} : vector<32x256xbf16>, vector<256x128xbf16>, vector<32x128xf32> -> vector<32x128xf32>
    %c1_132 = arith.constant 1 : index
    %c0_133 = arith.constant 0 : index
    %385 = vector.load %arg17[%c1_132, %c0_133] : memref<2x128xf32, #tpu.memory_space<vmem>>, vector<1x128xf32>
    %386 = vector.broadcast %385 : vector<1x128xf32> to vector<32x128xf32>
    %387 = arith.addf %384, %386 : vector<32x128xf32>
    %388 = arith.addf %371, %387 : vector<32x128xf32>
    %c4 = arith.constant 4 : index
    %c0_134 = arith.constant 0 : index
    %389 = vector.load %arg18[%c4, %c0_134] : memref<5x128xf32, #tpu.memory_space<vmem>>, vector<1x128xf32>
    %c4_135 = arith.constant 4 : index
    %c0_136 = arith.constant 0 : index
    %390 = vector.load %arg19[%c4_135, %c0_136] : memref<5x128xf32, #tpu.memory_space<vmem>>, vector<1x128xf32>
    %cst_137 = arith.constant dense<0.000000e+00> : vector<32xf32>
    %391 = vector.multi_reduction <add>, %388, %cst_137 [1] : vector<32x128xf32> to vector<32xf32>
    %392 = vector.shape_cast %391 : vector<32xf32> to vector<32x1xf32>
    %cst_138 = arith.constant 1.280000e+02 : f32
    %393 = vector.broadcast %cst_138 : f32 to vector<32x1xf32>
    %394 = arith.divf %392, %393 : vector<32x1xf32>
    %395 = vector.broadcast %394 : vector<32x1xf32> to vector<32x128xf32>
    %396 = arith.subf %388, %395 : vector<32x128xf32>
    %397 = arith.mulf %396, %396 : vector<32x128xf32>
    %cst_139 = arith.constant dense<0.000000e+00> : vector<32xf32>
    %398 = vector.multi_reduction <add>, %397, %cst_139 [1] : vector<32x128xf32> to vector<32xf32>
    %399 = vector.shape_cast %398 : vector<32xf32> to vector<32x1xf32>
    %cst_140 = arith.constant 0.00787401571 : f32
    %400 = vector.broadcast %cst_140 : f32 to vector<32x1xf32>
    %401 = arith.mulf %399, %400 : vector<32x1xf32>
    %402 = math.sqrt %401 : vector<32x1xf32>
    %cst_141 = arith.constant 9.99999974E-6 : f32
    %403 = vector.broadcast %cst_141 : f32 to vector<32x1xf32>
    %404 = arith.addf %402, %403 : vector<32x1xf32>
    %405 = tpu.reciprocal %404 : vector<32x1xf32> -> vector<32x1xf32>
    %406 = vector.broadcast %405 : vector<32x1xf32> to vector<32x128xf32>
    %407 = arith.mulf %396, %406 : vector<32x128xf32>
    %408 = vector.broadcast %389 : vector<1x128xf32> to vector<32x128xf32>
    %409 = arith.mulf %408, %407 : vector<32x128xf32>
    %410 = vector.broadcast %390 : vector<1x128xf32> to vector<32x128xf32>
    %411 = arith.addf %409, %410 : vector<32x128xf32>
    %412 = vector.shape_cast %411 : vector<32x128xf32> to vector<4x8x128xf32>
    %c0_142 = arith.constant 0 : index
    %c0_143 = arith.constant 0 : index
    %c0_144 = arith.constant 0 : index
    %413 = vector.load %arg20[%c0_142, %c0_143, %c0_144] : memref<4x8x128xf32, #tpu.memory_space<vmem>>, vector<4x8x128xf32>
    tpu.vector_store %arg20[%c0_142, %c0_143, %c0_144], %412 {strides = array<i32>} : memref<4x8x128xf32, #tpu.memory_space<vmem>>, vector<4x8x128xf32>,
    return
  }
  func.func @transform_0(%arg0: i32) -> (i32, i32, i32) {
    %c0_i32 = arith.constant 0 : i32
    %c0_i32_0 = arith.constant 0 : i32
    %c0_i32_1 = arith.constant 0 : i32
    return %arg0, %c0_i32, %c0_i32_0 : i32, i32, i32
  }
  func.func @transform_1(%arg0: i32) -> (i32, i32, i32) {
    %c0_i32 = arith.constant 0 : i32
    %c0_i32_0 = arith.constant 0 : i32
    %c0_i32_1 = arith.constant 0 : i32
    return %arg0, %c0_i32, %c0_i32_0 : i32, i32, i32
  }
  func.func @transform_2(%arg0: i32) -> (i32, i32, i32) {
    %c0_i32 = arith.constant 0 : i32
    %c0_i32_0 = arith.constant 0 : i32
    %c0_i32_1 = arith.constant 0 : i32
    return %arg0, %c0_i32, %c0_i32_0 : i32, i32, i32
  }
  func.func @transform_3(%arg0: i32) -> (i32, i32) {
    %c0_i32 = arith.constant 0 : i32
    %c0_i32_0 = arith.constant 0 : i32
    %c0_i32_1 = arith.constant 0 : i32
    return %c0_i32, %c0_i32_0 : i32, i32
  }
  func.func @transform_4(%arg0: i32) -> (i32, i32) {
    %c0_i32 = arith.constant 0 : i32
    %c0_i32_0 = arith.constant 0 : i32
    %c0_i32_1 = arith.constant 0 : i32
    return %c0_i32, %c0_i32_0 : i32, i32
  }
  func.func @transform_5(%arg0: i32) -> (i32, i32) {
    %c0_i32 = arith.constant 0 : i32
    %c0_i32_0 = arith.constant 0 : i32
    %c0_i32_1 = arith.constant 0 : i32
    return %c0_i32, %c0_i32_0 : i32, i32
  }
  func.func @transform_6(%arg0: i32) -> (i32, i32) {
    %c0_i32 = arith.constant 0 : i32
    %c0_i32_0 = arith.constant 0 : i32
    %c0_i32_1 = arith.constant 0 : i32
    return %c0_i32, %c0_i32_0 : i32, i32
  }
  func.func @transform_7(%arg0: i32) -> (i32, i32, i32) {
    %c0_i32 = arith.constant 0 : i32
    %c0_i32_0 = arith.constant 0 : i32
    %c0_i32_1 = arith.constant 0 : i32
    %c0_i32_2 = arith.constant 0 : i32
    return %c0_i32, %c0_i32_0, %c0_i32_1 : i32, i32, i32
  }
  func.func @transform_8(%arg0: i32) -> (i32, i32) {
    %c0_i32 = arith.constant 0 : i32
    %c0_i32_0 = arith.constant 0 : i32
    %c0_i32_1 = arith.constant 0 : i32
    return %c0_i32, %c0_i32_0 : i32, i32
  }
  func.func @transform_9(%arg0: i32) -> (i32, i32, i32) {
    %c0_i32 = arith.constant 0 : i32
    %c0_i32_0 = arith.constant 0 : i32
    %c0_i32_1 = arith.constant 0 : i32
    %c0_i32_2 = arith.constant 0 : i32
    return %c0_i32, %c0_i32_0, %c0_i32_1 : i32, i32, i32
  }
  func.func @transform_10(%arg0: i32) -> (i32, i32) {
    %c0_i32 = arith.constant 0 : i32
    %c0_i32_0 = arith.constant 0 : i32
    %c0_i32_1 = arith.constant 0 : i32
    return %c0_i32, %c0_i32_0 : i32, i32
  }
  func.func @transform_11(%arg0: i32) -> (i32, i32, i32) {
    %c0_i32 = arith.constant 0 : i32
    %c0_i32_0 = arith.constant 0 : i32
    %c0_i32_1 = arith.constant 0 : i32
    %c0_i32_2 = arith.constant 0 : i32
    return %c0_i32, %c0_i32_0, %c0_i32_1 : i32, i32, i32
  }
  func.func @transform_12(%arg0: i32) -> (i32, i32) {
    %c0_i32 = arith.constant 0 : i32
    %c0_i32_0 = arith.constant 0 : i32
    %c0_i32_1 = arith.constant 0 : i32
    return %c0_i32, %c0_i32_0 : i32, i32
  }
  func.func @transform_13(%arg0: i32) -> (i32, i32, i32) {
    %c0_i32 = arith.constant 0 : i32
    %c0_i32_0 = arith.constant 0 : i32
    %c0_i32_1 = arith.constant 0 : i32
    %c0_i32_2 = arith.constant 0 : i32
    return %c0_i32, %c0_i32_0, %c0_i32_1 : i32, i32, i32
  }
  func.func @transform_14(%arg0: i32) -> (i32, i32) {
    %c0_i32 = arith.constant 0 : i32
    %c0_i32_0 = arith.constant 0 : i32
    %c0_i32_1 = arith.constant 0 : i32
    return %c0_i32, %c0_i32_0 : i32, i32
  }
  func.func @transform_15(%arg0: i32) -> (i32, i32, i32) {
    %c0_i32 = arith.constant 0 : i32
    %c0_i32_0 = arith.constant 0 : i32
    %c0_i32_1 = arith.constant 0 : i32
    %c0_i32_2 = arith.constant 0 : i32
    return %c0_i32, %c0_i32_0, %c0_i32_1 : i32, i32, i32
  }
  func.func @transform_16(%arg0: i32) -> (i32, i32) {
    %c0_i32 = arith.constant 0 : i32
    %c0_i32_0 = arith.constant 0 : i32
    %c0_i32_1 = arith.constant 0 : i32
    return %c0_i32, %c0_i32_0 : i32, i32
  }
  func.func @transform_17(%arg0: i32) -> (i32, i32) {
    %c0_i32 = arith.constant 0 : i32
    %c0_i32_0 = arith.constant 0 : i32
    %c0_i32_1 = arith.constant 0 : i32
    return %c0_i32, %c0_i32_0 : i32, i32
  }
  func.func @transform_18(%arg0: i32) -> (i32, i32) {
    %c0_i32 = arith.constant 0 : i32
    %c0_i32_0 = arith.constant 0 : i32
    %c0_i32_1 = arith.constant 0 : i32
    return %c0_i32, %c0_i32_0 : i32, i32
  }
  func.func @transform_19(%arg0: i32) -> (i32, i32, i32) {
    %c0_i32 = arith.constant 0 : i32
    %c0_i32_0 = arith.constant 0 : i32
    %c0_i32_1 = arith.constant 0 : i32
    return %arg0, %c0_i32, %c0_i32_0 : i32, i32, i32
  }
}

</mosaic_0001>

<bundles_post_ra>
// kernel: tpu_custom_call.1
= control target key start
LH: loop header
LB: loop body
LE: loop exit
PB: predicated region body
PF: predicated region fallthrough
CT: control target
= control target key end

     0   :  { %s12822_s0 = inlined_call_operand.hbm [shape: f32[4,8,128], index: 0, kind: input, shape index: {}]   ;;  %s12823_s1 = inlined_call_operand.hbm [shape: f32[4,16,128], index: 1, kind: input, shape index: {}]   ;;  %s12824_s2 = inlined_call_operand.hbm [shape: f32[4,8,128], index: 2, kind: input, shape index: {}]   ;;  %s12825_s3 = inlined_call_operand.vmem [shape: f32[8,16], index: 3, kind: input, shape index: {}]   ;;  %s12826_s4 = inlined_call_operand.hbm [shape: f32[8,8], index: 4, kind: input, shape index: {}]   ;;  %s12827_s5 = inlined_call_operand.hbm [shape: bf16[128,384], index: 5, kind: input, shape index: {}]   ;;  %s12828_s6 = inlined_call_operand.hbm [shape: f32[1,384], index: 6, kind: input, shape index: {}]   ;;  %s12829_s7 = inlined_call_operand.hbm [shape: bf16[2,128,128], index: 7, kind: input, shape index: {}]   ;;  %s12830_s8 = inlined_call_operand.hbm [shape: f32[2,128], index: 8, kind: input, shape index: {}]   ;;  %s12831_s9 = inlined_call_operand.hbm [shape: bf16[2,128,256], index: 9, kind: input, shape index: {}]   ;;  %s12832_s10 = inlined_call_operand.vmem [shape: f32[2,256], index: 10, kind: input, shape index: {}]   ;;  %s12833_s11 = inlined_call_operand.hbm [shape: bf16[3,128,128], index: 11, kind: input, shape index: {}]   ;;  %s12834_s12 = inlined_call_operand.vmem [shape: f32[3,128], index: 12, kind: input, shape index: {}]   ;;  %s12835_s13 = inlined_call_operand.hbm [shape: bf16[2,128,256], index: 13, kind: input, shape index: {}]   ;;  %s12836_s14 = inlined_call_operand.vmem [shape: f32[2,256], index: 14, kind: input, shape index: {}]   ;;  %s12837_s15 = inlined_call_operand.hbm [shape: bf16[2,256,128], index: 15, kind: input, shape index: {}]   ;;  %s12838_s16 = inlined_call_operand.vmem [shape: f32[2,128], index: 16, kind: input, shape index: {}]   ;;  %s12839_s17 = inlined_call_operand.vmem [shape: f32[5,128], index: 17, kind: input, shape index: {}]   ;;  %s12840_s18 = inlined_call_operand.vmem [shape: f32[5,128], index: 18, kind: input, shape index: {}]   ;;  %s12841_s19 = inlined_call_operand.hbm [shape: f32[4,8,128], index: 19, kind: output, shape index: {}]  }
   0x1   :  { %12849 = sst [smem:[#allocation31_spill]] %s12822_s0 }
   0x2   :  { %12850 = sst [smem:[#allocation32_spill]] %s12823_s1 }
   0x3   :  { %12851 = sst [smem:[#allocation33_spill]] %s12824_s2 }
   0x4   :  { %12852 = sst [smem:[#allocation34_spill]] %s12825_s3 }
   0x5   :  { %24 = vsyncpa [#allocation3], 0 }
   0x6   :  { %25 = vsyncpa [#allocation6], 0 }
   0x7   :  { %26 = vsyncpa [#allocation9], 0 }
   0x8   :  { %27 = vsyncpa [#allocation12], 0 }
   0x9   :  { %28 = vsyncpa [#allocation15], 0 }
   0xa   :  { %29 = vsyncpa [#allocation18], 0 }
   0xb   :  { %30 = vsyncpa [#allocation21], 0 }
   0xc   :  { %31 = vsyncpa [#allocation4], 0  ;;  %s10883_s0 = smov [#allocation5]   ;;  %s10884_s20 = smov [#allocation8]  }
   0xd   :  { %s49_s30 = sshll.u32 %s10883_s0, 4  ;;  %s76_s21 = sshll.u32 %s10884_s20, 4  ;;  %s50_s30 = int_to_ptr.vmem [resolvable:$true] %s49_s30  ;;  %s77_s21 = int_to_ptr.vmem [resolvable:$true] %s76_s21 }
   0xe   :  { %s12853_s2 = sld [smem:[#allocation32_spill]] }
  0x14   :  { %s10581_s23 = scalar_lea.hbm %s12853_s2, 1024 }
  0x15   :  { %p10582_p0 = scmp.ne.s32.totalorder %s12853_s2, %s10581_s23  ;;  %p10585_p1 = scmp.lt.u32.totalorder %s10581_s23, %s12853_s2 }
  0x17   :  { %p10587_p2 = pnand %p10585_p1, %p10582_p0 }
  0x19   :  { %10590 = shalt.err (!%p10587_p2)
}
  0x1a   :  { %s10591_s27 = scalar_lea.vmem %s50_s30, 1024  ;;  %p10596_p4 = scmp.lt.s32.totalorder %s50_s30, %s50_s30 }
  0x1b   :  { %p10592_p3 = scmp.ne.s32.totalorder %s50_s30, %s10591_s27  ;;  %p10597_p5 = scmp.lt.s32.totalorder %s10591_s27, %s10591_s27 }
  0x1d   :  { %p10598_p6 = por %p10597_p5, %p10596_p4 }
  0x1f   :  { %p10599_p7 = pnand %p10598_p6, %p10592_p3 }
  0x21   :  { %10602 = shalt.err (!%p10599_p7)
}
  0x22   :  { %s12845_s28 = smov 128   ;;  %s10886_s29 = smov 8  }
  0x23   :  { %55 = dma.hbm_to_vmem [thread:$0]  %s12853_s2, 1024, %s50_s30, [#allocation6], %s12845_s28, %s12845_s28, %s10886_s29  }
  0x24   :  { %s10603_s23 = scalar_lea.hbm %s12826_s4, 128 }
  0x25   :  { %p10604_p8 = scmp.ne.s32.totalorder %s12826_s4, %s10603_s23  ;;  %p10607_p9 = scmp.lt.u32.totalorder %s10603_s23, %s12826_s4 }
  0x27   :  { %p10609_p10 = pnand %p10607_p9, %p10604_p8 }
  0x29   :  { %10612 = shalt.err (!%p10609_p10)
}
  0x2a   :  { %s10613_s27 = scalar_lea.vmem %s77_s21, 128  ;;  %p10618_p12 = scmp.lt.s32.totalorder %s77_s21, %s77_s21 }
  0x2b   :  { %p10614_p11 = scmp.ne.s32.totalorder %s77_s21, %s10613_s27  ;;  %p10619_p13 = scmp.lt.s32.totalorder %s10613_s27, %s10613_s27 }
  0x2d   :  { %p10620_p0 = por %p10619_p13, %p10618_p12 }
  0x2f   :  { %p10621_p1 = pnand %p10620_p0, %p10614_p11 }
  0x31   :  { %10624 = shalt.err (!%p10621_p1)
}
  0x32   :  { %79 = dma.hbm_to_vmem [thread:$0]  %s12826_s4, 128, %s77_s21, [#allocation9]  }
  0x33   :  { %s10887_s0 = smov [#allocation11]   ;;  %s10888_s1 = smov [#allocation14]  }
  0x34   :  { %s98_s20 = sshll.u32 %s10887_s0, 4  ;;  %s120_s22 = sshll.u32 %s10888_s1, 4  ;;  %s99_s20 = int_to_ptr.vmem [resolvable:$true] %s98_s20  ;;  %s121_s22 = int_to_ptr.vmem [resolvable:$true] %s120_s22 }
  0x35   :  { %s10625_s25 = scalar_lea.hbm %s12828_s6, 48 }
  0x36   :  { %p10626_p2 = scmp.ne.s32.totalorder %s12828_s6, %s10625_s25  ;;  %p10629_p3 = scmp.lt.u32.totalorder %s10625_s25, %s12828_s6 }
  0x38   :  { %p10631_p4 = pnand %p10629_p3, %p10626_p2 }
  0x3a   :  { %10634 = shalt.err (!%p10631_p4)
}
  0x3b   :  { %s10635_s4 = scalar_lea.vmem %s99_s20, 48  ;;  %s10639_s21 = scalar_lea.vmem %s99_s20, 64 }
  0x3c   :  { %p10636_p5 = scmp.ne.s32.totalorder %s99_s20, %s10635_s4  ;;  %p10640_p6 = scmp.lt.s32.totalorder %s99_s20, %s99_s20 }
  0x3d   :  { %p10641_p7 = scmp.lt.s32.totalorder %s10639_s21, %s10635_s4 }
  0x3f   :  { %p10642_p8 = por %p10641_p7, %p10640_p6 }
  0x41   :  { %p10643_p9 = pnand %p10642_p8, %p10636_p5 }
  0x43   :  { %10646 = shalt.err (!%p10643_p9)
}
  0x44   :  { %101 = dma.hbm_to_vmem [thread:$0]  %s12828_s6, 48, %s99_s20, [#allocation12]  }
  0x45   :  { %s10647_s23 = scalar_lea.hbm %s12830_s8, 32 }
  0x46   :  { %p10648_p10 = scmp.ne.s32.totalorder %s12830_s8, %s10647_s23  ;;  %p10651_p11 = scmp.lt.u32.totalorder %s10647_s23, %s12830_s8 }
  0x48   :  { %p10653_p12 = pnand %p10651_p11, %p10648_p10 }
  0x4a   :  { %10656 = shalt.err (!%p10653_p12)
}
  0x4b   :  { %s10657_s26 = scalar_lea.vmem %s121_s22, 32  ;;  %p10662_p0 = scmp.lt.s32.totalorder %s121_s22, %s121_s22 }
  0x4c   :  { %p10658_p13 = scmp.ne.s32.totalorder %s121_s22, %s10657_s26  ;;  %p10663_p1 = scmp.lt.s32.totalorder %s10657_s26, %s10657_s26 }
  0x4e   :  { %p10664_p2 = por %p10663_p1, %p10662_p0 }
  0x50   :  { %p10665_p3 = pnand %p10664_p2, %p10658_p13 }
  0x52   :  { %10668 = shalt.err (!%p10665_p3)
}
  0x53   :  { %123 = dma.hbm_to_vmem [thread:$0]  %s12830_s8, 32, %s121_s22, [#allocation15]  }
  0x54   :  { %s10889_s27 = smov [#allocation17]   ;;  %s10890_s21 = smov [#allocation2]  }
  0x55   :  { %s143_s4 = sshll.u32 %s10889_s27, 4  ;;  %s37_s30 = sshll.u32 %s10890_s21, 4  ;;  %s144_s4 = int_to_ptr.vmem [resolvable:$true] %s143_s4  ;;  %s11058_s30 = int_to_ptr.vmem [resolvable:$true] %s37_s30 }
  0x56   :  { %s10669_s1 = scalar_lea.hbm %s12833_s11, 3072 }
  0x57   :  { %p10670_p4 = scmp.ne.s32.totalorder %s12833_s11, %s10669_s1  ;;  %p10673_p5 = scmp.lt.u32.totalorder %s10669_s1, %s12833_s11 }
  0x59   :  { %p10675_p6 = pnand %p10673_p5, %p10670_p4 }
  0x5b   :  { %10678 = shalt.err (!%p10675_p6)
}
  0x5c   :  { %s10679_s8 = scalar_lea.vmem %s144_s4, 3072  ;;  %p10684_p8 = scmp.lt.s32.totalorder %s144_s4, %s144_s4 }
  0x5d   :  { %p10680_p7 = scmp.ne.s32.totalorder %s144_s4, %s10679_s8  ;;  %p10685_p9 = scmp.lt.s32.totalorder %s10679_s8, %s10679_s8 }
  0x5f   :  { %p10686_p10 = por %p10685_p9, %p10684_p8 }
  0x61   :  { %p10687_p11 = pnand %p10686_p10, %p10680_p7 }
  0x63   :  { %10690 = shalt.err (!%p10687_p11)
}
  0x64   :  { %s12847_s22 = smov 64   ;;  %s10892_s3 = smov 4  }
  0x65   :  { %149 = dma.hbm_to_vmem [thread:$0]  %s12833_s11, 3072, %s144_s4, [#allocation18], %s12847_s22, %s12847_s22, %s10892_s3  }
  0x66   :  { %s12854_s21 = sld [smem:[#allocation31_spill]] }
  0x6c   :  { %s10691_s2 = scalar_lea.hbm %s12854_s21, 512 }
  0x6d   :  { %p10692_p12 = scmp.ne.s32.totalorder %s12854_s21, %s10691_s2  ;;  %p10695_p13 = scmp.lt.u32.totalorder %s10691_s2, %s12854_s21 }
  0x6f   :  { %p10697_p0 = pnand %p10695_p13, %p10692_p12 }
  0x71   :  { %10700 = shalt.err (!%p10697_p0)
}
  0x72   :  { %s10701_s24 = scalar_lea.vmem %s11058_s30, 512  ;;  %p10706_p2 = scmp.lt.s32.totalorder %s11058_s30, %s11058_s30 }
  0x73   :  { %p10702_p1 = scmp.ne.s32.totalorder %s11058_s30, %s10701_s24  ;;  %p10707_p3 = scmp.lt.s32.totalorder %s10701_s24, %s10701_s24 }
  0x75   :  { %p10708_p4 = por %p10707_p3, %p10706_p2 }
  0x77   :  { %p10709_p5 = pnand %p10708_p4, %p10702_p1 }
  0x79   :  { %10712 = shalt.err (!%p10709_p5)
}
  0x7a   :  { %s12855_s11 = smov 128   ;;  %s10893_s8 = smov [#allocation7]  }
  0x7b   :  { %43 = dma.hbm_to_vmem [thread:$0]  %s12854_s21, 512, %s11058_s30, [#allocation3], %s12855_s11, %s12855_s11, %s10886_s29  }
  0x7c   :  { %s61_s26 = sshll.u32 %s10893_s8, 4  ;;  %s10894_s6 = smov [#allocation10]   ;;  %s62_s26 = int_to_ptr.vmem [resolvable:$true] %s61_s26 }
  0x7d   :  { %s85_s20 = sshll.u32 %s10894_s6, 4  ;;  %s12856_s0 = sld [smem:[#allocation33_spill]]  ;;  %s11095_s20 = int_to_ptr.vmem [resolvable:$true] %s85_s20 }
  0x83   :  { %s10713_s1 = scalar_lea.hbm %s12856_s0, 512 }
  0x84   :  { %p10714_p6 = scmp.ne.s32.totalorder %s12856_s0, %s10713_s1  ;;  %p10717_p7 = scmp.lt.u32.totalorder %s10713_s1, %s12856_s0 }
  0x86   :  { %p10719_p8 = pnand %p10717_p7, %p10714_p6 }
  0x88   :  { %10722 = shalt.err (!%p10719_p8)
}
  0x89   :  { %s10723_s30 = scalar_lea.vmem %s62_s26, 512  ;;  %p10728_p10 = scmp.lt.s32.totalorder %s62_s26, %s62_s26 }
  0x8a   :  { %p10724_p9 = scmp.ne.s32.totalorder %s62_s26, %s10723_s30  ;;  %p10729_p11 = scmp.lt.s32.totalorder %s10723_s30, %s10723_s30 }
  0x8c   :  { %p10730_p12 = por %p10729_p11, %p10728_p10 }
  0x8e   :  { %p10731_p13 = pnand %p10730_p12, %p10724_p9 }
  0x90   :  { %10734 = shalt.err (!%p10731_p13)
}
  0x91   :  { %67 = dma.hbm_to_vmem [thread:$0]  %s12856_s0, 512, %s62_s26, [#allocation6], %s12855_s11, %s12855_s11, %s10886_s29  }
  0x92   :  { %s10735_s22 = scalar_lea.hbm %s12827_s5, 3072 }
  0x93   :  { %p10736_p0 = scmp.ne.s32.totalorder %s12827_s5, %s10735_s22  ;;  %p10739_p1 = scmp.lt.u32.totalorder %s10735_s22, %s12827_s5 }
  0x95   :  { %p10741_p2 = pnand %p10739_p1, %p10736_p0 }
  0x97   :  { %10744 = shalt.err (!%p10741_p2)
}
  0x98   :  { %s10745_s23 = scalar_lea.vmem %s11095_s20, 3072  ;;  %p10750_p4 = scmp.lt.s32.totalorder %s11095_s20, %s11095_s20 }
  0x99   :  { %p10746_p3 = scmp.ne.s32.totalorder %s11095_s20, %s10745_s23  ;;  %p10751_p5 = scmp.lt.s32.totalorder %s10745_s23, %s10745_s23 }
  0x9b   :  { %p10752_p6 = por %p10751_p5, %p10750_p4 }
  0x9d   :  { %p10753_p7 = pnand %p10752_p6, %p10746_p3 }
  0x9f   :  { %10756 = shalt.err (!%p10753_p7)
}
  0xa0   :  { %s10895_s26 = smov 192   ;;  %s10896_s0 = smov 12  }
  0xa1   :  { %91 = dma.hbm_to_vmem [thread:$0]  %s12827_s5, 3072, %s11095_s20, [#allocation9], %s10895_s26, %s10895_s26, %s10896_s0  }
  0xa2   :  { %s10897_s30 = smov [#allocation13]   ;;  %s10898_s4 = smov [#allocation16]  }
  0xa3   :  { %s107_s21 = sshll.u32 %s10897_s30, 4  ;;  %s129_s25 = sshll.u32 %s10898_s4, 4  ;;  %s108_s21 = int_to_ptr.vmem [resolvable:$true] %s107_s21  ;;  %s11129_s25 = int_to_ptr.vmem [resolvable:$true] %s129_s25 }
  0xa4   :  { %s10757_s6 = scalar_lea.hbm %s12829_s7, 2048 }
  0xa5   :  { %p10758_p8 = scmp.ne.s32.totalorder %s12829_s7, %s10757_s6  ;;  %p10761_p9 = scmp.lt.u32.totalorder %s10757_s6, %s12829_s7 }
  0xa7   :  { %p10763_p10 = pnand %p10761_p9, %p10758_p8 }
  0xa9   :  { %10766 = shalt.err (!%p10763_p10)
}
  0xaa   :  { %s10767_s5 = scalar_lea.vmem %s108_s21, 2048  ;;  %p10772_p12 = scmp.lt.s32.totalorder %s108_s21, %s108_s21 }
  0xab   :  { %p10768_p11 = scmp.ne.s32.totalorder %s108_s21, %s10767_s5  ;;  %p10773_p13 = scmp.lt.s32.totalorder %s10767_s5, %s10767_s5 }
  0xad   :  { %p10774_p0 = por %p10773_p13, %p10772_p12 }
  0xaf   :  { %p10775_p1 = pnand %p10774_p0, %p10768_p11 }
  0xb1   :  { %10778 = shalt.err (!%p10775_p1)
}
  0xb2   :  { %s12857_s20 = smov 64   ;;  %s10779_s30 = scalar_lea.hbm %s12831_s9, 4096 }
  0xb3   :  { %113 = dma.hbm_to_vmem [thread:$0]  %s12829_s7, 2048, %s108_s21, [#allocation12], %s12857_s20, %s12857_s20, %s10892_s3  }
  0xb4   :  { %p10780_p2 = scmp.ne.s32.totalorder %s12831_s9, %s10779_s30  ;;  %p10783_p3 = scmp.lt.u32.totalorder %s10779_s30, %s12831_s9 }
  0xb6   :  { %p10785_p4 = pnand %p10783_p3, %p10780_p2 }
  0xb8   :  { %10788 = shalt.err (!%p10785_p4)
}
  0xb9   :  { %s10789_s27 = scalar_lea.vmem %s11129_s25, 4096  ;;  %p10794_p6 = scmp.lt.s32.totalorder %s11129_s25, %s11129_s25 }
  0xba   :  { %p10790_p5 = scmp.ne.s32.totalorder %s11129_s25, %s10789_s27  ;;  %p10795_p7 = scmp.lt.s32.totalorder %s10789_s27, %s10789_s27 }
  0xbc   :  { %p10796_p8 = por %p10795_p7, %p10794_p6 }
  0xbe   :  { %p10797_p9 = pnand %p10796_p8, %p10790_p5 }
  0xc0   :  { %10800 = shalt.err (!%p10797_p9)
}
  0xc1   :  { %135 = dma.hbm_to_vmem [thread:$0]  %s12831_s9, 4096, %s11129_s25, [#allocation15], %s12855_s11, %s12855_s11, %s10886_s29  }
  0xc2   :  { %s10899_s2 = smov [#allocation19]   ;;  %s10900_s23 = smov [#allocation20]  }
  0xc3   :  { %s157_s1 = sshll.u32 %s10899_s2, 4  ;;  %s171_s5 = sshll.u32 %s10900_s23, 4  ;;  %s158_s1 = int_to_ptr.vmem [resolvable:$true] %s157_s1  ;;  %s11166_s5 = int_to_ptr.vmem [resolvable:$true] %s171_s5 }
  0xc4   :  { %s10801_s28 = scalar_lea.hbm %s12835_s13, 4096 }
  0xc5   :  { %p10802_p10 = scmp.ne.s32.totalorder %s12835_s13, %s10801_s28  ;;  %p10805_p11 = scmp.lt.u32.totalorder %s10801_s28, %s12835_s13 }
  0xc7   :  { %p10807_p12 = pnand %p10805_p11, %p10802_p10 }
  0xc9   :  { %10810 = shalt.err (!%p10807_p12)
}
  0xca   :  { %s10811_s9 = scalar_lea.vmem %s158_s1, 4096  ;;  %p10816_p0 = scmp.lt.s32.totalorder %s158_s1, %s158_s1 }
  0xcb   :  { %p10812_p13 = scmp.ne.s32.totalorder %s158_s1, %s10811_s9  ;;  %p10817_p1 = scmp.lt.s32.totalorder %s10811_s9, %s10811_s9 }
  0xcd   :  { %p10818_p2 = por %p10817_p1, %p10816_p0 }
  0xcf   :  { %p10819_p3 = pnand %p10818_p2, %p10812_p13 }
  0xd1   :  { %10822 = shalt.err (!%p10819_p3)
}
  0xd2   :  { %163 = dma.hbm_to_vmem [thread:$0]  %s12835_s13, 4096, %s158_s1, [#allocation18], %s12855_s11, %s12855_s11, %s10886_s29  }
  0xd3   :  { %s10823_s7 = scalar_lea.hbm %s12837_s15, 4096 }
  0xd4   :  { %p10824_p4 = scmp.ne.s32.totalorder %s12837_s15, %s10823_s7  ;;  %p10827_p5 = scmp.lt.u32.totalorder %s10823_s7, %s12837_s15 }
  0xd6   :  { %p10829_p6 = pnand %p10827_p5, %p10824_p4 }
  0xd8   :  { %10832 = shalt.err (!%p10829_p6)
}
  0xd9   :  { %s10833_s0 = scalar_lea.vmem %s11166_s5, 4096  ;;  %p10838_p8 = scmp.lt.s32.totalorder %s11166_s5, %s11166_s5 }
  0xda   :  { %p10834_p7 = scmp.ne.s32.totalorder %s11166_s5, %s10833_s0  ;;  %p10839_p9 = scmp.lt.s32.totalorder %s10833_s0, %s10833_s0 }
  0xdc   :  { %p10840_p10 = por %p10839_p9, %p10838_p8 }
  0xde   :  { %p10841_p11 = pnand %p10840_p10, %p10834_p7 }
  0xe0   :  { %10844 = shalt.err (!%p10841_p11)
}
  0xe1   :  { %177 = dma.hbm_to_vmem [thread:$0]  %s12837_s15, 4096, %s11166_s5, [#allocation21], %s12857_s20, %s12857_s20, %s10892_s3  }
  0xe2   :  { %10867 = dma.done.wait [#allocation3], 512  }
  0xe3   :  { %10868 = vsyncadd [#allocation3], 4294966784 }
  0xe4   :  { %10869 = dma.done.wait [#allocation6], 1536  }
  0xe5   :  { %10870 = vsyncadd [#allocation6], 4294965760 }
  0xe6   :  { %10871 = dma.done.wait [#allocation9], 3200  }
  0xe7   :  { %10872 = vsyncadd [#allocation9], 4294964096 }
  0xe8   :  { %10873 = dma.done.wait [#allocation12], 2096  }
  0xe9   :  { %10874 = vsyncadd [#allocation12], 4294965200 }
  0xea   :  { %10875 = dma.done.wait [#allocation15], 4128  }
  0xeb   :  { %10876 = vsyncadd [#allocation15], 4294963168 }
  0xec   :  { %10877 = dma.done.wait [#allocation18], 7168  }
  0xed   :  { %10878 = vsyncadd [#allocation18], 4294960128 }
  0xee   :  { %10879 = dma.done.wait [#allocation21], 4096  }
  0xef   :  { %10880 = vsyncadd [#allocation21], 4294963200  ;;  %v10901_v0 = vmov 0   ;;  %v10041_v1 = vld [vmem:[#allocation10 + $0x4] ss:$12 sps:$4 sm:$0xff]   ;;  %v221_v8 = vld [vmem:[#allocation2] sm:$0xff]  ;;  %v275_v32 = vlaneseq }
  0xf0   :  { %450 = vmatprep.mubr.bf16.mxu0 %v10901_v0  ;;  %v10043_v2 = vld [vmem:[#allocation10] ss:$12 sps:$4 sm:$0xff]   ;;  %418 = vmatprep.subr.bf16.mxu0 %v10041_v1  ;;  %v10044_v3 = vld [vmem:[#allocation10 + $0x1c] ss:$12 sps:$4 sm:$0xff]   ;;  %v10046_v4 = vld [vmem:[#allocation10 + $0x18] ss:$12 sps:$4 sm:$0xff]  }
  0xf1   :  { %419 = vmatpush1.bf16.msra.mxu0 %v10043_v2  ;;  %v10047_v5 = vld [vmem:[#allocation10 + $0x34] ss:$12 sps:$4 sm:$0xff]   ;;  %v10049_v6 = vld [vmem:[#allocation10 + $0x30] ss:$12 sps:$4 sm:$0xff]   ;;  %v10050_v7 = vld [vmem:[#allocation10 + $0x4c] ss:$12 sps:$4 sm:$0xff]  }
  0xf2   :  { %420 = vmatprep.subr.bf16.mxu0 %v10044_v3  ;;  %v10052_v9 = vld [vmem:[#allocation10 + $0x48] ss:$12 sps:$4 sm:$0xff]   ;;  %v10053_v10 = vld [vmem:[#allocation10 + $0x64] ss:$12 sps:$4 sm:$0xff]   ;;  %v10066_v14 = vld [vmem:[#allocation10 + $0x20] ss:$12 sps:$4 sm:$0xff]  }
  0xf3   :  { %v222_v11 = vld [vmem:[#allocation2 + $0x8] sm:$0xff]  ;;  %v10065_v13 = vld [vmem:[#allocation10 + $0x8] ss:$12 sps:$4 sm:$0xff]   ;;  %v10068_v20 = vld [vmem:[#allocation10 + $0x50] ss:$12 sps:$4 sm:$0xff]   ;;  %v10902_v31 = vmov 0.0  }
  0xf4   :  { %v271_v12 = vpack.c.bf16 %v222_v11, %v221_v8  ;;  %v10055_v15 = vld [vmem:[#allocation10 + $0x60] ss:$12 sps:$4 sm:$0xff]   ;;  %9321 = vmatprep.subr.bf16.mxu1 %v10065_v13  ;;  %v10056_v16 = vld [vmem:[#allocation10 + $0x7c] ss:$12 sps:$4 sm:$0xff]   ;;  %v10067_v17 = vld [vmem:[#allocation10 + $0x38] ss:$12 sps:$4 sm:$0xff]  }
  0xf5   :  { %421 = vmatpush1.bf16.msra.mxu0 %v10046_v4  ;;  %9322 = vmatpush3.bf16.msra.mxu1 %v10065_v13  ;;  %v10058_v18 = vld [vmem:[#allocation10 + $0x78] ss:$12 sps:$4 sm:$0xff]   ;;  %v10059_v19 = vld [vmem:[#allocation10 + $0x94] ss:$12 sps:$4 sm:$0xff]   ;;  %v10061_v21 = vld [vmem:[#allocation10 + $0x90] ss:$12 sps:$4 sm:$0xff]  }
  0xf6   :  { %422 = vmatprep.subr.bf16.mxu0 %v10047_v5  ;;  %9337 = vmatprep.mubr.bf16.mxu1 %v271_v12  ;;  %v10062_v22 = vld [vmem:[#allocation10 + $0xac] ss:$12 sps:$4 sm:$0xff]   ;;  %v10069_v23 = vld [vmem:[#allocation10 + $0x68] ss:$12 sps:$4 sm:$0xff]   ;;  %v10072_v30 = vld [vmem:[#allocation10 + $0xb0] ss:$12 sps:$4 sm:$0xff]  }
  0xf7   :  { %9323 = vmatprep.subr.bf16.mxu1 %v10066_v14  ;;  %v10064_v24 = vld [vmem:[#allocation10 + $0xa8] ss:$12 sps:$4 sm:$0xff]   ;;  %v10070_v25 = vld [vmem:[#allocation10 + $0x80] ss:$12 sps:$4 sm:$0xff]   ;;  %v10071_v29 = vld [vmem:[#allocation10 + $0x98] ss:$12 sps:$4 sm:$0xff]  }
  0xf8   :  { %v223_v26 = vld [vmem:[#allocation2 + $0x10] sm:$0xff]  ;;  %v224_v27 = vld [vmem:[#allocation2 + $0x18] sm:$0xff]  ;;  %vm10903_vm0 = vmmov 0   ;;  %v11211_v33 = vshrl.u32 %v275_v32, 7  ;;  %v11216_v35 = vld [vmem:[#allocation11] sm:$0x7] }
  0xf9   :  { %423 = vmatpush1.bf16.msra.mxu0 %v10049_v6  ;;  %9324 = vmatpush3.bf16.msra.mxu1 %v10066_v14  ;;  %v272_v28 = vpack.c.bf16 %v224_v27, %v223_v26  ;;  %vm668_vm1 = vcmask 261120   ;;  %s10904_s15 = smov 96   ;;  %s10905_s3 = smov 32   ;;  %vm1601_vm2 = vcmask 1043456   ;;  %vm1405_vm3 = vcmask 64512  }
  0xfa   :  { %424 = vmatprep.subr.bf16.mxu0 %v10050_v7  ;;  %9325 = vmatprep.subr.bf16.mxu1 %v10067_v17  ;;  %v11214_v34 = vsub.s32 0, %v11211_v33  ;;  %v11219_v36 = vsub.s32 1, %v11211_v33  ;;  %vm2367_vm4 = vcmask 523264   ;;  %vm2372_vm5 = vcmask 785408   ;;  %s12858_s27 = sld [smem:[#allocation34_spill]] }
  0xfb   :  { %vm3761_vm14 = vcmask 130048  }
  0xfc   :  { %v278_v37 = vrot.slane %v11216_v35, %v11214_v34  ;;  %v282_v38 = vrot.slane %v11216_v35, %v11219_v36 }
  0xfd   :  { %425 = vmatpush1.bf16.msra.mxu0 %v10052_v9  ;;  %9326 = vmatpush3.bf16.msra.mxu1 %v10067_v17 }
  0xfe   :  { %426 = vmatprep.subr.bf16.mxu0 %v10053_v10  ;;  %9327 = vmatprep.subr.bf16.mxu1 %v10068_v20 }
 0x101   :  { %427 = vmatpush1.bf16.msra.mxu0 %v10055_v15  ;;  %9328 = vmatpush3.bf16.msra.mxu1 %v10068_v20 }
 0x102   :  { %428 = vmatprep.subr.bf16.mxu0 %v10056_v16  ;;  %9329 = vmatprep.subr.bf16.mxu1 %v10069_v23 }
 0x105   :  { %429 = vmatpush1.bf16.msra.mxu0 %v10058_v18  ;;  %9330 = vmatpush3.bf16.msra.mxu1 %v10069_v23 }
 0x106   :  { %430 = vmatprep.subr.bf16.mxu0 %v10059_v19  ;;  %9331 = vmatprep.subr.bf16.mxu1 %v10070_v25 }
 0x109   :  { %431 = vmatpush1.bf16.msra.mxu0 %v10061_v21  ;;  %9332 = vmatpush3.bf16.msra.mxu1 %v10070_v25 }
 0x10a   :  { %432 = vmatprep.subr.bf16.mxu0 %v10062_v22  ;;  %9333 = vmatprep.subr.bf16.mxu1 %v10071_v29 }
 0x10d   :  { %433 = vmatpush1.bf16.msra.mxu0 %v10064_v24  ;;  %9334 = vmatpush3.bf16.msra.mxu1 %v10071_v29 }
 0x10e   :  { %9335 = vmatprep.subr.bf16.mxu1 %v10072_v30  ;;  %9341 = vmatprep.subr.bf16.mxu0 %v10902_v31 }
 0x110   :  { %451 = vmatmul.mubr.bf16.vlgmr.msra.gmra.mrb[0].mxu0 %v271_v12  ;;  %v285_v12 = vsub.s32 2, %v11211_v33 }
 0x111   :  { %460 = vmatprep.mubr.bf16.mxu0 %v10901_v0  ;;  %9336 = vmatpush3.bf16.msra.mxu1 %v10072_v30 }
 0x112   :  { %9353 = vmatprep.subr.bf16.mxu1 %v10902_v31  ;;  %v286_v15 = vrot.slane %v11216_v35, %v285_v12 }
 0x114   :  { %9338 = vmatmul.mubr.bf16.vlgmr.msra.gmra.mrb[0].mxu1 %v272_v28 }
 0x115   :  { %9355 = vmatprep.mubr.msk.bf16.mxu1 %vm10903_vm0, %v10902_v31 }
 0x118   :  { %461 = vmatmul.mubr.bf16.gmra.mrb[4].mxu0 %v272_v28 }
 0x119   :  { %9343 = vmatprep.mubr.msk.bf16.mxu0 %vm10903_vm0, %v10902_v31 }
 0x1e3   :  { %v452_v39 = vpop.f32.mrb[0].mxu0 }
 0x1e4   :  { %v453_v40 = vadd.f32 %v452_v39, %v278_v37  ;;  %v454_v41 = vpop.f32.mrb[1].mxu0 }
 0x1e5   :  { %v455_v42 = vadd.f32 %v454_v41, %v282_v38  ;;  %v456_v43 = vpop.f32.mrb[2].mxu0 }
 0x1e6   :  { %v457_v44 = vadd.f32 %v456_v43, %v278_v37  ;;  %v458_v45 = vpop.f32.mrb[3].mxu0  ;;  %v520_v48 = vmul.f32 0.17677669, %v453_v40 }
 0x1e7   :  { %v8989_v46 = vpack.c.bf16 %v455_v42, %v455_v42  ;;  %v459_v47 = vadd.f32 %v458_v45, %v282_v38  ;;  %v9339_v13 = vpop.f32.mrb[0].mxu1 }
 0x1e8   :  { %v521_v49 = vmul.f32 0.17677669, %v457_v44  ;;  %v8985_v62 = vpack.c.bf16 %v520_v48, %v520_v48  ;;  %v505_v14 = vpop.f32.mrb[1].mxu1  ;;  %v11259_v18 = vadd.f32 %v9339_v13, %v286_v15 }
 0x1e9   :  { %v572_v50 = vpack.c.bf16 %v459_v47, %v455_v42  ;;  %v673_v51 = vsel %vm668_vm1, %v8989_v46, 0  ;;  %v8990_v56 = vpack.c.bf16 %v459_v47, %v459_v47  ;;  %v9340_v16 = vpop.f32.mrb[2].mxu1  ;;  %v11261_v19 = vadd.f32 %v505_v14, %v286_v15 }
 0x1ea   :  { %v524_v52 = vpack.c.bf16 %v521_v49, %v520_v48  ;;  %9342 = vmatpush3.bf16.xpose.msra.mxu0 %v673_v51  ;;  %v8986_v9 = vpack.c.bf16 %v521_v49, %v521_v49  ;;  %v508_v17 = vpop.f32.mrb[3].mxu1  ;;  %v11263_v20 = vadd.f32 %v9340_v16, %v286_v15 }
 0x1eb   :  { %v462_v53 = vpop.f32.mrb[4].mxu0  ;;  %576 = vrot.lane.b32.xlu0 %v572_v50, %s10904_s15  ;;  %9347 = vmatprep.subr.bf16.mxu0 %v10902_v31  ;;  %v719_v4 = vsel %vm668_vm1, %v8990_v56, 0  ;;  %v11265_v21 = vadd.f32 %v508_v17, %v286_v15 }
 0x1ec   :  { %v463_v54 = vadd.f32 %v462_v53, %v278_v37  ;;  %v464_v55 = vpop.f32.mrb[5].mxu0  ;;  %v11269_v22 = vpack.c.bf16 %v11263_v20, %v11259_v18 }
 0x1ed   :  { %v465_v57 = vadd.f32 %v464_v55, %v282_v38  ;;  %v466_v58 = vpop.f32.mrb[6].mxu0  ;;  %v11273_v23 = vpack.c.bf16 %v11265_v21, %v11261_v19 }
 0x1ee   :  { %v522_v59 = vmul.f32 0.17677669, %v463_v54  ;;  %v467_v60 = vadd.f32 %v466_v58, %v278_v37  ;;  %v468_v61 = vpop.f32.mrb[7].mxu0 }
 0x1ef   :  { %v8991_v63 = vpack.c.bf16 %v465_v57, %v465_v57  ;;  %v469_v1 = vadd.f32 %v468_v61, %v282_v38  ;;  %528 = vrot.lane.b32.xlu0 %v524_v52, %s10904_s15 }
 0x1f0   :  { %v523_v2 = vmul.f32 0.17677669, %v467_v60  ;;  %v8987_v8 = vpack.c.bf16 %v522_v59, %v522_v59 }
 0x1f1   :  { %v573_v3 = vpack.c.bf16 %v469_v1, %v465_v57  ;;  %9344 = vmatmul.mubr.msk.bf16.vlgmr.msra.gmra.mrb[8].mxu0 %vm668_vm1, %v8985_v62  ;;  %v765_v5 = vsel %vm668_vm1, %v8991_v63, 0  ;;  %v8992_v7 = vpack.c.bf16 %v469_v1, %v469_v1 }
 0x1f2   :  { %v525_v6 = vpack.c.bf16 %v523_v2, %v522_v59  ;;  %9348 = vmatpush3.bf16.xpose.msra.mxu0 %v719_v4  ;;  %9354 = vmatpush3.bf16.xpose.msra.mxu1 %v765_v5  ;;  %v8988_v11 = vpack.c.bf16 %v523_v2, %v523_v2 }
 0x1f3   :  { %578 = vrot.lane.b32.xlu1 %v573_v3, %s10904_s15  ;;  %580 = vrot.lane.b32.xlu0 %v572_v50, %s12857_s20  ;;  %v811_v10 = vsel %vm668_vm1, %v8992_v7, 0 }
 0x1f4   :  { %9349 = vmatprep.mubr.msk.bf16.mxu0 %vm10903_vm0, %v10902_v31  ;;  %9359 = vmatprep.subr.bf16.mxu0 %v10902_v31 }
 0x1f5   :  { %9365 = vmatprep.subr.bf16.mxu1 %v10902_v31 }
 0x1f7   :  { %530 = vrot.lane.b32.xlu1 %v525_v6, %s10904_s15  ;;  %582 = vrot.lane.b32.xlu0 %v573_v3, %s12857_s20 }
 0x1f9   :  { %9350 = vmatmul.mubr.msk.bf16.vlgmr.msra.gmra.mrb[12].mxu0 %vm668_vm1, %v8986_v9  ;;  %9356 = vmatmul.mubr.msk.bf16.vlgmr.msra.gmra.mrb[4].mxu1 %vm668_vm1, %v8987_v8 }
 0x1fa   :  { %9360 = vmatpush3.bf16.xpose.msra.mxu0 %v811_v10  ;;  %9361 = vmatprep.mubr.msk.bf16.mxu0 %vm10903_vm0, %v10902_v31  ;;  %v8993_v10 = vpack.c.bf16 %v11261_v19, %v11261_v19 }
 0x1fb   :  { %532 = vrot.lane.b32.xlu1 %v524_v52, %s12857_s20  ;;  %584 = vrot.lane.b32.xlu0 %v572_v50, %s10905_s3 }
 0x1fc   :  { %9371 = vmatprep.subr.bf16.mxu0 %v10902_v31  ;;  %9367 = vmatprep.mubr.msk.bf16.mxu1 %vm10903_vm0, %v10902_v31  ;;  %v1603_v14 = vsel %vm1601_vm2, %v8993_v10, 0 }
 0x1ff   :  { %534 = vrot.lane.b32.xlu1 %v525_v6, %s12857_s20  ;;  %586 = vrot.lane.b32.xlu0 %v573_v3, %s10905_s3 }
 0x201   :  { %9362 = vmatmul.mubr.msk.bf16.vlgmr.msra.gmra.mrb[16].mxu0 %vm668_vm1, %v8988_v11  ;;  %v8994_v11 = vpack.c.bf16 %v11265_v21, %v11265_v21 }
 0x202   :  { %9373 = vmatprep.mubr.msk.bf16.mxu0 %vm10903_vm0, %v10902_v31 }
 0x203   :  { %536 = vrot.lane.b32.xlu1 %v524_v52, %s10905_s3  ;;  %v1649_v15 = vsel %vm1601_vm2, %v8994_v11, 0 }
 0x207   :  { %538 = vrot.lane.b32.xlu1 %v525_v6, %s10905_s3 }
 0x25d   :  { %v577_v24 = vpop.permute.xlu0 %576 }
 0x25e   :  { %v8642_v25 = vcombine.low %v577_v24, %v577_v24  ;;  %v8643_v26 = vcombine.high %v577_v24, %v577_v24 }
 0x260   :  { %v857_v27 = vsel %vm668_vm1, %v8642_v25, 0  ;;  %v903_v28 = vsel %vm668_vm1, %v8643_v26, 0 }
 0x261   :  { %9366 = vmatpush3.bf16.xpose.msra.mxu1 %v857_v27  ;;  %9372 = vmatpush3.bf16.xpose.msra.mxu0 %v903_v28  ;;  %v529_v29 = vpop.permute.xlu0 %528 }
 0x262   :  { %9377 = vmatprep.subr.bf16.mxu1 %v10902_v31  ;;  %9383 = vmatprep.subr.bf16.mxu0 %v10902_v31  ;;  %v8626_v32 = vcombine.low %v529_v29, %v529_v29  ;;  %v8627_v33 = vcombine.high %v529_v29, %v529_v29 }
 0x265   :  { %v579_v30 = vpop.permute.xlu1 %578  ;;  %v581_v40 = vpop.permute.xlu0 %580 }
 0x266   :  { %v8644_v35 = vcombine.low %v579_v30, %v579_v30  ;;  %v8645_v37 = vcombine.high %v579_v30, %v579_v30  ;;  %v8646_v42 = vcombine.low %v581_v40, %v581_v40  ;;  %v8647_v43 = vcombine.high %v581_v40, %v581_v40 }
 0x268   :  { %9368 = vmatmul.mubr.msk.bf16.vlgmr.msra.gmra.mrb[8].mxu1 %vm668_vm1, %v8626_v32  ;;  %9374 = vmatmul.mubr.msk.bf16.vlgmr.msra.gmra.mrb[20].mxu0 %vm668_vm1, %v8627_v33  ;;  %v949_v38 = vsel %vm668_vm1, %v8644_v35, 0  ;;  %v995_v39 = vsel %vm668_vm1, %v8645_v37, 0  ;;  %v1041_v46 = vsel %vm668_vm1, %v8646_v42, 0  ;;  %v1087_v47 = vsel %vm668_vm1, %v8647_v43, 0 }
 0x269   :  { %9378 = vmatpush3.bf16.xpose.msra.mxu1 %v949_v38  ;;  %9384 = vmatpush3.bf16.xpose.msra.mxu0 %v995_v39  ;;  %v531_v41 = vpop.permute.xlu1 %530  ;;  %v583_v48 = vpop.permute.xlu0 %582 }
 0x26a   :  { %9379 = vmatprep.mubr.msk.bf16.mxu1 %vm10903_vm0, %v10902_v31  ;;  %9385 = vmatprep.mubr.msk.bf16.mxu0 %vm10903_vm0, %v10902_v31  ;;  %v8628_v44 = vcombine.low %v531_v41, %v531_v41  ;;  %v8629_v45 = vcombine.high %v531_v41, %v531_v41  ;;  %v8648_v49 = vcombine.low %v583_v48, %v583_v48 }
 0x26b   :  { %9389 = vmatprep.subr.bf16.mxu1 %v10902_v31  ;;  %9395 = vmatprep.subr.bf16.mxu0 %v10902_v31  ;;  %v8649_v50 = vcombine.high %v583_v48, %v583_v48 }
 0x26c   :  { %v1133_v54 = vsel %vm668_vm1, %v8648_v49, 0 }
 0x26d   :  { %v533_v51 = vpop.permute.xlu1 %532  ;;  %v1179_v55 = vsel %vm668_vm1, %v8649_v50, 0  ;;  %v585_v56 = vpop.permute.xlu0 %584 }
 0x26e   :  { %v8630_v52 = vcombine.low %v533_v51, %v533_v51  ;;  %v8631_v53 = vcombine.high %v533_v51, %v533_v51  ;;  %v8650_v58 = vcombine.low %v585_v56, %v585_v56  ;;  %v8651_v59 = vcombine.high %v585_v56, %v585_v56 }
 0x270   :  { %9380 = vmatmul.mubr.msk.bf16.vlgmr.msra.gmra.mrb[12].mxu1 %vm668_vm1, %v8628_v44  ;;  %9386 = vmatmul.mubr.msk.bf16.vlgmr.msra.gmra.mrb[24].mxu0 %vm668_vm1, %v8629_v45  ;;  %v1225_v63 = vsel %vm668_vm1, %v8650_v58, 0  ;;  %v1271_v1 = vsel %vm668_vm1, %v8651_v59, 0 }
 0x271   :  { %9390 = vmatpush3.bf16.xpose.msra.mxu1 %v1041_v46  ;;  %9396 = vmatpush3.bf16.xpose.msra.mxu0 %v1087_v47  ;;  %v535_v57 = vpop.permute.xlu1 %534  ;;  %v587_v62 = vpop.permute.xlu0 %586 }
 0x272   :  { %9391 = vmatprep.mubr.msk.bf16.mxu1 %vm10903_vm0, %v10902_v31  ;;  %9397 = vmatprep.mubr.msk.bf16.mxu0 %vm10903_vm0, %v10902_v31  ;;  %v8632_v60 = vcombine.low %v535_v57, %v535_v57  ;;  %v8633_v61 = vcombine.high %v535_v57, %v535_v57  ;;  %v8652_v2 = vcombine.low %v587_v62, %v587_v62 }
 0x273   :  { %9401 = vmatprep.subr.bf16.mxu1 %v10902_v31  ;;  %9407 = vmatprep.subr.bf16.mxu0 %v10902_v31  ;;  %v8653_v3 = vcombine.high %v587_v62, %v587_v62 }
 0x274   :  { %v1317_v7 = vsel %vm668_vm1, %v8652_v2, 0 }
 0x275   :  { %v537_v4 = vpop.permute.xlu1 %536  ;;  %v1363_v8 = vsel %vm668_vm1, %v8653_v3, 0 }
 0x276   :  { %v8634_v5 = vcombine.low %v537_v4, %v537_v4  ;;  %v8635_v6 = vcombine.high %v537_v4, %v537_v4 }
 0x278   :  { %9392 = vmatmul.mubr.msk.bf16.vlgmr.msra.gmra.mrb[16].mxu1 %vm668_vm1, %v8630_v52  ;;  %9398 = vmatmul.mubr.msk.bf16.vlgmr.msra.gmra.mrb[28].mxu0 %vm668_vm1, %v8631_v53 }
 0x279   :  { %9402 = vmatpush3.bf16.xpose.msra.mxu1 %v1133_v54  ;;  %9408 = vmatpush3.bf16.xpose.msra.mxu0 %v1179_v55  ;;  %v539_v9 = vpop.permute.xlu1 %538 }
 0x27a   :  { %9403 = vmatprep.mubr.msk.bf16.mxu1 %vm10903_vm0, %v10902_v31  ;;  %9409 = vmatprep.mubr.msk.bf16.mxu0 %vm10903_vm0, %v10902_v31  ;;  %v8636_v12 = vcombine.low %v539_v9, %v539_v9  ;;  %v8637_v13 = vcombine.high %v539_v9, %v539_v9 }
 0x27b   :  { %9413 = vmatprep.subr.bf16.mxu1 %v10902_v31  ;;  %9419 = vmatprep.subr.bf16.mxu0 %v10902_v31 }
 0x280   :  { %9404 = vmatmul.mubr.msk.bf16.vlgmr.msra.gmra.mrb[20].mxu1 %vm668_vm1, %v8632_v60  ;;  %9410 = vmatmul.mubr.msk.bf16.vlgmr.msra.gmra.mrb[32].mxu0 %vm668_vm1, %v8633_v61 }
 0x281   :  { %9414 = vmatpush3.bf16.xpose.msra.mxu1 %v1225_v63  ;;  %9420 = vmatpush3.bf16.xpose.msra.mxu0 %v1271_v1 }
 0x282   :  { %9415 = vmatprep.mubr.msk.bf16.mxu1 %vm10903_vm0, %v10902_v31  ;;  %9421 = vmatprep.mubr.msk.bf16.mxu0 %vm10903_vm0, %v10902_v31 }
 0x283   :  { %9425 = vmatprep.subr.bf16.mxu1 %v10902_v31  ;;  %9431 = vmatprep.subr.bf16.mxu0 %v10902_v31 }
 0x288   :  { %9416 = vmatmul.mubr.msk.bf16.vlgmr.msra.gmra.mrb[24].mxu1 %vm668_vm1, %v8634_v5  ;;  %9422 = vmatmul.mubr.msk.bf16.vlgmr.msra.gmra.mrb[36].mxu0 %vm668_vm1, %v8635_v6 }
 0x289   :  { %9426 = vmatpush3.bf16.xpose.msra.mxu1 %v1317_v7  ;;  %9432 = vmatpush3.bf16.xpose.msra.mxu0 %v1363_v8 }
 0x28a   :  { %9427 = vmatprep.mubr.msk.bf16.mxu1 %vm10903_vm0, %v10902_v31  ;;  %9433 = vmatprep.mubr.msk.bf16.mxu0 %vm10903_vm0, %v10902_v31 }
 0x28b   :  { %9437 = vmatprep.subr.bf16.mxu1 %v10902_v31  ;;  %9443 = vmatprep.subr.bf16.mxu0 %v10902_v31 }
 0x290   :  { %9428 = vmatmul.mubr.msk.bf16.vlgmr.msra.gmra.mrb[28].mxu1 %vm668_vm1, %v8636_v12  ;;  %9434 = vmatmul.mubr.msk.bf16.vlgmr.msra.gmra.mrb[40].mxu0 %vm668_vm1, %v8637_v13 }
 0x291   :  { %9438 = vmatpush3.bf16.msra.mxu1 %v1603_v14  ;;  %9444 = vmatpush3.bf16.msra.mxu0 %v1649_v15 }
 0x292   :  { %9445 = vmatprep.mubr.msk.bf16.mxu0 %vm10903_vm0, %v10902_v31  ;;  %9455 = vmatprep.subr.bf16.mxu0 %v10902_v31 }
 0x293   :  { %9439 = vmatprep.mubr.msk.bf16.mxu1 %vm10903_vm0, %v10902_v31  ;;  %9449 = vmatprep.subr.bf16.mxu1 %v10902_v31 }
 0x2c4   :  { %v11343_v16 = vpop.f32.mrb[8].mxu0 }
 0x2c5   :  { %v9345_v17 = vpop.f32.mrb[9].mxu0  ;;  %v1406_v19 = vsel %vm1405_vm3, %v11343_v16, -inf }
 0x2c6   :  { %v712_v21 = vpop.f32.mrb[10].mxu0  ;;  %1407 = vmax.xlane.f32.xlu0 %v1406_v19 }
 0x2c7   :  { %v9346_v24 = vpop.f32.mrb[11].mxu0 }
 0x2cc   :  { %v11347_v25 = vpop.f32.mrb[12].mxu0  ;;  %v11349_v26 = vpop.f32.mrb[4].mxu1 }
 0x2cd   :  { %v9351_v27 = vpop.f32.mrb[13].mxu0  ;;  %v1409_v28 = vsel %vm1405_vm3, %v11347_v25, -inf  ;;  %v1412_v29 = vsel %vm1405_vm3, %v11349_v26, -inf  ;;  %v9357_v30 = vpop.f32.mrb[5].mxu1 }
 0x2ce   :  { %v758_v32 = vpop.f32.mrb[14].mxu0  ;;  %1410 = vmax.xlane.f32.xlu1 %v1409_v28  ;;  %1413 = vmax.xlane.f32.xlu0 %v1412_v29  ;;  %v804_v33 = vpop.f32.mrb[6].mxu1 }
 0x2cf   :  { %v9352_v35 = vpop.f32.mrb[15].mxu0  ;;  %v9358_v37 = vpop.f32.mrb[7].mxu1 }
 0x2d4   :  { %v11355_v38 = vpop.f32.mrb[16].mxu0 }
 0x2d5   :  { %v1415_v39 = vsel %vm1405_vm3, %v11355_v38, -inf  ;;  %v9363_v40 = vpop.f32.mrb[17].mxu0 }
 0x2d6   :  { %1416 = vmax.xlane.f32.xlu0 %v1415_v39  ;;  %v850_v41 = vpop.f32.mrb[18].mxu0 }
 0x2d7   :  { %v9364_v42 = vpop.f32.mrb[19].mxu0 }
 0x33b   :  { %v11359_v43 = vpop.f32.mrb[8].mxu1  ;;  %v11361_v44 = vpop.f32.mrb[20].mxu0 }
 0x33c   :  { %v9369_v45 = vpop.f32.mrb[9].mxu1  ;;  %v9375_v46 = vpop.f32.mrb[21].mxu0  ;;  %v1421_v47 = vsel %vm1405_vm3, %v11361_v44, -inf  ;;  %v1418_v48 = vsel %vm1405_vm3, %v11359_v43, -inf }
 0x33d   :  { %1422 = vmax.xlane.f32.xlu0 %v1421_v47  ;;  %v942_v49 = vpop.f32.mrb[22].mxu0  ;;  %1419 = vmax.xlane.f32.xlu1 %v1418_v48  ;;  %v896_v50 = vpop.f32.mrb[10].mxu1 }
 0x33e   :  { %v9370_v51 = vpop.f32.mrb[11].mxu1  ;;  %v9376_v52 = vpop.f32.mrb[23].mxu0 }
 0x343   :  { %v11367_v53 = vpop.f32.mrb[24].mxu0  ;;  %v11369_v54 = vpop.f32.mrb[12].mxu1 }
 0x344   :  { %v1427_v55 = vsel %vm1405_vm3, %v11367_v53, -inf  ;;  %v9381_v56 = vpop.f32.mrb[13].mxu1  ;;  %v9387_v57 = vpop.f32.mrb[25].mxu0 }
 0x345   :  { %1428 = vmax.xlane.f32.xlu0 %v1427_v55  ;;  %v988_v58 = vpop.f32.mrb[14].mxu1  ;;  %v1034_v59 = vpop.f32.mrb[26].mxu0  ;;  %v1424_v57 = vsel %vm1405_vm3, %v11369_v54, -inf }
 0x346   :  { %v9382_v60 = vpop.f32.mrb[15].mxu1  ;;  %v9388_v61 = vpop.f32.mrb[27].mxu0 }
 0x34b   :  { %v11373_v62 = vpop.f32.mrb[16].mxu1  ;;  %v11375_v63 = vpop.f32.mrb[28].mxu0 }
 0x34c   :  { %v9393_v1 = vpop.f32.mrb[17].mxu1  ;;  %v9399_v2 = vpop.f32.mrb[29].mxu0  ;;  %v1433_v3 = vsel %vm1405_vm3, %v11375_v63, -inf  ;;  %v1430_v58 = vsel %vm1405_vm3, %v11373_v62, -inf }
 0x34d   :  { %1434 = vmax.xlane.f32.xlu0 %v1433_v3  ;;  %v1080_v4 = vpop.f32.mrb[18].mxu1  ;;  %v1126_v5 = vpop.f32.mrb[30].mxu0 }
 0x34e   :  { %624 = vrot.lane.b32.xlu1 %v11273_v23, %s10904_s15  ;;  %v9394_v6 = vpop.f32.mrb[19].mxu1  ;;  %v9400_v7 = vpop.f32.mrb[31].mxu0 }
 0x353   :  { %v11381_v8 = vpop.f32.mrb[32].mxu0  ;;  %v11385_v10 = vpop.f32.mrb[20].mxu1 }
 0x354   :  { %v1439_v9 = vsel %vm1405_vm3, %v11381_v8, -inf  ;;  %v9411_v11 = vpop.f32.mrb[33].mxu0  ;;  %v9405_v12 = vpop.f32.mrb[21].mxu1  ;;  %v1436_v59 = vsel %vm1405_vm3, %v11385_v10, -inf }
 0x355   :  { %1440 = vmax.xlane.f32.xlu0 %v1439_v9  ;;  %v1218_v13 = vpop.f32.mrb[34].mxu0  ;;  %v1172_v14 = vpop.f32.mrb[22].mxu1 }
 0x356   :  { %v9412_v15 = vpop.f32.mrb[35].mxu0  ;;  %v9406_v17 = vpop.f32.mrb[23].mxu1 }
 0x357   :  { %v1408_v50 = vpop.xlane.xlu0 %1407 }
 0x358   :  { %v1454_v55 = vsub.f32 %v11343_v16, %v1408_v50 }
 0x35a   :  { %v1470_v56 = vmul.f32 1.442695, %v1454_v55 }
 0x35b   :  { %v1411_v19 = vpop.xlane.xlu1 %1410  ;;  %v11387_v21 = vpop.f32.mrb[24].mxu1 }
 0x35c   :  { %v1455_v24 = vsub.f32 %v11347_v25, %v1411_v19  ;;  %v11390_v27 = vpop.f32.mrb[36].mxu0  ;;  %v9417_v28 = vpop.f32.mrb[25].mxu1  ;;  %v1442_v60 = vsel %vm1405_vm3, %v11387_v21, -inf }
 0x35d   :  { %v9423_v29 = vpop.f32.mrb[37].mxu0  ;;  %v1445_v30 = vsel %vm1405_vm3, %v11390_v27, -inf  ;;  %v1264_v33 = vpop.f32.mrb[26].mxu1 }
 0x35e   :  { %v1472_v32 = vmul.f32 1.442695, %v1455_v24  ;;  %1446 = vmax.xlane.f32.xlu0 %v1445_v30  ;;  %v1310_v35 = vpop.f32.mrb[38].mxu0  ;;  %v9418_v37 = vpop.f32.mrb[27].mxu1 }
 0x35f   :  { %v9424_v39 = vpop.f32.mrb[39].mxu0  ;;  %v1414_v1 = vpop.xlane.xlu0 %1413 }
 0x360   :  { %10241 = vpow2.f32 %v1472_v32  ;;  %v1456_v9 = vsub.f32 %v11349_v26, %v1414_v1 }
 0x361   :  { %10243 = vpow2.f32 %v1470_v56 }
 0x362   :  { %v1474_v11 = vmul.f32 1.442695, %v1456_v9 }
 0x363   :  { %v11394_v40 = vpop.f32.mrb[28].mxu1  ;;  %v11396_v41 = vpop.f32.mrb[40].mxu0 }
 0x364   :  { %v9429_v42 = vpop.f32.mrb[29].mxu1  ;;  %v1451_v25 = vsel %vm1405_vm3, %v11396_v41, -inf  ;;  %v9435_v45 = vpop.f32.mrb[41].mxu0  ;;  %v1448_v2 = vsel %vm1405_vm3, %v11394_v40, -inf }
 0x365   :  { %1452 = vmax.xlane.f32.xlu0 %v1451_v25  ;;  %v1356_v46 = vpop.f32.mrb[30].mxu1  ;;  %v1402_v47 = vpop.f32.mrb[42].mxu0 }
 0x366   :  { %v9430_v48 = vpop.f32.mrb[31].mxu1  ;;  %v9436_v49 = vpop.f32.mrb[43].mxu0 }
 0x367   :  { %v1417_v3 = vpop.xlane.xlu0 %1416 }
 0x368   :  { %v1457_v4 = vsub.f32 %v11355_v38, %v1417_v3 }
 0x36a   :  { %v11400_v51 = vpop.eup %10241  ;;  %v1476_v5 = vmul.f32 1.442695, %v1457_v4 }
 0x36b   :  { %v1505_v52 = vsel %vm1405_vm3, %v11400_v51, 0.0  ;;  %v11413_v61 = vpop.eup %10243 }
 0x36c   :  { %1506 = vadd.xlane.f32.xlu0 %v1505_v52  ;;  %v1502_v16 = vsel %vm1405_vm3, %v11413_v61, 0.0  ;;  %10245 = vpow2.f32 %v1476_v5 }
 0x36d   :  { %10247 = vpow2.f32 %v1474_v11 }
 0x372   :  { %1425 = vmax.xlane.f32.xlu1 %v1424_v57 }
 0x376   :  { %1431 = vmax.xlane.f32.xlu1 %v1430_v58  ;;  %v11424_v6 = vpop.eup %10245  ;;  %v8996_v58 = vpack.c.bf16 %v11263_v20, %v11263_v20 }
 0x377   :  { %v1511_v7 = vsel %vm1405_vm3, %v11424_v6, 0.0  ;;  %v11429_v12 = vpop.eup %10247 }
 0x378   :  { %v1508_v38 = vsel %vm1405_vm3, %v11429_v12, 0.0 }
 0x37a   :  { %1437 = vmax.xlane.f32.xlu1 %v1436_v59 }
 0x37e   :  { %1443 = vmax.xlane.f32.xlu1 %v1442_v60 }
 0x382   :  { %626 = vrot.lane.b32.xlu0 %v11269_v22, %s10904_s15  ;;  %1503 = vadd.xlane.f32.xlu1 %v1502_v16 }
 0x386   :  { %1449 = vmax.xlane.f32.xlu1 %v1448_v2 }
 0x397   :  { %628 = vrot.lane.b32.xlu1 %v11273_v23, %s12857_s20 }
 0x3a1   :  { %1512 = vadd.xlane.f32.xlu0 %v1511_v7 }
 0x3bb   :  { %1509 = vadd.xlane.f32.xlu1 %v1508_v38 }
 0x3ca   :  { %v1420_v13 = vpop.xlane.xlu1 %1419  ;;  %v1423_v14 = vpop.xlane.xlu0 %1422 }
 0x3cb   :  { %v1458_v15 = vsub.f32 %v11359_v43, %v1420_v13  ;;  %v1459_v17 = vsub.f32 %v11361_v44, %v1423_v14 }
 0x3cd   :  { %v1478_v19 = vmul.f32 1.442695, %v1458_v15  ;;  %v1480_v24 = vmul.f32 1.442695, %v1459_v17 }
 0x3ce   :  { %v11453_v48 = vpop.permute.xlu1 %624 }
 0x3cf   :  { %10249 = vpow2.f32 %v1478_v19 }
 0x3d0   :  { %10251 = vpow2.f32 %v1480_v24 }
 0x3d2   :  { %v1429_v28 = vpop.xlane.xlu0 %1428 }
 0x3d3   :  { %v1461_v26 = vsub.f32 %v11367_v53, %v1429_v28 }
 0x3d5   :  { %v1484_v29 = vmul.f32 1.442695, %v1461_v26 }
 0x3d7   :  { %10253 = vpow2.f32 %v1484_v29 }
 0x3d9   :  { %v11436_v30 = vpop.eup %10249 }
 0x3da   :  { %v11438_v32 = vpop.eup %10251  ;;  %v1435_v33 = vpop.xlane.xlu0 %1434  ;;  %v1514_v35 = vsel %vm1405_vm3, %v11436_v30, 0.0 }
 0x3db   :  { %v1463_v43 = vsub.f32 %v11375_v63, %v1435_v33  ;;  %1515 = vadd.xlane.f32.xlu1 %v1514_v35  ;;  %v1517_v44 = vsel %vm1405_vm3, %v11438_v32, 0.0 }
 0x3dc   :  { %1518 = vadd.xlane.f32.xlu0 %v1517_v44 }
 0x3dd   :  { %v1488_v37 = vmul.f32 1.442695, %v1463_v43 }
 0x3df   :  { %10255 = vpow2.f32 %v1488_v37 }
 0x3e1   :  { %v11445_v53 = vpop.eup %10253 }
 0x3e2   :  { %v1523_v39 = vsel %vm1405_vm3, %v11445_v53, 0.0  ;;  %v1441_v63 = vpop.xlane.xlu0 %1440 }
 0x3e3   :  { %1524 = vadd.xlane.f32.xlu0 %v1523_v39  ;;  %v1465_v60 = vsub.f32 %v11381_v8, %v1441_v63 }
 0x3e5   :  { %v1492_v4 = vmul.f32 1.442695, %v1465_v60 }
 0x3e9   :  { %v11449_v42 = vpop.eup %10255 }
 0x3ea   :  { %v1529_v25 = vsel %vm1405_vm3, %v11449_v42, 0.0 }
 0x3eb   :  { %1530 = vadd.xlane.f32.xlu0 %v1529_v25  ;;  %v1447_v45 = vpop.xlane.xlu0 %1446 }
 0x3f2   :  { %v1453_v46 = vpop.xlane.xlu0 %1452 }
 0x3f3   :  { %v1469_v9 = vsub.f32 %v11396_v41, %v1453_v46 }
 0x3f5   :  { %v1500_v15 = vmul.f32 1.442695, %v1469_v9 }
 0x3f9   :  { %v1507_v47 = vpop.xlane.xlu0 %1506 }
 0x3fa   :  { %10257 = vrcp.f32 %v1507_v47  ;;  %v8659_v47 = vcombine.high %v11453_v48, %v11453_v48 }
 0x3fd   :  { %v627_v39 = vpop.permute.xlu0 %626 }
 0x3ff   :  { %v1426_v49 = vpop.xlane.xlu1 %1425 }
 0x400   :  { %v1460_v50 = vsub.f32 %v11369_v54, %v1426_v49  ;;  %v1741_v54 = vsel %vm1601_vm2, %v8996_v58, 0 }
 0x402   :  { %v1482_v52 = vmul.f32 1.442695, %v1460_v50 }
 0x403   :  { %v1432_v55 = vpop.xlane.xlu1 %1431 }
 0x404   :  { %v10258_v56 = vpop.eup %10257  ;;  %10259 = vpow2.f32 %v1482_v52  ;;  %v1462_v57 = vsub.f32 %v11373_v62, %v1432_v55  ;;  %v1467_v62 = vsub.f32 %v11390_v27, %v1447_v45  ;;  %v1833_v52 = vsel %vm1601_vm2, %v8659_v47, 0 }
 0x405   :  { %v1567_v59 = vmul.f32 %v10258_v56, %v11400_v51 }
 0x406   :  { %v1486_v16 = vmul.f32 1.442695, %v1462_v57  ;;  %v8658_v57 = vcombine.low %v11453_v48, %v11453_v48 }
 0x407   :  { %v1438_v1 = vpop.xlane.xlu1 %1437  ;;  %v1583_v2 = vpack.c.bf16 %v1567_v59, %v1567_v59 }
 0x408   :  { %10261 = vpow2.f32 %v1486_v16  ;;  %v1464_v3 = vsub.f32 %v11385_v10, %v1438_v1  ;;  %v1496_v10 = vmul.f32 1.442695, %v1467_v62  ;;  %v1787_v60 = vsel %vm1601_vm2, %v8658_v57, 0 }
 0x409   :  { %9446 = vmatmul.mubr.msk.bf16.vlgmr.msra.gmra.mrb[44].mxu0 %vm1405_vm3, %v1583_v2 }
 0x40a   :  { %v1490_v5 = vmul.f32 1.442695, %v1464_v3  ;;  %9456 = vmatpush3.bf16.msra.mxu0 %v1741_v54  ;;  %9457 = vmatprep.mubr.msk.bf16.mxu0 %vm10903_vm0, %v10902_v31  ;;  %v8660_v3 = vcombine.low %v627_v39, %v627_v39 }
 0x40b   :  { %v1444_v20 = vpop.xlane.xlu1 %1443  ;;  %9467 = vmatprep.subr.bf16.mxu0 %v10902_v31 }
 0x40c   :  { %10263 = vpow2.f32 %v1490_v5  ;;  %v1466_v63 = vsub.f32 %v11387_v21, %v1444_v20 }
 0x40d   :  { %10265 = vpow2.f32 %v1492_v4  ;;  %v8661_v4 = vcombine.high %v627_v39, %v627_v39 }
 0x40e   :  { %v11468_v8 = vpop.eup %10259  ;;  %v1494_v45 = vmul.f32 1.442695, %v1466_v63 }
 0x40f   :  { %v1504_v51 = vpop.xlane.xlu1 %1503  ;;  %v1520_v7 = vsel %vm1405_vm3, %v11468_v8, 0.0 }
 0x410   :  { %1521 = vadd.xlane.f32.xlu1 %v1520_v7  ;;  %10267 = vrcp.f32 %v1504_v51  ;;  %v1925_v51 = vsel %vm1601_vm2, %v8661_v4, 0 }
 0x411   :  { %10269 = vpow2.f32 %v1496_v10 }
 0x412   :  { %v11472_v27 = vpop.eup %10261 }
 0x413   :  { %v1450_v11 = vpop.xlane.xlu1 %1449  ;;  %v1526_v38 = vsel %vm1405_vm3, %v11472_v27, 0.0 }
 0x414   :  { %v1468_v13 = vsub.f32 %v11394_v40, %v1450_v11  ;;  %1527 = vadd.xlane.f32.xlu1 %v1526_v38  ;;  %v8995_v40 = vpack.c.bf16 %v11259_v18, %v11259_v18 }
 0x416   :  { %v11478_v14 = vpop.eup %10263  ;;  %v1498_v17 = vmul.f32 1.442695, %v1468_v13  ;;  %v1695_v43 = vsel %vm1601_vm2, %v8995_v40, 0 }
 0x417   :  { %v1532_v19 = vsel %vm1405_vm3, %v11478_v14, 0.0  ;;  %v11482_v24 = vpop.eup %10265  ;;  %v11519_v21 = vpop.permute.xlu1 %628 }
 0x418   :  { %10271 = vpow2.f32 %v1498_v17  ;;  %1533 = vadd.xlane.f32.xlu0 %v1532_v19  ;;  %v1535_v28 = vsel %vm1405_vm3, %v11482_v24, 0.0  ;;  %v8663_v7 = vcombine.high %v11519_v21, %v11519_v21 }
 0x419   :  { %10273 = vpow2.f32 %v1500_v15 }
 0x41a   :  { %v10268_v41 = vpop.eup %10267  ;;  %v2017_v11 = vsel %vm1601_vm2, %v8663_v7, 0 }
 0x41b   :  { %v11486_v26 = vpop.eup %10269  ;;  %v1566_v29 = vmul.f32 %v10268_v41, %v11413_v61 }
 0x41c   :  { %1536 = vadd.xlane.f32.xlu0 %v1535_v28  ;;  %v1541_v35 = vsel %vm1405_vm3, %v11486_v26, 0.0 }
 0x41d   :  { %v1582_v33 = vpack.c.bf16 %v1566_v29, %v1566_v29 }
 0x41f   :  { %9440 = vmatmul.mubr.msk.bf16.vlgmr.msra.gmra.mrb[32].mxu1 %vm1405_vm3, %v1582_v33  ;;  %v8662_v33 = vcombine.low %v11519_v21, %v11519_v21 }
 0x420   :  { %1542 = vadd.xlane.f32.xlu0 %v1541_v35  ;;  %9450 = vmatpush3.bf16.msra.mxu1 %v1695_v43 }
 0x421   :  { %9451 = vmatprep.mubr.msk.bf16.mxu1 %vm10903_vm0, %v10902_v31  ;;  %9461 = vmatprep.subr.bf16.mxu1 %v10902_v31 }
 0x422   :  { %v11497_v44 = vpop.eup %10271 }
 0x423   :  { %v1544_v18 = vsel %vm1405_vm3, %v11497_v44, 0.0  ;;  %v11502_v61 = vpop.eup %10273 }
 0x424   :  { %1545 = vadd.xlane.f32.xlu0 %v1544_v18  ;;  %v1547_v37 = vsel %vm1405_vm3, %v11502_v61, 0.0 }
 0x425   :  { %630 = vrot.lane.b32.xlu1 %v11269_v22, %s12857_s20 }
 0x428   :  { %1548 = vadd.xlane.f32.xlu0 %v1547_v37  ;;  %v1971_v37 = vsel %vm1601_vm2, %v8662_v33, 0 }
 0x42e   :  { %v1513_v25 = vpop.xlane.xlu0 %1512 }
 0x42f   :  { %10275 = vrcp.f32 %v1513_v25 }
 0x430   :  { %10277 = vpow2.f32 %v1494_v45 }
 0x439   :  { %v10276_v46 = vpop.eup %10275 }
 0x43a   :  { %v1569_v49 = vmul.f32 %v10276_v46, %v11424_v6  ;;  %v11521_v55 = vpop.eup %10277 }
 0x43b   :  { %v1538_v56 = vsel %vm1405_vm3, %v11521_v55, 0.0 }
 0x43c   :  { %v1585_v50 = vpack.c.bf16 %v1569_v49, %v1569_v49 }
 0x43e   :  { %632 = vrot.lane.b32.xlu0 %v11273_v23, %s10905_s3  ;;  %9458 = vmatmul.mubr.msk.bf16.vlgmr.msra.gmra.mrb[48].mxu0 %vm1405_vm3, %v1585_v50 }
 0x43f   :  { %9468 = vmatpush3.bf16.msra.mxu0 %v1833_v52  ;;  %9469 = vmatprep.mubr.msk.bf16.mxu0 %vm10903_vm0, %v10902_v31 }
 0x440   :  { %9479 = vmatprep.subr.bf16.mxu0 %v10902_v31 }
 0x448   :  { %v1510_v6 = vpop.xlane.xlu1 %1509 }
 0x449   :  { %10279 = vrcp.f32 %v1510_v6  ;;  %1539 = vadd.xlane.f32.xlu1 %v1538_v56 }
 0x453   :  { %v10280_v23 = vpop.eup %10279 }
 0x454   :  { %v1568_v58 = vmul.f32 %v10280_v23, %v11429_v12 }
 0x456   :  { %v1584_v59 = vpack.c.bf16 %v1568_v58, %v1568_v58 }
 0x458   :  { %9452 = vmatmul.mubr.msk.bf16.vlgmr.msra.gmra.mrb[36].mxu1 %vm1405_vm3, %v1584_v59 }
 0x459   :  { %9462 = vmatpush3.bf16.msra.mxu1 %v1787_v60  ;;  %9463 = vmatprep.mubr.msk.bf16.mxu1 %vm10903_vm0, %v10902_v31 }
 0x45a   :  { %634 = vrot.lane.b32.xlu1 %v11269_v22, %s10905_s3  ;;  %9473 = vmatprep.subr.bf16.mxu1 %v10902_v31  ;;  %v1879_v22 = vsel %vm1601_vm2, %v8660_v3, 0 }
 0x468   :  { %v1516_v16 = vpop.xlane.xlu1 %1515 }
 0x469   :  { %10281 = vrcp.f32 %v1516_v16  ;;  %v1519_v1 = vpop.xlane.xlu0 %1518 }
 0x46a   :  { %10283 = vrcp.f32 %v1519_v1 }
 0x470   :  { %v1525_v48 = vpop.xlane.xlu0 %1524 }
 0x471   :  { %10285 = vrcp.f32 %v1525_v48 }
 0x473   :  { %v10282_v12 = vpop.eup %10281 }
 0x474   :  { %v10284_v2 = vpop.eup %10283  ;;  %v1570_v54 = vmul.f32 %v10282_v12, %v11436_v30 }
 0x475   :  { %v1571_v62 = vmul.f32 %v10284_v2, %v11438_v32 }
 0x476   :  { %v1586_v5 = vpack.c.bf16 %v1570_v54, %v1570_v54 }
 0x477   :  { %v1587_v20 = vpack.c.bf16 %v1571_v62, %v1571_v62 }
 0x478   :  { %9464 = vmatmul.mubr.msk.bf16.vlgmr.msra.gmra.mrb[40].mxu1 %vm1405_vm3, %v1586_v5  ;;  %v1531_v10 = vpop.xlane.xlu0 %1530 }
 0x479   :  { %9470 = vmatmul.mubr.msk.bf16.vlgmr.msra.gmra.mrb[52].mxu0 %vm1405_vm3, %v1587_v20  ;;  %9474 = vmatpush3.bf16.msra.mxu1 %v1879_v22  ;;  %10287 = vrcp.f32 %v1531_v10 }
 0x47a   :  { %9480 = vmatpush3.bf16.msra.mxu0 %v1925_v51  ;;  %9481 = vmatprep.mubr.msk.bf16.mxu0 %vm10903_vm0, %v10902_v31 }
 0x47b   :  { %v10286_v30 = vpop.eup %10285  ;;  %9491 = vmatprep.subr.bf16.mxu0 %v10902_v31  ;;  %9475 = vmatprep.mubr.msk.bf16.mxu1 %vm10903_vm0, %v10902_v31 }
 0x47c   :  { %v1573_v32 = vmul.f32 %v10286_v30, %v11445_v53  ;;  %9485 = vmatprep.subr.bf16.mxu1 %v10902_v31 }
 0x47e   :  { %v1589_v9 = vpack.c.bf16 %v1573_v32, %v1573_v32 }
 0x481   :  { %9482 = vmatmul.mubr.msk.bf16.vlgmr.msra.gmra.mrb[56].mxu0 %vm1405_vm3, %v1589_v9 }
 0x482   :  { %9492 = vmatpush3.bf16.msra.mxu0 %v2017_v11  ;;  %9493 = vmatprep.mubr.msk.bf16.mxu0 %vm10903_vm0, %v10902_v31 }
 0x483   :  { %v10288_v38 = vpop.eup %10287  ;;  %9503 = vmatprep.subr.bf16.mxu0 %v10902_v31 }
 0x484   :  { %v1575_v13 = vmul.f32 %v10288_v38, %v11449_v42 }
 0x486   :  { %v1591_v53 = vpack.c.bf16 %v1575_v13, %v1575_v13 }
 0x489   :  { %9494 = vmatmul.mubr.msk.bf16.vlgmr.msra.gmra.mrb[60].mxu0 %vm1405_vm3, %v1591_v53 }
 0x48a   :  { %9505 = vmatprep.mubr.msk.bf16.mxu0 %vm10903_vm0, %v10902_v31 }
 0x49d   :  { %v1522_v15 = vpop.xlane.xlu1 %1521 }
 0x49e   :  { %10289 = vrcp.f32 %v1522_v15 }
 0x4a1   :  { %v1528_v17 = vpop.xlane.xlu1 %1527 }
 0x4a2   :  { %10291 = vrcp.f32 %v1528_v17 }
 0x4a5   :  { %v631_v19 = vpop.permute.xlu1 %630  ;;  %v1534_v41 = vpop.xlane.xlu0 %1533 }
 0x4a6   :  { %v8665_v28 = vcombine.high %v631_v19, %v631_v19  ;;  %10293 = vrcp.f32 %v1534_v41 }
 0x4a8   :  { %v10290_v40 = vpop.eup %10289  ;;  %v2109_v29 = vsel %vm1601_vm2, %v8665_v28, 0 }
 0x4a9   :  { %9504 = vmatpush3.bf16.msra.mxu0 %v2109_v29  ;;  %v1537_v42 = vpop.xlane.xlu0 %1536  ;;  %v1572_v35 = vmul.f32 %v10290_v40, %v11468_v8  ;;  %v8664_v8 = vcombine.low %v631_v19, %v631_v19 }
 0x4aa   :  { %10295 = vrcp.f32 %v1537_v42  ;;  %9515 = vmatprep.subr.bf16.mxu0 %v10902_v31 }
 0x4ab   :  { %v1588_v43 = vpack.c.bf16 %v1572_v35, %v1572_v35  ;;  %v2063_v49 = vsel %vm1601_vm2, %v8664_v8, 0 }
 0x4ac   :  { %v10292_v18 = vpop.eup %10291 }
 0x4ad   :  { %9476 = vmatmul.mubr.msk.bf16.vlgmr.msra.gmra.mrb[44].mxu1 %vm1405_vm3, %v1588_v43  ;;  %v1543_v39 = vpop.xlane.xlu0 %1542  ;;  %v1574_v25 = vmul.f32 %v10292_v18, %v11472_v27 }
 0x4ae   :  { %9486 = vmatpush3.bf16.msra.mxu1 %v1971_v37  ;;  %10297 = vrcp.f32 %v1543_v39  ;;  %9487 = vmatprep.mubr.msk.bf16.mxu1 %vm10903_vm0, %v10902_v31 }
 0x4af   :  { %9497 = vmatprep.subr.bf16.mxu1 %v10902_v31  ;;  %v1590_v46 = vpack.c.bf16 %v1574_v25, %v1574_v25 }
 0x4b0   :  { %v10294_v45 = vpop.eup %10293 }
 0x4b1   :  { %v1546_v63 = vpop.xlane.xlu0 %1545  ;;  %v1576_v27 = vmul.f32 %v10294_v45, %v11478_v14 }
 0x4b3   :  { %v1592_v58 = vpack.c.bf16 %v1576_v27, %v1576_v27 }
 0x4b4   :  { %v10296_v47 = vpop.eup %10295 }
 0x4b5   :  { %9488 = vmatmul.mubr.msk.bf16.vlgmr.msra.gmra.mrb[48].mxu1 %vm1405_vm3, %v1590_v46  ;;  %v1549_v50 = vpop.xlane.xlu0 %1548  ;;  %v1577_v52 = vmul.f32 %v10296_v47, %v11482_v24 }
 0x4b6   :  { %9498 = vmatpush3.bf16.msra.mxu1 %v2063_v49  ;;  %9499 = vmatprep.mubr.msk.bf16.mxu1 %vm10903_vm0, %v10902_v31  ;;  %10299 = vrcp.f32 %v1549_v50 }
 0x4b7   :  { %v1593_v21 = vpack.c.bf16 %v1577_v52, %v1577_v52  ;;  %9509 = vmatprep.subr.bf16.mxu1 %v10902_v31 }
 0x4b8   :  { %v10298_v6 = vpop.eup %10297 }
 0x4b9   :  { %9506 = vmatmul.mubr.msk.bf16.vlgmr.msra.gmra.mrb[64].mxu0 %vm1405_vm3, %v1593_v21  ;;  %v633_v56 = vpop.permute.xlu0 %632  ;;  %v1579_v24 = vmul.f32 %v10298_v6, %v11486_v26 }
 0x4ba   :  { %v8666_v23 = vcombine.low %v633_v56, %v633_v56  ;;  %v8667_v57 = vcombine.high %v633_v56, %v633_v56  ;;  %9517 = vmatprep.mubr.msk.bf16.mxu0 %vm10903_vm0, %v10902_v31 }
 0x4bb   :  { %v1595_v14 = vpack.c.bf16 %v1579_v24, %v1579_v24  ;;  %v10074_v24 = vld [vmem:[#allocation17 + $0x8] sm:$0xff]  }
 0x4bc   :  { %v2155_v59 = vsel %vm1601_vm2, %v8666_v23, 0  ;;  %v2201_v60 = vsel %vm1601_vm2, %v8667_v57, 0 }
 0x4bd   :  { %9500 = vmatmul.mubr.msk.bf16.vlgmr.msra.gmra.mrb[52].mxu1 %vm1405_vm3, %v1592_v58  ;;  %9516 = vmatpush3.bf16.msra.mxu0 %v2201_v60  ;;  %v10073_v58 = vld [vmem:[#allocation17] sm:$0xff]  }
 0x4be   :  { %9510 = vmatpush3.bf16.msra.mxu1 %v2155_v59  ;;  %9527 = vmatprep.subr.bf16.mxu0 %v10902_v31 }
 0x4bf   :  { %9511 = vmatprep.mubr.msk.bf16.mxu1 %vm10903_vm0, %v10902_v31  ;;  %9521 = vmatprep.subr.bf16.mxu1 %v10902_v31 }
 0x4c0   :  { %v10300_v16 = vpop.eup %10299 }
 0x4c1   :  { %9518 = vmatmul.mubr.msk.bf16.vlgmr.msra.gmra.mrb[68].mxu0 %vm1405_vm3, %v1595_v14  ;;  %v1581_v12 = vmul.f32 %v10300_v16, %v11502_v61  ;;  %v10075_v16 = vld [vmem:[#allocation17 + $0x10] sm:$0xff]  }
 0x4c2   :  { %9529 = vmatprep.mubr.msk.bf16.mxu0 %vm10903_vm0, %v10902_v31 }
 0x4c3   :  { %v1597_v5 = vpack.c.bf16 %v1581_v12, %v1581_v12 }
 0x4d6   :  { %v1540_v26 = vpop.xlane.xlu1 %1539 }
 0x4d7   :  { %10301 = vrcp.f32 %v1540_v26 }
 0x4d8   :  { %10303 = vrcp.f32 %v1546_v63 }
 0x4da   :  { %v635_v1 = vpop.permute.xlu1 %634 }
 0x4db   :  { %v8669_v48 = vcombine.high %v635_v1, %v635_v1  ;;  %v8668_v22 = vcombine.low %v635_v1, %v635_v1 }
 0x4dc   :  { %v11592_v2 = vpop.f32.mrb[44].mxu0 }
 0x4dd   :  { %v9447_v3 = vpop.f32.mrb[45].mxu0  ;;  %v2293_v54 = vsel %vm1601_vm2, %v8669_v48, 0  ;;  %v2247_v61 = vsel %vm1601_vm2, %v8668_v22, 0 }
 0x4de   :  { %v1688_v4 = vpop.f32.mrb[46].mxu0  ;;  %9528 = vmatpush3.bf16.msra.mxu0 %v2293_v54  ;;  %v10076_v54 = vld [vmem:[#allocation17 + $0x18] sm:$0xff]  }
 0x4df   :  { %v9448_v62 = vpop.f32.mrb[47].mxu0 }
 0x4e1   :  { %v10302_v20 = vpop.eup %10301  ;;  %9530 = vmatmul.mubr.msk.bf16.vlgmr.msra.gmra.mrb[72].mxu0 %vm1405_vm3, %v1597_v5 }
 0x4e2   :  { %v1578_v10 = vmul.f32 %v10302_v20, %v11521_v55  ;;  %v10304_v30 = vpop.eup %10303 }
 0x4e3   :  { %v1580_v32 = vmul.f32 %v10304_v30, %v11497_v44 }
 0x4e4   :  { %v1594_v51 = vpack.c.bf16 %v1578_v10, %v1578_v10  ;;  %v10077_v10 = vld [vmem:[#allocation17 + $0x20] sm:$0xff]  }
 0x4e5   :  { %v1596_v7 = vpack.c.bf16 %v1580_v32, %v1580_v32 }
 0x4e6   :  { %9512 = vmatmul.mubr.msk.bf16.vlgmr.msra.gmra.mrb[56].mxu1 %vm1405_vm3, %v1594_v51 }
 0x4e7   :  { %9522 = vmatpush3.bf16.msra.mxu1 %v2247_v61  ;;  %9523 = vmatprep.mubr.msk.bf16.mxu1 %vm10903_vm0, %v10902_v31 }
 0x4e8   :  { %9533 = vmatprep.subr.bf16.mxu1 %v10073_v58 }
 0x4ee   :  { %9524 = vmatmul.mubr.msk.bf16.vlgmr.msra.gmra.mrb[60].mxu1 %vm1405_vm3, %v1596_v7  ;;  %v10078_v7 = vld [vmem:[#allocation17 + $0x28] sm:$0xff]  }
 0x4ef   :  { %9534 = vmatpush3.bf16.msra.mxu1 %v10073_v58 }
 0x4f0   :  { %9535 = vmatprep.subr.bf16.mxu1 %v10074_v24 }
 0x4f2   :  { %v11603_v9 = vpop.f32.mrb[32].mxu1 }
 0x4f3   :  { %v2335_v55 = vpack.c.bf16 %v11592_v2, %v11603_v9  ;;  %v9441_v11 = vpop.f32.mrb[33].mxu1  ;;  %9536 = vmatpush3.bf16.msra.mxu1 %v10074_v24  ;;  %v8702_v2 = vld [vmem:[%s12834_s12] ss:$0 sm:$0xff] }
 0x4f4   :  { %v1642_v38 = vpop.f32.mrb[34].mxu1  ;;  %9537 = vmatprep.subr.bf16.mxu1 %v10075_v16 }
 0x4f5   :  { %v9442_v13 = vpop.f32.mrb[35].mxu1  ;;  %v10079_v38 = vld [vmem:[#allocation17 + $0x30] sm:$0xff]  }
 0x4f6   :  { %v10080_v13 = vld [vmem:[#allocation17 + $0x38] sm:$0xff]  }
 0x4f7   :  { %9538 = vmatpush3.bf16.msra.mxu1 %v10075_v16 }
 0x4f8   :  { %9539 = vmatprep.subr.bf16.mxu1 %v10076_v54 }
 0x4fb   :  { %9540 = vmatpush3.bf16.msra.mxu1 %v10076_v54  ;;  %v10086_v54 = vld [vmem:[#allocation16 + $0x14] ss:$8 sps:$4 sm:$0xff]  }
 0x4fc   :  { %9541 = vmatprep.subr.bf16.mxu1 %v10077_v10 }
 0x4ff   :  { %9542 = vmatpush3.bf16.msra.mxu1 %v10077_v10 }
 0x500   :  { %9543 = vmatprep.subr.bf16.mxu1 %v10078_v7 }
 0x503   :  { %9544 = vmatpush3.bf16.msra.mxu1 %v10078_v7 }
 0x504   :  { %9545 = vmatprep.subr.bf16.mxu1 %v10079_v38 }
 0x507   :  { %9546 = vmatpush3.bf16.msra.mxu1 %v10079_v38 }
 0x508   :  { %9547 = vmatprep.subr.bf16.mxu1 %v10080_v13 }
 0x50b   :  { %9548 = vmatpush3.bf16.msra.mxu1 %v10080_v13 }
 0x511   :  { %v11607_v53 = vpop.f32.mrb[48].mxu0 }
 0x512   :  { %v9459_v15 = vpop.f32.mrb[49].mxu0 }
 0x513   :  { %v1780_v17 = vpop.f32.mrb[50].mxu0 }
 0x514   :  { %v9460_v19 = vpop.f32.mrb[51].mxu0 }
 0x52b   :  { %v11609_v41 = vpop.f32.mrb[36].mxu1 }
 0x52c   :  { %v2336_v44 = vpack.c.bf16 %v11607_v53, %v11609_v41  ;;  %v9453_v28 = vpop.f32.mrb[37].mxu1 }
 0x52d   :  { %v1734_v40 = vpop.f32.mrb[38].mxu1 }
 0x52e   :  { %v9454_v29 = vpop.f32.mrb[39].mxu1 }
 0x54b   :  { %v1823_v33 = vpop.f32.mrb[40].mxu1 }
 0x54c   :  { %v1869_v42 = vpop.f32.mrb[52].mxu0  ;;  %v9465_v35 = vpop.f32.mrb[41].mxu1 }
 0x54d   :  { %v2337_v43 = vpack.c.bf16 %v1869_v42, %v1823_v33  ;;  %v9471_v18 = vpop.f32.mrb[53].mxu0  ;;  %v1826_v37 = vpop.f32.mrb[42].mxu1 }
 0x54e   :  { %v1872_v39 = vpop.f32.mrb[54].mxu0  ;;  %v9466_v25 = vpop.f32.mrb[43].mxu1 }
 0x54f   :  { %2345 = vrot.lane.b32.xlu1 %v2337_v43, %s10905_s3  ;;  %v9472_v8 = vpop.f32.mrb[55].mxu0 }
 0x554   :  { %v1961_v63 = vpop.f32.mrb[56].mxu0 }
 0x555   :  { %v9483_v45 = vpop.f32.mrb[57].mxu0 }
 0x556   :  { %v1964_v46 = vpop.f32.mrb[58].mxu0 }
 0x557   :  { %v9484_v47 = vpop.f32.mrb[59].mxu0 }
 0x55c   :  { %v2053_v49 = vpop.f32.mrb[60].mxu0 }
 0x55d   :  { %v9495_v50 = vpop.f32.mrb[61].mxu0 }
 0x55e   :  { %v2056_v52 = vpop.f32.mrb[62].mxu0 }
 0x55f   :  { %v9496_v21 = vpop.f32.mrb[63].mxu0 }
 0x580   :  { %v1915_v27 = vpop.f32.mrb[44].mxu1 }
 0x581   :  { %v2338_v6 = vpack.c.bf16 %v1961_v63, %v1915_v27  ;;  %v9477_v56 = vpop.f32.mrb[45].mxu1 }
 0x582   :  { %v1918_v23 = vpop.f32.mrb[46].mxu1 }
 0x583   :  { %v9478_v57 = vpop.f32.mrb[47].mxu1  ;;  %2347 = vrot.lane.b32.xlu1 %v2338_v6, %s10905_s3 }
 0x588   :  { %v2007_v59 = vpop.f32.mrb[48].mxu1 }
 0x589   :  { %v2339_v60 = vpack.c.bf16 %v2053_v49, %v2007_v59  ;;  %v9489_v14 = vpop.f32.mrb[49].mxu1  ;;  %v10578_v59 = vld [vmem:[#allocation2 + $0x8] sm:$0xff] }
 0x58a   :  { %v2010_v26 = vpop.f32.mrb[50].mxu1 }
 0x58b   :  { %v9490_v1 = vpop.f32.mrb[51].mxu1  ;;  %2351 = vrot.lane.b32.xlu1 %v2339_v60, %s12857_s20  ;;  %v10579_v26 = vld [vmem:[#allocation2 + $0x10] sm:$0xff] }
 0x58c   :  { %v2145_v48 = vpop.f32.mrb[64].mxu0  ;;  %v10580_v1 = vld [vmem:[#allocation2 + $0x18] sm:$0xff] }
 0x58d   :  { %v9507_v12 = vpop.f32.mrb[65].mxu0 }
 0x58e   :  { %v2148_v3 = vpop.f32.mrb[66].mxu0  ;;  %v10081_v12 = vld [vmem:[#allocation16] ss:$8 sps:$4 sm:$0xff]  }
 0x58f   :  { %v9508_v4 = vpop.f32.mrb[67].mxu0  ;;  %v10083_v3 = vld [vmem:[#allocation16 + $0x4] ss:$8 sps:$4 sm:$0xff]  }
 0x590   :  { %v2099_v62 = vpop.f32.mrb[52].mxu1  ;;  %2824 = vmatprep.subr.bf16.mxu1 %v10083_v3  ;;  %v10084_v4 = vld [vmem:[#allocation16 + $0x10] ss:$8 sps:$4 sm:$0xff]  }
 0x591   :  { %v2340_v5 = vpack.c.bf16 %v2145_v48, %v2099_v62  ;;  %v9501_v20 = vpop.f32.mrb[53].mxu1 }
 0x592   :  { %v2102_v22 = vpop.f32.mrb[54].mxu1 }
 0x593   :  { %v9502_v51 = vpop.f32.mrb[55].mxu1  ;;  %2353 = vrot.lane.b32.xlu1 %v2340_v5, %s12857_s20 }
 0x594   :  { %v2237_v30 = vpop.f32.mrb[68].mxu0 }
 0x595   :  { %v9519_v61 = vpop.f32.mrb[69].mxu0 }
 0x596   :  { %v2240_v32 = vpop.f32.mrb[70].mxu0 }
 0x597   :  { %v9520_v11 = vpop.f32.mrb[71].mxu0 }
 0x5b4   :  { %v2329_v15 = vpop.f32.mrb[72].mxu0 }
 0x5b5   :  { %v9531_v17 = vpop.f32.mrb[73].mxu0 }
 0x5b6   :  { %v2332_v19 = vpop.f32.mrb[74].mxu0 }
 0x5b7   :  { %v9532_v28 = vpop.f32.mrb[75].mxu0 }
 0x5b8   :  { %v10089_v28 = vld [vmem:[#allocation16 + $0x24] ss:$8 sps:$4 sm:$0xff]  }
 0x5b9   :  { %v2191_v40 = vpop.f32.mrb[56].mxu1 }
 0x5ba   :  { %v2341_v29 = vpack.c.bf16 %v2237_v30, %v2191_v40  ;;  %v9513_v33 = vpop.f32.mrb[57].mxu1  ;;  %v10087_v40 = vld [vmem:[#allocation16 + $0x20] ss:$8 sps:$4 sm:$0xff]  }
 0x5bb   :  { %v2194_v42 = vpop.f32.mrb[58].mxu1  ;;  %v10090_v33 = vld [vmem:[#allocation16 + $0x30] ss:$8 sps:$4 sm:$0xff]  }
 0x5bc   :  { %2357 = vrot.lane.b32.xlu0 %v2341_v29, %s10904_s15  ;;  %v9514_v35 = vpop.f32.mrb[59].mxu1  ;;  %v10092_v29 = vld [vmem:[#allocation16 + $0x34] ss:$8 sps:$4 sm:$0xff]   ;;  %v10095_v42 = vld [vmem:[#allocation16 + $0x44] ss:$8 sps:$4 sm:$0xff]  }
 0x5bd   :  { %v10093_v35 = vld [vmem:[#allocation16 + $0x40] ss:$8 sps:$4 sm:$0xff]  }
 0x5c1   :  { %v2283_v43 = vpop.f32.mrb[60].mxu1  ;;  %v2346_v8 = vpop.permute.xlu1 %2345 }
 0x5c2   :  { %v2342_v18 = vpack.c.bf16 %v2329_v15, %v2283_v43  ;;  %v9525_v37 = vpop.f32.mrb[61].mxu1  ;;  %v2363_v46 = vsel %vm668_vm1, %v2335_v55, %v2346_v8  ;;  %v10096_v43 = vld [vmem:[#allocation13] sm:$0xff]  }
 0x5c3   :  { %v2286_v39 = vpop.f32.mrb[62].mxu1  ;;  %9553 = vmatprep.subr.bf16.mxu0 %v10096_v43  ;;  %v10097_v37 = vld [vmem:[#allocation16 + $0x50] ss:$8 sps:$4 sm:$0xff]   ;;  %v10101_v8 = vld [vmem:[#allocation16 + $0x60] ss:$8 sps:$4 sm:$0xff]  }
 0x5c4   :  { %2359 = vrot.lane.b32.xlu1 %v2342_v18, %s10904_s15  ;;  %v9526_v25 = vpop.f32.mrb[63].mxu1  ;;  %v10099_v18 = vld [vmem:[#allocation16 + $0x54] ss:$8 sps:$4 sm:$0xff]   ;;  %9554 = vmatpush3.bf16.msra.mxu0 %v10096_v43  ;;  %v10100_v39 = vld [vmem:[#allocation13 + $0x8] sm:$0xff]  }
 0x5c5   :  { %9555 = vmatprep.subr.bf16.mxu0 %v10100_v39  ;;  %v10103_v25 = vld [vmem:[#allocation16 + $0x64] ss:$8 sps:$4 sm:$0xff]  }
 0x5c8   :  { %9556 = vmatpush3.bf16.msra.mxu0 %v10100_v39  ;;  %v8711_v39 = vld [vmem:[%s12839_s17] ss:$0 sm:$0xff] }
 0x5f5   :  { %v2348_v63 = vpop.permute.xlu1 %2347 }
 0x5f6   :  { %v2366_v21 = vsel %vm668_vm1, %v2336_v44, %v2348_v63  ;;  %v10577_v44 = vld [vmem:[#allocation2] sm:$0xff] }
 0x5f7   :  { %v10104_v63 = vld [vmem:[#allocation13 + $0x10] sm:$0xff]  }
 0x5f8   :  { %9557 = vmatprep.subr.bf16.mxu0 %v10104_v63 }
 0x5f9   :  { %9558 = vmatpush3.bf16.msra.mxu0 %v10104_v63 }
 0x5fd   :  { %v2352_v45 = vpop.permute.xlu1 %2351 }
 0x5fe   :  { %v2369_v47 = vsel %vm2367_vm4, %v2363_v46, %v2352_v45  ;;  %v10107_v45 = vld [vmem:[#allocation16 + $0x74] ss:$8 sps:$4 sm:$0xff]   ;;  %v10105_v46 = vld [vmem:[#allocation16 + $0x70] ss:$8 sps:$4 sm:$0xff]  }
 0x605   :  { %v2354_v52 = vpop.permute.xlu1 %2353 }
 0x606   :  { %v2371_v27 = vsel %vm2367_vm4, %v2366_v21, %v2354_v52  ;;  %v10109_v52 = vld [vmem:[#allocation13 + $0x20] sm:$0xff]  }
 0x62e   :  { %v2358_v49 = vpop.permute.xlu0 %2357 }
 0x62f   :  { %v2374_v50 = vsel %vm2372_vm5, %v2369_v47, %v2358_v49  ;;  %v10108_v47 = vld [vmem:[#allocation13 + $0x18] sm:$0xff]  }
 0x630   :  { %9549 = vmatprep.mubr.bf16.mxu1 %v2374_v50  ;;  %v225_v49 = vld [vmem:[#allocation5] sm:$0xff]  ;;  %v226_v50 = vld [vmem:[#allocation5 + $0x8] sm:$0xff]  ;;  %9559 = vmatprep.subr.bf16.mxu0 %v10108_v47 }
 0x631   :  { %v2728_v21 = vpack.c.bf16 %v226_v50, %v225_v49  ;;  %9560 = vmatpush3.bf16.msra.mxu0 %v10108_v47  ;;  %v8712_v47 = vld [vmem:[%s12840_s18] ss:$0 sm:$0xff] }
 0x632   :  { %9561 = vmatprep.subr.bf16.mxu0 %v10109_v52 }
 0x635   :  { %9562 = vmatpush3.bf16.msra.mxu0 %v10109_v52 }
 0x636   :  { %v2360_v6 = vpop.permute.xlu1 %2359 }
 0x637   :  { %v2377_v56 = vsel %vm2372_vm5, %v2371_v27, %v2360_v6  ;;  %v10110_v27 = vld [vmem:[#allocation13 + $0x28] sm:$0xff]  }
 0x638   :  { %9550 = vmatmul.mubr.bf16.vlgmr.msra.gmra.mrb[64].mxu1 %v2377_v56  ;;  %v227_v6 = vld [vmem:[#allocation5 + $0x10] sm:$0xff]  ;;  %v228_v56 = vld [vmem:[#allocation5 + $0x18] sm:$0xff]  ;;  %9563 = vmatprep.subr.bf16.mxu0 %v10110_v27 }
 0x639   :  { %2856 = vmatprep.mubr.bf16.mxu1 %v10901_v0  ;;  %2825 = vmatpush1.bf16.msra.mxu1 %v10081_v12 }
 0x63a   :  { %2826 = vmatprep.subr.bf16.mxu1 %v10086_v54  ;;  %9564 = vmatpush3.bf16.msra.mxu0 %v10110_v27 }
 0x63d   :  { %2827 = vmatpush1.bf16.msra.mxu1 %v10084_v4 }
 0x63e   :  { %2828 = vmatprep.subr.bf16.mxu1 %v10089_v28 }
 0x641   :  { %2829 = vmatpush1.bf16.msra.mxu1 %v10087_v40 }
 0x642   :  { %2830 = vmatprep.subr.bf16.mxu1 %v10092_v29 }
 0x645   :  { %2831 = vmatpush1.bf16.msra.mxu1 %v10090_v33 }
 0x646   :  { %2832 = vmatprep.subr.bf16.mxu1 %v10095_v42 }
 0x649   :  { %2833 = vmatpush1.bf16.msra.mxu1 %v10093_v35 }
 0x64a   :  { %2834 = vmatprep.subr.bf16.mxu1 %v10099_v18 }
 0x64d   :  { %2835 = vmatpush1.bf16.msra.mxu1 %v10097_v37 }
 0x64e   :  { %2836 = vmatprep.subr.bf16.mxu1 %v10103_v25 }
 0x651   :  { %2837 = vmatpush1.bf16.msra.mxu1 %v10101_v8 }
 0x652   :  { %2838 = vmatprep.subr.bf16.mxu1 %v10107_v45 }
 0x655   :  { %2839 = vmatpush1.bf16.msra.mxu1 %v10105_v46 }
 0x656   :  { %9615 = vmatprep.subr.bf16.mxu1 %v10902_v31 }
 0x658   :  { %2857 = vmatmul.mubr.bf16.vlgmr.msra.gmra.mrb[68].mxu1 %v2728_v21 }
 0x659   :  { %2866 = vmatprep.mubr.bf16.mxu1 %v10901_v0 }
 0x70b   :  { %v9551_v9 = vpop.f32.mrb[64].mxu1 }
 0x70c   :  { %v2482_v55 = vpop.f32.mrb[65].mxu1  ;;  %v2491_v53 = vadd.f32 %v9551_v9, %v8702_v2  ;;  %v10111_v9 = vld [vmem:[#allocation13 + $0x30] sm:$0xff]  }
 0x70d   :  { %v2483_v23 = vadd.f32 %v8702_v2, %v2482_v55  ;;  %v9552_v57 = vpop.f32.mrb[66].mxu1  ;;  %9565 = vmatprep.subr.bf16.mxu0 %v10111_v9  ;;  %v10112_v55 = vld [vmem:[#allocation13 + $0x38] sm:$0xff]  }
 0x70e   :  { %v2485_v58 = vpop.f32.mrb[67].mxu1  ;;  %v2494_v14 = vadd.f32 %v9552_v57, %v8702_v2  ;;  %v2499_v16 = vadd.f32 %v10579_v26, %v2491_v53  ;;  %9566 = vmatpush3.bf16.msra.mxu0 %v10111_v9  ;;  %v230_v57 = vld [vmem:[#allocation5 + $0x28] sm:$0xff]  ;;  %v231_v53 = vld [vmem:[#allocation5 + $0x30] sm:$0xff] }
 0x70f   :  { %v2486_v41 = vadd.f32 %v8702_v2, %v2485_v58  ;;  %v2497_v24 = vadd.f32 %v10577_v44, %v2483_v23  ;;  %v2729_v2 = vpack.c.bf16 %v228_v56, %v227_v6  ;;  %v229_v23 = vld [vmem:[#allocation5 + $0x20] sm:$0xff]  ;;  %9567 = vmatprep.subr.bf16.mxu0 %v10112_v55 }
 0x710   :  { %v2500_v48 = vadd.f32 %v10580_v1, %v2494_v14  ;;  %v2730_v58 = vpack.c.bf16 %v230_v57, %v229_v23 }
 0x711   :  { %2503 = vadd.xlane.f32.xlu0 %v2497_v24  ;;  %v2498_v60 = vadd.f32 %v10578_v59, %v2486_v41  ;;  %2867 = vmatmul.mubr.bf16.gmra.mrb[72].mxu1 %v2729_v2  ;;  %v232_v41 = vld [vmem:[#allocation5 + $0x38] sm:$0xff] }
 0x712   :  { %2876 = vmatprep.mubr.bf16.mxu1 %v10901_v0  ;;  %9568 = vmatpush3.bf16.msra.mxu0 %v10112_v55  ;;  %v2731_v44 = vpack.c.bf16 %v232_v41, %v231_v53 }
 0x713   :  { %2505 = vadd.xlane.f32.xlu1 %v2498_v60  ;;  %9573 = vmatprep.subr.bf16.mxu0 %v10902_v31 }
 0x715   :  { %2507 = vadd.xlane.f32.xlu0 %v2499_v16 }
 0x719   :  { %2509 = vadd.xlane.f32.xlu0 %v2500_v48  ;;  %2877 = vmatmul.mubr.bf16.gmra.mrb[76].mxu1 %v2730_v58 }
 0x71a   :  { %2886 = vmatprep.mubr.bf16.mxu1 %v10901_v0 }
 0x721   :  { %2887 = vmatmul.mubr.bf16.gmra.mrb[80].mxu1 %v2731_v44 }
 0x722   :  { %9617 = vmatprep.mubr.msk.bf16.mxu1 %vm10903_vm0, %v10902_v31 }
 0x72b   :  { %v2858_v57 = vpop.f32.mrb[68].mxu1 }
 0x72c   :  { %v2860_v53 = vpop.f32.mrb[69].mxu1 }
 0x72d   :  { %v2862_v44 = vpop.f32.mrb[70].mxu1 }
 0x79e   :  { %v2504_v62 = vpop.xlane.xlu0 %2503 }
 0x79f   :  { %v2512_v5 = vmul.f32 0.0078125, %v2504_v62 }
 0x7a0   :  { %v2506_v20 = vpop.xlane.xlu1 %2505 }
 0x7a1   :  { %v2513_v22 = vmul.f32 0.0078125, %v2506_v20  ;;  %v11635_v10 = vsub.f32 %v2497_v24, %v2512_v5 }
 0x7a2   :  { %v2508_v51 = vpop.xlane.xlu0 %2507 }
 0x7a3   :  { %v2514_v30 = vmul.f32 0.0078125, %v2508_v51  ;;  %v2520_v61 = vmul.f32 %v11635_v10, %v11635_v10  ;;  %v11639_v32 = vsub.f32 %v2498_v60, %v2513_v22 }
 0x7a5   :  { %2524 = vadd.xlane.f32.xlu1 %v2520_v61  ;;  %v2521_v7 = vmul.f32 %v11639_v32, %v11639_v32  ;;  %v11643_v11 = vsub.f32 %v2499_v16, %v2514_v30 }
 0x7a6   :  { %v2510_v38 = vpop.xlane.xlu0 %2509 }
 0x7a7   :  { %v2515_v13 = vmul.f32 0.0078125, %v2510_v38  ;;  %2526 = vadd.xlane.f32.xlu0 %v2521_v7  ;;  %v2522_v15 = vmul.f32 %v11643_v11, %v11643_v11 }
 0x7a9   :  { %2528 = vadd.xlane.f32.xlu1 %v2522_v15  ;;  %v11647_v17 = vsub.f32 %v2500_v48, %v2515_v13 }
 0x7ab   :  { %v2523_v19 = vmul.f32 %v11647_v17, %v11647_v17 }
 0x7ad   :  { %2530 = vadd.xlane.f32.xlu0 %v2523_v19 }
 0x832   :  { %v2525_v24 = vpop.xlane.xlu1 %2524 }
 0x833   :  { %v2532_v59 = vmul.f32 0.007874016, %v2525_v24 }
 0x834   :  { %v2527_v60 = vpop.xlane.xlu0 %2526 }
 0x835   :  { %10305 = vrsqrt.f32 %v2532_v59  ;;  %v2533_v14 = vmul.f32 0.007874016, %v2527_v60  ;;  %vm2538_vm6 = vcmp.eq.f32.partialorder %v2532_v59, inf  ;;  %v2541_v54 = vand.u32 2147483648, %v2532_v59 }
 0x836   :  { %v2529_v26 = vpop.xlane.xlu1 %2528  ;;  %vm2540_vm7 = vcmp.eq.f32.partialorder %v2532_v59, 0.0 }
 0x837   :  { %v2534_v16 = vmul.f32 0.007874016, %v2529_v26  ;;  %10307 = vrsqrt.f32 %v2533_v14  ;;  %vm2545_vm8 = vcmp.eq.f32.partialorder %v2533_v14, inf  ;;  %v2548_v51 = vand.u32 2147483648, %v2533_v14 }
 0x838   :  { %vm2547_vm9 = vcmp.eq.f32.partialorder %v2533_v14, 0.0 }
 0x839   :  { %10309 = vrsqrt.f32 %v2534_v16  ;;  %vm2552_vm10 = vcmp.eq.f32.partialorder %v2534_v16, inf  ;;  %v2555_v38 = vand.u32 2147483648, %v2534_v16  ;;  %vm2554_vm11 = vcmp.eq.f32.partialorder %v2534_v16, 0.0 }
 0x83a   :  { %v2531_v1 = vpop.xlane.xlu0 %2530 }
 0x83b   :  { %v2535_v48 = vmul.f32 0.007874016, %v2531_v1 }
 0x83d   :  { %10311 = vrsqrt.f32 %v2535_v48  ;;  %vm2559_vm12 = vcmp.eq.f32.partialorder %v2535_v48, inf  ;;  %v2562_v42 = vand.u32 2147483648, %v2535_v48  ;;  %vm2561_vm13 = vcmp.eq.f32.partialorder %v2535_v48, 0.0 }
 0x83f   :  { %v10306_v12 = vpop.eup %10305 }
 0x840   :  { %v2537_v3 = vmul.f32 %v10306_v12, %v2532_v59 }
 0x841   :  { %v10308_v4 = vpop.eup %10307 }
 0x842   :  { %v2539_v62 = vsel %vm2538_vm6, %v2532_v59, %v2537_v3  ;;  %v2544_v20 = vmul.f32 %v10308_v4, %v2533_v14  ;;  %v2864_v59 = vpop.f32.mrb[71].mxu1 }
 0x843   :  { %v10310_v5 = vpop.eup %10309  ;;  %v2542_v22 = vsel %vm2540_vm7, %v2541_v54, %v2539_v62  ;;  %v2868_v1 = vpop.f32.mrb[72].mxu1 }
 0x844   :  { %v2551_v30 = vmul.f32 %v10310_v5, %v2534_v16  ;;  %v2564_v61 = vadd.f32 1e-05, %v2542_v22  ;;  %v2546_v7 = vsel %vm2545_vm8, %v2533_v14, %v2544_v20  ;;  %v2870_v12 = vpop.f32.mrb[73].mxu1 }
 0x845   :  { %v2549_v15 = vsel %vm2547_vm9, %v2548_v51, %v2546_v7  ;;  %v2872_v54 = vpop.f32.mrb[74].mxu1 }
 0x846   :  { %v2553_v13 = vsel %vm2552_vm10, %v2534_v16, %v2551_v30  ;;  %10313 = vrcp.f32 %v2564_v61  ;;  %v2565_v40 = vadd.f32 1e-05, %v2549_v15  ;;  %v2874_v62 = vpop.f32.mrb[75].mxu1 }
 0x847   :  { %v10312_v19 = vpop.eup %10311  ;;  %v2556_v28 = vsel %vm2554_vm11, %v2555_v38, %v2553_v13  ;;  %v2878_v51 = vpop.f32.mrb[76].mxu1 }
 0x848   :  { %v2566_v29 = vadd.f32 1e-05, %v2556_v28  ;;  %v2558_v33 = vmul.f32 %v10312_v19, %v2535_v48  ;;  %10315 = vrcp.f32 %v2565_v40  ;;  %v2880_v61 = vpop.f32.mrb[77].mxu1 }
 0x849   :  { %v2882_v38 = vpop.f32.mrb[78].mxu1 }
 0x84a   :  { %10317 = vrcp.f32 %v2566_v29  ;;  %v2560_v35 = vsel %vm2559_vm12, %v2535_v48, %v2558_v33  ;;  %v2884_v15 = vpop.f32.mrb[79].mxu1 }
 0x84b   :  { %v2563_v43 = vsel %vm2561_vm13, %v2562_v42, %v2560_v35  ;;  %v2888_v29 = vpop.f32.mrb[80].mxu1 }
 0x84c   :  { %v2567_v18 = vadd.f32 1e-05, %v2563_v43  ;;  %v2890_v42 = vpop.f32.mrb[81].mxu1 }
 0x84d   :  { %v2892_v43 = vpop.f32.mrb[82].mxu1 }
 0x84e   :  { %10319 = vrcp.f32 %v2567_v18 }
 0x850   :  { %v10314_v37 = vpop.eup %10313 }
 0x851   :  { %v2572_v25 = vmul.f32 %v10314_v37, %v11635_v10  ;;  %v2894_v37 = vpop.f32.mrb[83].mxu1 }
 0x852   :  { %v10316_v8 = vpop.eup %10315 }
 0x853   :  { %v2573_v45 = vmul.f32 %v10316_v8, %v11639_v32  ;;  %v2580_v46 = vmul.f32 %v8711_v39, %v2572_v25 }
 0x854   :  { %v10318_v63 = vpop.eup %10317 }
 0x855   :  { %v2574_v49 = vmul.f32 %v10318_v63, %v11643_v11  ;;  %v2581_v50 = vmul.f32 %v8711_v39, %v2573_v45  ;;  %v11667_v21 = vadd.f32 %v8712_v47, %v2580_v46  ;;  %v8713_v63 = vld [vmem:[#allocation14] ss:$0 sm:$0xff] }
 0x857   :  { %v11669_v27 = vadd.f32 %v8712_v47, %v2581_v50  ;;  %v2582_v10 = vmul.f32 %v8711_v39, %v2574_v49 }
 0x858   :  { %v10320_v52 = vpop.eup %10319 }
 0x859   :  { %v2575_v6 = vmul.f32 %v10320_v52, %v11647_v17  ;;  %v2608_v56 = vpack.c.bf16 %v11669_v27, %v11667_v21  ;;  %v11674_v2 = vadd.f32 %v8712_v47, %v2582_v10  ;;  %v2732_v17 = vld [vmem:[%s12832_s10] ss:$2 sm:$0x3] }
 0x85a   :  { %v2737_v55 = vrot.slane %v2732_v17, %v11214_v34  ;;  %v2741_v23 = vrot.slane %v2732_v17, %v11219_v36 }
 0x85b   :  { %v2583_v32 = vmul.f32 %v8711_v39, %v2575_v6  ;;  %9569 = vmatprep.mubr.bf16.mxu0 %v2608_v56 }
 0x85c   :  { %v2859_v58 = vadd.f32 %v2858_v57, %v2737_v55  ;;  %v2861_v41 = vadd.f32 %v2860_v53, %v2741_v23  ;;  %v2863_v24 = vadd.f32 %v2862_v44, %v2737_v55  ;;  %v2865_v60 = vadd.f32 %v2864_v59, %v2741_v23 }
 0x85d   :  { %v11676_v9 = vadd.f32 %v8712_v47, %v2583_v32  ;;  %v2869_v48 = vadd.f32 %v2868_v1, %v2737_v55  ;;  %v2871_v3 = vadd.f32 %v2870_v12, %v2741_v23  ;;  %v2873_v4 = vadd.f32 %v2872_v54, %v2737_v55 }
 0x85e   :  { %v11687_v14 = vpack.c.bf16 %v2863_v24, %v2859_v58  ;;  %v11689_v26 = vpack.c.bf16 %v2865_v60, %v2861_v41  ;;  %v2875_v5 = vadd.f32 %v2874_v62, %v2741_v23  ;;  %v2879_v30 = vadd.f32 %v2878_v51, %v2737_v55 }
 0x85f   :  { %v2609_v11 = vpack.c.bf16 %v11676_v9, %v11674_v2  ;;  %v2950_v20 = vpack.c.bf16 %v2873_v4, %v2869_v48  ;;  %v2881_v7 = vadd.f32 %v2880_v61, %v2741_v23  ;;  %v2883_v13 = vadd.f32 %v2882_v38, %v2737_v55 }
 0x860   :  { %2957 = vrot.lane.b32.xlu1 %v11687_v14, %s10904_s15  ;;  %v3029_v16 = vsel %vm668_vm1, %v11687_v14, 0  ;;  %v11696_v22 = vpack.c.bf16 %v2875_v5, %v2871_v3  ;;  %v2885_v19 = vadd.f32 %v2884_v15, %v2741_v23  ;;  %v2889_v33 = vadd.f32 %v2888_v29, %v2737_v55 }
 0x861   :  { %9570 = vmatmul.mubr.bf16.vlgmr.msra.gmra.mrb[76].mxu0 %v2609_v11  ;;  %v2951_v28 = vpack.c.bf16 %v2883_v13, %v2879_v30  ;;  %v2891_v35 = vadd.f32 %v2890_v42, %v2741_v23  ;;  %v2893_v18 = vadd.f32 %v2892_v43, %v2737_v55  ;;  %v2895_v39 = vadd.f32 %v2894_v37, %v2741_v23 }
 0x862   :  { %9575 = vmatprep.mubr.msk.bf16.mxu0 %vm10903_vm0, %v10902_v31  ;;  %9574 = vmatpush3.bf16.xpose.msra.mxu0 %v3029_v16  ;;  %v11699_v40 = vpack.c.bf16 %v2885_v19, %v2881_v7  ;;  %v3075_v23 = vsel %vm668_vm1, %v2950_v20, 0 }
 0x863   :  { %9579 = vmatprep.subr.bf16.mxu0 %v10902_v31  ;;  %v2952_v25 = vpack.c.bf16 %v2893_v18, %v2889_v33  ;;  %v11702_v8 = vpack.c.bf16 %v2895_v39, %v2891_v35  ;;  %v3121_v41 = vsel %vm668_vm1, %v2951_v28, 0 }
 0x864   :  { %2959 = vrot.lane.b32.xlu1 %v2950_v20, %s10904_s15 }
 0x865   :  { %v3167_v24 = vsel %vm668_vm1, %v2952_v25, 0 }
 0x868   :  { %2961 = vrot.lane.b32.xlu1 %v2951_v28, %s10904_s15 }
 0x8d2   :  { %v2958_v59 = vpop.permute.xlu1 %2957 }
 0x8d3   :  { %v3213_v16 = vsel %vm668_vm1, %v2958_v59, 0 }
 0x934   :  { %v9571_v45 = vpop.f32.mrb[76].mxu0 }
 0x935   :  { %v2706_v46 = vadd.f32 %v9571_v45, %v8713_v63  ;;  %v2697_v47 = vpop.f32.mrb[77].mxu0 }
 0x936   :  { %v2698_v49 = vadd.f32 %v8713_v63, %v2697_v47  ;;  %v9572_v50 = vpop.f32.mrb[78].mxu0 }
 0x937   :  { %v2709_v52 = vadd.f32 %v9572_v50, %v8713_v63  ;;  %v2700_v6 = vpop.f32.mrb[79].mxu0  ;;  %v2899_v32 = vmul.f32 0.17677669, %v2706_v46 }
 0x938   :  { %v2897_v10 = vmul.f32 0.17677669, %v2698_v49  ;;  %v2701_v56 = vadd.f32 %v8713_v63, %v2700_v6 }
 0x939   :  { %v2900_v11 = vmul.f32 0.17677669, %v2709_v52  ;;  %v8999_v44 = vpack.c.bf16 %v2899_v32, %v2899_v32 }
 0x93a   :  { %v8997_v17 = vpack.c.bf16 %v2897_v10, %v2897_v10  ;;  %v2898_v57 = vmul.f32 0.17677669, %v2701_v56 }
 0x93b   :  { %v2902_v55 = vpack.c.bf16 %v2900_v11, %v2899_v32  ;;  %v9000_v60 = vpack.c.bf16 %v2900_v11, %v2900_v11 }
 0x93c   :  { %v2901_v58 = vpack.c.bf16 %v2898_v57, %v2897_v10  ;;  %9576 = vmatmul.mubr.msk.bf16.vlgmr.msra.gmra.mrb[80].mxu0 %vm668_vm1, %v8997_v17  ;;  %v8998_v53 = vpack.c.bf16 %v2898_v57, %v2898_v57  ;;  %v11822_v17 = vld [vmem:[%s12858_s27] sm:$0xff] }
 0x93d   :  { %9580 = vmatpush3.bf16.xpose.msra.mxu0 %v3075_v23  ;;  %2907 = vrot.lane.b32.xlu1 %v2902_v55, %s10904_s15 }
 0x93e   :  { %2905 = vrot.lane.b32.xlu0 %v2901_v58, %s10904_s15  ;;  %9581 = vmatprep.mubr.msk.bf16.mxu0 %vm10903_vm0, %v10902_v31 }
 0x93f   :  { %9585 = vmatprep.subr.bf16.mxu0 %v10902_v31 }
 0x941   :  { %2967 = vrot.lane.b32.xlu1 %v2950_v20, %s12857_s20 }
 0x942   :  { %2963 = vrot.lane.b32.xlu0 %v2952_v25, %s10904_s15 }
 0x944   :  { %9582 = vmatmul.mubr.msk.bf16.vlgmr.msra.gmra.mrb[84].mxu0 %vm668_vm1, %v8998_v53 }
 0x945   :  { %9586 = vmatpush3.bf16.xpose.msra.mxu0 %v3121_v41  ;;  %2969 = vrot.lane.b32.xlu1 %v2951_v28, %s12857_s20 }
 0x946   :  { %2965 = vrot.lane.b32.xlu0 %v11687_v14, %s12857_s20  ;;  %9587 = vmatprep.mubr.msk.bf16.mxu0 %vm10903_vm0, %v10902_v31 }
 0x947   :  { %9591 = vmatprep.subr.bf16.mxu0 %v10902_v31 }
 0x949   :  { %2911 = vrot.lane.b32.xlu1 %v2902_v55, %s12857_s20 }
 0x94a   :  { %2909 = vrot.lane.b32.xlu0 %v2901_v58, %s12857_s20 }
 0x94c   :  { %9588 = vmatmul.mubr.msk.bf16.vlgmr.msra.gmra.mrb[88].mxu0 %vm668_vm1, %v8999_v44 }
 0x94d   :  { %9592 = vmatpush3.bf16.xpose.msra.mxu0 %v3167_v24  ;;  %2975 = vrot.lane.b32.xlu1 %v2950_v20, %s10905_s3 }
 0x94e   :  { %2971 = vrot.lane.b32.xlu0 %v2952_v25, %s12857_s20  ;;  %9593 = vmatprep.mubr.msk.bf16.mxu0 %vm10903_vm0, %v10902_v31 }
 0x94f   :  { %9597 = vmatprep.subr.bf16.mxu0 %v10902_v31 }
 0x951   :  { %2977 = vrot.lane.b32.xlu1 %v2951_v28, %s10905_s3 }
 0x952   :  { %2973 = vrot.lane.b32.xlu0 %v11687_v14, %s10905_s3  ;;  %v2960_v14 = vpop.permute.xlu1 %2959 }
 0x953   :  { %v3259_v54 = vsel %vm668_vm1, %v2960_v14, 0 }
 0x954   :  { %9594 = vmatmul.mubr.msk.bf16.vlgmr.msra.gmra.mrb[92].mxu0 %vm668_vm1, %v9000_v60 }
 0x955   :  { %2915 = vrot.lane.b32.xlu1 %v2902_v55, %s10905_s3  ;;  %9598 = vmatpush3.bf16.xpose.msra.mxu0 %v3213_v16 }
 0x956   :  { %2913 = vrot.lane.b32.xlu0 %v2901_v58, %s10905_s3  ;;  %9599 = vmatprep.mubr.msk.bf16.mxu0 %vm10903_vm0, %v10902_v31  ;;  %v2962_v1 = vpop.permute.xlu1 %2961 }
 0x957   :  { %9603 = vmatprep.subr.bf16.mxu0 %v10902_v31  ;;  %v3305_v30 = vsel %vm668_vm1, %v2962_v1, 0 }
 0x959   :  { %2989 = vrot.lane.b32.xlu1 %v11689_v26, %s10904_s15 }
 0x95a   :  { %2979 = vrot.lane.b32.xlu0 %v2952_v25, %s10905_s3 }
 0x95d   :  { %2993 = vrot.lane.b32.xlu1 %v11699_v40, %s10904_s15 }
 0x95e   :  { %2991 = vrot.lane.b32.xlu0 %v11696_v22, %s10904_s15 }
 0x961   :  { %3001 = vrot.lane.b32.xlu1 %v11689_v26, %s12857_s20 }
 0x962   :  { %2995 = vrot.lane.b32.xlu0 %v11702_v8, %s10904_s15 }
 0x965   :  { %3005 = vrot.lane.b32.xlu1 %v11699_v40, %s12857_s20 }
 0x966   :  { %3003 = vrot.lane.b32.xlu0 %v11696_v22, %s12857_s20 }
 0x969   :  { %3007 = vrot.lane.b32.xlu1 %v11702_v8, %s12857_s20 }
 0x9af   :  { %v2908_v3 = vpop.permute.xlu1 %2907 }
 0x9b0   :  { %v2906_v48 = vpop.permute.xlu0 %2905  ;;  %v8745_v61 = vcombine.high %v2908_v3, %v2908_v3  ;;  %v8744_v19 = vcombine.low %v2908_v3, %v2908_v3 }
 0x9b1   :  { %v8742_v12 = vcombine.low %v2906_v48, %v2906_v48  ;;  %v8743_v51 = vcombine.high %v2906_v48, %v2906_v48 }
 0x9b3   :  { %9600 = vmatmul.mubr.msk.bf16.vlgmr.msra.gmra.mrb[96].mxu0 %vm668_vm1, %v8742_v12  ;;  %v2968_v5 = vpop.permute.xlu1 %2967 }
 0x9b4   :  { %9604 = vmatpush3.bf16.xpose.msra.mxu0 %v3259_v54  ;;  %v2964_v4 = vpop.permute.xlu0 %2963  ;;  %9605 = vmatprep.mubr.msk.bf16.mxu0 %vm10903_vm0, %v10902_v31  ;;  %v3443_v38 = vsel %vm668_vm1, %v2968_v5, 0 }
 0x9b5   :  { %v3351_v62 = vsel %vm668_vm1, %v2964_v4, 0  ;;  %9609 = vmatprep.subr.bf16.mxu0 %v10902_v31 }
 0x9b6   :  { %9616 = vmatpush3.bf16.xpose.msra.mxu1 %v3351_v62 }
 0x9b7   :  { %9627 = vmatprep.subr.bf16.mxu1 %v10902_v31  ;;  %v2970_v13 = vpop.permute.xlu1 %2969 }
 0x9b8   :  { %v2966_v20 = vpop.permute.xlu0 %2965  ;;  %v3489_v37 = vsel %vm668_vm1, %v2970_v13, 0 }
 0x9b9   :  { %v3397_v28 = vsel %vm668_vm1, %v2966_v20, 0 }
 0x9bb   :  { %9606 = vmatmul.mubr.msk.bf16.vlgmr.msra.gmra.mrb[100].mxu0 %vm668_vm1, %v8743_v51  ;;  %v2912_v33 = vpop.permute.xlu1 %2911 }
 0x9bc   :  { %9610 = vmatpush3.bf16.xpose.msra.mxu0 %v3305_v30  ;;  %v2910_v7 = vpop.permute.xlu0 %2909  ;;  %9611 = vmatprep.mubr.msk.bf16.mxu0 %vm10903_vm0, %v10902_v31  ;;  %v8749_v39 = vcombine.high %v2912_v33, %v2912_v33  ;;  %v8748_v45 = vcombine.low %v2912_v33, %v2912_v33 }
 0x9bd   :  { %9618 = vmatmul.mubr.msk.bf16.vlgmr.msra.gmra.mrb[84].mxu1 %vm668_vm1, %v8745_v61  ;;  %9621 = vmatprep.subr.bf16.mxu0 %v10902_v31  ;;  %v8747_v29 = vcombine.high %v2910_v7, %v2910_v7  ;;  %v8746_v43 = vcombine.low %v2910_v7, %v2910_v7 }
 0x9be   :  { %9628 = vmatpush3.bf16.xpose.msra.mxu1 %v3443_v38  ;;  %9629 = vmatprep.mubr.msk.bf16.mxu1 %vm10903_vm0, %v10902_v31 }
 0x9bf   :  { %9639 = vmatprep.subr.bf16.mxu1 %v10902_v31  ;;  %v2976_v18 = vpop.permute.xlu1 %2975 }
 0x9c0   :  { %v2972_v15 = vpop.permute.xlu0 %2971  ;;  %v3627_v63 = vsel %vm668_vm1, %v2976_v18, 0 }
 0x9c1   :  { %v3535_v42 = vsel %vm668_vm1, %v2972_v15, 0 }
 0x9c3   :  { %9612 = vmatmul.mubr.msk.bf16.vlgmr.msra.gmra.mrb[104].mxu0 %vm668_vm1, %v8744_v19  ;;  %v2978_v46 = vpop.permute.xlu1 %2977 }
 0x9c4   :  { %9622 = vmatpush3.bf16.xpose.msra.mxu0 %v3397_v28  ;;  %9623 = vmatprep.mubr.msk.bf16.mxu0 %vm10903_vm0, %v10902_v31  ;;  %v2974_v35 = vpop.permute.xlu0 %2973  ;;  %v3673_v56 = vsel %vm668_vm1, %v2978_v46, 0 }
 0x9c5   :  { %9630 = vmatmul.mubr.msk.bf16.vlgmr.msra.gmra.mrb[88].mxu1 %vm668_vm1, %v8747_v29  ;;  %9633 = vmatprep.subr.bf16.mxu0 %v10902_v31  ;;  %v3581_v49 = vsel %vm668_vm1, %v2974_v35, 0 }
 0x9c6   :  { %9640 = vmatpush3.bf16.xpose.msra.mxu1 %v3535_v42  ;;  %9641 = vmatprep.mubr.msk.bf16.mxu1 %vm10903_vm0, %v10902_v31 }
 0x9c7   :  { %9651 = vmatprep.subr.bf16.mxu1 %v10902_v31  ;;  %v2916_v6 = vpop.permute.xlu1 %2915 }
 0x9c8   :  { %v2914_v25 = vpop.permute.xlu0 %2913  ;;  %v8753_v32 = vcombine.high %v2916_v6, %v2916_v6  ;;  %v8752_v11 = vcombine.low %v2916_v6, %v2916_v6 }
 0x9c9   :  { %v8751_v50 = vcombine.high %v2914_v25, %v2914_v25  ;;  %v8750_v10 = vcombine.low %v2914_v25, %v2914_v25 }
 0x9cb   :  { %9624 = vmatmul.mubr.msk.bf16.vlgmr.msra.gmra.mrb[108].mxu0 %vm668_vm1, %v8746_v43 }
 0x9cc   :  { %9634 = vmatpush3.bf16.xpose.msra.mxu0 %v3489_v37  ;;  %9635 = vmatprep.mubr.msk.bf16.mxu0 %vm10903_vm0, %v10902_v31  ;;  %v2980_v47 = vpop.permute.xlu0 %2979 }
 0x9cd   :  { %9642 = vmatmul.mubr.msk.bf16.vlgmr.msra.gmra.mrb[92].mxu1 %vm668_vm1, %v8749_v39  ;;  %9645 = vmatprep.subr.bf16.mxu0 %v10902_v31  ;;  %v3719_v52 = vsel %vm668_vm1, %v2980_v47, 0 }
 0x9ce   :  { %9652 = vmatpush3.bf16.xpose.msra.mxu1 %v3627_v63  ;;  %9653 = vmatprep.mubr.msk.bf16.mxu1 %vm10903_vm0, %v10902_v31 }
 0x9cf   :  { %9663 = vmatprep.subr.bf16.mxu1 %v10902_v31 }
 0x9d3   :  { %9636 = vmatmul.mubr.msk.bf16.vlgmr.msra.gmra.mrb[112].mxu0 %vm668_vm1, %v8748_v45 }
 0x9d4   :  { %9646 = vmatpush3.bf16.xpose.msra.mxu0 %v3581_v49  ;;  %9647 = vmatprep.mubr.msk.bf16.mxu0 %vm10903_vm0, %v10902_v31 }
 0x9d5   :  { %9654 = vmatmul.mubr.msk.bf16.vlgmr.msra.gmra.mrb[96].mxu1 %vm668_vm1, %v8751_v50  ;;  %9657 = vmatprep.subr.bf16.mxu0 %v10902_v31 }
 0x9d6   :  { %9664 = vmatpush3.bf16.xpose.msra.mxu1 %v3719_v52  ;;  %9665 = vmatprep.mubr.msk.bf16.mxu1 %vm10903_vm0, %v10902_v31 }
 0x9d7   :  { %9675 = vmatprep.subr.bf16.mxu1 %v10902_v31 }
 0x9db   :  { %9648 = vmatmul.mubr.msk.bf16.vlgmr.msra.gmra.mrb[116].mxu0 %vm668_vm1, %v8750_v10 }
 0x9dc   :  { %9658 = vmatpush3.bf16.xpose.msra.mxu0 %v3673_v56  ;;  %9659 = vmatprep.mubr.msk.bf16.mxu0 %vm10903_vm0, %v10902_v31 }
 0x9dd   :  { %9666 = vmatmul.mubr.msk.bf16.vlgmr.msra.gmra.mrb[100].mxu1 %vm668_vm1, %v8753_v32  ;;  %9669 = vmatprep.subr.bf16.mxu0 %v10902_v31 }
 0x9de   :  { %9676 = vmatpush3.bf16.msra.mxu1 %v11696_v22  ;;  %9677 = vmatprep.mubr.msk.bf16.mxu1 %vm10903_vm0, %v10902_v31 }
 0x9df   :  { %9687 = vmatprep.subr.bf16.mxu1 %v10902_v31 }
 0x9e3   :  { %9660 = vmatmul.mubr.msk.bf16.vlgmr.msra.gmra.mrb[120].mxu0 %vm668_vm1, %v8752_v11 }
 0x9e4   :  { %9670 = vmatpush3.bf16.msra.mxu0 %v11689_v26  ;;  %9671 = vmatprep.mubr.msk.bf16.mxu0 %vm10903_vm0, %v10902_v31 }
 0x9e5   :  { %9681 = vmatprep.subr.bf16.mxu0 %v10902_v31 }
 0xa0f   :  { %v3065_v57 = vpop.f32.mrb[80].mxu0 }
 0xa10   :  { %v3066_v55 = vadd.f32 %v3065_v57, %v11822_v17  ;;  %v9577_v58 = vpop.f32.mrb[81].mxu0 }
 0xa11   :  { %v3068_v23 = vpop.f32.mrb[82].mxu0 }
 0xa12   :  { %v3762_v53 = vsel %vm3761_vm14, %v3066_v55, -inf  ;;  %v9578_v41 = vpop.f32.mrb[83].mxu0 }
 0xa13   :  { %v3763_v44 = vrot.slane %v3762_v53, 4 }
 0xa15   :  { %v3764_v24 = vmax.f32 %v3762_v53, %v3763_v44 }
 0xa17   :  { %v3765_v59 = vrot.slane %v3764_v24, 2  ;;  %v3111_v60 = vpop.f32.mrb[84].mxu0 }
 0xa18   :  { %v3112_v16 = vadd.f32 %v3111_v60, %v11822_v17  ;;  %v9583_v14 = vpop.f32.mrb[85].mxu0 }
 0xa19   :  { %v3766_v1 = vmax.f32 %v3764_v24, %v3765_v59  ;;  %v3114_v48 = vpop.f32.mrb[86].mxu0 }
 0xa1a   :  { %v3769_v12 = vsel %vm3761_vm14, %v3112_v16, -inf  ;;  %v9584_v3 = vpop.f32.mrb[87].mxu0 }
 0xa1b   :  { %v3767_v54 = vrot.slane %v3766_v1, 1  ;;  %v3770_v4 = vrot.slane %v3769_v12, 4 }
 0xa1d   :  { %v3768_v62 = vmax.f32 %v3766_v1, %v3767_v54  ;;  %v3771_v5 = vmax.f32 %v3769_v12, %v3770_v4 }
 0xa1f   :  { %v3874_v20 = vsub.f32 %v3066_v55, %v3768_v62  ;;  %v3772_v51 = vrot.slane %v3771_v5, 2  ;;  %v3157_v30 = vpop.f32.mrb[88].mxu0 }
 0xa20   :  { %v3158_v61 = vadd.f32 %v3157_v30, %v11822_v17  ;;  %v9589_v7 = vpop.f32.mrb[89].mxu0 }
 0xa21   :  { %v3890_v38 = vmul.f32 1.442695, %v3874_v20  ;;  %v3773_v13 = vmax.f32 %v3771_v5, %v3772_v51  ;;  %v3160_v15 = vpop.f32.mrb[90].mxu0 }
 0xa22   :  { %v3776_v19 = vsel %vm3761_vm14, %v3158_v61, -inf  ;;  %v9590_v28 = vpop.f32.mrb[91].mxu0 }
 0xa23   :  { %10321 = vpow2.f32 %v3890_v38  ;;  %v3774_v29 = vrot.slane %v3773_v13, 1  ;;  %v3777_v33 = vrot.slane %v3776_v19, 4 }
 0xa25   :  { %v3775_v42 = vmax.f32 %v3773_v13, %v3774_v29  ;;  %v3778_v35 = vmax.f32 %v3776_v19, %v3777_v33 }
 0xa27   :  { %v3875_v43 = vsub.f32 %v3112_v16, %v3775_v42  ;;  %v3779_v18 = vrot.slane %v3778_v35, 2  ;;  %v3203_v37 = vpop.f32.mrb[92].mxu0 }
 0xa28   :  { %v3204_v39 = vadd.f32 %v3203_v37, %v11822_v17  ;;  %v9595_v25 = vpop.f32.mrb[93].mxu0 }
 0xa29   :  { %v3892_v63 = vmul.f32 1.442695, %v3875_v43  ;;  %v3780_v45 = vmax.f32 %v3778_v35, %v3779_v18  ;;  %v3206_v46 = vpop.f32.mrb[94].mxu0 }
 0xa2a   :  { %v3783_v47 = vsel %vm3761_vm14, %v3204_v39, -inf  ;;  %v9596_v49 = vpop.f32.mrb[95].mxu0 }
 0xa2b   :  { %10323 = vpow2.f32 %v3892_v63  ;;  %v3781_v50 = vrot.slane %v3780_v45, 1  ;;  %v3784_v52 = vrot.slane %v3783_v47, 4 }
 0xa2d   :  { %v10322_v6 = vpop.eup %10321  ;;  %v3782_v10 = vmax.f32 %v3780_v45, %v3781_v50  ;;  %v3785_v56 = vmax.f32 %v3783_v47, %v3784_v52 }
 0xa2e   :  { %v3922_v32 = vsel %vm3761_vm14, %v10322_v6, 0.0 }
 0xa2f   :  { %v3923_v11 = vrot.slane %v3922_v32, 4  ;;  %v3876_v57 = vsub.f32 %v3158_v61, %v3782_v10  ;;  %v3786_v55 = vrot.slane %v3785_v56, 2 }
 0xa31   :  { %v3924_v58 = vadd.f32 %v3923_v11, %v3922_v32  ;;  %v3894_v23 = vmul.f32 1.442695, %v3876_v57  ;;  %v3787_v53 = vmax.f32 %v3785_v56, %v3786_v55 }
 0xa33   :  { %v3925_v41 = vrot.slane %v3924_v58, 2  ;;  %10325 = vpow2.f32 %v3894_v23  ;;  %v3788_v44 = vrot.slane %v3787_v53, 1 }
 0xa35   :  { %v10324_v24 = vpop.eup %10323  ;;  %v3789_v59 = vmax.f32 %v3787_v53, %v3788_v44  ;;  %v3926_v60 = vadd.f32 %v3925_v41, %v3924_v58 }
 0xa36   :  { %v3929_v16 = vsel %vm3761_vm14, %v10324_v24, 0.0 }
 0xa37   :  { %v3930_v14 = vrot.slane %v3929_v16, 4  ;;  %v3877_v1 = vsub.f32 %v3204_v39, %v3789_v59  ;;  %v3927_v48 = vrot.slane %v3926_v60, 1 }
 0xa39   :  { %v3931_v12 = vadd.f32 %v3930_v14, %v3929_v16  ;;  %v3896_v3 = vmul.f32 1.442695, %v3877_v1  ;;  %v3928_v54 = vadd.f32 %v3927_v48, %v3926_v60 }
 0xa3b   :  { %v3932_v4 = vrot.slane %v3931_v12, 2  ;;  %10327 = vpow2.f32 %v3896_v3 }
 0xa3c   :  { %10329 = vrcp.f32 %v3928_v54 }
 0xa3d   :  { %v10326_v62 = vpop.eup %10325  ;;  %v3933_v5 = vadd.f32 %v3932_v4, %v3931_v12 }
 0xa3e   :  { %v3936_v20 = vsel %vm3761_vm14, %v10326_v62, 0.0 }
 0xa3f   :  { %v3937_v51 = vrot.slane %v3936_v20, 4  ;;  %v3934_v30 = vrot.slane %v3933_v5, 1 }
 0xa41   :  { %v3938_v61 = vadd.f32 %v3937_v51, %v3936_v20  ;;  %v3935_v7 = vadd.f32 %v3934_v30, %v3933_v5 }
 0xa43   :  { %v3939_v38 = vrot.slane %v3938_v61, 2  ;;  %10331 = vrcp.f32 %v3935_v7 }
 0xa45   :  { %v10328_v13 = vpop.eup %10327  ;;  %v3940_v15 = vadd.f32 %v3939_v38, %v3938_v61 }
 0xa46   :  { %v10330_v19 = vpop.eup %10329  ;;  %v3943_v28 = vsel %vm3761_vm14, %v10328_v13, 0.0 }
 0xa47   :  { %v3944_v29 = vrot.slane %v3943_v28, 4  ;;  %v11836_v33 = vmul.f32 %v10330_v19, %v10322_v6  ;;  %v3941_v42 = vrot.slane %v3940_v15, 1 }
 0xa49   :  { %v3945_v35 = vadd.f32 %v3944_v29, %v3943_v28  ;;  %v4066_v43 = vsel %vm3761_vm14, %v11836_v33, 0.0  ;;  %v3942_v18 = vadd.f32 %v3941_v42, %v3940_v15 }
 0xa4a   :  { %4067 = vadd.xlane.f32.xlu0 %v4066_v43 }
 0xa4b   :  { %v3946_v37 = vrot.slane %v3945_v35, 2  ;;  %10333 = vrcp.f32 %v3942_v18 }
 0xa4d   :  { %v10332_v39 = vpop.eup %10331  ;;  %v3947_v25 = vadd.f32 %v3946_v37, %v3945_v35 }
 0xa4e   :  { %v11840_v63 = vmul.f32 %v10332_v39, %v10324_v24 }
 0xa4f   :  { %v3948_v45 = vrot.slane %v3947_v25, 1 }
 0xa50   :  { %v4069_v46 = vsel %vm3761_vm14, %v11840_v63, 0.0 }
 0xa51   :  { %4070 = vadd.xlane.f32.xlu1 %v4069_v46  ;;  %v3949_v47 = vadd.f32 %v3948_v45, %v3947_v25 }
 0xa53   :  { %10335 = vrcp.f32 %v3949_v47 }
 0xa55   :  { %v10334_v49 = vpop.eup %10333 }
 0xa56   :  { %v11844_v50 = vmul.f32 %v10334_v49, %v10326_v62 }
 0xa58   :  { %v4072_v52 = vsel %vm3761_vm14, %v11844_v50, 0.0 }
 0xa59   :  { %4073 = vadd.xlane.f32.xlu0 %v4072_v52 }
 0xa5d   :  { %v10336_v6 = vpop.eup %10335 }
 0xa5e   :  { %v11848_v10 = vmul.f32 %v10336_v6, %v10328_v13 }
 0xa60   :  { %v4075_v56 = vsel %vm3761_vm14, %v11848_v10, 0.0 }
 0xa61   :  { %4076 = vadd.xlane.f32.xlu0 %v4075_v56 }
 0xa86   :  { %v3249_v32 = vpop.f32.mrb[96].mxu0 }
 0xa87   :  { %v3250_v11 = vadd.f32 %v3249_v32, %v11822_v17  ;;  %v9601_v57 = vpop.f32.mrb[97].mxu0 }
 0xa88   :  { %v3252_v55 = vpop.f32.mrb[98].mxu0 }
 0xa89   :  { %v3790_v58 = vsel %vm3761_vm14, %v3250_v11, -inf  ;;  %v9602_v23 = vpop.f32.mrb[99].mxu0 }
 0xa8a   :  { %v3791_v53 = vrot.slane %v3790_v58, 4 }
 0xa8c   :  { %v3792_v41 = vmax.f32 %v3790_v58, %v3791_v53 }
 0xa8e   :  { %v3793_v44 = vrot.slane %v3792_v41, 2  ;;  %v3295_v24 = vpop.f32.mrb[100].mxu0 }
 0xa8f   :  { %v3296_v59 = vadd.f32 %v3295_v24, %v11822_v17  ;;  %v9607_v60 = vpop.f32.mrb[101].mxu0 }
 0xa90   :  { %v3794_v16 = vmax.f32 %v3792_v41, %v3793_v44  ;;  %v3298_v14 = vpop.f32.mrb[102].mxu0  ;;  %v3387_v1 = vpop.f32.mrb[84].mxu1 }
 0xa91   :  { %v3797_v48 = vsel %vm3761_vm14, %v3296_v59, -inf  ;;  %v3388_v12 = vadd.f32 %v3387_v1, %v11822_v17  ;;  %v9608_v3 = vpop.f32.mrb[103].mxu0  ;;  %v9619_v54 = vpop.f32.mrb[85].mxu1 }
 0xa92   :  { %v3795_v4 = vrot.slane %v3794_v16, 1  ;;  %v3798_v62 = vrot.slane %v3797_v48, 4  ;;  %v3390_v5 = vpop.f32.mrb[86].mxu1 }
 0xa93   :  { %v3811_v20 = vsel %vm3761_vm14, %v3388_v12, -inf  ;;  %v9620_v51 = vpop.f32.mrb[87].mxu1 }
 0xa94   :  { %v3796_v30 = vmax.f32 %v3794_v16, %v3795_v4  ;;  %v3799_v61 = vmax.f32 %v3797_v48, %v3798_v62  ;;  %v3812_v7 = vrot.slane %v3811_v20, 4 }
 0xa96   :  { %v3878_v38 = vsub.f32 %v3250_v11, %v3796_v30  ;;  %v3800_v13 = vrot.slane %v3799_v61, 2  ;;  %v3813_v15 = vmax.f32 %v3811_v20, %v3812_v7  ;;  %v3341_v19 = vpop.f32.mrb[104].mxu0 }
 0xa97   :  { %v3342_v28 = vadd.f32 %v3341_v19, %v11822_v17  ;;  %v9613_v29 = vpop.f32.mrb[105].mxu0 }
 0xa98   :  { %v3898_v42 = vmul.f32 1.442695, %v3878_v38  ;;  %v3801_v35 = vmax.f32 %v3799_v61, %v3800_v13  ;;  %v3814_v43 = vrot.slane %v3813_v15, 2  ;;  %v3344_v18 = vpop.f32.mrb[106].mxu0  ;;  %v3479_v37 = vpop.f32.mrb[88].mxu1 }
 0xa99   :  { %v3804_v39 = vsel %vm3761_vm14, %v3342_v28, -inf  ;;  %v11861_v25 = vadd.f32 %v3479_v37, %v11822_v17  ;;  %v9614_v45 = vpop.f32.mrb[107].mxu0  ;;  %v9631_v46 = vpop.f32.mrb[89].mxu1 }
 0xa9a   :  { %10337 = vpow2.f32 %v3898_v42  ;;  %v3802_v47 = vrot.slane %v3801_v35, 1  ;;  %v3815_v49 = vmax.f32 %v3813_v15, %v3814_v43  ;;  %v3805_v52 = vrot.slane %v3804_v39, 4  ;;  %v3482_v6 = vpop.f32.mrb[90].mxu1 }
 0xa9b   :  { %v3825_v56 = vsel %vm3761_vm14, %v11861_v25, -inf  ;;  %v9632_v32 = vpop.f32.mrb[91].mxu1 }
 0xa9c   :  { %v3803_v11 = vmax.f32 %v3801_v35, %v3802_v47  ;;  %v3816_v57 = vrot.slane %v3815_v49, 1  ;;  %v3806_v55 = vmax.f32 %v3804_v39, %v3805_v52  ;;  %v3826_v58 = vrot.slane %v3825_v56, 4 }
 0xa9e   :  { %v3879_v23 = vsub.f32 %v3296_v59, %v3803_v11  ;;  %v3817_v53 = vmax.f32 %v3815_v49, %v3816_v57  ;;  %v3807_v41 = vrot.slane %v3806_v55, 2  ;;  %v3827_v44 = vmax.f32 %v3825_v56, %v3826_v58  ;;  %v3433_v24 = vpop.f32.mrb[108].mxu0 }
 0xa9f   :  { %v11866_v60 = vadd.f32 %v3433_v24, %v11822_v17  ;;  %v9625_v16 = vpop.f32.mrb[109].mxu0 }
 0xaa0   :  { %v3900_v14 = vmul.f32 1.442695, %v3879_v23  ;;  %v3881_v1 = vsub.f32 %v3388_v12, %v3817_v53  ;;  %v3808_v48 = vmax.f32 %v3806_v55, %v3807_v41  ;;  %v3828_v3 = vrot.slane %v3827_v44, 2  ;;  %v3436_v54 = vpop.f32.mrb[110].mxu0  ;;  %v3571_v4 = vpop.f32.mrb[92].mxu1 }
 0xaa1   :  { %v3818_v62 = vsel %vm3761_vm14, %v11866_v60, -inf  ;;  %v11871_v5 = vadd.f32 %v3571_v4, %v11822_v17  ;;  %v9626_v59 = vpop.f32.mrb[111].mxu0  ;;  %v9643_v20 = vpop.f32.mrb[93].mxu1 }
 0xaa2   :  { %10339 = vpow2.f32 %v3900_v14  ;;  %v3904_v51 = vmul.f32 1.442695, %v3881_v1  ;;  %v3809_v30 = vrot.slane %v3808_v48, 1  ;;  %v3829_v61 = vmax.f32 %v3827_v44, %v3828_v3  ;;  %v3574_v7 = vpop.f32.mrb[94].mxu1 }
 0xaa3   :  { %v3819_v38 = vrot.slane %v3818_v62, 4  ;;  %v3839_v12 = vsel %vm3761_vm14, %v11871_v5, -inf  ;;  %v9644_v13 = vpop.f32.mrb[95].mxu1 }
 0xaa4   :  { %v11875_v15 = vpop.eup %10337  ;;  %10341 = vpow2.f32 %v3904_v51  ;;  %v3810_v19 = vmax.f32 %v3808_v48, %v3809_v30  ;;  %v3830_v29 = vrot.slane %v3829_v61, 1  ;;  %v3840_v42 = vrot.slane %v3839_v12, 4 }
 0xaa5   :  { %v3950_v35 = vsel %vm3761_vm14, %v11875_v15, 0.0  ;;  %v3820_v43 = vmax.f32 %v3818_v62, %v3819_v38 }
 0xaa6   :  { %v3951_v18 = vrot.slane %v3950_v35, 4  ;;  %v3880_v37 = vsub.f32 %v3342_v28, %v3810_v19  ;;  %v3831_v39 = vmax.f32 %v3829_v61, %v3830_v29  ;;  %v3841_v45 = vmax.f32 %v3839_v12, %v3840_v42  ;;  %v3525_v46 = vpop.f32.mrb[112].mxu0 }
 0xaa7   :  { %v3821_v47 = vrot.slane %v3820_v43, 2  ;;  %v9637_v49 = vpop.f32.mrb[113].mxu0  ;;  %v11883_v48 = vadd.f32 %v3525_v46, %v11822_v17 }
 0xaa8   :  { %v3952_v52 = vadd.f32 %v3951_v18, %v3950_v35  ;;  %v3902_v6 = vmul.f32 1.442695, %v3880_v37  ;;  %v3883_v56 = vsub.f32 %v11861_v25, %v3831_v39  ;;  %v3842_v32 = vrot.slane %v3841_v45, 2  ;;  %v3528_v11 = vpop.f32.mrb[114].mxu0  ;;  %v3663_v57 = vpop.f32.mrb[96].mxu1 }
 0xaa9   :  { %v3822_v55 = vmax.f32 %v3820_v43, %v3821_v47  ;;  %v9638_v58 = vpop.f32.mrb[115].mxu0  ;;  %v9655_v23 = vpop.f32.mrb[97].mxu1  ;;  %v11886_v3 = vadd.f32 %v3663_v57, %v11822_v17  ;;  %v3832_v12 = vsel %vm3761_vm14, %v11883_v48, -inf }
 0xaaa   :  { %v3953_v53 = vrot.slane %v3952_v52, 2  ;;  %10343 = vpow2.f32 %v3902_v6  ;;  %v3908_v41 = vmul.f32 1.442695, %v3883_v56  ;;  %v3843_v44 = vmax.f32 %v3841_v45, %v3842_v32  ;;  %v3666_v28 = vpop.f32.mrb[98].mxu1 }
 0xaab   :  { %v3823_v24 = vrot.slane %v3822_v55, 1  ;;  %v9656_v16 = vpop.f32.mrb[99].mxu1  ;;  %v3853_v42 = vsel %vm3761_vm14, %v11886_v3, -inf  ;;  %v3833_v47 = vrot.slane %v3832_v12, 4 }
 0xaac   :  { %v11880_v14 = vpop.eup %10339  ;;  %10345 = vpow2.f32 %v3908_v41  ;;  %v3844_v1 = vrot.slane %v3843_v44, 1  ;;  %v3954_v54 = vadd.f32 %v3953_v53, %v3952_v52  ;;  %v3854_v32 = vrot.slane %v3853_v42, 4 }
 0xaad   :  { %v3824_v25 = vmax.f32 %v3822_v55, %v3823_v24  ;;  %v3957_v20 = vsel %vm3761_vm14, %v11880_v14, 0.0  ;;  %v3834_v28 = vmax.f32 %v3832_v12, %v3833_v47 }
 0xaae   :  { %v11888_v4 = vpop.eup %10341  ;;  %v3845_v62 = vmax.f32 %v3843_v44, %v3844_v1  ;;  %v3617_v59 = vpop.f32.mrb[116].mxu0  ;;  %v3955_v37 = vrot.slane %v3954_v54, 1 }
 0xaaf   :  { %v3971_v51 = vsel %vm3761_vm14, %v11888_v4, 0.0  ;;  %v3882_v30 = vsub.f32 %v11866_v60, %v3824_v25  ;;  %v9649_v61 = vpop.f32.mrb[117].mxu0  ;;  %v11901_v35 = vadd.f32 %v3617_v59, %v11822_v17  ;;  %v3958_v60 = vrot.slane %v3957_v20, 4 }
 0xab0   :  { %v3972_v7 = vrot.slane %v3971_v51, 4  ;;  %v3885_v38 = vsub.f32 %v11871_v5, %v3845_v62  ;;  %v3620_v13 = vpop.f32.mrb[118].mxu0  ;;  %v3755_v19 = vpop.f32.mrb[100].mxu1  ;;  %v3956_v57 = vadd.f32 %v3955_v37, %v3954_v54  ;;  %v3835_v12 = vrot.slane %v3834_v28, 2 }
 0xab1   :  { %v3906_v29 = vmul.f32 1.442695, %v3882_v30  ;;  %v9650_v43 = vpop.f32.mrb[119].mxu0  ;;  %v9667_v18 = vpop.f32.mrb[101].mxu1  ;;  %v11904_v5 = vadd.f32 %v3755_v19, %v11822_v17  ;;  %v3846_v11 = vsel %vm3761_vm14, %v11901_v35, -inf  ;;  %v3959_v58 = vadd.f32 %v3958_v60, %v3957_v20 }
 0xab2   :  { %v3973_v39 = vadd.f32 %v3972_v7, %v3971_v51  ;;  %v3912_v45 = vmul.f32 1.442695, %v3885_v38  ;;  %v3758_v46 = vpop.f32.mrb[102].mxu1  ;;  %v3847_v54 = vrot.slane %v3846_v11, 4  ;;  %v3855_v51 = vmax.f32 %v3853_v42, %v3854_v32 }
 0xab3   :  { %10347 = vpow2.f32 %v3906_v29  ;;  %v9668_v49 = vpop.f32.mrb[103].mxu1  ;;  %v3867_v53 = vsel %vm3761_vm14, %v11904_v5, -inf  ;;  %v3960_v61 = vrot.slane %v3959_v58, 2 }
 0xab4   :  { %v11906_v52 = vpop.eup %10343  ;;  %v3974_v6 = vrot.slane %v3973_v39, 2  ;;  %10349 = vpow2.f32 %v3912_v45  ;;  %v3868_v20 = vrot.slane %v3867_v53, 4  ;;  %v3848_v29 = vmax.f32 %v3846_v11, %v3847_v54 }
 0xab5   :  { %v3964_v56 = vsel %vm3761_vm14, %v11906_v52, 0.0  ;;  %10351 = vrcp.f32 %v3956_v57  ;;  %v3856_v37 = vrot.slane %v3855_v51, 2  ;;  %v3836_v11 = vmax.f32 %v3834_v28, %v3835_v12 }
 0xab6   :  { %v11912_v55 = vpop.eup %10345  ;;  %v3965_v23 = vrot.slane %v3964_v56, 4  ;;  %v3709_v41 = vpop.f32.mrb[120].mxu0  ;;  %v3975_v1 = vadd.f32 %v3974_v6, %v3973_v39  ;;  %v3869_v60 = vmax.f32 %v3867_v53, %v3868_v20  ;;  %v3961_v6 = vadd.f32 %v3960_v61, %v3959_v58 }
 0xab7   :  { %v3985_v44 = vsel %vm3761_vm14, %v11912_v55, 0.0  ;;  %v11919_v24 = vadd.f32 %v3709_v41, %v11822_v17  ;;  %v9661_v16 = vpop.f32.mrb[121].mxu0 }
 0xab8   :  { %v3966_v25 = vadd.f32 %v3965_v23, %v3964_v56  ;;  %v3986_v62 = vrot.slane %v3985_v44, 4  ;;  %v3712_v59 = vpop.f32.mrb[122].mxu0  ;;  %v3976_v19 = vrot.slane %v3975_v1, 1  ;;  %v3849_v23 = vrot.slane %v3848_v29, 2 }
 0xab9   :  { %v9662_v30 = vpop.f32.mrb[123].mxu0  ;;  %v3860_v13 = vsel %vm3761_vm14, %v11919_v24, -inf  ;;  %v3870_v54 = vrot.slane %v3869_v60, 2  ;;  %v3962_v59 = vrot.slane %v3961_v6, 1 }
 0xaba   :  { %v3967_v7 = vrot.slane %v3966_v25, 2  ;;  %v3987_v38 = vadd.f32 %v3986_v62, %v3985_v44  ;;  %v3861_v39 = vrot.slane %v3860_v13, 4  ;;  %v3977_v42 = vadd.f32 %v3976_v19, %v3975_v1 }
 0xabb   :  { %v3857_v44 = vmax.f32 %v3855_v51, %v3856_v37  ;;  %v3837_v30 = vrot.slane %v3836_v11, 1  ;;  %v3850_v28 = vmax.f32 %v3848_v29, %v3849_v23  ;;  %v3963_v12 = vadd.f32 %v3962_v59, %v3961_v6 }
 0xabc   :  { %v3988_v17 = vrot.slane %v3987_v38, 2  ;;  %v3968_v43 = vadd.f32 %v3967_v7, %v3966_v25  ;;  %10353 = vrcp.f32 %v3977_v42  ;;  %v3862_v16 = vmax.f32 %v3860_v13, %v3861_v39  ;;  %v11931_v25 = vpop.permute.xlu1 %2989  ;;  %v11938_v39 = vpop.permute.xlu0 %2991 }
 0xabd   :  { %v11923_v18 = vpop.eup %10347  ;;  %v3858_v19 = vrot.slane %v3857_v44, 1  ;;  %v3838_v29 = vmax.f32 %v3836_v11, %v3837_v30 }
 0xabe   :  { %v11925_v45 = vpop.eup %10349  ;;  %v3978_v46 = vsel %vm3761_vm14, %v11923_v18, 0.0  ;;  %v3969_v47 = vrot.slane %v3968_v43, 1  ;;  %v3989_v49 = vadd.f32 %v3988_v17, %v3987_v38  ;;  %v3863_v51 = vrot.slane %v3862_v16, 2 }
 0xabf   :  { %v3979_v56 = vrot.slane %v3978_v46, 4  ;;  %v3999_v32 = vsel %vm3761_vm14, %v11925_v45, 0.0  ;;  %v10352_v58 = vpop.eup %10351  ;;  %v3871_v17 = vmax.f32 %v3869_v60, %v3870_v54 }
 0xac0   :  { %v4000_v57 = vrot.slane %v3999_v32, 4  ;;  %v3970_v41 = vadd.f32 %v3969_v47, %v3968_v43  ;;  %v3990_v1 = vrot.slane %v3989_v49, 1  ;;  %v11934_v38 = vmul.f32 %v10352_v58, %v11875_v15 }
 0xac1   :  { %v3980_v53 = vadd.f32 %v3979_v56, %v3978_v46  ;;  %v11940_v46 = vpop.permute.xlu1 %2993  ;;  %v3851_v15 = vrot.slane %v3850_v28, 1 }
 0xac2   :  { %v4001_v62 = vadd.f32 %v4000_v57, %v3999_v32  ;;  %10355 = vrcp.f32 %v3970_v41  ;;  %v3991_v61 = vadd.f32 %v3990_v1, %v3989_v49  ;;  %v4078_v43 = vsel %vm3761_vm14, %v11934_v38, 0.0 }
 0xac3   :  { %v3981_v20 = vrot.slane %v3980_v53, 2  ;;  %4079 = vadd.xlane.f32.xlu1 %v4078_v43  ;;  %v3864_v49 = vmax.f32 %v3862_v16, %v3863_v51  ;;  %v3859_v32 = vmax.f32 %v3857_v44, %v3858_v19  ;;  %v3872_v57 = vrot.slane %v3871_v17, 1 }
 0xac4   :  { %v4002_v7 = vrot.slane %v4001_v62, 2  ;;  %10357 = vrcp.f32 %v3991_v61  ;;  %v3852_v1 = vmax.f32 %v3850_v28, %v3851_v15 }
 0xac5   :  { %v3982_v13 = vadd.f32 %v3981_v20, %v3980_v53  ;;  %10359 = vrcp.f32 %v3963_v12  ;;  %v3884_v53 = vsub.f32 %v11883_v48, %v3838_v29  ;;  %v3865_v54 = vrot.slane %v3864_v49, 1  ;;  %v11953_v44 = vpop.permute.xlu1 %3001 }
 0xac6   :  { %v4003_v37 = vadd.f32 %v4002_v7, %v4001_v62  ;;  %v10354_v56 = vpop.eup %10353  ;;  %v11946_v62 = vpop.permute.xlu0 %2995  ;;  %v3873_v59 = vmax.f32 %v3871_v17, %v3872_v57 }
 0xac7   :  { %v3983_v42 = vrot.slane %v3982_v13, 1  ;;  %v11943_v23 = vmul.f32 %v10354_v56, %v11888_v4  ;;  %v3887_v4 = vsub.f32 %v11886_v3, %v3859_v32  ;;  %v3910_v61 = vmul.f32 1.442695, %v3884_v53 }
 0xac8   :  { %v4004_v47 = vrot.slane %v4003_v37, 1  ;;  %v3866_v7 = vmax.f32 %v3864_v49, %v3865_v54  ;;  %v3889_v12 = vsub.f32 %v11904_v5, %v3873_v59 }
 0xac9   :  { %v3984_v6 = vadd.f32 %v3983_v42, %v3982_v13  ;;  %v4087_v11 = vsel %vm3761_vm14, %v11943_v23, 0.0  ;;  %v3916_v28 = vmul.f32 1.442695, %v3887_v4  ;;  %v11970_v13 = vpop.permute.xlu1 %3005 }
 0xaca   :  { %v4005_v60 = vadd.f32 %v4004_v47, %v4003_v37  ;;  %4088 = vadd.xlane.f32.xlu0 %v4087_v11  ;;  %v11968_v51 = vpop.permute.xlu0 %3003  ;;  %v3888_v17 = vsub.f32 %v11919_v24, %v3866_v7  ;;  %v3920_v43 = vmul.f32 1.442695, %v3889_v12 }
 0xacb   :  { %10361 = vrcp.f32 %v3984_v6 }
 0xacc   :  { %v10356_v41 = vpop.eup %10355  ;;  %10363 = vrcp.f32 %v4005_v60  ;;  %v3918_v15 = vmul.f32 1.442695, %v3888_v17 }
 0xacd   :  { %v11951_v16 = vmul.f32 %v10356_v41, %v11906_v52  ;;  %v3886_v52 = vsub.f32 %v11901_v35, %v3852_v1  ;;  %10365 = vpow2.f32 %v3910_v61  ;;  %v11983_v47 = vpop.permute.xlu1 %3007 }
 0xace   :  { %v10358_v58 = vpop.eup %10357  ;;  %10367 = vpow2.f32 %v3916_v28 }
 0xacf   :  { %v4084_v48 = vsel %vm3761_vm14, %v11951_v16, 0.0  ;;  %v10360_v20 = vpop.eup %10359  ;;  %v11959_v30 = vmul.f32 %v10358_v58, %v11912_v55  ;;  %v3914_v55 = vmul.f32 1.442695, %v3886_v52 }
 0xad0   :  { %4085 = vadd.xlane.f32.xlu1 %v4084_v48  ;;  %v11966_v19 = vmul.f32 %v10360_v20, %v11880_v14 }
 0xad1   :  { %v4093_v3 = vsel %vm3761_vm14, %v11959_v30, 0.0 }
 0xad2   :  { %4094 = vadd.xlane.f32.xlu0 %v4093_v3  ;;  %v4081_v5 = vsel %vm3761_vm14, %v11966_v19, 0.0 }
 0xad5   :  { %v10362_v35 = vpop.eup %10361 }
 0xad6   :  { %v10364_v37 = vpop.eup %10363  ;;  %4082 = vadd.xlane.f32.xlu0 %v4081_v5  ;;  %v11976_v14 = vmul.f32 %v10362_v35, %v11923_v18 }
 0xad7   :  { %v4068_v42 = vpop.xlane.xlu0 %4067  ;;  %v11979_v29 = vmul.f32 %v10364_v37, %v11925_v45  ;;  %v11987_v6 = vpop.eup %10365 }
 0xad8   :  { %10369 = vrcp.f32 %v4068_v42  ;;  %v4090_v24 = vsel %vm3761_vm14, %v11976_v14, 0.0  ;;  %v11989_v45 = vpop.eup %10367  ;;  %v3992_v32 = vsel %vm3761_vm14, %v11987_v6, 0.0 }
 0xad9   :  { %10371 = vpow2.f32 %v3914_v55  ;;  %4091 = vadd.xlane.f32.xlu1 %v4090_v24  ;;  %v4099_v49 = vsel %vm3761_vm14, %v11979_v29, 0.0  ;;  %v4013_v60 = vsel %vm3761_vm14, %v11989_v45, 0.0  ;;  %v3993_v1 = vrot.slane %v3992_v32, 4 }
 0xada   :  { %10373 = vpow2.f32 %v3920_v43  ;;  %4100 = vadd.xlane.f32.xlu0 %v4099_v49  ;;  %v4014_v11 = vrot.slane %v4013_v60, 4 }
 0xadb   :  { %10375 = vpow2.f32 %v3918_v15  ;;  %v3994_v20 = vadd.f32 %v3993_v1, %v3992_v32 }
 0xadc   :  { %v4015_v52 = vadd.f32 %v4014_v11, %v4013_v60 }
 0xadd   :  { %v3995_v55 = vrot.slane %v3994_v20, 2 }
 0xade   :  { %v4071_v18 = vpop.xlane.xlu1 %4070  ;;  %v4016_v43 = vrot.slane %v4015_v52, 2 }
 0xadf   :  { %10377 = vrcp.f32 %v4071_v18  ;;  %v3996_v15 = vadd.f32 %v3995_v55, %v3994_v20 }
 0xae0   :  { %v4017_v18 = vadd.f32 %v4016_v43, %v4015_v52 }
 0xae1   :  { %v3997_v60 = vrot.slane %v3996_v15, 1 }
 0xae2   :  { %v10370_v56 = vpop.eup %10369  ;;  %v4018_v1 = vrot.slane %v4017_v18, 1 }
 0xae3   :  { %v11993_v57 = vpop.eup %10371  ;;  %v4130_v41 = vmul.f32 %v10370_v56, %v11836_v33  ;;  %v3998_v11 = vadd.f32 %v3997_v60, %v3996_v15 }
 0xae4   :  { %v11998_v53 = vpop.eup %10373  ;;  %v4006_v4 = vsel %vm3761_vm14, %v11993_v57, 0.0 }
 0xae5   :  { %v4146_v54 = vpack.c.bf16 %v4130_v41, %v4130_v41  ;;  %v12002_v58 = vpop.eup %10375  ;;  %v4027_v48 = vsel %vm3761_vm14, %v11998_v53, 0.0  ;;  %v4007_v61 = vrot.slane %v4006_v4, 4 }
 0xae6   :  { %v4074_v59 = vpop.xlane.xlu0 %4073  ;;  %v4028_v7 = vrot.slane %v4027_v48, 4  ;;  %v4020_v28 = vsel %vm3761_vm14, %v12002_v58, 0.0 }
 0xae7   :  { %9672 = vmatmul.mubr.msk.bf16.vlgmr.msra.gmra.mrb[124].mxu0 %vm3761_vm14, %v4146_v54  ;;  %10379 = vrcp.f32 %v4074_v59  ;;  %v4008_v17 = vadd.f32 %v4007_v61, %v4006_v4  ;;  %v4021_v35 = vrot.slane %v4020_v28, 4 }
 0xae8   :  { %9682 = vmatpush3.bf16.msra.mxu0 %v11699_v40  ;;  %9683 = vmatprep.mubr.msk.bf16.mxu0 %vm10903_vm0, %v10902_v31  ;;  %v4029_v5 = vadd.f32 %v4028_v7, %v4027_v48  ;;  %v4019_v48 = vadd.f32 %v4018_v1, %v4017_v18 }
 0xae9   :  { %v10378_v33 = vpop.eup %10377  ;;  %9693 = vmatprep.subr.bf16.mxu0 %v10902_v31  ;;  %v4009_v42 = vrot.slane %v4008_v17, 2 }
 0xaea   :  { %v4131_v12 = vmul.f32 %v10378_v33, %v11840_v63  ;;  %3015 = vrot.lane.b32.xlu1 %v11696_v22, %s10905_s3  ;;  %v4022_v22 = vadd.f32 %v4021_v35, %v4020_v28  ;;  %v4030_v24 = vrot.slane %v4029_v5, 2 }
 0xaeb   :  { %v4010_v41 = vadd.f32 %v4009_v42, %v4008_v17 }
 0xaec   :  { %v4147_v3 = vpack.c.bf16 %v4131_v12, %v4131_v12  ;;  %v4023_v32 = vrot.slane %v4022_v22, 2  ;;  %v4031_v54 = vadd.f32 %v4030_v24, %v4029_v5 }
 0xaed   :  { %v4011_v4 = vrot.slane %v4010_v41, 1 }
 0xaee   :  { %9678 = vmatmul.mubr.msk.bf16.vlgmr.msra.gmra.mrb[104].mxu1 %vm3761_vm14, %v4147_v3  ;;  %v4077_v37 = vpop.xlane.xlu0 %4076  ;;  %v4032_v33 = vrot.slane %v4031_v54, 1 }
 0xaef   :  { %9688 = vmatpush3.bf16.msra.mxu1 %v11702_v8  ;;  %10381 = vrcp.f32 %v4077_v37  ;;  %9689 = vmatprep.mubr.msk.bf16.mxu1 %vm10903_vm0, %v10902_v31  ;;  %v4012_v61 = vadd.f32 %v4011_v4, %v4010_v41 }
 0xaf0   :  { %9699 = vmatprep.subr.bf16.mxu1 %v10902_v31  ;;  %3013 = vrot.lane.b32.xlu0 %v11689_v26, %s10905_s3  ;;  %10383 = vrcp.f32 %v3998_v11 }
 0xaf1   :  { %v10380_v63 = vpop.eup %10379  ;;  %10385 = vrcp.f32 %v4019_v48 }
 0xaf2   :  { %v4132_v49 = vmul.f32 %v10380_v63, %v11844_v50  ;;  %v4024_v50 = vadd.f32 %v4023_v32, %v4022_v22  ;;  %10387 = vrcp.f32 %v4012_v61 }
 0xaf4   :  { %v4148_v56 = vpack.c.bf16 %v4132_v49, %v4132_v49  ;;  %v4025_v52 = vrot.slane %v4024_v50, 1 }
 0xaf6   :  { %9684 = vmatmul.mubr.msk.bf16.vlgmr.msra.gmra.mrb[128].mxu0 %vm3761_vm14, %v4148_v56  ;;  %v4026_v7 = vadd.f32 %v4025_v52, %v4024_v50 }
 0xaf7   :  { %9694 = vmatpush3.bf16.msra.mxu0 %v11931_v25  ;;  %9695 = vmatprep.mubr.msk.bf16.mxu0 %vm10903_vm0, %v10902_v31  ;;  %v4033_v25 = vadd.f32 %v4032_v33, %v4031_v54 }
 0xaf8   :  { %9705 = vmatprep.subr.bf16.mxu0 %v10902_v31 }
 0xaf9   :  { %v10382_v26 = vpop.eup %10381  ;;  %10389 = vrcp.f32 %v4033_v25 }
 0xafa   :  { %v4133_v59 = vmul.f32 %v10382_v26, %v11848_v10  ;;  %10391 = vrcp.f32 %v4026_v7  ;;  %v10384_v10 = vpop.eup %10383 }
 0xafb   :  { %v10386_v28 = vpop.eup %10385  ;;  %v12036_v12 = vmul.f32 %v10384_v10, %v11987_v6 }
 0xafc   :  { %v4149_v20 = vpack.c.bf16 %v4133_v59, %v4133_v59  ;;  %v10388_v3 = vpop.eup %10387  ;;  %v12039_v55 = vmul.f32 %v10386_v28, %v11989_v45 }
 0xafd   :  { %v12044_v35 = vmul.f32 %v10388_v3, %v11993_v57 }
 0xafe   :  { %9690 = vmatmul.mubr.msk.bf16.vlgmr.msra.gmra.mrb[108].mxu1 %vm3761_vm14, %v4149_v20  ;;  %v4105_v5 = vsel %vm3761_vm14, %v12039_v55, 0.0 }
 0xaff   :  { %9700 = vmatpush3.bf16.msra.mxu1 %v11938_v39  ;;  %9701 = vmatprep.mubr.msk.bf16.mxu1 %vm10903_vm0, %v10902_v31  ;;  %v4096_v39 = vsel %vm3761_vm14, %v12036_v12, 0.0  ;;  %v4102_v6 = vsel %vm3761_vm14, %v12044_v35, 0.0 }
 0xb00   :  { %9711 = vmatprep.subr.bf16.mxu1 %v10902_v31 }
 0xb03   :  { %v10390_v17 = vpop.eup %10389 }
 0xb04   :  { %v10392_v43 = vpop.eup %10391  ;;  %v12049_v37 = vmul.f32 %v10390_v17, %v11998_v53 }
 0xb05   :  { %v12054_v45 = vmul.f32 %v10392_v43, %v12002_v58 }
 0xb06   :  { %v4111_v57 = vsel %vm3761_vm14, %v12049_v37, 0.0 }
 0xb07   :  { %v4108_v63 = vsel %vm3761_vm14, %v12054_v45, 0.0 }
 0xb0e   :  { %4097 = vadd.xlane.f32.xlu1 %v4096_v39 }
 0xb0f   :  { %4106 = vadd.xlane.f32.xlu0 %v4105_v5 }
 0xb12   :  { %4103 = vadd.xlane.f32.xlu1 %v4102_v6 }
 0xb13   :  { %4112 = vadd.xlane.f32.xlu0 %v4111_v57 }
 0xb16   :  { %4109 = vadd.xlane.f32.xlu1 %v4108_v63 }
 0xb27   :  { %3019 = vrot.lane.b32.xlu1 %v11702_v8, %s10905_s3 }
 0xb29   :  { %3017 = vrot.lane.b32.xlu0 %v11699_v40, %s10905_s3 }
 0xb50   :  { %v4080_v53 = vpop.xlane.xlu1 %4079 }
 0xb51   :  { %10393 = vrcp.f32 %v4080_v53 }
 0xb57   :  { %v4089_v42 = vpop.xlane.xlu0 %4088 }
 0xb5b   :  { %v10394_v22 = vpop.eup %10393 }
 0xb5c   :  { %v4134_v15 = vmul.f32 %v10394_v22, %v11934_v38 }
 0xb5d   :  { %v4086_v58 = vpop.xlane.xlu1 %4085 }
 0xb5e   :  { %10395 = vrcp.f32 %v4086_v58  ;;  %v4150_v49 = vpack.c.bf16 %v4134_v15, %v4134_v15 }
 0xb5f   :  { %v4095_v24 = vpop.xlane.xlu0 %4094 }
 0xb60   :  { %9696 = vmatmul.mubr.msk.bf16.vlgmr.msra.gmra.mrb[132].mxu0 %vm3761_vm14, %v4150_v49 }
 0xb61   :  { %9706 = vmatpush3.bf16.msra.mxu0 %v11940_v46  ;;  %9707 = vmatprep.mubr.msk.bf16.mxu0 %vm10903_vm0, %v10902_v31 }
 0xb62   :  { %9717 = vmatprep.subr.bf16.mxu0 %v10902_v31 }
 0xb63   :  { %v4083_v18 = vpop.xlane.xlu0 %4082 }
 0xb64   :  { %10397 = vrcp.f32 %v4083_v18 }
 0xb66   :  { %v4092_v40 = vpop.xlane.xlu1 %4091 }
 0xb67   :  { %10399 = vrcp.f32 %v4092_v40  ;;  %v4101_v26 = vpop.xlane.xlu0 %4100 }
 0xb68   :  { %v10396_v8 = vpop.eup %10395  ;;  %10401 = vrcp.f32 %v4089_v42 }
 0xb69   :  { %v4136_v56 = vmul.f32 %v10396_v8, %v11951_v16  ;;  %10403 = vrcp.f32 %v4095_v24 }
 0xb6a   :  { %10405 = vrcp.f32 %v4101_v26  ;;  %v3016_v4 = vpop.permute.xlu1 %3015 }
 0xb6b   :  { %v4152_v38 = vpack.c.bf16 %v4136_v56, %v4136_v56 }
 0xb6d   :  { %9708 = vmatmul.mubr.msk.bf16.vlgmr.msra.gmra.mrb[136].mxu0 %vm3761_vm14, %v4152_v38 }
 0xb6e   :  { %9718 = vmatpush3.bf16.msra.mxu0 %v11953_v44  ;;  %9719 = vmatprep.mubr.msk.bf16.mxu0 %vm10903_vm0, %v10902_v31  ;;  %v10398_v46 = vpop.eup %10397 }
 0xb6f   :  { %9729 = vmatprep.subr.bf16.mxu0 %v10902_v31  ;;  %v4135_v32 = vmul.f32 %v10398_v46, %v11966_v19 }
 0xb71   :  { %v10400_v60 = vpop.eup %10399  ;;  %v4151_v41 = vpack.c.bf16 %v4135_v32, %v4135_v32 }
 0xb72   :  { %v10402_v1 = vpop.eup %10401  ;;  %v4138_v54 = vmul.f32 %v10400_v60, %v11976_v14 }
 0xb73   :  { %9702 = vmatmul.mubr.msk.bf16.vlgmr.msra.gmra.mrb[112].mxu1 %vm3761_vm14, %v4151_v41  ;;  %v4137_v44 = vmul.f32 %v10402_v1, %v11943_v23  ;;  %v10404_v19 = vpop.eup %10403 }
 0xb74   :  { %9712 = vmatpush3.bf16.msra.mxu1 %v11946_v62  ;;  %v4154_v16 = vpack.c.bf16 %v4138_v54, %v4138_v54  ;;  %9713 = vmatprep.mubr.msk.bf16.mxu1 %vm10903_vm0, %v10902_v31  ;;  %v4139_v23 = vmul.f32 %v10404_v19, %v11959_v30  ;;  %v10406_v14 = vpop.eup %10405  ;;  %v3014_v30 = vpop.permute.xlu0 %3013 }
 0xb75   :  { %9723 = vmatprep.subr.bf16.mxu1 %v10902_v31  ;;  %v4153_v62 = vpack.c.bf16 %v4137_v44, %v4137_v44  ;;  %v4141_v11 = vmul.f32 %v10406_v14, %v11979_v29 }
 0xb76   :  { %9720 = vmatmul.mubr.msk.bf16.vlgmr.msra.gmra.mrb[140].mxu0 %vm3761_vm14, %v4154_v16 }
 0xb77   :  { %9730 = vmatpush3.bf16.msra.mxu0 %v11970_v13  ;;  %9731 = vmatprep.mubr.msk.bf16.mxu0 %vm10903_vm0, %v10902_v31  ;;  %v4155_v13 = vpack.c.bf16 %v4139_v23, %v4139_v23 }
 0xb78   :  { %9741 = vmatprep.subr.bf16.mxu0 %v10902_v31 }
 0xb7b   :  { %9714 = vmatmul.mubr.msk.bf16.vlgmr.msra.gmra.mrb[116].mxu1 %vm3761_vm14, %v4153_v62 }
 0xb7c   :  { %9724 = vmatpush3.bf16.msra.mxu1 %v11968_v51  ;;  %9725 = vmatprep.mubr.msk.bf16.mxu1 %vm10903_vm0, %v10902_v31  ;;  %v4157_v51 = vpack.c.bf16 %v4141_v11, %v4141_v11 }
 0xb7d   :  { %9735 = vmatprep.subr.bf16.mxu1 %v10902_v31 }
 0xb83   :  { %9726 = vmatmul.mubr.msk.bf16.vlgmr.msra.gmra.mrb[120].mxu1 %vm3761_vm14, %v4155_v13 }
 0xb84   :  { %9736 = vmatpush3.bf16.msra.mxu1 %v11983_v47  ;;  %9737 = vmatprep.mubr.msk.bf16.mxu1 %vm10903_vm0, %v10902_v31 }
 0xb85   :  { %9747 = vmatprep.subr.bf16.mxu1 %v10902_v31 }
 0xb8b   :  { %9738 = vmatmul.mubr.msk.bf16.vlgmr.msra.gmra.mrb[124].mxu1 %vm3761_vm14, %v4157_v51 }
 0xb8c   :  { %9748 = vmatpush3.bf16.msra.mxu1 %v3016_v4  ;;  %9749 = vmatprep.mubr.msk.bf16.mxu1 %vm10903_vm0, %v10902_v31 }
 0xb8d   :  { %9759 = vmatprep.subr.bf16.mxu1 %v10902_v31 }
 0xb9b   :  { %v4098_v50 = vpop.xlane.xlu1 %4097 }
 0xb9c   :  { %10407 = vrcp.f32 %v4098_v50  ;;  %v4107_v47 = vpop.xlane.xlu0 %4106 }
 0xb9d   :  { %10409 = vrcp.f32 %v4107_v47  ;;  %v10113_v47 = vld [vmem:[#allocation17 + $0x40] sm:$0xff]  }
 0xb9f   :  { %v4104_v59 = vpop.xlane.xlu1 %4103 }
 0xba0   :  { %10411 = vrcp.f32 %v4104_v59  ;;  %v4113_v29 = vpop.xlane.xlu0 %4112  ;;  %v10114_v59 = vld [vmem:[#allocation17 + $0x48] sm:$0xff]  }
 0xba1   :  { %10413 = vrcp.f32 %v4113_v29 }
 0xba3   :  { %v4110_v48 = vpop.xlane.xlu1 %4109 }
 0xba4   :  { %10415 = vrcp.f32 %v4110_v48  ;;  %v3018_v5 = vpop.permute.xlu0 %3017 }
 0xba6   :  { %v10408_v33 = vpop.eup %10407 }
 0xba7   :  { %v10410_v20 = vpop.eup %10409  ;;  %v4140_v61 = vmul.f32 %v10408_v33, %v12036_v12  ;;  %v3020_v3 = vpop.permute.xlu1 %3019 }
 0xba8   :  { %v4143_v52 = vmul.f32 %v10410_v20, %v12039_v55 }
 0xba9   :  { %v4156_v25 = vpack.c.bf16 %v4140_v61, %v4140_v61  ;;  %v10115_v61 = vld [vmem:[#allocation17 + $0x50] sm:$0xff]  }
 0xbaa   :  { %v10412_v7 = vpop.eup %10411  ;;  %v4159_v10 = vpack.c.bf16 %v4143_v52, %v4143_v52 }
 0xbab   :  { %v10414_v28 = vpop.eup %10413  ;;  %9732 = vmatmul.mubr.msk.bf16.vlgmr.msra.gmra.mrb[144].mxu0 %vm3761_vm14, %v4156_v25  ;;  %v4142_v17 = vmul.f32 %v10412_v7, %v12044_v35  ;;  %v10116_v25 = vld [vmem:[#allocation17 + $0x58] sm:$0xff]  }
 0xbac   :  { %9742 = vmatpush3.bf16.msra.mxu0 %v3014_v30  ;;  %9750 = vmatmul.mubr.msk.bf16.vlgmr.msra.gmra.mrb[128].mxu1 %vm3761_vm14, %v4159_v10  ;;  %v4145_v12 = vmul.f32 %v10414_v28, %v12049_v37 }
 0xbad   :  { %9760 = vmatpush3.bf16.msra.mxu1 %v3020_v3  ;;  %9743 = vmatprep.mubr.msk.bf16.mxu0 %vm10903_vm0, %v10902_v31  ;;  %v4158_v55 = vpack.c.bf16 %v4142_v17, %v4142_v17 }
 0xbae   :  { %9753 = vmatprep.subr.bf16.mxu0 %v10902_v31  ;;  %9761 = vmatprep.mubr.msk.bf16.mxu1 %vm10903_vm0, %v10902_v31  ;;  %v10416_v39 = vpop.eup %10415  ;;  %v4161_v43 = vpack.c.bf16 %v4145_v12, %v4145_v12 }
 0xbaf   :  { %v4144_v35 = vmul.f32 %v10416_v39, %v12054_v45 }
 0xbb1   :  { %v4160_v6 = vpack.c.bf16 %v4144_v35, %v4144_v35  ;;  %v10118_v35 = vld [vmem:[#allocation17 + $0x68] sm:$0xff]  }
 0xbb3   :  { %9744 = vmatmul.mubr.msk.bf16.vlgmr.msra.gmra.mrb[148].mxu0 %vm3761_vm14, %v4158_v55 }
 0xbb4   :  { %9754 = vmatpush3.bf16.msra.mxu0 %v3018_v5  ;;  %9762 = vmatmul.mubr.msk.bf16.vlgmr.msra.gmra.mrb[132].mxu1 %vm3761_vm14, %v4161_v43  ;;  %v10117_v5 = vld [vmem:[#allocation17 + $0x60] sm:$0xff]  }
 0xbb5   :  { %9755 = vmatprep.mubr.msk.bf16.mxu0 %vm10903_vm0, %v10902_v31  ;;  %5247 = vmatprep.mubr.bf16.mxu1 %v10901_v0 }
 0xbb6   :  { %9765 = vmatprep.subr.bf16.mxu0 %v10113_v47 }
 0xbba   :  { %v12122_v37 = vpop.f32.mrb[124].mxu0 }
 0xbbb   :  { %v9673_v57 = vpop.f32.mrb[125].mxu0  ;;  %9756 = vmatmul.mubr.msk.bf16.vlgmr.msra.gmra.mrb[152].mxu0 %vm3761_vm14, %v4160_v6  ;;  %v10119_v6 = vld [vmem:[#allocation17 + $0x70] sm:$0xff]  }
 0xbbc   :  { %v4202_v63 = vpop.f32.mrb[126].mxu0  ;;  %9766 = vmatpush3.bf16.msra.mxu0 %v10113_v47  ;;  %v10120_v57 = vld [vmem:[#allocation17 + $0x78] sm:$0xff]  }
 0xbbd   :  { %v9674_v53 = vpop.f32.mrb[127].mxu0  ;;  %9767 = vmatprep.subr.bf16.mxu0 %v10114_v59 }
 0xbc0   :  { %9768 = vmatpush3.bf16.msra.mxu0 %v10114_v59 }
 0xbc1   :  { %v12125_v42 = vpop.f32.mrb[104].mxu1  ;;  %9769 = vmatprep.subr.bf16.mxu0 %v10115_v61 }
 0xbc2   :  { %v4850_v58 = vpack.c.bf16 %v12125_v42, %v12122_v37  ;;  %v9679_v22 = vpop.f32.mrb[105].mxu1  ;;  %v8786_v42 = vld [vmem:[%s12834_s12 + $0x1] ss:$0 sm:$0xff] }
 0xbc3   :  { %v4245_v45 = vpop.f32.mrb[106].mxu1 }
 0xbc4   :  { %v9680_v15 = vpop.f32.mrb[107].mxu1  ;;  %9770 = vmatpush3.bf16.msra.mxu0 %v10115_v61 }
 0xbc5   :  { %9771 = vmatprep.subr.bf16.mxu0 %v10116_v25 }
 0xbc8   :  { %9772 = vmatpush3.bf16.msra.mxu0 %v10116_v25 }
 0xbc9   :  { %v12129_v24 = vpop.f32.mrb[128].mxu0  ;;  %9773 = vmatprep.subr.bf16.mxu0 %v10117_v5 }
 0xbca   :  { %v9685_v49 = vpop.f32.mrb[129].mxu0 }
 0xbcb   :  { %v4288_v18 = vpop.f32.mrb[130].mxu0 }
 0xbcc   :  { %v9686_v40 = vpop.f32.mrb[131].mxu0  ;;  %9774 = vmatpush3.bf16.msra.mxu0 %v10117_v5 }
 0xbcd   :  { %9775 = vmatprep.subr.bf16.mxu0 %v10118_v35 }
 0xbd0   :  { %9776 = vmatpush3.bf16.msra.mxu0 %v10118_v35 }
 0xbd1   :  { %v12131_v8 = vpop.f32.mrb[108].mxu1  ;;  %9777 = vmatprep.subr.bf16.mxu0 %v10119_v6 }
 0xbd2   :  { %v4851_v56 = vpack.c.bf16 %v12131_v8, %v12129_v24  ;;  %v9691_v38 = vpop.f32.mrb[109].mxu1 }
 0xbd3   :  { %v4331_v46 = vpop.f32.mrb[110].mxu1 }
 0xbd4   :  { %v9692_v32 = vpop.f32.mrb[111].mxu1  ;;  %9778 = vmatpush3.bf16.msra.mxu0 %v10119_v6 }
 0xbd5   :  { %9779 = vmatprep.subr.bf16.mxu0 %v10120_v57 }
 0xbd8   :  { %9780 = vmatpush3.bf16.msra.mxu0 %v10120_v57 }
 0xc33   :  { %v4371_v60 = vpop.f32.mrb[132].mxu0 }
 0xc34   :  { %v9697_v41 = vpop.f32.mrb[133].mxu0 }
 0xc35   :  { %v4374_v1 = vpop.f32.mrb[134].mxu0 }
 0xc36   :  { %v9698_v54 = vpop.f32.mrb[135].mxu0 }
 0xc40   :  { %v4457_v16 = vpop.f32.mrb[136].mxu0 }
 0xc41   :  { %v9709_v44 = vpop.f32.mrb[137].mxu0 }
 0xc42   :  { %v4460_v26 = vpop.f32.mrb[138].mxu0 }
 0xc43   :  { %v9710_v62 = vpop.f32.mrb[139].mxu0 }
 0xc46   :  { %v4414_v19 = vpop.f32.mrb[112].mxu1 }
 0xc47   :  { %v4852_v23 = vpack.c.bf16 %v4414_v19, %v4371_v60  ;;  %v9703_v13 = vpop.f32.mrb[113].mxu1 }
 0xc48   :  { %v4417_v14 = vpop.f32.mrb[114].mxu1 }
 0xc49   :  { %v4543_v11 = vpop.f32.mrb[140].mxu0  ;;  %4860 = vrot.lane.b32.xlu0 %v4852_v23, %s10905_s3  ;;  %v9704_v51 = vpop.f32.mrb[115].mxu1 }
 0xc4a   :  { %v9721_v4 = vpop.f32.mrb[141].mxu0 }
 0xc4b   :  { %v4546_v30 = vpop.f32.mrb[142].mxu0 }
 0xc4c   :  { %v9722_v50 = vpop.f32.mrb[143].mxu0 }
 0xc4e   :  { %v4500_v29 = vpop.f32.mrb[116].mxu1 }
 0xc4f   :  { %v4853_v48 = vpack.c.bf16 %v4500_v29, %v4457_v16  ;;  %v9715_v33 = vpop.f32.mrb[117].mxu1 }
 0xc50   :  { %v4503_v20 = vpop.f32.mrb[118].mxu1 }
 0xc51   :  { %4862 = vrot.lane.b32.xlu1 %v4853_v48, %s10905_s3  ;;  %v9716_v52 = vpop.f32.mrb[119].mxu1 }
 0xc56   :  { %v4586_v7 = vpop.f32.mrb[120].mxu1 }
 0xc57   :  { %v4854_v10 = vpack.c.bf16 %v4586_v7, %v4543_v11  ;;  %v9727_v28 = vpop.f32.mrb[121].mxu1 }
 0xc58   :  { %v4589_v3 = vpop.f32.mrb[122].mxu1 }
 0xc59   :  { %4866 = vrot.lane.b32.xlu0 %v4854_v10, %s12857_s20  ;;  %v9728_v17 = vpop.f32.mrb[123].mxu1 }
 0xc5e   :  { %v4672_v12 = vpop.f32.mrb[124].mxu1 }
 0xc5f   :  { %v9739_v55 = vpop.f32.mrb[125].mxu1 }
 0xc60   :  { %v4675_v39 = vpop.f32.mrb[126].mxu1 }
 0xc61   :  { %v9740_v43 = vpop.f32.mrb[127].mxu1 }
 0xc7e   :  { %v4629_v63 = vpop.f32.mrb[144].mxu0 }
 0xc7f   :  { %v4855_v53 = vpack.c.bf16 %v4672_v12, %v4629_v63  ;;  %v9733_v22 = vpop.f32.mrb[145].mxu0  ;;  %v4758_v45 = vpop.f32.mrb[128].mxu1 }
 0xc80   :  { %v4632_v15 = vpop.f32.mrb[146].mxu0  ;;  %v9751_v49 = vpop.f32.mrb[129].mxu1 }
 0xc81   :  { %v9734_v18 = vpop.f32.mrb[147].mxu0  ;;  %4868 = vrot.lane.b32.xlu1 %v4855_v53, %s12857_s20  ;;  %v4761_v40 = vpop.f32.mrb[130].mxu1  ;;  %v10123_v15 = vld [vmem:[#allocation19 + $0x4] ss:$8 sps:$4 sm:$0xff]   ;;  %v10121_v49 = vld [vmem:[#allocation19] ss:$8 sps:$4 sm:$0xff]  }
 0xc82   :  { %v9752_v38 = vpop.f32.mrb[131].mxu1  ;;  %5215 = vmatprep.subr.bf16.mxu1 %v10123_v15  ;;  %v10126_v18 = vld [vmem:[#allocation19 + $0x14] ss:$8 sps:$4 sm:$0xff]   ;;  %v10124_v40 = vld [vmem:[#allocation19 + $0x10] ss:$8 sps:$4 sm:$0xff]  }
 0xc83   :  { %5216 = vmatpush1.bf16.msra.mxu1 %v10121_v49  ;;  %v10129_v38 = vld [vmem:[#allocation19 + $0x24] ss:$8 sps:$4 sm:$0xff]  }
 0xc84   :  { %5217 = vmatprep.subr.bf16.mxu1 %v10126_v18 }
 0xc86   :  { %v4715_v46 = vpop.f32.mrb[148].mxu0 }
 0xc87   :  { %v4856_v32 = vpack.c.bf16 %v4758_v45, %v4715_v46  ;;  %v9745_v60 = vpop.f32.mrb[149].mxu0  ;;  %v4844_v41 = vpop.f32.mrb[132].mxu1  ;;  %5218 = vmatpush1.bf16.msra.mxu1 %v10124_v40  ;;  %v10127_v46 = vld [vmem:[#allocation19 + $0x20] ss:$8 sps:$4 sm:$0xff]  }
 0xc88   :  { %v4718_v1 = vpop.f32.mrb[150].mxu0  ;;  %v9763_v54 = vpop.f32.mrb[133].mxu1  ;;  %5219 = vmatprep.subr.bf16.mxu1 %v10129_v38  ;;  %v10130_v60 = vld [vmem:[#allocation19 + $0x30] ss:$8 sps:$4 sm:$0xff]  }
 0xc89   :  { %v9746_v16 = vpop.f32.mrb[151].mxu0  ;;  %4872 = vrot.lane.b32.xlu0 %v4856_v32, %s10904_s15  ;;  %v4847_v44 = vpop.f32.mrb[134].mxu1  ;;  %v10132_v32 = vld [vmem:[#allocation19 + $0x34] ss:$8 sps:$4 sm:$0xff]   ;;  %v10133_v1 = vld [vmem:[#allocation19 + $0x40] ss:$8 sps:$4 sm:$0xff]  }
 0xc8a   :  { %v9764_v26 = vpop.f32.mrb[135].mxu1  ;;  %v10138_v54 = vld [vmem:[#allocation19 + $0x54] ss:$8 sps:$4 sm:$0xff]   ;;  %v10136_v16 = vld [vmem:[#allocation19 + $0x50] ss:$8 sps:$4 sm:$0xff]  }
 0xc8b   :  { %5220 = vmatpush1.bf16.msra.mxu1 %v10127_v46  ;;  %v10141_v44 = vld [vmem:[#allocation19 + $0x64] ss:$8 sps:$4 sm:$0xff]   ;;  %v10139_v26 = vld [vmem:[#allocation19 + $0x60] ss:$8 sps:$4 sm:$0xff]   ;;  %v8795_v38 = vld [vmem:[%s12839_s17 + $0x1] ss:$0 sm:$0xff] }
 0xc8c   :  { %5221 = vmatprep.subr.bf16.mxu1 %v10132_v32 }
 0xc8e   :  { %v4801_v62 = vpop.f32.mrb[152].mxu0 }
 0xc8f   :  { %v4857_v19 = vpack.c.bf16 %v4844_v41, %v4801_v62  ;;  %v9757_v23 = vpop.f32.mrb[153].mxu0  ;;  %v10135_v41 = vld [vmem:[#allocation19 + $0x44] ss:$8 sps:$4 sm:$0xff]   ;;  %5222 = vmatpush1.bf16.msra.mxu1 %v10130_v60  ;;  %v10144_v62 = vld [vmem:[#allocation19 + $0x74] ss:$8 sps:$4 sm:$0xff]  }
 0xc90   :  { %v4804_v13 = vpop.f32.mrb[154].mxu0  ;;  %5223 = vmatprep.subr.bf16.mxu1 %v10135_v41  ;;  %v10145_v23 = vld [vmem:[#allocation20 + $0x40] sm:$0xff]  }
 0xc91   :  { %4874 = vrot.lane.b32.xlu1 %v4857_v19, %s10904_s15  ;;  %v9758_v14 = vpop.f32.mrb[155].mxu0  ;;  %v10142_v19 = vld [vmem:[#allocation19 + $0x70] ss:$8 sps:$4 sm:$0xff]   ;;  %v10146_v13 = vld [vmem:[#allocation20] sm:$0xff]   ;;  %9181 = vmatprep.subr.bf16.mxu0 %v10145_v23 }
 0xc92   :  { %v10147_v14 = vld [vmem:[#allocation20 + $0x48] sm:$0xff]  }
 0xc93   :  { %5224 = vmatpush1.bf16.msra.mxu1 %v10133_v1 }
 0xc94   :  { %5225 = vmatprep.subr.bf16.mxu1 %v10138_v54  ;;  %v8796_v54 = vld [vmem:[%s12840_s18 + $0x1] ss:$0 sm:$0xff] }
 0xc97   :  { %5226 = vmatpush1.bf16.msra.mxu1 %v10136_v16 }
 0xc98   :  { %5227 = vmatprep.subr.bf16.mxu1 %v10141_v44 }
 0xc9b   :  { %5228 = vmatpush1.bf16.msra.mxu1 %v10139_v26 }
 0xc9c   :  { %5229 = vmatprep.subr.bf16.mxu1 %v10144_v62 }
 0xc9f   :  { %5230 = vmatpush1.bf16.msra.mxu1 %v10142_v19 }
 0xcbb   :  { %v4861_v11 = vpop.permute.xlu0 %4860 }
 0xcbc   :  { %v4878_v4 = vsel %vm668_vm1, %v4850_v58, %v4861_v11  ;;  %v10148_v11 = vld [vmem:[#allocation20 + $0x8] sm:$0xff]  }
 0xcc3   :  { %v4863_v30 = vpop.permute.xlu1 %4862 }
 0xcc4   :  { %v4881_v48 = vsel %vm668_vm1, %v4851_v56, %v4863_v30  ;;  %v10151_v30 = vld [vmem:[#allocation20 + $0x58] sm:$0xff]  }
 0xccb   :  { %v4867_v51 = vpop.permute.xlu0 %4866 }
 0xccc   :  { %v4883_v50 = vsel %vm2367_vm4, %v4878_v4, %v4867_v51  ;;  %v10149_v51 = vld [vmem:[#allocation20 + $0x50] sm:$0xff]  }
 0xccd   :  { %v10150_v4 = vld [vmem:[#allocation20 + $0x10] sm:$0xff]  }
 0xcf3   :  { %v4869_v29 = vpop.permute.xlu1 %4868 }
 0xcf4   :  { %v4885_v33 = vsel %vm2367_vm4, %v4881_v48, %v4869_v29  ;;  %v10155_v29 = vld [vmem:[#allocation20 + $0x68] sm:$0xff]  }
 0xcfb   :  { %v4873_v47 = vpop.permute.xlu0 %4872 }
 0xcfc   :  { %v4887_v59 = vsel %vm2372_vm5, %v4883_v50, %v4873_v47  ;;  %v10152_v50 = vld [vmem:[#allocation20 + $0x18] sm:$0xff]   ;;  %v10153_v47 = vld [vmem:[#allocation20 + $0x60] sm:$0xff]  }
 0xcfd   :  { %9781 = vmatprep.mubr.bf16.mxu0 %v4887_v59  ;;  %v10154_v59 = vld [vmem:[#allocation20 + $0x20] sm:$0xff]  }
 0xd03   :  { %v4875_v20 = vpop.permute.xlu1 %4874 }
 0xd04   :  { %v4890_v37 = vsel %vm2372_vm5, %v4885_v33, %v4875_v20 }
 0xd05   :  { %9782 = vmatmul.mubr.bf16.vlgmr.msra.gmra.mrb[156].mxu0 %v4890_v37 }
 0xd06   :  { %9182 = vmatpush3.bf16.msra.mxu0 %v10146_v13 }
 0xd07   :  { %9183 = vmatprep.subr.bf16.mxu0 %v10147_v14 }
 0xd0a   :  { %9184 = vmatpush3.bf16.msra.mxu0 %v10148_v11 }
 0xd0b   :  { %9185 = vmatprep.subr.bf16.mxu0 %v10149_v51 }
 0xd0e   :  { %9186 = vmatpush3.bf16.msra.mxu0 %v10150_v4  ;;  %v10156_v4 = vld [vmem:[#allocation20 + $0x28] sm:$0xff]  }
 0xd0f   :  { %9187 = vmatprep.subr.bf16.mxu0 %v10151_v30  ;;  %v10159_v30 = vld [vmem:[#allocation20 + $0x78] sm:$0xff]  }
 0xd12   :  { %9188 = vmatpush3.bf16.msra.mxu0 %v10152_v50  ;;  %v10160_v50 = vld [vmem:[#allocation20 + $0x38] sm:$0xff]  }
 0xd13   :  { %9189 = vmatprep.subr.bf16.mxu0 %v10153_v47  ;;  %v5123_v47 = vld [vmem:[%s12836_s14] ss:$2 sm:$0x3] }
 0xd16   :  { %9190 = vmatpush3.bf16.msra.mxu0 %v10154_v59  ;;  %v5128_v59 = vrot.slane %v5123_v47, %v11214_v34 }
 0xd17   :  { %9191 = vmatprep.subr.bf16.mxu0 %v10155_v29  ;;  %v5132_v29 = vrot.slane %v5123_v47, %v11219_v36 }
 0xd1a   :  { %9192 = vmatpush3.bf16.msra.mxu0 %v10156_v4 }
 0xdd8   :  { %v9783_v58 = vpop.f32.mrb[156].mxu0 }
 0xdd9   :  { %v4996_v61 = vpop.f32.mrb[157].mxu0  ;;  %v5005_v10 = vadd.f32 %v9783_v58, %v8786_v42 }
 0xdda   :  { %v4997_v52 = vadd.f32 %v8786_v42, %v4996_v61  ;;  %v9784_v25 = vpop.f32.mrb[158].mxu0 }
 0xddb   :  { %v4999_v7 = vpop.f32.mrb[159].mxu0  ;;  %v5013_v28 = vadd.f32 %v5005_v10, %v11674_v2  ;;  %v5008_v3 = vadd.f32 %v9784_v25, %v8786_v42 }
 0xddc   :  { %v5011_v24 = vadd.f32 %v4997_v52, %v11667_v21  ;;  %v5000_v8 = vadd.f32 %v8786_v42, %v4999_v7 }
 0xddd   :  { %v5014_v17 = vadd.f32 %v5008_v3, %v11676_v9 }
 0xdde   :  { %v5012_v56 = vadd.f32 %v5000_v8, %v11669_v27  ;;  %5017 = vadd.xlane.f32.xlu0 %v5011_v24 }
 0xde0   :  { %5019 = vadd.xlane.f32.xlu1 %v5012_v56 }
 0xde2   :  { %5021 = vadd.xlane.f32.xlu0 %v5013_v28 }
 0xde6   :  { %5023 = vadd.xlane.f32.xlu0 %v5014_v17 }
 0xe6b   :  { %v5018_v12 = vpop.xlane.xlu0 %5017 }
 0xe6c   :  { %v5025_v55 = vmul.f32 0.0078125, %v5018_v12 }
 0xe6d   :  { %v5020_v39 = vpop.xlane.xlu1 %5019 }
 0xe6e   :  { %v12160_v43 = vsub.f32 %v5011_v24, %v5025_v55  ;;  %v5026_v5 = vmul.f32 0.0078125, %v5020_v39 }
 0xe6f   :  { %v5022_v35 = vpop.xlane.xlu0 %5021 }
 0xe70   :  { %v12162_v21 = vsub.f32 %v5012_v56, %v5026_v5  ;;  %v5027_v6 = vmul.f32 0.0078125, %v5022_v35  ;;  %v5033_v27 = vmul.f32 %v12160_v43, %v12160_v43 }
 0xe72   :  { %v12166_v2 = vsub.f32 %v5013_v28, %v5027_v6  ;;  %5037 = vadd.xlane.f32.xlu1 %v5033_v27  ;;  %v5034_v9 = vmul.f32 %v12162_v21, %v12162_v21 }
 0xe73   :  { %v5024_v57 = vpop.xlane.xlu0 %5023 }
 0xe74   :  { %v5028_v63 = vmul.f32 0.0078125, %v5024_v57  ;;  %5039 = vadd.xlane.f32.xlu0 %v5034_v9  ;;  %v5035_v53 = vmul.f32 %v12166_v2, %v12166_v2 }
 0xe76   :  { %v12172_v22 = vsub.f32 %v5014_v17, %v5028_v63  ;;  %5041 = vadd.xlane.f32.xlu1 %v5035_v53 }
 0xe78   :  { %v5036_v45 = vmul.f32 %v12172_v22, %v12172_v22 }
 0xe7a   :  { %5043 = vadd.xlane.f32.xlu0 %v5036_v45 }
 0xeff   :  { %v5038_v48 = vpop.xlane.xlu1 %5037 }
 0xf00   :  { %v5045_v33 = vmul.f32 0.007874016, %v5038_v48 }
 0xf01   :  { %v5040_v20 = vpop.xlane.xlu0 %5039 }
 0xf02   :  { %10417 = vrsqrt.f32 %v5045_v33  ;;  %v5046_v37 = vmul.f32 0.007874016, %v5040_v20  ;;  %vm5051_vm15 = vcmp.eq.f32.partialorder %v5045_v33, inf  ;;  %v5054_v10 = vand.u32 2147483648, %v5045_v33 }
 0xf03   :  { %v5042_v42 = vpop.xlane.xlu1 %5041  ;;  %vm5053_vm6 = vcmp.eq.f32.partialorder %v5045_v33, 0.0 }
 0xf04   :  { %v5047_v58 = vmul.f32 0.007874016, %v5042_v42  ;;  %10419 = vrsqrt.f32 %v5046_v37  ;;  %vm5058_vm7 = vcmp.eq.f32.partialorder %v5046_v37, inf  ;;  %v5061_v12 = vand.u32 2147483648, %v5046_v37 }
 0xf05   :  { %vm5060_vm8 = vcmp.eq.f32.partialorder %v5046_v37, 0.0 }
 0xf06   :  { %10421 = vrsqrt.f32 %v5047_v58  ;;  %vm5065_vm9 = vcmp.eq.f32.partialorder %v5047_v58, inf  ;;  %v5068_v5 = vand.u32 2147483648, %v5047_v58  ;;  %vm5067_vm10 = vcmp.eq.f32.partialorder %v5047_v58, 0.0 }
 0xf07   :  { %v5044_v61 = vpop.xlane.xlu0 %5043 }
 0xf08   :  { %v5048_v52 = vmul.f32 0.007874016, %v5044_v61 }
 0xf0a   :  { %10423 = vrsqrt.f32 %v5048_v52  ;;  %vm5072_vm11 = vcmp.eq.f32.partialorder %v5048_v52, inf  ;;  %v5075_v45 = vand.u32 2147483648, %v5048_v52  ;;  %vm5074_vm12 = vcmp.eq.f32.partialorder %v5048_v52, 0.0 }
 0xf0c   :  { %v10418_v25 = vpop.eup %10417 }
 0xf0d   :  { %v5050_v7 = vmul.f32 %v10418_v25, %v5045_v33 }
 0xf0e   :  { %v10420_v24 = vpop.eup %10419 }
 0xf0f   :  { %v5052_v8 = vsel %vm5051_vm15, %v5045_v33, %v5050_v7  ;;  %v5057_v3 = vmul.f32 %v10420_v24, %v5046_v37 }
 0xf10   :  { %v10422_v56 = vpop.eup %10421  ;;  %v5055_v28 = vsel %vm5053_vm6, %v5054_v10, %v5052_v8 }
 0xf11   :  { %v5077_v17 = vadd.f32 1e-05, %v5055_v28  ;;  %v5064_v55 = vmul.f32 %v10422_v56, %v5047_v58  ;;  %v5059_v39 = vsel %vm5058_vm7, %v5046_v37, %v5057_v3 }
 0xf12   :  { %v5062_v35 = vsel %vm5060_vm8, %v5061_v12, %v5059_v39 }
 0xf13   :  { %10425 = vrcp.f32 %v5077_v17  ;;  %v5066_v6 = vsel %vm5065_vm9, %v5047_v58, %v5064_v55  ;;  %v5078_v9 = vadd.f32 1e-05, %v5062_v35 }
 0xf14   :  { %v10424_v27 = vpop.eup %10423  ;;  %v5069_v57 = vsel %vm5067_vm10, %v5068_v5, %v5066_v6 }
 0xf15   :  { %v5079_v63 = vadd.f32 1e-05, %v5069_v57  ;;  %v5071_v53 = vmul.f32 %v10424_v27, %v5048_v52  ;;  %10427 = vrcp.f32 %v5078_v9 }
 0xf17   :  { %v5073_v15 = vsel %vm5072_vm11, %v5048_v52, %v5071_v53  ;;  %10429 = vrcp.f32 %v5079_v63 }
 0xf18   :  { %v5076_v49 = vsel %vm5074_vm12, %v5075_v45, %v5073_v15  ;;  %v8813_v15 = vld [vmem:[%s12838_s16] ss:$0 sm:$0xff] }
 0xf19   :  { %v5080_v18 = vadd.f32 1e-05, %v5076_v49 }
 0xf1b   :  { %10431 = vrcp.f32 %v5080_v18 }
 0xf1d   :  { %v10426_v40 = vpop.eup %10425 }
 0xf1e   :  { %v5085_v46 = vmul.f32 %v10426_v40, %v12160_v43 }
 0xf1f   :  { %v10428_v32 = vpop.eup %10427 }
 0xf20   :  { %v5086_v60 = vmul.f32 %v10428_v32, %v12162_v21  ;;  %v5093_v41 = vmul.f32 %v8795_v38, %v5085_v46 }
 0xf21   :  { %v10430_v1 = vpop.eup %10429 }
 0xf22   :  { %v5094_v16 = vmul.f32 %v8795_v38, %v5086_v60  ;;  %v12184_v26 = vadd.f32 %v8796_v54, %v5093_v41  ;;  %v5087_v19 = vmul.f32 %v10430_v1, %v12166_v2  ;;  %v10157_v2 = vld [vmem:[#allocation20 + $0x70] sm:$0xff]  }
 0xf23   :  { %9193 = vmatprep.subr.bf16.mxu0 %v10157_v2 }
 0xf24   :  { %v12186_v62 = vadd.f32 %v8796_v54, %v5094_v16  ;;  %v5095_v13 = vmul.f32 %v8795_v38, %v5087_v19 }
 0xf25   :  { %v10432_v44 = vpop.eup %10431 }
 0xf26   :  { %v5088_v23 = vmul.f32 %v10432_v44, %v12172_v22  ;;  %v5121_v43 = vpack.c.bf16 %v12186_v62, %v12184_v26  ;;  %v12195_v11 = vadd.f32 %v8796_v54, %v5095_v13  ;;  %v10158_v22 = vld [vmem:[#allocation20 + $0x30] sm:$0xff]  }
 0xf27   :  { %9194 = vmatpush3.bf16.msra.mxu0 %v10158_v22 }
 0xf28   :  { %v5096_v21 = vmul.f32 %v8795_v38, %v5088_v23  ;;  %5248 = vmatmul.mubr.bf16.vlgmr.msra.gmra.mrb[136].mxu1 %v5121_v43  ;;  %9195 = vmatprep.subr.bf16.mxu0 %v10159_v30 }
 0xf29   :  { %5257 = vmatprep.mubr.bf16.mxu1 %v10901_v0 }
 0xf2a   :  { %v12193_v14 = vadd.f32 %v8796_v54, %v5096_v21 }
 0xf2b   :  { %9196 = vmatpush3.bf16.msra.mxu0 %v10160_v50 }
 0xf2c   :  { %v5122_v51 = vpack.c.bf16 %v12193_v14, %v12195_v11 }
 0xf30   :  { %5258 = vmatmul.mubr.bf16.gmra.mrb[140].mxu1 %v5122_v51 }
 0xffb   :  { %v5249_v48 = vpop.f32.mrb[136].mxu1 }
 0xffc   :  { %v5250_v33 = vadd.f32 %v5249_v48, %v5128_v59  ;;  %v5251_v20 = vpop.f32.mrb[137].mxu1 }
 0xffd   :  { %v5252_v37 = vadd.f32 %v5251_v20, %v5132_v29  ;;  %v5253_v42 = vpop.f32.mrb[138].mxu1 }
 0xffe   :  { %v5254_v58 = vadd.f32 %v5253_v42, %v5128_v59  ;;  %v5255_v61 = vpop.f32.mrb[139].mxu1  ;;  %v5268_v25 = vmax.f32 %v5250_v33, 0.0 }
 0xfff   :  { %v5256_v52 = vadd.f32 %v5255_v61, %v5132_v29  ;;  %v5269_v10 = vmax.f32 %v5252_v37, 0.0  ;;  %v10161_v61 = vld [vmem:[#allocation16 + $0x80] ss:$8 sps:$4 sm:$0xff]  }
0x1000   :  { %v5270_v7 = vmax.f32 %v5254_v58, 0.0  ;;  %v10163_v58 = vld [vmem:[#allocation16 + $0x84] ss:$8 sps:$4 sm:$0xff]  }
0x1001   :  { %v5271_v24 = vmax.f32 %v5256_v52, 0.0  ;;  %5789 = vmatprep.subr.bf16.mxu0 %v10163_v58  ;;  %v10166_v52 = vld [vmem:[#allocation16 + $0x94] ss:$8 sps:$4 sm:$0xff]  }
0x1002   :  { %v5308_v8 = vpack.c.bf16 %v5270_v7, %v5268_v25  ;;  %v10164_v25 = vld [vmem:[#allocation16 + $0x90] ss:$8 sps:$4 sm:$0xff]   ;;  %v10169_v7 = vld [vmem:[#allocation16 + $0xa4] ss:$8 sps:$4 sm:$0xff]  }
0x1003   :  { %v5309_v56 = vpack.c.bf16 %v5271_v24, %v5269_v10  ;;  %v5259_v28 = vpop.f32.mrb[140].mxu1  ;;  %v10167_v10 = vld [vmem:[#allocation16 + $0xa0] ss:$8 sps:$4 sm:$0xff]  }
0x1004   :  { %v5260_v3 = vadd.f32 %v5259_v28, %v5128_v59  ;;  %v5261_v17 = vpop.f32.mrb[141].mxu1  ;;  %v10170_v24 = vld [vmem:[#allocation13 + $0x40] sm:$0xff]   ;;  %v10174_v28 = vld [vmem:[#allocation13 + $0x48] sm:$0xff]  }
0x1005   :  { %v5262_v12 = vadd.f32 %v5261_v17, %v5132_v29  ;;  %v5263_v55 = vpop.f32.mrb[142].mxu1  ;;  %5445 = vmatprep.mubr.bf16.mxu0 %v5309_v56  ;;  %9785 = vmatprep.subr.bf16.mxu1 %v10170_v24  ;;  %v10171_v56 = vld [vmem:[#allocation16 + $0xb0] ss:$8 sps:$4 sm:$0xff]   ;;  %v10175_v17 = vld [vmem:[#allocation16 + $0xc0] ss:$8 sps:$4 sm:$0xff]  }
0x1006   :  { %v5264_v39 = vadd.f32 %v5263_v55, %v5128_v59  ;;  %v5265_v5 = vpop.f32.mrb[143].mxu1  ;;  %5446 = vmatmul.mubr.bf16.vlgmr.msra.gmra.mrb[160].mxu0 %v5308_v8  ;;  %v5272_v6 = vmax.f32 %v5260_v3, 0.0  ;;  %v10173_v8 = vld [vmem:[#allocation16 + $0xb4] ss:$8 sps:$4 sm:$0xff]   ;;  %9786 = vmatpush3.bf16.msra.mxu1 %v10170_v24  ;;  %v10177_v3 = vld [vmem:[#allocation16 + $0xc4] ss:$8 sps:$4 sm:$0xff]  }
0x1007   :  { %v5266_v35 = vadd.f32 %v5265_v5, %v5132_v29  ;;  %v5273_v9 = vmax.f32 %v5262_v12, 0.0  ;;  %5790 = vmatpush1.bf16.msra.mxu0 %v10161_v61  ;;  %9787 = vmatprep.subr.bf16.mxu1 %v10174_v28  ;;  %v10178_v12 = vld [vmem:[#allocation13 + $0x50] sm:$0xff]  }
0x1008   :  { %v5274_v27 = vmax.f32 %v5264_v39, 0.0  ;;  %5791 = vmatprep.subr.bf16.mxu0 %v10166_v52  ;;  %v10181_v55 = vld [vmem:[#allocation16 + $0xd4] ss:$8 sps:$4 sm:$0xff]   ;;  %v10179_v5 = vld [vmem:[#allocation16 + $0xd0] ss:$8 sps:$4 sm:$0xff]  }
0x1009   :  { %v5275_v57 = vmax.f32 %v5266_v35, 0.0  ;;  %v10182_v39 = vld [vmem:[#allocation13 + $0x58] sm:$0xff]   ;;  %v10185_v35 = vld [vmem:[#allocation16 + $0xe4] ss:$8 sps:$4 sm:$0xff]  }
0x100a   :  { %v5310_v63 = vpack.c.bf16 %v5274_v27, %v5272_v6  ;;  %9788 = vmatpush3.bf16.msra.mxu1 %v10174_v28  ;;  %v10186_v6 = vld [vmem:[#allocation13 + $0x60] sm:$0xff]  }
0x100b   :  { %v5311_v53 = vpack.c.bf16 %v5275_v57, %v5273_v9  ;;  %5792 = vmatpush1.bf16.msra.mxu0 %v10164_v25  ;;  %9789 = vmatprep.subr.bf16.mxu1 %v10178_v12  ;;  %v10183_v27 = vld [vmem:[#allocation16 + $0xe0] ss:$8 sps:$4 sm:$0xff]   ;;  %v10189_v9 = vld [vmem:[#allocation16 + $0xf4] ss:$8 sps:$4 sm:$0xff]  }
0x100c   :  { %5793 = vmatprep.subr.bf16.mxu0 %v10169_v7  ;;  %v10190_v57 = vld [vmem:[#allocation13 + $0x68] sm:$0xff]  }
0x100d   :  { %5453 = vmatprep.mubr.bf16.mxu0 %v5311_v53  ;;  %v233_v53 = vld [vmem:[#allocation7] sm:$0xff] }
0x100e   :  { %5454 = vmatmul.mubr.bf16.gmra.mrb[164].mxu0 %v5310_v63  ;;  %9790 = vmatpush3.bf16.msra.mxu1 %v10178_v12  ;;  %v10187_v63 = vld [vmem:[#allocation16 + $0xf0] ss:$8 sps:$4 sm:$0xff]   ;;  %v8831_v12 = vld [vmem:[%s12840_s18 + $0x2] ss:$0 sm:$0xff] }
0x100f   :  { %5821 = vmatprep.mubr.bf16.mxu0 %v10901_v0  ;;  %5794 = vmatpush1.bf16.msra.mxu0 %v10167_v10 }
0x1010   :  { %5795 = vmatprep.subr.bf16.mxu0 %v10173_v8  ;;  %9791 = vmatprep.subr.bf16.mxu1 %v10182_v39  ;;  %v8830_v8 = vld [vmem:[%s12839_s17 + $0x2] ss:$0 sm:$0xff] }
0x1012   :  { %9792 = vmatpush3.bf16.msra.mxu1 %v10182_v39 }
0x1013   :  { %5796 = vmatpush1.bf16.msra.mxu0 %v10171_v56  ;;  %9793 = vmatprep.subr.bf16.mxu1 %v10186_v6 }
0x1014   :  { %5797 = vmatprep.subr.bf16.mxu0 %v10177_v3 }
0x1016   :  { %9794 = vmatpush3.bf16.msra.mxu1 %v10186_v6 }
0x1017   :  { %5798 = vmatpush1.bf16.msra.mxu0 %v10175_v17  ;;  %9795 = vmatprep.subr.bf16.mxu1 %v10190_v57 }
0x1018   :  { %5799 = vmatprep.subr.bf16.mxu0 %v10181_v55 }
0x101a   :  { %9796 = vmatpush3.bf16.msra.mxu1 %v10190_v57 }
0x101b   :  { %5800 = vmatpush1.bf16.msra.mxu0 %v10179_v5 }
0x101c   :  { %5801 = vmatprep.subr.bf16.mxu0 %v10185_v35 }
0x101f   :  { %5802 = vmatpush1.bf16.msra.mxu0 %v10183_v27 }
0x1020   :  { %5803 = vmatprep.subr.bf16.mxu0 %v10189_v9 }
0x1023   :  { %5804 = vmatpush1.bf16.msra.mxu0 %v10187_v63 }
0x1024   :  { %9835 = vmatprep.subr.bf16.mxu0 %v10902_v31 }
0x10d9   :  { %v9197_v45 = vpop.f32.mrb[160].mxu0 }
0x10da   :  { %v9198_v49 = vpop.f32.mrb[161].mxu0 }
0x10db   :  { %v9199_v18 = vadd.f32 %v9198_v49, %v9197_v45  ;;  %v9200_v40 = vpop.f32.mrb[162].mxu0  ;;  %v234_v45 = vld [vmem:[#allocation7 + $0x8] sm:$0xff]  ;;  %v10191_v49 = vld [vmem:[#allocation13 + $0x70] sm:$0xff]  }
0x10dc   :  { %v9201_v38 = vpop.f32.mrb[163].mxu0  ;;  %9797 = vmatprep.subr.bf16.mxu1 %v10191_v49 }
0x10dd   :  { %v5448_v46 = vadd.f32 %v9199_v18, %v8813_v15  ;;  %v9202_v32 = vadd.f32 %v9201_v38, %v9200_v40  ;;  %v10192_v18 = vld [vmem:[#allocation13 + $0x78] sm:$0xff]   ;;  %v235_v40 = vld [vmem:[#allocation7 + $0x10] sm:$0xff]  ;;  %v236_v38 = vld [vmem:[#allocation7 + $0x18] sm:$0xff]  ;;  %9798 = vmatpush3.bf16.msra.mxu1 %v10191_v49 }
0x10de   :  { %9799 = vmatprep.subr.bf16.mxu1 %v10192_v18 }
0x10df   :  { %v5451_v60 = vadd.f32 %v9202_v32, %v8813_v15  ;;  %v5462_v41 = vadd.f32 %v5448_v46, %v12184_v26  ;;  %v5695_v46 = vpack.c.bf16 %v236_v38, %v235_v40 }
0x10e1   :  { %5468 = vadd.xlane.f32.xlu1 %v5462_v41  ;;  %v9203_v1 = vpop.f32.mrb[164].mxu0  ;;  %v5463_v54 = vadd.f32 %v5451_v60, %v12186_v62  ;;  %9800 = vmatpush3.bf16.msra.mxu1 %v10192_v18 }
0x10e2   :  { %v9204_v16 = vpop.f32.mrb[165].mxu0  ;;  %9805 = vmatprep.subr.bf16.mxu1 %v10902_v31 }
0x10e3   :  { %v9205_v44 = vadd.f32 %v9204_v16, %v9203_v1  ;;  %5470 = vadd.xlane.f32.xlu0 %v5463_v54  ;;  %v9206_v19 = vpop.f32.mrb[166].mxu0 }
0x10e4   :  { %v9207_v23 = vpop.f32.mrb[167].mxu0 }
0x10e5   :  { %v5456_v43 = vadd.f32 %v9205_v44, %v8813_v15  ;;  %v9208_v21 = vadd.f32 %v9207_v23, %v9206_v19 }
0x10e7   :  { %v5459_v13 = vadd.f32 %v9208_v21, %v8813_v15  ;;  %v5464_v51 = vadd.f32 %v5456_v43, %v12195_v11  ;;  %v5694_v15 = vpack.c.bf16 %v234_v45, %v233_v53 }
0x10e9   :  { %5472 = vadd.xlane.f32.xlu1 %v5464_v51  ;;  %v5465_v4 = vadd.f32 %v5459_v13, %v12193_v14  ;;  %5822 = vmatmul.mubr.bf16.vlgmr.msra.gmra.mrb[168].mxu0 %v5694_v15 }
0x10ea   :  { %5831 = vmatprep.mubr.bf16.mxu0 %v10901_v0 }
0x10eb   :  { %5474 = vadd.xlane.f32.xlu0 %v5465_v4 }
0x10f1   :  { %5832 = vmatmul.mubr.bf16.gmra.mrb[172].mxu0 %v5695_v46 }
0x10f2   :  { %9837 = vmatprep.mubr.msk.bf16.mxu0 %vm10903_vm0, %v10902_v31 }
0x116e   :  { %v5469_v2 = vpop.xlane.xlu1 %5468 }
0x116f   :  { %v5476_v26 = vmul.f32 0.0078125, %v5469_v2 }
0x1170   :  { %v5471_v22 = vpop.xlane.xlu0 %5470 }
0x1171   :  { %v12212_v30 = vsub.f32 %v5462_v41, %v5476_v26  ;;  %v5477_v62 = vmul.f32 0.0078125, %v5471_v22 }
0x1173   :  { %v12214_v50 = vsub.f32 %v5463_v54, %v5477_v62  ;;  %v5484_v47 = vmul.f32 %v12212_v30, %v12212_v30 }
0x1175   :  { %5488 = vadd.xlane.f32.xlu1 %v5484_v47  ;;  %v5485_v59 = vmul.f32 %v12214_v50, %v12214_v50 }
0x1176   :  { %v5473_v11 = vpop.xlane.xlu1 %5472 }
0x1177   :  { %v5478_v29 = vmul.f32 0.0078125, %v5473_v11  ;;  %5490 = vadd.xlane.f32.xlu0 %v5485_v59 }
0x1178   :  { %v5475_v14 = vpop.xlane.xlu0 %5474 }
0x1179   :  { %v12220_v48 = vsub.f32 %v5464_v51, %v5478_v29  ;;  %v5479_v33 = vmul.f32 0.0078125, %v5475_v14 }
0x117b   :  { %v12222_v20 = vsub.f32 %v5465_v4, %v5479_v33  ;;  %v5486_v37 = vmul.f32 %v12220_v48, %v12220_v48 }
0x117d   :  { %5492 = vadd.xlane.f32.xlu1 %v5486_v37  ;;  %v5487_v42 = vmul.f32 %v12222_v20, %v12222_v20 }
0x117f   :  { %5494 = vadd.xlane.f32.xlu0 %v5487_v42 }
0x11bc   :  { %v5823_v49 = vpop.f32.mrb[168].mxu0 }
0x11bd   :  { %v5825_v40 = vpop.f32.mrb[169].mxu0 }
0x11be   :  { %v5827_v46 = vpop.f32.mrb[170].mxu0 }
0x1202   :  { %v5489_v32 = vpop.xlane.xlu1 %5488 }
0x1203   :  { %v5496_v60 = vmul.f32 0.007874016, %v5489_v32 }
0x1204   :  { %v5491_v41 = vpop.xlane.xlu0 %5490 }
0x1205   :  { %10433 = vrsqrt.f32 %v5496_v60  ;;  %v5497_v1 = vmul.f32 0.007874016, %v5491_v41  ;;  %vm5502_vm13 = vcmp.eq.f32.partialorder %v5496_v60, inf  ;;  %v5505_v21 = vand.u32 2147483648, %v5496_v60 }
0x1206   :  { %vm5504_vm14 = vcmp.eq.f32.partialorder %v5496_v60, 0.0 }
0x1207   :  { %10435 = vrsqrt.f32 %v5497_v1  ;;  %vm5509_vm15 = vcmp.eq.f32.partialorder %v5497_v1, inf  ;;  %v5512_v22 = vand.u32 2147483648, %v5497_v1  ;;  %vm5511_vm6 = vcmp.eq.f32.partialorder %v5497_v1, 0.0 }
0x120a   :  { %v5493_v54 = vpop.xlane.xlu1 %5492 }
0x120b   :  { %v5498_v16 = vmul.f32 0.007874016, %v5493_v54 }
0x120c   :  { %v5495_v44 = vpop.xlane.xlu0 %5494 }
0x120d   :  { %10437 = vrsqrt.f32 %v5498_v16  ;;  %v5499_v19 = vmul.f32 0.007874016, %v5495_v44  ;;  %vm5516_vm7 = vcmp.eq.f32.partialorder %v5498_v16, inf  ;;  %v5519_v14 = vand.u32 2147483648, %v5498_v16 }
0x120e   :  { %vm5518_vm8 = vcmp.eq.f32.partialorder %v5498_v16, 0.0 }
0x120f   :  { %v10434_v23 = vpop.eup %10433  ;;  %10439 = vrsqrt.f32 %v5499_v19  ;;  %vm5523_vm9 = vcmp.eq.f32.partialorder %v5499_v19, inf  ;;  %v5526_v52 = vand.u32 2147483648, %v5499_v19  ;;  %vm5525_vm10 = vcmp.eq.f32.partialorder %v5499_v19, 0.0 }
0x1210   :  { %v5501_v43 = vmul.f32 %v10434_v23, %v5496_v60 }
0x1211   :  { %v10436_v13 = vpop.eup %10435 }
0x1212   :  { %v5503_v51 = vsel %vm5502_vm13, %v5496_v60, %v5501_v43  ;;  %v5508_v2 = vmul.f32 %v10436_v13, %v5497_v1  ;;  %v5829_v60 = vpop.f32.mrb[171].mxu0 }
0x1213   :  { %v5506_v4 = vsel %vm5504_vm14, %v5505_v21, %v5503_v51  ;;  %v5833_v44 = vpop.f32.mrb[172].mxu0 }
0x1214   :  { %v5528_v26 = vadd.f32 1e-05, %v5506_v4  ;;  %v5510_v62 = vsel %vm5509_vm15, %v5497_v1, %v5508_v2  ;;  %v5835_v43 = vpop.f32.mrb[173].mxu0 }
0x1215   :  { %v5513_v47 = vsel %vm5511_vm6, %v5512_v22, %v5510_v62  ;;  %v5837_v21 = vpop.f32.mrb[174].mxu0 }
0x1216   :  { %10441 = vrcp.f32 %v5528_v26  ;;  %v5529_v11 = vadd.f32 1e-05, %v5513_v47  ;;  %v5839_v2 = vpop.f32.mrb[175].mxu0 }
0x1217   :  { %v10438_v59 = vpop.eup %10437 }
0x1218   :  { %v5515_v29 = vmul.f32 %v10438_v59, %v5498_v16  ;;  %10443 = vrcp.f32 %v5529_v11  ;;  %v8832_v11 = vld [vmem:[#allocation14 + $0x1] ss:$0 sm:$0xff] }
0x1219   :  { %v10440_v33 = vpop.eup %10439 }
0x121a   :  { %v5517_v37 = vsel %vm5516_vm7, %v5498_v16, %v5515_v29  ;;  %v5522_v58 = vmul.f32 %v10440_v33, %v5499_v19 }
0x121b   :  { %v5520_v42 = vsel %vm5518_vm8, %v5519_v14, %v5517_v37 }
0x121c   :  { %v5530_v61 = vadd.f32 1e-05, %v5520_v42  ;;  %v5524_v25 = vsel %vm5523_vm9, %v5499_v19, %v5522_v58 }
0x121d   :  { %v5527_v7 = vsel %vm5525_vm10, %v5526_v52, %v5524_v25 }
0x121e   :  { %10445 = vrcp.f32 %v5530_v61  ;;  %v5531_v10 = vadd.f32 1e-05, %v5527_v7 }
0x1220   :  { %v10442_v24 = vpop.eup %10441  ;;  %10447 = vrcp.f32 %v5531_v10 }
0x1221   :  { %v5536_v56 = vmul.f32 %v10442_v24, %v12212_v30 }
0x1222   :  { %v10444_v28 = vpop.eup %10443 }
0x1223   :  { %v5537_v3 = vmul.f32 %v10444_v28, %v12214_v50  ;;  %v5544_v17 = vmul.f32 %v8830_v8, %v5536_v56 }
0x1225   :  { %v5545_v55 = vmul.f32 %v8830_v8, %v5537_v3  ;;  %v12241_v5 = vadd.f32 %v8831_v12, %v5544_v17 }
0x1227   :  { %v12243_v35 = vadd.f32 %v8831_v12, %v5545_v55 }
0x1228   :  { %v10446_v39 = vpop.eup %10445 }
0x1229   :  { %v5538_v6 = vmul.f32 %v10446_v39, %v12220_v48  ;;  %v5573_v27 = vpack.c.bf16 %v12243_v35, %v12241_v5  ;;  %v8841_v48 = vld [vmem:[%s12832_s10 + $0x1] ss:$2 sm:$0x3] }
0x122a   :  { %v10448_v30 = vpop.eup %10447  ;;  %v5702_v15 = vrot.slane %v8841_v48, %v11214_v34 }
0x122b   :  { %9801 = vmatprep.mubr.bf16.mxu1 %v5573_v27  ;;  %v5539_v50 = vmul.f32 %v10448_v30, %v12222_v20  ;;  %v5546_v9 = vmul.f32 %v8830_v8, %v5538_v6  ;;  %v5706_v20 = vrot.slane %v8841_v48, %v11219_v36 }
0x122c   :  { %v5824_v18 = vadd.f32 %v5823_v49, %v5702_v15  ;;  %v5828_v32 = vadd.f32 %v5827_v46, %v5702_v15  ;;  %v5834_v23 = vadd.f32 %v5833_v44, %v5702_v15  ;;  %v5838_v13 = vadd.f32 %v5837_v21, %v5702_v15 }
0x122d   :  { %v5547_v57 = vmul.f32 %v8830_v8, %v5539_v50  ;;  %v12249_v63 = vadd.f32 %v8831_v12, %v5546_v9  ;;  %v12262_v38 = vadd.f32 %v5825_v40, %v5706_v20  ;;  %v12264_v1 = vadd.f32 %v5829_v60, %v5706_v20 }
0x122e   :  { %v9005_v41 = vpack.c.bf16 %v5824_v18, %v5824_v18  ;;  %v5894_v54 = vpack.c.bf16 %v5828_v32, %v5824_v18  ;;  %v12273_v51 = vadd.f32 %v5835_v43, %v5706_v20  ;;  %v5895_v4 = vpack.c.bf16 %v5838_v13, %v5834_v23 }
0x122f   :  { %v12251_v53 = vadd.f32 %v8831_v12, %v5547_v57  ;;  %v12268_v16 = vpack.c.bf16 %v12264_v1, %v12262_v38  ;;  %v12275_v26 = vadd.f32 %v5839_v2, %v5706_v20  ;;  %v9006_v52 = vpack.c.bf16 %v5828_v32, %v5828_v32 }
0x1230   :  { %5898 = vrot.lane.b32.xlu1 %v5894_v54, %s10904_s15  ;;  %v5994_v19 = vsel %vm668_vm1, %v9005_v41, 0  ;;  %v9007_v12 = vpack.c.bf16 %v5834_v23, %v5834_v23  ;;  %v9008_v6 = vpack.c.bf16 %v5838_v13, %v5838_v13 }
0x1231   :  { %v5574_v45 = vpack.c.bf16 %v12251_v53, %v12249_v63  ;;  %v12280_v22 = vpack.c.bf16 %v12275_v26, %v12273_v51  ;;  %v6040_v17 = vsel %vm668_vm1, %v9006_v52, 0 }
0x1232   :  { %v6086_v39 = vsel %vm668_vm1, %v9007_v12, 0  ;;  %v6132_v30 = vsel %vm668_vm1, %v9008_v6, 0  ;;  %v9009_v12 = vpack.c.bf16 %v12262_v38, %v12262_v38  ;;  %v12384_v38 = vld [vmem:[#allocation8] sm:$0xff] }
0x1233   :  { %9802 = vmatmul.mubr.bf16.vlgmr.msra.gmra.mrb[144].mxu1 %v5574_v45 }
0x1234   :  { %9807 = vmatprep.mubr.msk.bf16.mxu1 %vm10903_vm0, %v10902_v31  ;;  %9806 = vmatpush3.bf16.xpose.msra.mxu1 %v5994_v19 }
0x1235   :  { %9811 = vmatprep.subr.bf16.mxu1 %v10902_v31  ;;  %5900 = vrot.lane.b32.xlu1 %v5895_v4, %s10904_s15 }
0x12a2   :  { %v5899_v62 = vpop.permute.xlu1 %5898 }
0x12a3   :  { %v8879_v47 = vcombine.high %v5899_v62, %v5899_v62  ;;  %v8878_v50 = vcombine.low %v5899_v62, %v5899_v62 }
0x12a5   :  { %v6224_v59 = vsel %vm668_vm1, %v8879_v47, 0  ;;  %v6178_v57 = vsel %vm668_vm1, %v8878_v50, 0 }
0x12a6   :  { %9836 = vmatpush3.bf16.xpose.msra.mxu0 %v6224_v59 }
0x12a7   :  { %9847 = vmatprep.subr.bf16.mxu0 %v10902_v31  ;;  %v5901_v45 = vpop.permute.xlu1 %5900 }
0x12a8   :  { %v8880_v48 = vcombine.low %v5901_v45, %v5901_v45  ;;  %v8881_v15 = vcombine.high %v5901_v45, %v5901_v45 }
0x12aa   :  { %v6270_v40 = vsel %vm668_vm1, %v8880_v48, 0  ;;  %v6316_v46 = vsel %vm668_vm1, %v8881_v15, 0 }
0x1306   :  { %v9803_v29 = vpop.f32.mrb[144].mxu1 }
0x1307   :  { %v5671_v14 = vadd.f32 %v9803_v29, %v8832_v11  ;;  %v5662_v33 = vpop.f32.mrb[145].mxu1 }
0x1308   :  { %v5663_v37 = vadd.f32 %v8832_v11, %v5662_v33  ;;  %v9804_v42 = vpop.f32.mrb[146].mxu1 }
0x1309   :  { %v5674_v58 = vadd.f32 %v9804_v42, %v8832_v11  ;;  %v5665_v61 = vpop.f32.mrb[147].mxu1  ;;  %v5844_v10 = vmul.f32 0.17677669, %v5671_v14 }
0x130a   :  { %v5842_v25 = vmul.f32 0.17677669, %v5663_v37  ;;  %v5666_v7 = vadd.f32 %v8832_v11, %v5665_v61 }
0x130b   :  { %v5845_v24 = vmul.f32 0.17677669, %v5674_v58  ;;  %v9003_v27 = vpack.c.bf16 %v5844_v10, %v5844_v10 }
0x130c   :  { %v9001_v8 = vpack.c.bf16 %v5842_v25, %v5842_v25  ;;  %v5843_v56 = vmul.f32 0.17677669, %v5666_v7 }
0x130d   :  { %v5847_v28 = vpack.c.bf16 %v5845_v24, %v5844_v10  ;;  %v9004_v9 = vpack.c.bf16 %v5845_v24, %v5845_v24 }
0x130e   :  { %v5846_v3 = vpack.c.bf16 %v5843_v56, %v5842_v25  ;;  %9808 = vmatmul.mubr.msk.bf16.vlgmr.msra.gmra.mrb[148].mxu1 %vm668_vm1, %v9001_v8  ;;  %v9002_v55 = vpack.c.bf16 %v5843_v56, %v5843_v56 }
0x130f   :  { %5852 = vrot.lane.b32.xlu1 %v5847_v28, %s10904_s15  ;;  %9812 = vmatpush3.bf16.xpose.msra.mxu1 %v6040_v17 }
0x1310   :  { %5850 = vrot.lane.b32.xlu0 %v5846_v3, %s10904_s15  ;;  %9813 = vmatprep.mubr.msk.bf16.mxu1 %vm10903_vm0, %v10902_v31 }
0x1311   :  { %9817 = vmatprep.subr.bf16.mxu1 %v10902_v31 }
0x1313   :  { %5854 = vrot.lane.b32.xlu1 %v5846_v3, %s12857_s20 }
0x1314   :  { %5902 = vrot.lane.b32.xlu0 %v5894_v54, %s12857_s20 }
0x1316   :  { %9814 = vmatmul.mubr.msk.bf16.vlgmr.msra.gmra.mrb[152].mxu1 %vm668_vm1, %v9002_v55  ;;  %v9010_v55 = vpack.c.bf16 %v12264_v1, %v12264_v1 }
0x1317   :  { %9818 = vmatpush3.bf16.xpose.msra.mxu1 %v6086_v39  ;;  %5856 = vrot.lane.b32.xlu1 %v5847_v28, %s12857_s20 }
0x1318   :  { %5904 = vrot.lane.b32.xlu0 %v5895_v4, %s12857_s20  ;;  %9819 = vmatprep.mubr.msk.bf16.mxu1 %vm10903_vm0, %v10902_v31 }
0x1319   :  { %9823 = vmatprep.subr.bf16.mxu1 %v10902_v31 }
0x131b   :  { %5858 = vrot.lane.b32.xlu1 %v5846_v3, %s10905_s3 }
0x131c   :  { %5906 = vrot.lane.b32.xlu0 %v5894_v54, %s10905_s3 }
0x131e   :  { %9820 = vmatmul.mubr.msk.bf16.vlgmr.msra.gmra.mrb[156].mxu1 %vm668_vm1, %v9003_v27  ;;  %v7130_v27 = vsel %vm1601_vm2, %v9009_v12, 0 }
0x131f   :  { %9824 = vmatpush3.bf16.xpose.msra.mxu1 %v6132_v30  ;;  %5860 = vrot.lane.b32.xlu1 %v5847_v28, %s10905_s3  ;;  %v7176_v30 = vsel %vm1601_vm2, %v9010_v55, 0 }
0x1320   :  { %5908 = vrot.lane.b32.xlu0 %v5895_v4, %s10905_s3  ;;  %9825 = vmatprep.mubr.msk.bf16.mxu1 %vm10903_vm0, %v10902_v31 }
0x1321   :  { %9829 = vmatprep.subr.bf16.mxu1 %v10902_v31 }
0x1323   :  { %5946 = vrot.lane.b32.xlu1 %v12268_v16, %s10904_s15 }
0x1324   :  { %5948 = vrot.lane.b32.xlu0 %v12280_v22, %s10904_s15 }
0x1326   :  { %9826 = vmatmul.mubr.msk.bf16.vlgmr.msra.gmra.mrb[160].mxu1 %vm668_vm1, %v9004_v9 }
0x1327   :  { %5950 = vrot.lane.b32.xlu1 %v12268_v16, %s12857_s20  ;;  %9830 = vmatpush3.bf16.xpose.msra.mxu1 %v6178_v57 }
0x1328   :  { %9831 = vmatprep.mubr.msk.bf16.mxu1 %vm10903_vm0, %v10902_v31  ;;  %9841 = vmatprep.subr.bf16.mxu1 %v10902_v31 }
0x1381   :  { %v5853_v60 = vpop.permute.xlu1 %5852 }
0x1382   :  { %v5851_v20 = vpop.permute.xlu0 %5850  ;;  %v8864_v44 = vcombine.low %v5853_v60, %v5853_v60  ;;  %v8865_v19 = vcombine.high %v5853_v60, %v5853_v60 }
0x1383   :  { %v8862_v49 = vcombine.low %v5851_v20, %v5851_v20  ;;  %v8863_v18 = vcombine.high %v5851_v20, %v5851_v20 }
0x1385   :  { %9832 = vmatmul.mubr.msk.bf16.vlgmr.msra.gmra.mrb[164].mxu1 %vm668_vm1, %v8862_v49  ;;  %9838 = vmatmul.mubr.msk.bf16.vlgmr.msra.gmra.mrb[176].mxu0 %vm668_vm1, %v8863_v18  ;;  %v5855_v13 = vpop.permute.xlu1 %5854 }
0x1386   :  { %9842 = vmatpush3.bf16.xpose.msra.mxu1 %v6270_v40  ;;  %9848 = vmatpush3.bf16.xpose.msra.mxu0 %v6316_v46  ;;  %v5903_v32 = vpop.permute.xlu0 %5902  ;;  %v8866_v62 = vcombine.low %v5855_v13, %v5855_v13  ;;  %v8867_v47 = vcombine.high %v5855_v13, %v5855_v13 }
0x1387   :  { %9843 = vmatprep.mubr.msk.bf16.mxu1 %vm10903_vm0, %v10902_v31  ;;  %9849 = vmatprep.mubr.msk.bf16.mxu0 %vm10903_vm0, %v10902_v31  ;;  %v8882_v41 = vcombine.low %v5903_v32, %v5903_v32  ;;  %v8883_v54 = vcombine.high %v5903_v32, %v5903_v32 }
0x1388   :  { %9853 = vmatprep.subr.bf16.mxu1 %v10902_v31  ;;  %9859 = vmatprep.subr.bf16.mxu0 %v10902_v31 }
0x1389   :  { %v6362_v23 = vsel %vm668_vm1, %v8882_v41, 0  ;;  %v6408_v43 = vsel %vm668_vm1, %v8883_v54, 0  ;;  %v5857_v14 = vpop.permute.xlu1 %5856 }
0x138a   :  { %v5905_v21 = vpop.permute.xlu0 %5904  ;;  %v8868_v42 = vcombine.low %v5857_v14, %v5857_v14  ;;  %v8869_v58 = vcombine.high %v5857_v14, %v5857_v14 }
0x138b   :  { %v8884_v4 = vcombine.low %v5905_v21, %v5905_v21  ;;  %v8885_v2 = vcombine.high %v5905_v21, %v5905_v21 }
0x138d   :  { %9844 = vmatmul.mubr.msk.bf16.vlgmr.msra.gmra.mrb[168].mxu1 %vm668_vm1, %v8864_v44  ;;  %9850 = vmatmul.mubr.msk.bf16.vlgmr.msra.gmra.mrb[180].mxu0 %vm668_vm1, %v8865_v19  ;;  %v6454_v59 = vsel %vm668_vm1, %v8884_v4, 0  ;;  %v6500_v11 = vsel %vm668_vm1, %v8885_v2, 0  ;;  %v5859_v7 = vpop.permute.xlu1 %5858 }
0x138e   :  { %9854 = vmatpush3.bf16.xpose.msra.mxu1 %v6362_v23  ;;  %9860 = vmatpush3.bf16.xpose.msra.mxu0 %v6408_v43  ;;  %v5907_v29 = vpop.permute.xlu0 %5906  ;;  %v8870_v8 = vcombine.low %v5859_v7, %v5859_v7  ;;  %v8871_v56 = vcombine.high %v5859_v7, %v5859_v7 }
0x138f   :  { %9855 = vmatprep.mubr.msk.bf16.mxu1 %vm10903_vm0, %v10902_v31  ;;  %9861 = vmatprep.mubr.msk.bf16.mxu0 %vm10903_vm0, %v10902_v31  ;;  %v8886_v33 = vcombine.low %v5907_v29, %v5907_v29  ;;  %v8887_v37 = vcombine.high %v5907_v29, %v5907_v29 }
0x1390   :  { %9865 = vmatprep.subr.bf16.mxu1 %v10902_v31  ;;  %9871 = vmatprep.subr.bf16.mxu0 %v10902_v31 }
0x1391   :  { %v6546_v61 = vsel %vm668_vm1, %v8886_v33, 0  ;;  %v6592_v52 = vsel %vm668_vm1, %v8887_v37, 0  ;;  %v5861_v17 = vpop.permute.xlu1 %5860 }
0x1392   :  { %v5909_v25 = vpop.permute.xlu0 %5908  ;;  %v8872_v39 = vcombine.low %v5861_v17, %v5861_v17  ;;  %v8873_v6 = vcombine.high %v5861_v17, %v5861_v17 }
0x1393   :  { %v8888_v10 = vcombine.low %v5909_v25, %v5909_v25  ;;  %v8889_v24 = vcombine.high %v5909_v25, %v5909_v25 }
0x1395   :  { %9856 = vmatmul.mubr.msk.bf16.vlgmr.msra.gmra.mrb[172].mxu1 %vm668_vm1, %v8866_v62  ;;  %9862 = vmatmul.mubr.msk.bf16.vlgmr.msra.gmra.mrb[184].mxu0 %vm668_vm1, %v8867_v47  ;;  %v6638_v28 = vsel %vm668_vm1, %v8888_v10, 0  ;;  %v6684_v3 = vsel %vm668_vm1, %v8889_v24, 0 }
0x1396   :  { %9866 = vmatpush3.bf16.xpose.msra.mxu1 %v6454_v59  ;;  %9872 = vmatpush3.bf16.xpose.msra.mxu0 %v6500_v11 }
0x1397   :  { %9867 = vmatprep.mubr.msk.bf16.mxu1 %vm10903_vm0, %v10902_v31  ;;  %9873 = vmatprep.mubr.msk.bf16.mxu0 %vm10903_vm0, %v10902_v31 }
0x1398   :  { %9877 = vmatprep.subr.bf16.mxu1 %v10902_v31  ;;  %9883 = vmatprep.subr.bf16.mxu0 %v10902_v31 }
0x139d   :  { %9868 = vmatmul.mubr.msk.bf16.vlgmr.msra.gmra.mrb[176].mxu1 %vm668_vm1, %v8868_v42  ;;  %9874 = vmatmul.mubr.msk.bf16.vlgmr.msra.gmra.mrb[188].mxu0 %vm668_vm1, %v8869_v58 }
0x139e   :  { %9878 = vmatpush3.bf16.xpose.msra.mxu1 %v6546_v61  ;;  %9884 = vmatpush3.bf16.xpose.msra.mxu0 %v6592_v52 }
0x139f   :  { %9879 = vmatprep.mubr.msk.bf16.mxu1 %vm10903_vm0, %v10902_v31  ;;  %9885 = vmatprep.mubr.msk.bf16.mxu0 %vm10903_vm0, %v10902_v31 }
0x13a0   :  { %9889 = vmatprep.subr.bf16.mxu1 %v10902_v31  ;;  %9895 = vmatprep.subr.bf16.mxu0 %v10902_v31 }
0x13a5   :  { %9880 = vmatmul.mubr.msk.bf16.vlgmr.msra.gmra.mrb[180].mxu1 %vm668_vm1, %v8870_v8  ;;  %9886 = vmatmul.mubr.msk.bf16.vlgmr.msra.gmra.mrb[192].mxu0 %vm668_vm1, %v8871_v56 }
0x13a6   :  { %9890 = vmatpush3.bf16.xpose.msra.mxu1 %v6638_v28  ;;  %9896 = vmatpush3.bf16.xpose.msra.mxu0 %v6684_v3 }
0x13a7   :  { %9891 = vmatprep.mubr.msk.bf16.mxu1 %vm10903_vm0, %v10902_v31  ;;  %9897 = vmatprep.mubr.msk.bf16.mxu0 %vm10903_vm0, %v10902_v31 }
0x13a8   :  { %9901 = vmatprep.subr.bf16.mxu1 %v10902_v31  ;;  %9907 = vmatprep.subr.bf16.mxu0 %v10902_v31 }
0x13ad   :  { %9892 = vmatmul.mubr.msk.bf16.vlgmr.msra.gmra.mrb[184].mxu1 %vm668_vm1, %v8872_v39  ;;  %9898 = vmatmul.mubr.msk.bf16.vlgmr.msra.gmra.mrb[196].mxu0 %vm668_vm1, %v8873_v6 }
0x13ae   :  { %9902 = vmatpush3.bf16.msra.mxu1 %v7130_v27  ;;  %9908 = vmatpush3.bf16.msra.mxu0 %v7176_v30 }
0x13af   :  { %9903 = vmatprep.mubr.msk.bf16.mxu1 %vm10903_vm0, %v10902_v31  ;;  %9913 = vmatprep.subr.bf16.mxu1 %v10902_v31 }
0x13b0   :  { %9909 = vmatprep.mubr.msk.bf16.mxu0 %vm10903_vm0, %v10902_v31  ;;  %9919 = vmatprep.subr.bf16.mxu0 %v10902_v31 }
0x13e1   :  { %v6030_v1 = vpop.f32.mrb[148].mxu1 }
0x13e2   :  { %v6031_v50 = vadd.f32 %v6030_v1, %v12384_v38  ;;  %v9809_v9 = vpop.f32.mrb[149].mxu1 }
0x13e3   :  { %v6033_v57 = vpop.f32.mrb[150].mxu1 }
0x13e4   :  { %v6726_v45 = vsel %vm1405_vm3, %v6031_v50, -inf  ;;  %v9810_v48 = vpop.f32.mrb[151].mxu1 }
0x13e5   :  { %v6727_v15 = vrot.slane %v6726_v45, 4 }
0x13e7   :  { %v6728_v20 = vmax.f32 %v6726_v45, %v6727_v15 }
0x13e9   :  { %v6729_v49 = vrot.slane %v6728_v20, 2  ;;  %v6076_v18 = vpop.f32.mrb[152].mxu1 }
0x13ea   :  { %v6077_v40 = vadd.f32 %v6076_v18, %v12384_v38  ;;  %v9815_v46 = vpop.f32.mrb[153].mxu1 }
0x13eb   :  { %v6730_v32 = vmax.f32 %v6728_v20, %v6729_v49  ;;  %v6079_v60 = vpop.f32.mrb[154].mxu1 }
0x13ec   :  { %v6733_v41 = vsel %vm1405_vm3, %v6077_v40, -inf  ;;  %v9816_v54 = vpop.f32.mrb[155].mxu1 }
0x13ed   :  { %v6731_v44 = vrot.slane %v6730_v32, 1  ;;  %v6734_v19 = vrot.slane %v6733_v41, 4 }
0x13ef   :  { %v6732_v23 = vmax.f32 %v6730_v32, %v6731_v44  ;;  %v6735_v43 = vmax.f32 %v6733_v41, %v6734_v19 }
0x13f1   :  { %v6838_v21 = vsub.f32 %v6031_v50, %v6732_v23  ;;  %v6736_v13 = vrot.slane %v6735_v43, 2  ;;  %v6122_v4 = vpop.f32.mrb[156].mxu1 }
0x13f2   :  { %v6123_v2 = vadd.f32 %v6122_v4, %v12384_v38  ;;  %v9821_v62 = vpop.f32.mrb[157].mxu1 }
0x13f3   :  { %v6854_v47 = vmul.f32 1.442695, %v6838_v21  ;;  %v6737_v59 = vmax.f32 %v6735_v43, %v6736_v13  ;;  %v6125_v11 = vpop.f32.mrb[158].mxu1 }
0x13f4   :  { %v6740_v29 = vsel %vm1405_vm3, %v6123_v2, -inf  ;;  %v9822_v14 = vpop.f32.mrb[159].mxu1 }
0x13f5   :  { %10449 = vpow2.f32 %v6854_v47  ;;  %v6738_v33 = vrot.slane %v6737_v59, 1  ;;  %v6741_v37 = vrot.slane %v6740_v29, 4 }
0x13f7   :  { %v6739_v42 = vmax.f32 %v6737_v59, %v6738_v33  ;;  %v6742_v58 = vmax.f32 %v6740_v29, %v6741_v37 }
0x13f9   :  { %v6839_v61 = vsub.f32 %v6077_v40, %v6739_v42  ;;  %v6743_v52 = vrot.slane %v6742_v58, 2  ;;  %v6168_v25 = vpop.f32.mrb[160].mxu1 }
0x13fa   :  { %v6169_v7 = vadd.f32 %v6168_v25, %v12384_v38  ;;  %v9827_v10 = vpop.f32.mrb[161].mxu1 }
0x13fb   :  { %v6856_v24 = vmul.f32 1.442695, %v6839_v61  ;;  %v6744_v8 = vmax.f32 %v6742_v58, %v6743_v52  ;;  %v6171_v56 = vpop.f32.mrb[162].mxu1 }
0x13fc   :  { %v6747_v28 = vsel %vm1405_vm3, %v6169_v7, -inf  ;;  %v9828_v3 = vpop.f32.mrb[163].mxu1 }
0x13fd   :  { %10451 = vpow2.f32 %v6856_v24  ;;  %v6745_v17 = vrot.slane %v6744_v8, 1  ;;  %v6748_v12 = vrot.slane %v6747_v28, 4 }
0x13ff   :  { %v10450_v55 = vpop.eup %10449  ;;  %v6746_v39 = vmax.f32 %v6744_v8, %v6745_v17  ;;  %v6749_v6 = vmax.f32 %v6747_v28, %v6748_v12 }
0x1400   :  { %v6886_v27 = vsel %vm1405_vm3, %v10450_v55, 0.0 }
0x1401   :  { %v6887_v30 = vrot.slane %v6886_v27, 4  ;;  %v6840_v1 = vsub.f32 %v6123_v2, %v6746_v39  ;;  %v6750_v50 = vrot.slane %v6749_v6, 2 }
0x1403   :  { %v6888_v9 = vadd.f32 %v6887_v30, %v6886_v27  ;;  %v6858_v57 = vmul.f32 1.442695, %v6840_v1  ;;  %v6751_v45 = vmax.f32 %v6749_v6, %v6750_v50 }
0x1405   :  { %v6889_v48 = vrot.slane %v6888_v9, 2  ;;  %10453 = vpow2.f32 %v6858_v57  ;;  %v6752_v15 = vrot.slane %v6751_v45, 1 }
0x1407   :  { %v10452_v20 = vpop.eup %10451  ;;  %v6753_v49 = vmax.f32 %v6751_v45, %v6752_v15  ;;  %v6890_v18 = vadd.f32 %v6889_v48, %v6888_v9 }
0x1408   :  { %v6893_v40 = vsel %vm1405_vm3, %v10452_v20, 0.0 }
0x1409   :  { %v6894_v46 = vrot.slane %v6893_v40, 4  ;;  %v6841_v32 = vsub.f32 %v6169_v7, %v6753_v49  ;;  %v6891_v60 = vrot.slane %v6890_v18, 1 }
0x140b   :  { %v6895_v41 = vadd.f32 %v6894_v46, %v6893_v40  ;;  %v6860_v54 = vmul.f32 1.442695, %v6841_v32  ;;  %v6892_v44 = vadd.f32 %v6891_v60, %v6890_v18 }
0x140d   :  { %v6896_v19 = vrot.slane %v6895_v41, 2  ;;  %10455 = vpow2.f32 %v6860_v54 }
0x140e   :  { %10457 = vrcp.f32 %v6892_v44 }
0x140f   :  { %v10454_v23 = vpop.eup %10453  ;;  %v6897_v43 = vadd.f32 %v6896_v19, %v6895_v41 }
0x1410   :  { %v6900_v21 = vsel %vm1405_vm3, %v10454_v23, 0.0 }
0x1411   :  { %v6901_v13 = vrot.slane %v6900_v21, 4  ;;  %v6898_v4 = vrot.slane %v6897_v43, 1 }
0x1413   :  { %v6902_v2 = vadd.f32 %v6901_v13, %v6900_v21  ;;  %v6899_v62 = vadd.f32 %v6898_v4, %v6897_v43 }
0x1415   :  { %v6903_v47 = vrot.slane %v6902_v2, 2  ;;  %10459 = vrcp.f32 %v6899_v62 }
0x1417   :  { %v10456_v59 = vpop.eup %10455  ;;  %v6904_v11 = vadd.f32 %v6903_v47, %v6902_v2 }
0x1418   :  { %v10458_v29 = vpop.eup %10457  ;;  %v6907_v14 = vsel %vm1405_vm3, %v10456_v59, 0.0 }
0x1419   :  { %v6908_v33 = vrot.slane %v6907_v14, 4  ;;  %v12398_v37 = vmul.f32 %v10458_v29, %v10450_v55  ;;  %v6905_v42 = vrot.slane %v6904_v11, 1 }
0x141b   :  { %v6909_v58 = vadd.f32 %v6908_v33, %v6907_v14  ;;  %v7030_v61 = vsel %vm1405_vm3, %v12398_v37, 0.0  ;;  %v6906_v52 = vadd.f32 %v6905_v42, %v6904_v11 }
0x141c   :  { %7031 = vadd.xlane.f32.xlu0 %v7030_v61 }
0x141d   :  { %v6910_v25 = vrot.slane %v6909_v58, 2  ;;  %10461 = vrcp.f32 %v6906_v52 }
0x141f   :  { %v10460_v7 = vpop.eup %10459  ;;  %v6911_v10 = vadd.f32 %v6910_v25, %v6909_v58 }
0x1420   :  { %v12402_v24 = vmul.f32 %v10460_v7, %v10452_v20 }
0x1421   :  { %v6912_v8 = vrot.slane %v6911_v10, 1 }
0x1422   :  { %v7033_v56 = vsel %vm1405_vm3, %v12402_v24, 0.0 }
0x1423   :  { %7034 = vadd.xlane.f32.xlu1 %v7033_v56  ;;  %v6913_v28 = vadd.f32 %v6912_v8, %v6911_v10 }
0x1425   :  { %10463 = vrcp.f32 %v6913_v28 }
0x1427   :  { %v10462_v3 = vpop.eup %10461 }
0x1428   :  { %v12406_v17 = vmul.f32 %v10462_v3, %v10454_v23 }
0x142a   :  { %v7036_v12 = vsel %vm1405_vm3, %v12406_v17, 0.0 }
0x142b   :  { %7037 = vadd.xlane.f32.xlu0 %v7036_v12 }
0x142f   :  { %v10464_v55 = vpop.eup %10463 }
0x1430   :  { %v12410_v39 = vmul.f32 %v10464_v55, %v10456_v59 }
0x1432   :  { %v7039_v6 = vsel %vm1405_vm3, %v12410_v39, 0.0 }
0x1433   :  { %7040 = vadd.xlane.f32.xlu0 %v7039_v6 }
0x1458   :  { %v6214_v27 = vpop.f32.mrb[164].mxu1  ;;  %v6260_v30 = vpop.f32.mrb[176].mxu0 }
0x1459   :  { %v6215_v1 = vadd.f32 %v6214_v27, %v12384_v38  ;;  %v6261_v50 = vadd.f32 %v6260_v30, %v12384_v38  ;;  %v9833_v9 = vpop.f32.mrb[165].mxu1  ;;  %v9839_v57 = vpop.f32.mrb[177].mxu0 }
0x145a   :  { %v6217_v45 = vpop.f32.mrb[166].mxu1  ;;  %v6263_v48 = vpop.f32.mrb[178].mxu0 }
0x145b   :  { %v6754_v15 = vsel %vm1405_vm3, %v6215_v1, -inf  ;;  %v6761_v20 = vsel %vm1405_vm3, %v6261_v50, -inf  ;;  %v9834_v49 = vpop.f32.mrb[167].mxu1  ;;  %v9840_v18 = vpop.f32.mrb[179].mxu0 }
0x145c   :  { %v6755_v40 = vrot.slane %v6754_v15, 4  ;;  %v6762_v46 = vrot.slane %v6761_v20, 4 }
0x145e   :  { %v6756_v32 = vmax.f32 %v6754_v15, %v6755_v40  ;;  %v6763_v60 = vmax.f32 %v6761_v20, %v6762_v46 }
0x1460   :  { %v6757_v41 = vrot.slane %v6756_v32, 2  ;;  %v6764_v54 = vrot.slane %v6763_v60, 2  ;;  %v6306_v44 = vpop.f32.mrb[168].mxu1  ;;  %v6352_v19 = vpop.f32.mrb[180].mxu0 }
0x1461   :  { %v6307_v23 = vadd.f32 %v6306_v44, %v12384_v38  ;;  %v6353_v43 = vadd.f32 %v6352_v19, %v12384_v38  ;;  %v9845_v21 = vpop.f32.mrb[169].mxu1  ;;  %v9851_v13 = vpop.f32.mrb[181].mxu0 }
0x1462   :  { %v6758_v4 = vmax.f32 %v6756_v32, %v6757_v41  ;;  %v6765_v2 = vmax.f32 %v6763_v60, %v6764_v54  ;;  %v6309_v62 = vpop.f32.mrb[170].mxu1  ;;  %v6355_v47 = vpop.f32.mrb[182].mxu0 }
0x1463   :  { %v6768_v59 = vsel %vm1405_vm3, %v6307_v23, -inf  ;;  %v6775_v11 = vsel %vm1405_vm3, %v6353_v43, -inf  ;;  %v9846_v29 = vpop.f32.mrb[171].mxu1  ;;  %v9852_v14 = vpop.f32.mrb[183].mxu0 }
0x1464   :  { %v6759_v33 = vrot.slane %v6758_v4, 1  ;;  %v6766_v42 = vrot.slane %v6765_v2, 1  ;;  %v6769_v58 = vrot.slane %v6768_v59, 4  ;;  %v6776_v61 = vrot.slane %v6775_v11, 4 }
0x1466   :  { %v6760_v52 = vmax.f32 %v6758_v4, %v6759_v33  ;;  %v6767_v25 = vmax.f32 %v6765_v2, %v6766_v42  ;;  %v6770_v7 = vmax.f32 %v6768_v59, %v6769_v58  ;;  %v6777_v10 = vmax.f32 %v6775_v11, %v6776_v61 }
0x1468   :  { %v6842_v8 = vsub.f32 %v6215_v1, %v6760_v52  ;;  %v6843_v56 = vsub.f32 %v6261_v50, %v6767_v25  ;;  %v6771_v28 = vrot.slane %v6770_v7, 2  ;;  %v6778_v3 = vrot.slane %v6777_v10, 2  ;;  %v6398_v12 = vpop.f32.mrb[172].mxu1  ;;  %v6444_v55 = vpop.f32.mrb[184].mxu0 }
0x1469   :  { %v12423_v6 = vadd.f32 %v6398_v12, %v12384_v38  ;;  %v12426_v27 = vadd.f32 %v6444_v55, %v12384_v38  ;;  %v9857_v30 = vpop.f32.mrb[173].mxu1  ;;  %v9863_v9 = vpop.f32.mrb[185].mxu0 }
0x146a   :  { %v6862_v57 = vmul.f32 1.442695, %v6842_v8  ;;  %v6864_v45 = vmul.f32 1.442695, %v6843_v56  ;;  %v6772_v48 = vmax.f32 %v6770_v7, %v6771_v28  ;;  %v6779_v15 = vmax.f32 %v6777_v10, %v6778_v3  ;;  %v6401_v20 = vpop.f32.mrb[174].mxu1  ;;  %v6447_v49 = vpop.f32.mrb[186].mxu0 }
0x146b   :  { %v6782_v1 = vsel %vm1405_vm3, %v12423_v6, -inf  ;;  %v6789_v50 = vsel %vm1405_vm3, %v12426_v27, -inf  ;;  %v9858_v18 = vpop.f32.mrb[175].mxu1  ;;  %v9864_v40 = vpop.f32.mrb[187].mxu0 }
0x146c   :  { %10465 = vpow2.f32 %v6862_v57  ;;  %v6773_v46 = vrot.slane %v6772_v48, 1  ;;  %v6780_v32 = vrot.slane %v6779_v15, 1  ;;  %v6783_v60 = vrot.slane %v6782_v1, 4 }
0x146d   :  { %10467 = vpow2.f32 %v6864_v45  ;;  %v6790_v41 = vrot.slane %v6789_v50, 4 }
0x146e   :  { %v6774_v54 = vmax.f32 %v6772_v48, %v6773_v46  ;;  %v6781_v44 = vmax.f32 %v6779_v15, %v6780_v32  ;;  %v6784_v19 = vmax.f32 %v6782_v1, %v6783_v60 }
0x146f   :  { %v6791_v21 = vmax.f32 %v6789_v50, %v6790_v41 }
0x1470   :  { %v6844_v13 = vsub.f32 %v6307_v23, %v6774_v54  ;;  %v6845_v4 = vsub.f32 %v6353_v43, %v6781_v44  ;;  %v6785_v2 = vrot.slane %v6784_v19, 2  ;;  %v6490_v62 = vpop.f32.mrb[176].mxu1  ;;  %v6536_v47 = vpop.f32.mrb[188].mxu0 }
0x1471   :  { %v6792_v59 = vrot.slane %v6791_v21, 2  ;;  %v12433_v11 = vadd.f32 %v6490_v62, %v12384_v38  ;;  %v12436_v29 = vadd.f32 %v6536_v47, %v12384_v38  ;;  %v9869_v14 = vpop.f32.mrb[177].mxu1  ;;  %v9875_v33 = vpop.f32.mrb[189].mxu0 }
0x1472   :  { %v6866_v42 = vmul.f32 1.442695, %v6844_v13  ;;  %v6868_v58 = vmul.f32 1.442695, %v6845_v4  ;;  %v6786_v61 = vmax.f32 %v6784_v19, %v6785_v2  ;;  %v6493_v52 = vpop.f32.mrb[178].mxu1  ;;  %v6539_v25 = vpop.f32.mrb[190].mxu0 }
0x1473   :  { %v6793_v7 = vmax.f32 %v6791_v21, %v6792_v59  ;;  %v6796_v23 = vsel %vm1405_vm3, %v12433_v11, -inf  ;;  %v6803_v43 = vsel %vm1405_vm3, %v12436_v29, -inf  ;;  %v9870_v10 = vpop.f32.mrb[179].mxu1  ;;  %v9876_v8 = vpop.f32.mrb[191].mxu0 }
0x1474   :  { %10469 = vpow2.f32 %v6866_v42  ;;  %v6787_v56 = vrot.slane %v6786_v61, 1  ;;  %v6797_v28 = vrot.slane %v6796_v23, 4  ;;  %v6804_v3 = vrot.slane %v6803_v43, 4 }
0x1475   :  { %10471 = vpow2.f32 %v6868_v58  ;;  %v6794_v12 = vrot.slane %v6793_v7, 1 }
0x1476   :  { %v12442_v55 = vpop.eup %10465  ;;  %v6788_v30 = vmax.f32 %v6786_v61, %v6787_v56  ;;  %v6798_v9 = vmax.f32 %v6796_v23, %v6797_v28  ;;  %v6805_v57 = vmax.f32 %v6803_v43, %v6804_v3 }
0x1477   :  { %v12444_v45 = vpop.eup %10467  ;;  %v6914_v48 = vsel %vm1405_vm3, %v12442_v55, 0.0  ;;  %v6795_v15 = vmax.f32 %v6793_v7, %v6794_v12 }
0x1478   :  { %v6915_v20 = vrot.slane %v6914_v48, 4  ;;  %v6921_v49 = vsel %vm1405_vm3, %v12444_v45, 0.0  ;;  %v6846_v1 = vsub.f32 %v12423_v6, %v6788_v30  ;;  %v6799_v50 = vrot.slane %v6798_v9, 2  ;;  %v6582_v18 = vpop.f32.mrb[180].mxu1  ;;  %v6628_v40 = vpop.f32.mrb[192].mxu0 }
0x1479   :  { %v6922_v46 = vrot.slane %v6921_v49, 4  ;;  %v6847_v32 = vsub.f32 %v12426_v27, %v6795_v15  ;;  %v6806_v60 = vrot.slane %v6805_v57, 2  ;;  %v12453_v41 = vadd.f32 %v6582_v18, %v12384_v38  ;;  %v9881_v54 = vpop.f32.mrb[181].mxu1  ;;  %v9887_v44 = vpop.f32.mrb[193].mxu0 }
0x147a   :  { %v6916_v19 = vadd.f32 %v6915_v20, %v6914_v48  ;;  %v6870_v21 = vmul.f32 1.442695, %v6846_v1  ;;  %v6800_v13 = vmax.f32 %v6798_v9, %v6799_v50  ;;  %v12456_v4 = vadd.f32 %v6628_v40, %v12384_v38  ;;  %v6585_v2 = vpop.f32.mrb[182].mxu1  ;;  %v6631_v6 = vpop.f32.mrb[194].mxu0 }
0x147b   :  { %v6923_v62 = vadd.f32 %v6922_v46, %v6921_v49  ;;  %v6872_v47 = vmul.f32 1.442695, %v6847_v32  ;;  %v6807_v59 = vmax.f32 %v6805_v57, %v6806_v60  ;;  %v6810_v27 = vsel %vm1405_vm3, %v12453_v41, -inf  ;;  %v9882_v14 = vpop.f32.mrb[183].mxu1  ;;  %v9888_v33 = vpop.f32.mrb[195].mxu0 }
0x147c   :  { %v6917_v42 = vrot.slane %v6916_v19, 2  ;;  %10473 = vpow2.f32 %v6870_v21  ;;  %v6801_v58 = vrot.slane %v6800_v13, 1  ;;  %v6811_v61 = vrot.slane %v6810_v27, 4 }
0x147d   :  { %10475 = vpow2.f32 %v6872_v47  ;;  %v6808_v52 = vrot.slane %v6807_v59, 1  ;;  %v6817_v25 = vsel %vm1405_vm3, %v12456_v4, -inf  ;;  %v6924_v23 = vrot.slane %v6923_v62, 2 }
0x147e   :  { %v12462_v7 = vpop.eup %10469  ;;  %v6802_v43 = vmax.f32 %v6800_v13, %v6801_v58  ;;  %v6818_v10 = vrot.slane %v6817_v25, 4  ;;  %v6812_v30 = vmax.f32 %v6810_v27, %v6811_v61  ;;  %v6918_v48 = vadd.f32 %v6917_v42, %v6916_v19 }
0x147f   :  { %v12464_v8 = vpop.eup %10471  ;;  %v6928_v56 = vsel %vm1405_vm3, %v12462_v7, 0.0  ;;  %v6809_v28 = vmax.f32 %v6807_v59, %v6808_v52  ;;  %v6925_v54 = vadd.f32 %v6924_v23, %v6923_v62 }
0x1480   :  { %v6935_v3 = vsel %vm1405_vm3, %v12464_v8, 0.0  ;;  %v6848_v12 = vsub.f32 %v12433_v11, %v6802_v43  ;;  %v6674_v9 = vpop.f32.mrb[184].mxu1  ;;  %v6720_v57 = vpop.f32.mrb[196].mxu0  ;;  %v6819_v49 = vmax.f32 %v6817_v25, %v6818_v10  ;;  %v6929_v40 = vrot.slane %v6928_v56, 4 }
0x1481   :  { %v6936_v15 = vrot.slane %v6935_v3, 4  ;;  %v6849_v20 = vsub.f32 %v12436_v29, %v6809_v28  ;;  %v12473_v1 = vadd.f32 %v6674_v9, %v12384_v38  ;;  %v9893_v50 = vpop.f32.mrb[185].mxu1  ;;  %v9899_v18 = vpop.f32.mrb[197].mxu0  ;;  %v12476_v32 = vadd.f32 %v6720_v57, %v12384_v38 }
0x1482   :  { %v6874_v46 = vmul.f32 1.442695, %v6848_v12  ;;  %v6677_v60 = vpop.f32.mrb[186].mxu1  ;;  %v6723_v11 = vpop.f32.mrb[198].mxu0  ;;  %v6820_v19 = vrot.slane %v6819_v49, 2  ;;  %v6930_v14 = vadd.f32 %v6929_v40, %v6928_v56  ;;  %v6926_v42 = vrot.slane %v6925_v54, 1 }
0x1483   :  { %v6937_v44 = vadd.f32 %v6936_v15, %v6935_v3  ;;  %v6876_v21 = vmul.f32 1.442695, %v6849_v20  ;;  %v6824_v29 = vsel %vm1405_vm3, %v12473_v1, -inf  ;;  %v9894_v13 = vpop.f32.mrb[187].mxu1  ;;  %v9900_v2 = vpop.f32.mrb[199].mxu0  ;;  %v6831_v38 = vsel %vm1405_vm3, %v12476_v32, -inf }
0x1484   :  { %10477 = vpow2.f32 %v6874_v46  ;;  %v6825_v6 = vrot.slane %v6824_v29, 4  ;;  %v6821_v59 = vmax.f32 %v6819_v49, %v6820_v19  ;;  %v6832_v33 = vrot.slane %v6831_v38, 4 }
0x1485   :  { %v6938_v47 = vrot.slane %v6937_v44, 2  ;;  %10479 = vpow2.f32 %v6876_v21  ;;  %v6813_v52 = vrot.slane %v6812_v30, 2  ;;  %v6919_v23 = vrot.slane %v6918_v48, 1 }
0x1486   :  { %v12482_v27 = vpop.eup %10473  ;;  %v6826_v62 = vmax.f32 %v6824_v29, %v6825_v6  ;;  %v6822_v25 = vrot.slane %v6821_v59, 1  ;;  %v6833_v56 = vmax.f32 %v6831_v38, %v6832_v33  ;;  %v6927_v57 = vadd.f32 %v6926_v42, %v6925_v54 }
0x1487   :  { %v12484_v58 = vpop.eup %10475  ;;  %v6942_v61 = vsel %vm1405_vm3, %v12482_v27, 0.0  ;;  %v6939_v3 = vadd.f32 %v6938_v47, %v6937_v44  ;;  %v6931_v15 = vrot.slane %v6930_v14, 2  ;;  %v6920_v50 = vadd.f32 %v6919_v23, %v6918_v48 }
0x1488   :  { %v6943_v43 = vrot.slane %v6942_v61, 4  ;;  %v6949_v10 = vsel %vm1405_vm3, %v12484_v58, 0.0  ;;  %v6827_v28 = vrot.slane %v6826_v62, 2  ;;  %v6823_v9 = vmax.f32 %v6821_v59, %v6822_v25 }
0x1489   :  { %v6950_v12 = vrot.slane %v6949_v10, 4  ;;  %v6834_v46 = vrot.slane %v6833_v56, 2  ;;  %10481 = vrcp.f32 %v6927_v57  ;;  %v6814_v11 = vmax.f32 %v6812_v30, %v6813_v52 }
0x148a   :  { %v6944_v20 = vadd.f32 %v6943_v43, %v6942_v61  ;;  %v6828_v49 = vmax.f32 %v6826_v62, %v6827_v28  ;;  %v6851_v40 = vsub.f32 %v12456_v4, %v6823_v9  ;;  %v6940_v19 = vrot.slane %v6939_v3, 1 }
0x148b   :  { %v6951_v18 = vadd.f32 %v6950_v12, %v6949_v10  ;;  %v6835_v44 = vmax.f32 %v6833_v56, %v6834_v46  ;;  %10483 = vrcp.f32 %v6920_v50  ;;  %v6932_v47 = vadd.f32 %v6931_v15, %v6930_v14 }
0x148c   :  { %v6945_v60 = vrot.slane %v6944_v20, 2  ;;  %v6829_v21 = vrot.slane %v6828_v49, 1  ;;  %v6880_v13 = vmul.f32 1.442695, %v6851_v40  ;;  %v6941_v6 = vadd.f32 %v6940_v19, %v6939_v3 }
0x148d   :  { %v6952_v29 = vrot.slane %v6951_v18, 2  ;;  %v6836_v38 = vrot.slane %v6835_v44, 1  ;;  %v6933_v25 = vrot.slane %v6932_v47, 1  ;;  %v6815_v43 = vrot.slane %v6814_v11, 1 }
0x148e   :  { %v12491_v2 = vpop.eup %10477  ;;  %v6830_v54 = vmax.f32 %v6828_v49, %v6829_v21  ;;  %v6946_v59 = vadd.f32 %v6945_v60, %v6944_v20  ;;  %10485 = vpow2.f32 %v6880_v13 }
0x148f   :  { %v12493_v48 = vpop.eup %10479  ;;  %v6956_v4 = vsel %vm1405_vm3, %v12491_v2, 0.0  ;;  %v6953_v30 = vadd.f32 %v6952_v29, %v6951_v18  ;;  %10487 = vrcp.f32 %v6941_v6  ;;  %v6837_v52 = vmax.f32 %v6835_v44, %v6836_v38 }
0x1490   :  { %v6957_v62 = vrot.slane %v6956_v4, 4  ;;  %v6963_v33 = vsel %vm1405_vm3, %v12493_v48, 0.0  ;;  %v6852_v42 = vsub.f32 %v12473_v1, %v6830_v54  ;;  %v6947_v28 = vrot.slane %v6946_v59, 1 }
0x1491   :  { %v6964_v61 = vrot.slane %v6963_v33, 4  ;;  %v6954_v14 = vrot.slane %v6953_v30, 1  ;;  %v6853_v12 = vsub.f32 %v12476_v32, %v6837_v52  ;;  %v6934_v9 = vadd.f32 %v6933_v25, %v6932_v47 }
0x1492   :  { %v6958_v23 = vadd.f32 %v6957_v62, %v6956_v4  ;;  %v6882_v10 = vmul.f32 1.442695, %v6852_v42  ;;  %v6948_v15 = vadd.f32 %v6947_v28, %v6946_v59  ;;  %v6816_v50 = vmax.f32 %v6814_v11, %v6815_v43 }
0x1493   :  { %v6965_v3 = vadd.f32 %v6964_v61, %v6963_v33  ;;  %v6955_v56 = vadd.f32 %v6954_v14, %v6953_v30  ;;  %v10482_v20 = vpop.eup %10481  ;;  %v6884_v1 = vmul.f32 1.442695, %v6853_v12 }
0x1494   :  { %v6959_v57 = vrot.slane %v6958_v23, 2  ;;  %10489 = vpow2.f32 %v6882_v10  ;;  %v12502_v18 = vmul.f32 %v10482_v20, %v12444_v45  ;;  %v6850_v45 = vsub.f32 %v12453_v41, %v6816_v50 }
0x1495   :  { %v6966_v49 = vrot.slane %v6965_v3, 2  ;;  %10491 = vrcp.f32 %v6934_v9  ;;  %v10484_v46 = vpop.eup %10483 }
0x1496   :  { %10493 = vrcp.f32 %v6955_v56  ;;  %v6960_v40 = vadd.f32 %v6959_v57, %v6958_v23  ;;  %v7045_v32 = vsel %vm1405_vm3, %v12502_v18, 0.0  ;;  %v12507_v21 = vmul.f32 %v10484_v46, %v12442_v55  ;;  %v12542_v57 = vpop.permute.xlu0 %5948 }
0x1497   :  { %10495 = vpow2.f32 %v6884_v1  ;;  %v6967_v60 = vadd.f32 %v6966_v49, %v6965_v3  ;;  %7046 = vadd.xlane.f32.xlu0 %v7045_v32  ;;  %v6878_v41 = vmul.f32 1.442695, %v6850_v45  ;;  %v12546_v1 = vpop.permute.xlu1 %5946 }
0x1498   :  { %10497 = vrcp.f32 %v6948_v15  ;;  %v12509_v19 = vpop.eup %10485  ;;  %v6961_v29 = vrot.slane %v6960_v40, 1  ;;  %v7042_v54 = vsel %vm1405_vm3, %v12507_v21, 0.0 }
0x1499   :  { %v6968_v11 = vrot.slane %v6967_v60, 1  ;;  %v10488_v13 = vpop.eup %10487  ;;  %v6977_v44 = vsel %vm1405_vm3, %v12509_v19, 0.0  ;;  %7043 = vadd.xlane.f32.xlu1 %v7042_v54 }
0x149a   :  { %v6978_v6 = vrot.slane %v6977_v44, 4  ;;  %v12517_v55 = vmul.f32 %v10488_v13, %v12464_v8  ;;  %v6962_v47 = vadd.f32 %v6961_v29, %v6960_v40 }
0x149b   :  { %v6969_v59 = vadd.f32 %v6968_v11, %v6967_v60 }
0x149c   :  { %v6979_v4 = vadd.f32 %v6978_v6, %v6977_v44  ;;  %v7051_v38 = vsel %vm1405_vm3, %v12517_v55, 0.0  ;;  %10499 = vrcp.f32 %v6962_v47  ;;  %v12558_v47 = vpop.permute.xlu1 %5950 }
0x149d   :  { %7052 = vadd.xlane.f32.xlu0 %v7051_v38  ;;  %10501 = vrcp.f32 %v6969_v59 }
0x149e   :  { %v12521_v30 = vpop.eup %10489  ;;  %v6980_v33 = vrot.slane %v6979_v4, 2  ;;  %10503 = vpow2.f32 %v6878_v41 }
0x149f   :  { %v10492_v62 = vpop.eup %10491  ;;  %v6984_v42 = vsel %vm1405_vm3, %v12521_v30, 0.0 }
0x14a0   :  { %v10494_v61 = vpop.eup %10493  ;;  %v6985_v8 = vrot.slane %v6984_v42, 4  ;;  %v12526_v52 = vmul.f32 %v10492_v62, %v12462_v7  ;;  %v6981_v23 = vadd.f32 %v6980_v33, %v6979_v4 }
0x14a1   :  { %v12528_v25 = vpop.eup %10495  ;;  %v12531_v14 = vmul.f32 %v10494_v61, %v12484_v58  ;;  %v9011_v61 = vpack.c.bf16 %v12273_v51, %v12273_v51 }
0x14a2   :  { %v10498_v43 = vpop.eup %10497  ;;  %v6986_v10 = vadd.f32 %v6985_v8, %v6984_v42  ;;  %v6991_v28 = vsel %vm1405_vm3, %v12528_v25, 0.0  ;;  %v7048_v3 = vsel %vm1405_vm3, %v12526_v52, 0.0  ;;  %v6982_v58 = vrot.slane %v6981_v23, 1 }
0x14a3   :  { %v6992_v12 = vrot.slane %v6991_v28, 4  ;;  %7049 = vadd.xlane.f32.xlu1 %v7048_v3  ;;  %v7057_v7 = vsel %vm1405_vm3, %v12531_v14, 0.0  ;;  %v12540_v9 = vmul.f32 %v10498_v43, %v12482_v27 }
0x14a4   :  { %v6987_v56 = vrot.slane %v6986_v10, 2  ;;  %7058 = vadd.xlane.f32.xlu0 %v7057_v7  ;;  %v6983_v49 = vadd.f32 %v6982_v58, %v6981_v23  ;;  %v9012_v58 = vpack.c.bf16 %v12275_v26, %v12275_v26 }
0x14a5   :  { %v6993_v15 = vadd.f32 %v6992_v12, %v6991_v28  ;;  %v7054_v20 = vsel %vm1405_vm3, %v12540_v9, 0.0  ;;  %v7222_v12 = vsel %vm1601_vm2, %v9011_v61, 0 }
0x14a6   :  { %v6988_v50 = vadd.f32 %v6987_v56, %v6986_v10  ;;  %v10500_v40 = vpop.eup %10499  ;;  %10505 = vrcp.f32 %v6983_v49 }
0x14a7   :  { %v6994_v46 = vrot.slane %v6993_v15, 2  ;;  %7055 = vadd.xlane.f32.xlu1 %v7054_v20  ;;  %v10502_v60 = vpop.eup %10501  ;;  %v12549_v27 = vmul.f32 %v10500_v40, %v12491_v2  ;;  %v8894_v40 = vcombine.low %v12546_v1, %v12546_v1 }
0x14a8   :  { %v6989_v32 = vrot.slane %v6988_v50, 1  ;;  %v12554_v45 = vmul.f32 %v10502_v60, %v12493_v48  ;;  %v12556_v6 = vpop.eup %10503 }
0x14a9   :  { %v7032_v29 = vpop.xlane.xlu0 %7031  ;;  %v6995_v11 = vadd.f32 %v6994_v46, %v6993_v15  ;;  %v7060_v13 = vsel %vm1405_vm3, %v12549_v27, 0.0  ;;  %v6970_v4 = vsel %vm1405_vm3, %v12556_v6, 0.0 }
0x14aa   :  { %10507 = vrcp.f32 %v7032_v29  ;;  %v6990_v44 = vadd.f32 %v6989_v32, %v6988_v50  ;;  %7061 = vadd.xlane.f32.xlu0 %v7060_v13  ;;  %v7063_v59 = vsel %vm1405_vm3, %v12554_v45, 0.0  ;;  %v6971_v41 = vrot.slane %v6970_v4, 4 }
0x14ab   :  { %v6996_v54 = vrot.slane %v6995_v11, 1  ;;  %v7314_v29 = vsel %vm1601_vm2, %v8894_v40, 0  ;;  %v8895_v13 = vcombine.high %v12546_v1, %v12546_v1 }
0x14ac   :  { %10509 = vrcp.f32 %v6990_v44  ;;  %v6972_v43 = vadd.f32 %v6971_v41, %v6970_v4 }
0x14ad   :  { %v6997_v2 = vadd.f32 %v6996_v54, %v6995_v11  ;;  %v7360_v54 = vsel %vm1601_vm2, %v8895_v13, 0 }
0x14ae   :  { %7064 = vadd.xlane.f32.xlu0 %v7063_v59 }
0x14af   :  { %10511 = vrcp.f32 %v6997_v2 }
0x14b0   :  { %v7035_v38 = vpop.xlane.xlu1 %7034  ;;  %v10506_v48 = vpop.eup %10505 }
0x14b1   :  { %10513 = vrcp.f32 %v7035_v38  ;;  %v12565_v62 = vmul.f32 %v10506_v48, %v12509_v19 }
0x14b3   :  { %v7069_v42 = vsel %vm1405_vm3, %v12565_v62, 0.0 }
0x14b4   :  { %v10508_v33 = vpop.eup %10507  ;;  %7070 = vadd.xlane.f32.xlu0 %v7069_v42 }
0x14b5   :  { %v7094_v8 = vmul.f32 %v10508_v33, %v12398_v37  ;;  %v6973_v37 = vrot.slane %v6972_v43, 2 }
0x14b6   :  { %v10510_v23 = vpop.eup %10509 }
0x14b7   :  { %v7110_v10 = vpack.c.bf16 %v7094_v8, %v7094_v8  ;;  %v12573_v28 = vmul.f32 %v10510_v23, %v12521_v30  ;;  %v6974_v49 = vadd.f32 %v6973_v37, %v6972_v43  ;;  %v8898_v37 = vcombine.low %v12558_v47, %v12558_v47 }
0x14b8   :  { %5952 = vrot.lane.b32.xlu1 %v12280_v22, %s12857_s20  ;;  %v7038_v19 = vpop.xlane.xlu0 %7037 }
0x14b9   :  { %v10512_v3 = vpop.eup %10511  ;;  %9904 = vmatmul.mubr.msk.bf16.vlgmr.msra.gmra.mrb[188].mxu1 %vm1405_vm3, %v7110_v10  ;;  %10515 = vrcp.f32 %v7038_v19  ;;  %v7072_v51 = vsel %vm1405_vm3, %v12573_v28, 0.0  ;;  %v6975_v26 = vrot.slane %v6974_v49, 1 }
0x14ba   :  { %9914 = vmatpush3.bf16.msra.mxu1 %v7222_v12  ;;  %7073 = vadd.xlane.f32.xlu0 %v7072_v51  ;;  %v12582_v7 = vmul.f32 %v10512_v3, %v12528_v25  ;;  %v7268_v25 = vsel %vm1601_vm2, %v9012_v58, 0 }
0x14bb   :  { %v10514_v30 = vpop.eup %10513  ;;  %9915 = vmatprep.mubr.msk.bf16.mxu1 %vm10903_vm0, %v10902_v31  ;;  %9925 = vmatprep.subr.bf16.mxu1 %v10902_v31  ;;  %v6976_v32 = vadd.f32 %v6975_v26, %v6974_v49 }
0x14bc   :  { %v7095_v56 = vmul.f32 %v10514_v30, %v12402_v24  ;;  %v7075_v15 = vsel %vm1405_vm3, %v12582_v7, 0.0 }
0x14be   :  { %7076 = vadd.xlane.f32.xlu0 %v7075_v15  ;;  %v7111_v20 = vpack.c.bf16 %v7095_v56, %v7095_v56 }
0x14c0   :  { %9910 = vmatmul.mubr.msk.bf16.vlgmr.msra.gmra.mrb[200].mxu0 %vm1405_vm3, %v7111_v20  ;;  %v7041_v50 = vpop.xlane.xlu0 %7040 }
0x14c1   :  { %9920 = vmatpush3.bf16.msra.mxu0 %v7268_v25  ;;  %10517 = vrcp.f32 %v7041_v50  ;;  %9921 = vmatprep.mubr.msk.bf16.mxu0 %vm10903_vm0, %v10902_v31 }
0x14c2   :  { %9931 = vmatprep.subr.bf16.mxu0 %v10902_v31  ;;  %10519 = vrcp.f32 %v6976_v32 }
0x14c3   :  { %v10516_v24 = vpop.eup %10515 }
0x14c4   :  { %v7096_v46 = vmul.f32 %v10516_v24, %v12406_v17 }
0x14c6   :  { %v7112_v60 = vpack.c.bf16 %v7096_v46, %v7096_v46 }
0x14c8   :  { %9916 = vmatmul.mubr.msk.bf16.vlgmr.msra.gmra.mrb[192].mxu1 %vm1405_vm3, %v7112_v60 }
0x14c9   :  { %9926 = vmatpush3.bf16.msra.mxu1 %v7314_v29  ;;  %9927 = vmatprep.mubr.msk.bf16.mxu1 %vm10903_vm0, %v10902_v31 }
0x14ca   :  { %9937 = vmatprep.subr.bf16.mxu1 %v10902_v31 }
0x14cb   :  { %v10518_v11 = vpop.eup %10517 }
0x14cc   :  { %v7097_v44 = vmul.f32 %v10518_v11, %v12410_v39  ;;  %v10520_v2 = vpop.eup %10519 }
0x14cd   :  { %v12616_v59 = vmul.f32 %v10520_v2, %v12556_v6  ;;  %v8897_v6 = vcombine.high %v12542_v57, %v12542_v57 }
0x14ce   :  { %v7113_v17 = vpack.c.bf16 %v7097_v44, %v7097_v44 }
0x14cf   :  { %v7066_v39 = vsel %vm1405_vm3, %v12616_v59, 0.0  ;;  %v7452_v19 = vsel %vm1601_vm2, %v8897_v6, 0 }
0x14d0   :  { %9922 = vmatmul.mubr.msk.bf16.vlgmr.msra.gmra.mrb[204].mxu0 %vm1405_vm3, %v7113_v17 }
0x14d1   :  { %9932 = vmatpush3.bf16.msra.mxu0 %v7360_v54  ;;  %9933 = vmatprep.mubr.msk.bf16.mxu0 %vm10903_vm0, %v10902_v31 }
0x14d2   :  { %9943 = vmatprep.subr.bf16.mxu0 %v10902_v31 }
0x14d4   :  { %5954 = vrot.lane.b32.xlu0 %v12268_v16, %s10905_s3 }
0x14dc   :  { %7067 = vadd.xlane.f32.xlu1 %v7066_v39 }
0x14ed   :  { %5956 = vrot.lane.b32.xlu1 %v12280_v22, %s10905_s3  ;;  %v8896_v22 = vcombine.low %v12542_v57, %v12542_v57  ;;  %v8899_v57 = vcombine.high %v12558_v47, %v12558_v47 }
0x14ef   :  { %v7544_v20 = vsel %vm1601_vm2, %v8899_v57, 0 }
0x1524   :  { %v7047_v1 = vpop.xlane.xlu0 %7046 }
0x1525   :  { %10521 = vrcp.f32 %v7047_v1 }
0x1526   :  { %v7044_v4 = vpop.xlane.xlu1 %7043 }
0x1527   :  { %10523 = vrcp.f32 %v7044_v4 }
0x152a   :  { %v7053_v38 = vpop.xlane.xlu0 %7052 }
0x152b   :  { %10525 = vrcp.f32 %v7053_v38 }
0x152f   :  { %v10522_v41 = vpop.eup %10521 }
0x1530   :  { %v7050_v48 = vpop.xlane.xlu1 %7049  ;;  %v7099_v33 = vmul.f32 %v10522_v41, %v12502_v18  ;;  %v7406_v18 = vsel %vm1601_vm2, %v8896_v22, 0 }
0x1531   :  { %10527 = vrcp.f32 %v7050_v48  ;;  %v7059_v16 = vpop.xlane.xlu0 %7058  ;;  %v10524_v42 = vpop.eup %10523 }
0x1532   :  { %10529 = vrcp.f32 %v7059_v16  ;;  %v7098_v61 = vmul.f32 %v10524_v42, %v12507_v21  ;;  %v7115_v23 = vpack.c.bf16 %v7099_v33, %v7099_v33 }
0x1534   :  { %v7056_v8 = vpop.xlane.xlu1 %7055  ;;  %v7114_v10 = vpack.c.bf16 %v7098_v61, %v7098_v61  ;;  %9934 = vmatmul.mubr.msk.bf16.vlgmr.msra.gmra.mrb[208].mxu0 %vm1405_vm3, %v7115_v23 }
0x1535   :  { %10531 = vrcp.f32 %v7056_v8  ;;  %v10526_v43 = vpop.eup %10525  ;;  %9944 = vmatpush3.bf16.msra.mxu0 %v7452_v19  ;;  %9945 = vmatprep.mubr.msk.bf16.mxu0 %vm10903_vm0, %v10902_v31 }
0x1536   :  { %v7101_v3 = vmul.f32 %v10526_v43, %v12517_v55  ;;  %9928 = vmatmul.mubr.msk.bf16.vlgmr.msra.gmra.mrb[196].mxu1 %vm1405_vm3, %v7114_v10  ;;  %9955 = vmatprep.subr.bf16.mxu0 %v10902_v31 }
0x1537   :  { %v7062_v21 = vpop.xlane.xlu0 %7061  ;;  %9938 = vmatpush3.bf16.msra.mxu1 %v7406_v18  ;;  %9939 = vmatprep.mubr.msk.bf16.mxu1 %vm10903_vm0, %v10902_v31 }
0x1538   :  { %9949 = vmatprep.subr.bf16.mxu1 %v10902_v31  ;;  %v7117_v55 = vpack.c.bf16 %v7101_v3, %v7101_v3  ;;  %10533 = vrcp.f32 %v7062_v21  ;;  %v5953_v25 = vpop.permute.xlu1 %5952 }
0x1539   :  { %v8900_v24 = vcombine.low %v5953_v25, %v5953_v25 }
0x153b   :  { %v10528_v12 = vpop.eup %10527  ;;  %v7065_v58 = vpop.xlane.xlu0 %7064  ;;  %v7590_v13 = vsel %vm1601_vm2, %v8900_v24, 0 }
0x153c   :  { %v10530_v51 = vpop.eup %10529  ;;  %v7100_v30 = vmul.f32 %v10528_v12, %v12526_v52  ;;  %10535 = vrcp.f32 %v7065_v58  ;;  %9946 = vmatmul.mubr.msk.bf16.vlgmr.msra.gmra.mrb[212].mxu0 %vm1405_vm3, %v7117_v55  ;;  %v7498_v52 = vsel %vm1601_vm2, %v8898_v37, 0 }
0x153d   :  { %v7103_v56 = vmul.f32 %v10530_v51, %v12531_v14  ;;  %9956 = vmatpush3.bf16.msra.mxu0 %v7544_v20  ;;  %9957 = vmatprep.mubr.msk.bf16.mxu0 %vm10903_vm0, %v10902_v31  ;;  %v8901_v14 = vcombine.high %v5953_v25, %v5953_v25 }
0x153e   :  { %v7116_v15 = vpack.c.bf16 %v7100_v30, %v7100_v30  ;;  %9967 = vmatprep.subr.bf16.mxu0 %v10902_v31 }
0x153f   :  { %v10532_v49 = vpop.eup %10531  ;;  %v7119_v47 = vpack.c.bf16 %v7103_v56, %v7103_v56 }
0x1540   :  { %v7102_v50 = vmul.f32 %v10532_v49, %v12540_v9  ;;  %9940 = vmatmul.mubr.msk.bf16.vlgmr.msra.gmra.mrb[200].mxu1 %vm1405_vm3, %v7116_v15  ;;  %v7636_v9 = vsel %vm1601_vm2, %v8901_v14, 0 }
0x1541   :  { %9950 = vmatpush3.bf16.msra.mxu1 %v7498_v52  ;;  %9951 = vmatprep.mubr.msk.bf16.mxu1 %vm10903_vm0, %v10902_v31  ;;  %v7071_v26 = vpop.xlane.xlu0 %7070 }
0x1542   :  { %9961 = vmatprep.subr.bf16.mxu1 %v10902_v31  ;;  %10537 = vrcp.f32 %v7071_v26  ;;  %v7118_v40 = vpack.c.bf16 %v7102_v50, %v7102_v50  ;;  %v10534_v46 = vpop.eup %10533 }
0x1543   :  { %v7104_v29 = vmul.f32 %v10534_v46, %v12549_v27 }
0x1544   :  { %9958 = vmatmul.mubr.msk.bf16.vlgmr.msra.gmra.mrb[216].mxu0 %vm1405_vm3, %v7119_v47 }
0x1545   :  { %9968 = vmatpush3.bf16.msra.mxu0 %v7636_v9  ;;  %9969 = vmatprep.mubr.msk.bf16.mxu0 %vm10903_vm0, %v10902_v31  ;;  %v7120_v54 = vpack.c.bf16 %v7104_v29, %v7104_v29 }
0x1546   :  { %v10536_v60 = vpop.eup %10535  ;;  %9979 = vmatprep.subr.bf16.mxu0 %v10902_v31 }
0x1547   :  { %v7074_v32 = vpop.xlane.xlu0 %7073  ;;  %v7105_v11 = vmul.f32 %v10536_v60, %v12554_v45 }
0x1548   :  { %9952 = vmatmul.mubr.msk.bf16.vlgmr.msra.gmra.mrb[204].mxu1 %vm1405_vm3, %v7118_v40 }
0x1549   :  { %9962 = vmatpush3.bf16.msra.mxu1 %v7590_v13  ;;  %9963 = vmatprep.mubr.msk.bf16.mxu1 %vm10903_vm0, %v10902_v31  ;;  %v7121_v44 = vpack.c.bf16 %v7105_v11, %v7105_v11 }
0x154a   :  { %9973 = vmatprep.subr.bf16.mxu1 %v10902_v31 }
0x154b   :  { %v7077_v17 = vpop.xlane.xlu0 %7076 }
0x154c   :  { %v10538_v2 = vpop.eup %10537  ;;  %9970 = vmatmul.mubr.msk.bf16.vlgmr.msra.gmra.mrb[220].mxu0 %vm1405_vm3, %v7121_v44  ;;  %10539 = vrcp.f32 %v7077_v17 }
0x154d   :  { %9981 = vmatprep.mubr.msk.bf16.mxu0 %vm10903_vm0, %v10902_v31  ;;  %v7107_v45 = vmul.f32 %v10538_v2, %v12565_v62 }
0x154f   :  { %v5955_v27 = vpop.permute.xlu0 %5954  ;;  %v7123_v48 = vpack.c.bf16 %v7107_v45, %v7107_v45 }
0x1550   :  { %9964 = vmatmul.mubr.msk.bf16.vlgmr.msra.gmra.mrb[208].mxu1 %vm1405_vm3, %v7120_v54  ;;  %v8902_v39 = vcombine.low %v5955_v27, %v5955_v27  ;;  %v8903_v1 = vcombine.high %v5955_v27, %v5955_v27 }
0x1551   :  { %9975 = vmatprep.mubr.msk.bf16.mxu1 %vm10903_vm0, %v10902_v31 }
0x1552   :  { %v7682_v4 = vsel %vm1601_vm2, %v8902_v39, 0  ;;  %v7728_v38 = vsel %vm1601_vm2, %v8903_v1, 0  ;;  %v10193_v39 = vld [vmem:[#allocation17 + $0x80] sm:$0xff]   ;;  %v10194_v1 = vld [vmem:[#allocation17 + $0x88] sm:$0xff]  }
0x1553   :  { %9974 = vmatpush3.bf16.msra.mxu1 %v7682_v4  ;;  %9980 = vmatpush3.bf16.msra.mxu0 %v7728_v38 }
0x1554   :  { %9991 = vmatprep.subr.bf16.mxu0 %v10902_v31  ;;  %9985 = vmatprep.subr.bf16.mxu1 %v10902_v31 }
0x1556   :  { %9982 = vmatmul.mubr.msk.bf16.vlgmr.msra.gmra.mrb[224].mxu0 %vm1405_vm3, %v7123_v48  ;;  %v10540_v41 = vpop.eup %10539 }
0x1557   :  { %9993 = vmatprep.mubr.msk.bf16.mxu0 %vm10903_vm0, %v10902_v31  ;;  %v7109_v6 = vmul.f32 %v10540_v41, %v12582_v7 }
0x1559   :  { %v7125_v22 = vpack.c.bf16 %v7109_v6, %v7109_v6 }
0x1569   :  { %v7068_v62 = vpop.xlane.xlu1 %7067 }
0x156a   :  { %10541 = vrcp.f32 %v7068_v62 }
0x156b   :  { %10543 = vrcp.f32 %v7074_v32 }
0x156d   :  { %v5957_v16 = vpop.permute.xlu1 %5956 }
0x156e   :  { %v8905_v33 = vcombine.high %v5957_v16, %v5957_v16  ;;  %v8904_v23 = vcombine.low %v5957_v16, %v5957_v16 }
0x1570   :  { %v7820_v42 = vsel %vm1601_vm2, %v8905_v33, 0  ;;  %v7774_v19 = vsel %vm1601_vm2, %v8904_v23, 0  ;;  %v10195_v33 = vld [vmem:[#allocation17 + $0x90] sm:$0xff]  }
0x1571   :  { %9992 = vmatpush3.bf16.msra.mxu0 %v7820_v42 }
0x1574   :  { %v10542_v61 = vpop.eup %10541  ;;  %9994 = vmatmul.mubr.msk.bf16.vlgmr.msra.gmra.mrb[228].mxu0 %vm1405_vm3, %v7125_v22 }
0x1575   :  { %v7106_v8 = vmul.f32 %v10542_v61, %v12616_v59  ;;  %8261 = vmatprep.mubr.bf16.mxu0 %v10901_v0  ;;  %v10544_v10 = vpop.eup %10543  ;;  %v10196_v61 = vld [vmem:[#allocation17 + $0x98] sm:$0xff]  }
0x1576   :  { %v7108_v7 = vmul.f32 %v10544_v10, %v12573_v28 }
0x1577   :  { %v7122_v43 = vpack.c.bf16 %v7106_v8, %v7106_v8 }
0x1578   :  { %v7124_v3 = vpack.c.bf16 %v7108_v7, %v7108_v7 }
0x1579   :  { %9976 = vmatmul.mubr.msk.bf16.vlgmr.msra.gmra.mrb[212].mxu1 %vm1405_vm3, %v7122_v43 }
0x157a   :  { %9986 = vmatpush3.bf16.msra.mxu1 %v7774_v19  ;;  %9987 = vmatprep.mubr.msk.bf16.mxu1 %vm10903_vm0, %v10902_v31 }
0x157b   :  { %9997 = vmatprep.subr.bf16.mxu1 %v10193_v39 }
0x1581   :  { %9988 = vmatmul.mubr.msk.bf16.vlgmr.msra.gmra.mrb[216].mxu1 %vm1405_vm3, %v7124_v3 }
0x1582   :  { %9998 = vmatpush3.bf16.msra.mxu1 %v10193_v39 }
0x1583   :  { %9999 = vmatprep.subr.bf16.mxu1 %v10194_v1 }
0x1586   :  { %10000 = vmatpush3.bf16.msra.mxu1 %v10194_v1 }
0x1587   :  { %10001 = vmatprep.subr.bf16.mxu1 %v10195_v33 }
0x158a   :  { %10002 = vmatpush3.bf16.msra.mxu1 %v10195_v33 }
0x158b   :  { %10003 = vmatprep.subr.bf16.mxu1 %v10196_v61 }
0x158c   :  { %v12693_v18 = vpop.f32.mrb[188].mxu1 }
0x158d   :  { %v9905_v59 = vpop.f32.mrb[189].mxu1 }
0x158e   :  { %v7169_v21 = vpop.f32.mrb[190].mxu1  ;;  %v10197_v59 = vld [vmem:[#allocation17 + $0xa0] sm:$0xff]   ;;  %10004 = vmatpush3.bf16.msra.mxu1 %v10196_v61 }
0x158f   :  { %v9906_v57 = vpop.f32.mrb[191].mxu1  ;;  %10005 = vmatprep.subr.bf16.mxu1 %v10197_v59 }
0x1592   :  { %10006 = vmatpush3.bf16.msra.mxu1 %v10197_v59 }
0x1593   :  { %v12695_v55 = vpop.f32.mrb[200].mxu0 }
0x1594   :  { %v7862_v12 = vpack.c.bf16 %v12695_v55, %v12693_v18  ;;  %v9911_v51 = vpop.f32.mrb[201].mxu0  ;;  %v8938_v18 = vld [vmem:[%s12834_s12 + $0x2] ss:$0 sm:$0xff] }
0x1595   :  { %v7215_v37 = vpop.f32.mrb[202].mxu0  ;;  %v10198_v51 = vld [vmem:[#allocation17 + $0xa8] sm:$0xff]  }
0x1596   :  { %v9912_v30 = vpop.f32.mrb[203].mxu0  ;;  %10007 = vmatprep.subr.bf16.mxu1 %v10198_v51 }
0x1597   :  { %10008 = vmatpush3.bf16.msra.mxu1 %v10198_v51  ;;  %v10203_v51 = vld [vmem:[#allocation19 + $0x84] ss:$8 sps:$4 sm:$0xff]  }
0x1598   :  { %8229 = vmatprep.subr.bf16.mxu0 %v10203_v51 }
0x159b   :  { %v12699_v58 = vpop.f32.mrb[192].mxu1 }
0x159c   :  { %v9917_v31 = vpop.f32.mrb[193].mxu1 }
0x159d   :  { %v7261_v28 = vpop.f32.mrb[194].mxu1 }
0x159e   :  { %v9918_v56 = vpop.f32.mrb[195].mxu1  ;;  %v10199_v28 = vld [vmem:[#allocation17 + $0xb0] sm:$0xff]  }
0x159f   :  { %10009 = vmatprep.subr.bf16.mxu1 %v10199_v28  ;;  %v10200_v56 = vld [vmem:[#allocation17 + $0xb8] sm:$0xff]  }
0x15a0   :  { %10010 = vmatpush3.bf16.msra.mxu1 %v10199_v28  ;;  %v10209_v28 = vld [vmem:[#allocation19 + $0xa4] ss:$8 sps:$4 sm:$0xff]  }
0x15a1   :  { %10011 = vmatprep.subr.bf16.mxu1 %v10200_v56 }
0x15a3   :  { %v12701_v15 = vpop.f32.mrb[204].mxu0 }
0x15a4   :  { %v7863_v20 = vpack.c.bf16 %v12701_v15, %v12699_v58  ;;  %v9923_v49 = vpop.f32.mrb[205].mxu0  ;;  %10012 = vmatpush3.bf16.msra.mxu1 %v10200_v56  ;;  %v10207_v56 = vld [vmem:[#allocation19 + $0xa0] ss:$8 sps:$4 sm:$0xff]  }
0x15a5   :  { %v7307_v25 = vpop.f32.mrb[206].mxu0 }
0x15a6   :  { %v9924_v50 = vpop.f32.mrb[207].mxu0 }
0x1607   :  { %v7396_v52 = vpop.f32.mrb[208].mxu0 }
0x1608   :  { %v9935_v14 = vpop.f32.mrb[209].mxu0 }
0x1609   :  { %v7350_v47 = vpop.f32.mrb[196].mxu1  ;;  %v7399_v26 = vpop.f32.mrb[210].mxu0 }
0x160a   :  { %v7864_v24 = vpack.c.bf16 %v7396_v52, %v7350_v47  ;;  %v9929_v40 = vpop.f32.mrb[197].mxu1  ;;  %v9936_v46 = vpop.f32.mrb[211].mxu0 }
0x160b   :  { %v7353_v9 = vpop.f32.mrb[198].mxu1 }
0x160c   :  { %v9930_v60 = vpop.f32.mrb[199].mxu1  ;;  %7872 = vrot.lane.b32.xlu1 %v7864_v24, %s10905_s3 }
0x160f   :  { %v7488_v32 = vpop.f32.mrb[212].mxu0 }
0x1610   :  { %v9947_v29 = vpop.f32.mrb[213].mxu0 }
0x1611   :  { %v7491_v13 = vpop.f32.mrb[214].mxu0 }
0x1612   :  { %v9948_v54 = vpop.f32.mrb[215].mxu0 }
0x1613   :  { %v7442_v11 = vpop.f32.mrb[200].mxu1 }
0x1614   :  { %v7865_v44 = vpack.c.bf16 %v7488_v32, %v7442_v11  ;;  %v9941_v17 = vpop.f32.mrb[201].mxu1 }
0x1615   :  { %v7445_v2 = vpop.f32.mrb[202].mxu1 }
0x1616   :  { %v9942_v27 = vpop.f32.mrb[203].mxu1  ;;  %7874 = vrot.lane.b32.xlu1 %v7865_v44, %s10905_s3 }
0x1617   :  { %v7580_v45 = vpop.f32.mrb[216].mxu0 }
0x1618   :  { %v9959_v4 = vpop.f32.mrb[217].mxu0 }
0x1619   :  { %v7583_v48 = vpop.f32.mrb[218].mxu0 }
0x161a   :  { %v9960_v16 = vpop.f32.mrb[219].mxu0 }
0x161b   :  { %v7534_v38 = vpop.f32.mrb[204].mxu1 }
0x161c   :  { %v7866_v62 = vpack.c.bf16 %v7580_v45, %v7534_v38  ;;  %v9953_v41 = vpop.f32.mrb[205].mxu1 }
0x161d   :  { %v7537_v6 = vpop.f32.mrb[206].mxu1 }
0x161e   :  { %v9954_v42 = vpop.f32.mrb[207].mxu1  ;;  %7878 = vrot.lane.b32.xlu1 %v7866_v62, %s12857_s20 }
0x161f   :  { %v7672_v22 = vpop.f32.mrb[220].mxu0 }
0x1620   :  { %v9971_v8 = vpop.f32.mrb[221].mxu0 }
0x1621   :  { %v7675_v43 = vpop.f32.mrb[222].mxu0 }
0x1622   :  { %v9972_v7 = vpop.f32.mrb[223].mxu0 }
0x1623   :  { %v7626_v23 = vpop.f32.mrb[208].mxu1 }
0x1624   :  { %v9965_v10 = vpop.f32.mrb[209].mxu1  ;;  %v7867_v19 = vpack.c.bf16 %v7672_v22, %v7626_v23 }
0x1625   :  { %v7629_v3 = vpop.f32.mrb[210].mxu1 }
0x1626   :  { %v9966_v21 = vpop.f32.mrb[211].mxu1  ;;  %7880 = vrot.lane.b32.xlu1 %v7867_v19, %s12857_s20 }
0x1629   :  { %v7764_v57 = vpop.f32.mrb[224].mxu0 }
0x162a   :  { %v9983_v37 = vpop.f32.mrb[225].mxu0 }
0x162b   :  { %v7767_v30 = vpop.f32.mrb[226].mxu0  ;;  %v10201_v37 = vld [vmem:[#allocation19 + $0x80] ss:$8 sps:$4 sm:$0xff]  }
0x162c   :  { %v9984_v31 = vpop.f32.mrb[227].mxu0  ;;  %8230 = vmatpush1.bf16.msra.mxu0 %v10201_v37  ;;  %v10206_v30 = vld [vmem:[#allocation19 + $0x94] ss:$8 sps:$4 sm:$0xff]  }
0x162d   :  { %v10204_v31 = vld [vmem:[#allocation19 + $0x90] ss:$8 sps:$4 sm:$0xff]   ;;  %8231 = vmatprep.subr.bf16.mxu0 %v10206_v30 }
0x1630   :  { %8232 = vmatpush1.bf16.msra.mxu0 %v10204_v31  ;;  %v8947_v31 = vld [vmem:[%s12839_s17 + $0x3] ss:$0 sm:$0xff] }
0x1631   :  { %8233 = vmatprep.subr.bf16.mxu0 %v10209_v28 }
0x1634   :  { %8234 = vmatpush1.bf16.msra.mxu0 %v10207_v56 }
0x1647   :  { %v7856_v49 = vpop.f32.mrb[228].mxu0 }
0x1648   :  { %v9995_v25 = vpop.f32.mrb[229].mxu0 }
0x1649   :  { %v7859_v50 = vpop.f32.mrb[230].mxu0  ;;  %v10210_v25 = vld [vmem:[#allocation19 + $0xb0] ss:$8 sps:$4 sm:$0xff]  }
0x164a   :  { %v9996_v52 = vpop.f32.mrb[231].mxu0  ;;  %v10215_v50 = vld [vmem:[#allocation19 + $0xc4] ss:$8 sps:$4 sm:$0xff]  }
0x164b   :  { %v10213_v52 = vld [vmem:[#allocation19 + $0xc0] ss:$8 sps:$4 sm:$0xff]  }
0x164c   :  { %v7718_v14 = vpop.f32.mrb[212].mxu1 }
0x164d   :  { %v7868_v47 = vpack.c.bf16 %v7764_v57, %v7718_v14  ;;  %v9977_v26 = vpop.f32.mrb[213].mxu1  ;;  %v10218_v14 = vld [vmem:[#allocation19 + $0xd4] ss:$8 sps:$4 sm:$0xff]  }
0x164e   :  { %v7721_v24 = vpop.f32.mrb[214].mxu1  ;;  %v10221_v26 = vld [vmem:[#allocation19 + $0xe4] ss:$8 sps:$4 sm:$0xff]  }
0x164f   :  { %7884 = vrot.lane.b32.xlu0 %v7868_v47, %s10904_s15  ;;  %v9978_v40 = vpop.f32.mrb[215].mxu1  ;;  %v10216_v47 = vld [vmem:[#allocation19 + $0xd0] ss:$8 sps:$4 sm:$0xff]   ;;  %v10219_v24 = vld [vmem:[#allocation19 + $0xe0] ss:$8 sps:$4 sm:$0xff]  }
0x1650   :  { %v10224_v40 = vld [vmem:[#allocation19 + $0xf4] ss:$8 sps:$4 sm:$0xff]  }
0x1654   :  { %v7810_v46 = vpop.f32.mrb[216].mxu1 }
0x1655   :  { %v7869_v9 = vpack.c.bf16 %v7856_v49, %v7810_v46  ;;  %v9989_v60 = vpop.f32.mrb[217].mxu1  ;;  %v10212_v49 = vld [vmem:[#allocation19 + $0xb4] ss:$8 sps:$4 sm:$0xff]   ;;  %v10222_v46 = vld [vmem:[#allocation19 + $0xf0] ss:$8 sps:$4 sm:$0xff]  }
0x1656   :  { %v7813_v32 = vpop.f32.mrb[218].mxu1  ;;  %8235 = vmatprep.subr.bf16.mxu0 %v10212_v49  ;;  %v10226_v60 = vld [vmem:[#allocation20 + $0x80] sm:$0xff]  }
0x1657   :  { %7886 = vrot.lane.b32.xlu1 %v7869_v9, %s10904_s15  ;;  %v9990_v29 = vpop.f32.mrb[219].mxu1  ;;  %8236 = vmatpush1.bf16.msra.mxu0 %v10210_v25  ;;  %v10225_v9 = vld [vmem:[#allocation20 + $0xc0] sm:$0xff]   ;;  %v10227_v32 = vld [vmem:[#allocation20 + $0xc8] sm:$0xff]  }
0x1658   :  { %8237 = vmatprep.subr.bf16.mxu0 %v10215_v50  ;;  %9293 = vmatprep.subr.bf16.mxu1 %v10225_v9  ;;  %v10228_v29 = vld [vmem:[#allocation20 + $0x88] sm:$0xff]  }
0x165b   :  { %8238 = vmatpush1.bf16.msra.mxu0 %v10213_v52  ;;  %v8948_v52 = vld [vmem:[%s12840_s18 + $0x3] ss:$0 sm:$0xff] }
0x165c   :  { %8239 = vmatprep.subr.bf16.mxu0 %v10218_v14 }
0x165f   :  { %8240 = vmatpush1.bf16.msra.mxu0 %v10216_v47 }
0x1660   :  { %8241 = vmatprep.subr.bf16.mxu0 %v10221_v26 }
0x1663   :  { %8242 = vmatpush1.bf16.msra.mxu0 %v10219_v24 }
0x1664   :  { %8243 = vmatprep.subr.bf16.mxu0 %v10224_v40 }
0x1667   :  { %8244 = vmatpush1.bf16.msra.mxu0 %v10222_v46 }
0x167e   :  { %v7873_v11 = vpop.permute.xlu1 %7872 }
0x167f   :  { %v7890_v17 = vsel %vm668_vm1, %v7862_v12, %v7873_v11  ;;  %v10229_v11 = vld [vmem:[#allocation20 + $0xd0] sm:$0xff]  }
0x1688   :  { %v7875_v13 = vpop.permute.xlu1 %7874 }
0x1689   :  { %v7893_v39 = vsel %vm668_vm1, %v7863_v20, %v7875_v13  ;;  %v10230_v13 = vld [vmem:[#allocation20 + $0x90] sm:$0xff]  }
0x1690   :  { %v7879_v44 = vpop.permute.xlu1 %7878 }
0x1691   :  { %v7895_v54 = vsel %vm2367_vm4, %v7890_v17, %v7879_v44  ;;  %v10231_v44 = vld [vmem:[#allocation20 + $0xd8] sm:$0xff]  }
0x1692   :  { %v10232_v17 = vld [vmem:[#allocation20 + $0x98] sm:$0xff]  }
0x1698   :  { %v7881_v45 = vpop.permute.xlu1 %7880 }
0x1699   :  { %v7897_v1 = vsel %vm2367_vm4, %v7893_v39, %v7881_v45 }
0x16c1   :  { %v7885_v2 = vpop.permute.xlu0 %7884 }
0x16c2   :  { %v7899_v27 = vsel %vm2372_vm5, %v7895_v54, %v7885_v2  ;;  %v10233_v54 = vld [vmem:[#allocation20 + $0xe0] sm:$0xff]  }
0x16c3   :  { %10013 = vmatprep.mubr.bf16.mxu1 %v7899_v27  ;;  %v10234_v2 = vld [vmem:[#allocation20 + $0xa0] sm:$0xff]   ;;  %v10235_v27 = vld [vmem:[#allocation20 + $0xe8] sm:$0xff]  }
0x16c9   :  { %v7887_v4 = vpop.permute.xlu1 %7886 }
0x16ca   :  { %v7902_v38 = vsel %vm2372_vm5, %v7897_v1, %v7887_v4 }
0x16cb   :  { %10014 = vmatmul.mubr.bf16.vlgmr.msra.gmra.mrb[220].mxu1 %v7902_v38 }
0x16cc   :  { %9294 = vmatpush3.bf16.msra.mxu1 %v10226_v60 }
0x16cd   :  { %9295 = vmatprep.subr.bf16.mxu1 %v10227_v32 }
0x16d0   :  { %9296 = vmatpush3.bf16.msra.mxu1 %v10228_v29 }
0x16d1   :  { %9297 = vmatprep.subr.bf16.mxu1 %v10229_v11  ;;  %v10236_v11 = vld [vmem:[#allocation20 + $0xa8] sm:$0xff]  }
0x16d4   :  { %9298 = vmatpush3.bf16.msra.mxu1 %v10230_v13  ;;  %v10239_v13 = vld [vmem:[#allocation20 + $0xf8] sm:$0xff]  }
0x16d5   :  { %9299 = vmatprep.subr.bf16.mxu1 %v10231_v44  ;;  %v10240_v44 = vld [vmem:[#allocation20 + $0xb8] sm:$0xff]  }
0x16d8   :  { %9300 = vmatpush3.bf16.msra.mxu1 %v10232_v17 }
0x16d9   :  { %9301 = vmatprep.subr.bf16.mxu1 %v10233_v54 }
0x16dc   :  { %9302 = vmatpush3.bf16.msra.mxu1 %v10234_v2 }
0x16dd   :  { %9303 = vmatprep.subr.bf16.mxu1 %v10235_v27 }
0x16e0   :  { %9304 = vmatpush3.bf16.msra.mxu1 %v10236_v11 }
0x179e   :  { %v10015_v55 = vpop.f32.mrb[220].mxu1 }
0x179f   :  { %v8008_v12 = vpop.f32.mrb[221].mxu1  ;;  %v8017_v16 = vadd.f32 %v10015_v55, %v8938_v18 }
0x17a0   :  { %v8009_v48 = vadd.f32 %v8938_v18, %v8008_v12  ;;  %v10016_v62 = vpop.f32.mrb[222].mxu1 }
0x17a1   :  { %v8011_v41 = vpop.f32.mrb[223].mxu1  ;;  %v8025_v6 = vadd.f32 %v8017_v16, %v12249_v63  ;;  %v8020_v33 = vadd.f32 %v10016_v62, %v8938_v18 }
0x17a2   :  { %v8023_v58 = vadd.f32 %v8009_v48, %v12241_v5  ;;  %v8012_v15 = vadd.f32 %v8938_v18, %v8011_v41 }
0x17a3   :  { %v8026_v42 = vadd.f32 %v8020_v33, %v12251_v53 }
0x17a4   :  { %v8024_v20 = vadd.f32 %v8012_v15, %v12243_v35  ;;  %8029 = vadd.xlane.f32.xlu0 %v8023_v58 }
0x17a6   :  { %8031 = vadd.xlane.f32.xlu1 %v8024_v20 }
0x17a8   :  { %8033 = vadd.xlane.f32.xlu0 %v8025_v6 }
0x17ac   :  { %8035 = vadd.xlane.f32.xlu0 %v8026_v42 }
0x1831   :  { %v8030_v22 = vpop.xlane.xlu0 %8029 }
0x1832   :  { %v8037_v61 = vmul.f32 0.0078125, %v8030_v22 }
0x1833   :  { %v8032_v8 = vpop.xlane.xlu1 %8031 }
0x1834   :  { %v12730_v23 = vsub.f32 %v8023_v58, %v8037_v61  ;;  %v8038_v43 = vmul.f32 0.0078125, %v8032_v8 }
0x1835   :  { %v8034_v10 = vpop.xlane.xlu0 %8033 }
0x1836   :  { %v12732_v5 = vsub.f32 %v8024_v20, %v8038_v43  ;;  %v8039_v19 = vmul.f32 0.0078125, %v8034_v10  ;;  %v8045_v35 = vmul.f32 %v12730_v23, %v12730_v23 }
0x1838   :  { %v12736_v63 = vsub.f32 %v8025_v6, %v8039_v19  ;;  %8049 = vadd.xlane.f32.xlu1 %v8045_v35  ;;  %v8046_v53 = vmul.f32 %v12732_v5, %v12732_v5 }
0x1839   :  { %v8036_v7 = vpop.xlane.xlu0 %8035 }
0x183a   :  { %v8040_v3 = vmul.f32 0.0078125, %v8036_v7  ;;  %8051 = vadd.xlane.f32.xlu0 %v8046_v53  ;;  %v8047_v59 = vmul.f32 %v12736_v63, %v12736_v63 }
0x183c   :  { %v12742_v21 = vsub.f32 %v8026_v42, %v8040_v3  ;;  %8053 = vadd.xlane.f32.xlu1 %v8047_v59 }
0x183e   :  { %v8048_v57 = vmul.f32 %v12742_v21, %v12742_v21 }
0x1840   :  { %8055 = vadd.xlane.f32.xlu0 %v8048_v57 }
0x18c5   :  { %v8050_v45 = vpop.xlane.xlu1 %8049 }
0x18c6   :  { %v8057_v39 = vmul.f32 0.007874016, %v8050_v45 }
0x18c7   :  { %v8052_v1 = vpop.xlane.xlu0 %8051 }
0x18c8   :  { %10545 = vrsqrt.f32 %v8057_v39  ;;  %v8058_v4 = vmul.f32 0.007874016, %v8052_v1  ;;  %vm8063_vm0 = vcmp.eq.f32.partialorder %v8057_v39, inf  ;;  %v8066_v41 = vand.u32 2147483648, %v8057_v39 }
0x18c9   :  { %v8054_v38 = vpop.xlane.xlu1 %8053  ;;  %vm8065_vm1 = vcmp.eq.f32.partialorder %v8057_v39, 0.0 }
0x18ca   :  { %v8059_v18 = vmul.f32 0.007874016, %v8054_v38  ;;  %10547 = vrsqrt.f32 %v8058_v4  ;;  %vm8070_vm2 = vcmp.eq.f32.partialorder %v8058_v4, inf  ;;  %v8073_v42 = vand.u32 2147483648, %v8058_v4 }
0x18cb   :  { %vm8072_vm3 = vcmp.eq.f32.partialorder %v8058_v4, 0.0 }
0x18cc   :  { %10549 = vrsqrt.f32 %v8059_v18  ;;  %vm8077_vm4 = vcmp.eq.f32.partialorder %v8059_v18, inf  ;;  %v8080_v8 = vand.u32 2147483648, %v8059_v18  ;;  %vm8079_vm5 = vcmp.eq.f32.partialorder %v8059_v18, 0.0 }
0x18cd   :  { %v8056_v55 = vpop.xlane.xlu0 %8055 }
0x18ce   :  { %v8060_v12 = vmul.f32 0.007874016, %v8056_v55 }
0x18d0   :  { %10551 = vrsqrt.f32 %v8060_v12  ;;  %vm8084_vm11 = vcmp.eq.f32.partialorder %v8060_v12, inf  ;;  %v8087_v59 = vand.u32 2147483648, %v8060_v12  ;;  %vm8086_vm12 = vcmp.eq.f32.partialorder %v8060_v12, 0.0 }
0x18d2   :  { %v10546_v48 = vpop.eup %10545 }
0x18d3   :  { %v8062_v62 = vmul.f32 %v10546_v48, %v8057_v39 }
0x18d4   :  { %v10548_v16 = vpop.eup %10547 }
0x18d5   :  { %v8064_v58 = vsel %vm8063_vm0, %v8057_v39, %v8062_v62  ;;  %v8069_v6 = vmul.f32 %v10548_v16, %v8058_v4 }
0x18d6   :  { %v10550_v15 = vpop.eup %10549  ;;  %v8067_v20 = vsel %vm8065_vm1, %v8066_v41, %v8064_v58 }
0x18d7   :  { %v8089_v33 = vadd.f32 1e-05, %v8067_v20  ;;  %v8076_v22 = vmul.f32 %v10550_v15, %v8059_v18  ;;  %v8071_v61 = vsel %vm8070_vm2, %v8058_v4, %v8069_v6 }
0x18d8   :  { %v8074_v43 = vsel %vm8072_vm3, %v8073_v42, %v8071_v61 }
0x18d9   :  { %10553 = vrcp.f32 %v8089_v33  ;;  %v8078_v10 = vsel %vm8077_vm4, %v8059_v18, %v8076_v22  ;;  %v8090_v35 = vadd.f32 1e-05, %v8074_v43 }
0x18da   :  { %v10552_v19 = vpop.eup %10551  ;;  %v8081_v53 = vsel %vm8079_vm5, %v8080_v8, %v8078_v10 }
0x18db   :  { %v8091_v7 = vadd.f32 1e-05, %v8081_v53  ;;  %v8083_v3 = vmul.f32 %v10552_v19, %v8060_v12  ;;  %10555 = vrcp.f32 %v8090_v35  ;;  %v8966_v53 = vld [vmem:[%s12838_s16 + $0x1] ss:$0 sm:$0xff] }
0x18dd   :  { %v8085_v57 = vsel %vm8084_vm11, %v8060_v12, %v8083_v3  ;;  %10557 = vrcp.f32 %v8091_v7 }
0x18de   :  { %v8088_v51 = vsel %vm8086_vm12, %v8087_v59, %v8085_v57 }
0x18df   :  { %v8092_v37 = vadd.f32 1e-05, %v8088_v51 }
0x18e1   :  { %10559 = vrcp.f32 %v8092_v37 }
0x18e3   :  { %v10554_v30 = vpop.eup %10553 }
0x18e4   :  { %v8097_v28 = vmul.f32 %v10554_v30, %v12730_v23 }
0x18e5   :  { %v10556_v56 = vpop.eup %10555 }
0x18e6   :  { %v8098_v49 = vmul.f32 %v10556_v56, %v12732_v5  ;;  %v8105_v25 = vmul.f32 %v8947_v31, %v8097_v28 }
0x18e7   :  { %v10558_v50 = vpop.eup %10557 }
0x18e8   :  { %v8106_v14 = vmul.f32 %v8947_v31, %v8098_v49  ;;  %v12754_v26 = vadd.f32 %v8948_v52, %v8105_v25  ;;  %v8099_v40 = vmul.f32 %v10558_v50, %v12736_v63  ;;  %v10237_v63 = vld [vmem:[#allocation20 + $0xf0] sm:$0xff]  }
0x18e9   :  { %9305 = vmatprep.subr.bf16.mxu1 %v10237_v63 }
0x18ea   :  { %v12756_v24 = vadd.f32 %v8948_v52, %v8106_v14  ;;  %v8107_v9 = vmul.f32 %v8947_v31, %v8099_v40 }
0x18eb   :  { %v10560_v47 = vpop.eup %10559 }
0x18ec   :  { %v8100_v46 = vmul.f32 %v10560_v47, %v12742_v21  ;;  %v8134_v23 = vpack.c.bf16 %v12756_v24, %v12754_v26  ;;  %v12765_v32 = vadd.f32 %v8948_v52, %v8107_v9  ;;  %v10238_v21 = vld [vmem:[#allocation20 + $0xb0] sm:$0xff]  }
0x18ed   :  { %9306 = vmatpush3.bf16.msra.mxu1 %v10238_v21 }
0x18ee   :  { %v8108_v5 = vmul.f32 %v8947_v31, %v8100_v46  ;;  %8262 = vmatmul.mubr.bf16.vlgmr.msra.gmra.mrb[232].mxu0 %v8134_v23  ;;  %9307 = vmatprep.subr.bf16.mxu1 %v10239_v13 }
0x18ef   :  { %8271 = vmatprep.mubr.bf16.mxu0 %v10901_v0  ;;  %v8949_v0 = vld [vmem:[%s12836_s14 + $0x1] ss:$2 sm:$0x3] }
0x18f0   :  { %v12763_v60 = vadd.f32 %v8948_v52, %v8108_v5  ;;  %v8142_v17 = vrot.slane %v8949_v0, %v11214_v34  ;;  %v8146_v54 = vrot.slane %v8949_v0, %v11219_v36 }
0x18f1   :  { %9308 = vmatpush3.bf16.msra.mxu1 %v10240_v44 }
0x18f2   :  { %v8135_v29 = vpack.c.bf16 %v12763_v60, %v12765_v32 }
0x18f6   :  { %8272 = vmatmul.mubr.bf16.gmra.mrb[236].mxu0 %v8135_v29 }
0x19c1   :  { %v8263_v2 = vpop.f32.mrb[232].mxu0 }
0x19c2   :  { %v8264_v27 = vadd.f32 %v8263_v2, %v8142_v17  ;;  %v8265_v45 = vpop.f32.mrb[233].mxu0 }
0x19c3   :  { %v8266_v39 = vadd.f32 %v8265_v45, %v8146_v54  ;;  %v8267_v1 = vpop.f32.mrb[234].mxu0 }
0x19c4   :  { %v8268_v4 = vadd.f32 %v8267_v1, %v8142_v17  ;;  %v8269_v38 = vpop.f32.mrb[235].mxu0  ;;  %v8282_v55 = vmax.f32 %v8264_v27, 0.0 }
0x19c5   :  { %v8270_v18 = vadd.f32 %v8269_v38, %v8146_v54  ;;  %v8283_v48 = vmax.f32 %v8266_v39, 0.0 }
0x19c6   :  { %v8284_v12 = vmax.f32 %v8268_v4, 0.0 }
0x19c7   :  { %v8285_v62 = vmax.f32 %v8270_v18, 0.0 }
0x19c8   :  { %v8323_v41 = vpack.c.bf16 %v8284_v12, %v8282_v55 }
0x19c9   :  { %v8324_v16 = vpack.c.bf16 %v8285_v62, %v8283_v48  ;;  %v8273_v58 = vpop.f32.mrb[236].mxu0 }
0x19ca   :  { %v8274_v15 = vadd.f32 %v8273_v58, %v8142_v17  ;;  %v8275_v20 = vpop.f32.mrb[237].mxu0 }
0x19cb   :  { %v8276_v34 = vadd.f32 %v8275_v20, %v8146_v54  ;;  %v8277_v6 = vpop.f32.mrb[238].mxu0  ;;  %8460 = vmatprep.mubr.bf16.mxu1 %v8324_v16 }
0x19cc   :  { %v8278_v36 = vadd.f32 %v8277_v6, %v8142_v17  ;;  %v8279_v33 = vpop.f32.mrb[239].mxu0  ;;  %8461 = vmatmul.mubr.bf16.vlgmr.msra.gmra.mrb[224].mxu1 %v8323_v41  ;;  %v8286_v22 = vmax.f32 %v8274_v15, 0.0 }
0x19cd   :  { %v8280_v42 = vadd.f32 %v8279_v33, %v8146_v54  ;;  %v8287_v8 = vmax.f32 %v8276_v34, 0.0 }
0x19ce   :  { %v8288_v61 = vmax.f32 %v8278_v36, 0.0 }
0x19cf   :  { %v8289_v43 = vmax.f32 %v8280_v42, 0.0 }
0x19d0   :  { %v8325_v10 = vpack.c.bf16 %v8288_v61, %v8286_v22 }
0x19d1   :  { %v8326_v19 = vpack.c.bf16 %v8289_v43, %v8287_v8 }
0x19d3   :  { %8468 = vmatprep.mubr.bf16.mxu1 %v8326_v19 }
0x19d4   :  { %8469 = vmatmul.mubr.bf16.gmra.mrb[228].mxu1 %v8325_v10 }
0x1a9f   :  { %v9309_v35 = vpop.f32.mrb[224].mxu1 }
0x1aa0   :  { %v9310_v7 = vpop.f32.mrb[225].mxu1 }
0x1aa1   :  { %v9311_v3 = vadd.f32 %v9310_v7, %v9309_v35  ;;  %v9312_v59 = vpop.f32.mrb[226].mxu1 }
0x1aa2   :  { %v9313_v57 = vpop.f32.mrb[227].mxu1 }
0x1aa3   :  { %v8463_v51 = vadd.f32 %v9311_v3, %v8966_v53  ;;  %v9314_v37 = vadd.f32 %v9313_v57, %v9312_v59 }
0x1aa5   :  { %v8466_v30 = vadd.f32 %v9314_v37, %v8966_v53  ;;  %v8477_v31 = vadd.f32 %v8463_v51, %v12754_v26  ;;  %v8983_v51 = vld [vmem:[%s12839_s17 + $0x4] ss:$0 sm:$0xff]  ;;  %s10906_s17 = smov [#allocation22]  }
0x1aa6   :  { %s8580_s26 = sshll.u32 %s10906_s17, 4  ;;  %s8581_s26 = int_to_ptr.vmem [resolvable:$true] %s8580_s26 }
0x1aa7   :  { %8483 = vadd.xlane.f32.xlu1 %v8477_v31  ;;  %v9315_v28 = vpop.f32.mrb[228].mxu1  ;;  %v8478_v56 = vadd.f32 %v8466_v30, %v12756_v24  ;;  %v8984_v30 = vld [vmem:[%s12840_s18 + $0x4] ss:$0 sm:$0xff]  ;;  %s10845_s18 = scalar_lea.vmem %s8581_s26, 512  ;;  %p10850_p13 = scmp.lt.s32.totalorder %s8581_s26, %s8581_s26 }
0x1aa8   :  { %v9316_v49 = vpop.f32.mrb[229].mxu1  ;;  %p10846_p12 = scmp.ne.s32.totalorder %s8581_s26, %s10845_s18  ;;  %p10851_p0 = scmp.lt.s32.totalorder %s10845_s18, %s10845_s18 }
0x1aa9   :  { %v9317_v25 = vadd.f32 %v9316_v49, %v9315_v28  ;;  %8485 = vadd.xlane.f32.xlu0 %v8478_v56  ;;  %v9318_v50 = vpop.f32.mrb[230].mxu1 }
0x1aaa   :  { %v9319_v52 = vpop.f32.mrb[231].mxu1  ;;  %p10852_p1 = por %p10851_p0, %p10850_p13 }
0x1aab   :  { %v8471_v14 = vadd.f32 %v9317_v25, %v8966_v53  ;;  %v9320_v47 = vadd.f32 %v9319_v52, %v9318_v50 }
0x1aac   :  { %p10853_p2 = pnand %p10852_p1, %p10846_p12 }
0x1aad   :  { %v8474_v40 = vadd.f32 %v9320_v47, %v8966_v53  ;;  %v8479_v46 = vadd.f32 %v8471_v14, %v12765_v32 }
0x1aaf   :  { %8487 = vadd.xlane.f32.xlu1 %v8479_v46  ;;  %v8480_v23 = vadd.f32 %v8474_v40, %v12763_v60 }
0x1ab1   :  { %8489 = vadd.xlane.f32.xlu0 %v8480_v23 }
0x1b34   :  { %v8484_v5 = vpop.xlane.xlu1 %8483 }
0x1b35   :  { %v8491_v26 = vmul.f32 0.0078125, %v8484_v5 }
0x1b36   :  { %v8486_v9 = vpop.xlane.xlu0 %8485 }
0x1b37   :  { %v12781_v29 = vsub.f32 %v8477_v31, %v8491_v26  ;;  %v8492_v24 = vmul.f32 0.0078125, %v8486_v9 }
0x1b39   :  { %v12783_v11 = vsub.f32 %v8478_v56, %v8492_v24  ;;  %v8499_v63 = vmul.f32 %v12781_v29, %v12781_v29 }
0x1b3b   :  { %8503 = vadd.xlane.f32.xlu1 %v8499_v63  ;;  %v8500_v21 = vmul.f32 %v12783_v11, %v12783_v11 }
0x1b3c   :  { %v8488_v32 = vpop.xlane.xlu1 %8487 }
0x1b3d   :  { %v8493_v13 = vmul.f32 0.0078125, %v8488_v32  ;;  %8505 = vadd.xlane.f32.xlu0 %v8500_v21 }
0x1b3e   :  { %v8490_v60 = vpop.xlane.xlu0 %8489 }
0x1b3f   :  { %v12789_v44 = vsub.f32 %v8479_v46, %v8493_v13  ;;  %v8494_v0 = vmul.f32 0.0078125, %v8490_v60 }
0x1b41   :  { %v12791_v17 = vsub.f32 %v8480_v23, %v8494_v0  ;;  %v8501_v54 = vmul.f32 %v12789_v44, %v12789_v44 }
0x1b43   :  { %8507 = vadd.xlane.f32.xlu1 %v8501_v54  ;;  %v8502_v2 = vmul.f32 %v12791_v17, %v12791_v17 }
0x1b45   :  { %8509 = vadd.xlane.f32.xlu0 %v8502_v2 }
0x1bc8   :  { %v8504_v27 = vpop.xlane.xlu1 %8503 }
0x1bc9   :  { %v8511_v45 = vmul.f32 0.007874016, %v8504_v27 }
0x1bca   :  { %v8506_v39 = vpop.xlane.xlu0 %8505 }
0x1bcb   :  { %10561 = vrsqrt.f32 %v8511_v45  ;;  %v8512_v1 = vmul.f32 0.007874016, %v8506_v39  ;;  %vm8517_vm13 = vcmp.eq.f32.partialorder %v8511_v45, inf  ;;  %v8520_v62 = vand.u32 2147483648, %v8511_v45 }
0x1bcc   :  { %vm8519_vm14 = vcmp.eq.f32.partialorder %v8511_v45, 0.0 }
0x1bcd   :  { %10563 = vrsqrt.f32 %v8512_v1  ;;  %vm8524_vm15 = vcmp.eq.f32.partialorder %v8512_v1, inf  ;;  %v8527_v34 = vand.u32 2147483648, %v8512_v1  ;;  %vm8526_vm6 = vcmp.eq.f32.partialorder %v8512_v1, 0.0 }
0x1bd0   :  { %v8508_v4 = vpop.xlane.xlu1 %8507 }
0x1bd1   :  { %v8513_v38 = vmul.f32 0.007874016, %v8508_v4 }
0x1bd2   :  { %v8510_v18 = vpop.xlane.xlu0 %8509 }
0x1bd3   :  { %10565 = vrsqrt.f32 %v8513_v38  ;;  %v8514_v55 = vmul.f32 0.007874016, %v8510_v18  ;;  %vm8531_vm7 = vcmp.eq.f32.partialorder %v8513_v38, inf  ;;  %v8534_v61 = vand.u32 2147483648, %v8513_v38 }
0x1bd4   :  { %vm8533_vm8 = vcmp.eq.f32.partialorder %v8513_v38, 0.0 }
0x1bd5   :  { %v10562_v12 = vpop.eup %10561  ;;  %10567 = vrsqrt.f32 %v8514_v55  ;;  %vm8538_vm9 = vcmp.eq.f32.partialorder %v8514_v55, inf  ;;  %v8541_v53 = vand.u32 2147483648, %v8514_v55  ;;  %vm8540_vm10 = vcmp.eq.f32.partialorder %v8514_v55, 0.0 }
0x1bd6   :  { %v8516_v48 = vmul.f32 %v10562_v12, %v8511_v45 }
0x1bd7   :  { %v10564_v41 = vpop.eup %10563 }
0x1bd8   :  { %v8518_v16 = vsel %vm8517_vm13, %v8511_v45, %v8516_v48  ;;  %v8523_v15 = vmul.f32 %v10564_v41, %v8512_v1 }
0x1bd9   :  { %v8521_v58 = vsel %vm8519_vm14, %v8520_v62, %v8518_v16 }
0x1bda   :  { %v8543_v20 = vadd.f32 1e-05, %v8521_v58  ;;  %v8525_v6 = vsel %vm8524_vm15, %v8512_v1, %v8523_v15 }
0x1bdb   :  { %v8528_v36 = vsel %vm8526_vm6, %v8527_v34, %v8525_v6 }
0x1bdc   :  { %10569 = vrcp.f32 %v8543_v20  ;;  %v8544_v42 = vadd.f32 1e-05, %v8528_v36 }
0x1bdd   :  { %v10566_v33 = vpop.eup %10565 }
0x1bde   :  { %v8530_v22 = vmul.f32 %v10566_v33, %v8513_v38  ;;  %10571 = vrcp.f32 %v8544_v42 }
0x1bdf   :  { %v10568_v8 = vpop.eup %10567 }
0x1be0   :  { %v8532_v43 = vsel %vm8531_vm7, %v8513_v38, %v8530_v22  ;;  %v8537_v19 = vmul.f32 %v10568_v8, %v8514_v55 }
0x1be1   :  { %v8535_v10 = vsel %vm8533_vm8, %v8534_v61, %v8532_v43 }
0x1be2   :  { %v8545_v35 = vadd.f32 1e-05, %v8535_v10  ;;  %v8539_v7 = vsel %vm8538_vm9, %v8514_v55, %v8537_v19 }
0x1be3   :  { %v8542_v3 = vsel %vm8540_vm10, %v8541_v53, %v8539_v7 }
0x1be4   :  { %10573 = vrcp.f32 %v8545_v35  ;;  %v8546_v59 = vadd.f32 1e-05, %v8542_v3 }
0x1be6   :  { %v10570_v57 = vpop.eup %10569  ;;  %10575 = vrcp.f32 %v8546_v59 }
0x1be7   :  { %v8551_v37 = vmul.f32 %v10570_v57, %v12781_v29 }
0x1be8   :  { %v10572_v31 = vpop.eup %10571 }
0x1be9   :  { %v8559_v28 = vmul.f32 %v8983_v51, %v8551_v37  ;;  %v8552_v56 = vmul.f32 %v10572_v31, %v12783_v11 }
0x1beb   :  { %v8567_v49 = vadd.f32 %v8984_v30, %v8559_v28  ;;  %v8560_v25 = vmul.f32 %v8983_v51, %v8552_v56 }
0x1bed   :  { %8571 = vst [vmem:[#allocation22] sm:$0xff] %v8567_v49  ;;  %v8568_v52 = vadd.f32 %v8984_v30, %v8560_v25 }
0x1bee   :  { %v10574_v50 = vpop.eup %10573 }
0x1bef   :  { %v8553_v14 = vmul.f32 %v10574_v50, %v12789_v44  ;;  %8572 = vst [vmem:[#allocation22 + $0x8] sm:$0xff] %v8568_v52 }
0x1bf0   :  { %v10576_v47 = vpop.eup %10575 }
0x1bf1   :  { %v8561_v40 = vmul.f32 %v8983_v51, %v8553_v14  ;;  %v8554_v46 = vmul.f32 %v10576_v47, %v12791_v17 }
0x1bf3   :  { %v8569_v23 = vadd.f32 %v8984_v30, %v8561_v40  ;;  %v8562_v5 = vmul.f32 %v8983_v51, %v8554_v46 }
0x1bf5   :  { %8573 = vst [vmem:[#allocation22 + $0x10] sm:$0xff] %v8569_v23  ;;  %v8570_v26 = vadd.f32 %v8984_v30, %v8562_v5 }
0x1bf7   :  { %8574 = vst [vmem:[#allocation22 + $0x18] sm:$0xff] %v8570_v26 }
0x1bf8   :  { %10856 = shalt.err (!%p10853_p2)
}
0x1bf9   :  { %s10857_s1 = scalar_lea.hbm %s12841_s19, 512 }
0x1bfa   :  { %p10858_p3 = scmp.ne.s32.totalorder %s12841_s19, %s10857_s1  ;;  %p10861_p4 = scmp.lt.u32.totalorder %s10857_s1, %s12841_s19 }
0x1bfc   :  { %p10863_p5 = pnand %p10861_p4, %p10858_p3 }
0x1bfe   :  { %10866 = shalt.err (!%p10863_p5)
}
0x1bff   :  { %8586 = dma.vmem_to_hbm [thread:$0]  %s8581_s26, 512, %s12841_s19, [#allocation4], %s12855_s11, %s12855_s11, %s10886_s29  }
0x1c00   :  { %10881 = dma.done.wait [#allocation4], 512  }
0x1c01   :  { %10882 = vsyncadd [#allocation4], 4294966784 }
0x1c02   :  { %8590 = vsyncpa [#allocation3], 1 }
0x1c03   :  { %8591 = vsyncpa [#allocation6], 1 }
0x1c04   :  { %8592 = vsyncpa [#allocation9], 1 }
0x1c05   :  { %8593 = vsyncpa [#allocation12], 1 }
0x1c06   :  { %8594 = vsyncpa [#allocation15], 1 }
0x1c07   :  { %8595 = vsyncpa [#allocation18], 1 }
0x1c08   :  { %8596 = vsyncpa [#allocation21], 1 }
0x1c09   :  { %8597 = vsyncpa [#allocation4], 1 }

</bundles_post_ra>
